<compile_context>
chip_gen: v5e
topology: v5e:2x2
jax: 0.10.0
libtpu: 0.0.40
codegen_flags: <defaults>
</compile_context>

<pallas_src>
import functools
import numpy as np
import jax
import jax.numpy as jnp
from jax.experimental import pallas as pl
from jax.experimental.pallas import tpu as pltpu

PATCH = 7       # census patch size
PAD = 3         # conv2d padding (patch // 2)
MASK_PAD = 1    # valid_mask padding


def _round_up(x, m):
    return (x + m - 1) // m * m


def _ternary_kernel(g0_ref, g1_ref, out_ref, s0_scr, s1_scr, *, H, W, TH, Wc):
    """One (batch, row-strip) grid step.

    g*_ref : (1, 1, TH+6, Wc+6) zero-padded gray strip
             (rows strip*TH-3 .. strip*TH+TH+2 of the padded image)
    out_ref: (1, 1, 8, 128) lane-dense tile holding this block's partial sum (splatted)
    s*_scr : (TH+6, Wc) VMEM scratch for the column-shifted slabs
    """
    strip = pl.program_id(1)
    row0 = strip * TH                       # first output row of this strip

    # Census centers (the un-shifted gray pixels of this strip).
    c0 = g0_ref[0, 0, PAD:PAD + TH, PAD:PAD + Wc]
    c1 = g1_ref[0, 0, PAD:PAD + TH, PAD:PAD + Wc]

    acc = jnp.zeros((TH, Wc), jnp.float32)
    # Identity 7x7 conv == 49 static shifts of the padded image.  Stage the
    # (lane-shift) column offset once per dj into scratch; the 7 row offsets are
    # sublane-only slices of it.
    for dj in range(PATCH):
        s0_scr[...] = g0_ref[0, 0, :, dj:dj + Wc]
        s1_scr[...] = g1_ref[0, 0, :, dj:dj + Wc]
        for di in range(PATCH):
            if di == PAD and dj == PAD:
                # Center tap: patch == center, so u == 0, t == 0, d == 0 and the
                # hamming term is exactly zero.  Skipping it is bit-exact.
                continue
            p0 = s0_scr[di:di + TH, :]
            p1 = s1_scr[di:di + TH, :]
            # transform: t = u * rsqrt(0.81 + u^2),  u = patch - center   (EUP rsqrt)
            u0 = p0 - c0
            t0 = u0 * jax.lax.rsqrt(0.81 + u0 * u0)
            u1 = p1 - c1
            t1 = u1 * jax.lax.rsqrt(0.81 + u1 * u1)
            # hamming: d / (0.1 + d)  (approximate EUP reciprocal)
            e = t0 - t1
            d = e * e
            acc = acc + d * pl.reciprocal(0.1 + d, approx=True)

    dist_norm = acc * (1.0 / (PATCH * PATCH))   # mean over the 49 "channels"

    # valid_mask(img, padding=1) restricted to this strip; also drops the
    # rows/cols that were only added for strip / lane alignment.
    row = jax.lax.broadcasted_iota(jnp.int32, (TH, Wc), 0) + row0
    col = jax.lax.broadcasted_iota(jnp.int32, (TH, Wc), 1)
    valid = ((row >= MASK_PAD) & (row <= H - 1 - MASK_PAD) &
             (col >= MASK_PAD) & (col <= W - 1 - MASK_PAD))
    part_sum = jnp.sum(jnp.where(valid, dist_norm, 0.0))

    # Lane-dense (unmasked) store of the partial sum; wrapper reads [0, 0].
    out_ref[...] = jnp.full(out_ref.shape, part_sum, jnp.float32)


def ternary_loss(img0, img1, *, strip_rows=64):
    """Pallas TPU implementation of Ternary()(img0, img1), NCHW float inputs."""
    N, C, H, W = img0.shape
    assert C == 3

    # rgb2gray in plain JAX so the kernel only streams one channel.
    def gray(x):
        x = x.astype(jnp.float32)
        return 0.2989 * x[:, 0] + 0.587 * x[:, 1] + 0.114 * x[:, 2]   # (N, H, W)

    g0 = gray(img0)
    g1 = gray(img1)

    TH = min(strip_rows, _round_up(H, 8))     # output rows per grid step (mult of 8)
    Hc = _round_up(H, TH)                     # rows padded to whole strips
    Wc = _round_up(W, 128)                    # lane-dense compute width
    S = Hc // TH
    THp, Wp = TH + 2 * PAD, Wc + 2 * PAD

    # conv zero-padding (3) + alignment padding (zeros; masked out in-kernel)
    pad = ((0, 0), (PAD, PAD + Hc - H), (PAD, PAD + Wc - W))
    g0p = jnp.pad(g0, pad)                    # (N, Hc + 6, Wp)
    g1p = jnp.pad(g1, pad)

    # Pre-materialize overlapping row strips (6-row halo) so every grid step sees a
    # small fixed-size block: bounded VMEM, pipelined DMA, fully parallel grid.
    def strips(gp):
        return jnp.stack([gp[:, s * TH: s * TH + THp, :] for s in range(S)], axis=1)

    g0s = strips(g0p)                         # (N, S, THp, Wp)
    g1s = strips(g1p)

    kernel = functools.partial(_ternary_kernel, H=H, W=W, TH=TH, Wc=Wc)
    partials = pl.pallas_call(
        kernel,
        out_shape=jax.ShapeDtypeStruct((N, S, 8, 128), jnp.float32),
        grid_spec=pltpu.PrefetchScalarGridSpec(
            num_scalar_prefetch=0,
            grid=(N, S),
            in_specs=[
                pl.BlockSpec((1, 1, THp, Wp), lambda n, s: (n, s, 0, 0)),
                pl.BlockSpec((1, 1, THp, Wp), lambda n, s: (n, s, 0, 0)),
            ],
            out_specs=pl.BlockSpec((1, 1, 8, 128), lambda n, s: (n, s, 0, 0)),
            scratch_shapes=[
                pltpu.VMEM((THp, Wc), jnp.float32),
                pltpu.VMEM((THp, Wc), jnp.float32),
            ],
        ),
        compiler_params=pltpu.CompilerParams(
            dimension_semantics=("parallel", "parallel"),
            vmem_limit_bytes=32 << 20,   # safe on all generations; strips are small
        ),
    )(g0s, g1s)

    total = jnp.sum(partials[:, :, 0, 0])
    # final .mean() over the (N, 1, H, W) masked hamming map
    return total / (N * 1 * H * W)


def _reference(img0, img1):
    # pure-JAX re-implementation of the PyTorch forward, for verification
    def gray(x):
        return 0.2989 * x[:, 0:1] + 0.587 * x[:, 1:2] + 0.114 * x[:, 2:3]

    def transform(g):
        N, _, H, W = g.shape
        gp = jnp.pad(g, ((0, 0), (0, 0), (PAD, PAD), (PAD, PAD)))
        patches = jnp.stack(
            [gp[:, 0, di:di + H, dj:dj + W]
             for di in range(PATCH) for dj in range(PATCH)], axis=1)
        t = patches - g
        return t / jnp.sqrt(0.81 + t * t)

    t0 = transform(gray(img0))
    t1 = transform(gray(img1))
    d = (t0 - t1) ** 2
    dn = jnp.mean(d / (0.1 + d), axis=1, keepdims=True)
    N, _, H, W = img0.shape
    mask = jnp.pad(jnp.ones((N, 1, H - 2, W - 2), jnp.float32),
                   ((0, 0), (0, 0), (1, 1), (1, 1)))
    return jnp.mean(dn * mask)


if __name__ == "__main__":
    key = jax.random.PRNGKey(0)
    k0, k1 = jax.random.split(key)
    img0 = jax.random.uniform(k0, (2, 3, 16, 16), dtype=jnp.float32)
    img1 = jax.random.uniform(k1, (2, 3, 16, 16), dtype=jnp.float32)

    out = jax.block_until_ready(ternary_loss(img0, img1))
    ref = jax.block_until_ready(_reference(img0, img1))
    # approx reciprocal / rsqrt introduce ~1e-3-level relative deviations vs. the
    # exact reference, so the tolerance is loosened accordingly.
    assert np.allclose(np.asarray(out), np.asarray(ref), rtol=1e-2, atol=1e-4), (out, ref)
    print("KERNEL_OK")
</pallas_src>

<mosaic_0001>
module attributes {stable_mosaic.version = 11 : i64} {
  func.func @_ternary_kernel(%arg0: i32, %arg1: i32, %arg2: memref<1x1x22x134xf32, #tpu.memory_space<vmem>>, %arg3: memref<1x1x22x134xf32, #tpu.memory_space<vmem>>, %arg4: memref<1x1x8x128xf32, #tpu.memory_space<vmem>>, %arg5: memref<22x128xf32, #tpu.memory_space<vmem>>, %arg6: memref<22x128xf32, #tpu.memory_space<vmem>>) attributes {dimension_semantics = [#tpu.dimension_semantics<parallel>, #tpu.dimension_semantics<parallel>], iteration_bounds = array<i64: 2, 1>, scalar_prefetch = 0 : i64, scratch_operands = 2 : i64, tpu.core_type = #tpu.core_type<tc>, window_params = [{transform_indices = @transform_0, window_bounds = array<i64: 1, 1, 22, 134>}, {transform_indices = @transform_1, window_bounds = array<i64: 1, 1, 22, 134>}, {transform_indices = @transform_2, window_bounds = array<i64: 1, 1, 8, 128>}]} {
    %c16_i32 = arith.constant 16 : i32
    %0 = arith.muli %arg1, %c16_i32 : i32
    %c0 = arith.constant 0 : index
    %c0_0 = arith.constant 0 : index
    %c3 = arith.constant 3 : index
    %c3_1 = arith.constant 3 : index
    %1 = vector.load %arg2[%c0, %c0_0, %c3, %c3_1] : memref<1x1x22x134xf32, #tpu.memory_space<vmem>>, vector<1x1x16x128xf32>
    %2 = vector.shape_cast %1 : vector<1x1x16x128xf32> to vector<16x128xf32>
    %c0_2 = arith.constant 0 : index
    %c0_3 = arith.constant 0 : index
    %c3_4 = arith.constant 3 : index
    %c3_5 = arith.constant 3 : index
    %3 = vector.load %arg3[%c0_2, %c0_3, %c3_4, %c3_5] : memref<1x1x22x134xf32, #tpu.memory_space<vmem>>, vector<1x1x16x128xf32>
    %4 = vector.shape_cast %3 : vector<1x1x16x128xf32> to vector<16x128xf32>
    %cst = arith.constant 0.000000e+00 : f32
    %5 = vector.broadcast %cst : f32 to vector<16x128xf32>
    %c0_6 = arith.constant 0 : index
    %c0_7 = arith.constant 0 : index
    %c0_8 = arith.constant 0 : index
    %c0_9 = arith.constant 0 : index
    %6 = vector.load %arg2[%c0_6, %c0_7, %c0_8, %c0_9] : memref<1x1x22x134xf32, #tpu.memory_space<vmem>>, vector<1x1x22x128xf32>
    %7 = vector.shape_cast %6 : vector<1x1x22x128xf32> to vector<22x128xf32>
    %c0_10 = arith.constant 0 : index
    %c0_11 = arith.constant 0 : index
    %8 = vector.load %arg5[%c0_10, %c0_11] : memref<22x128xf32, #tpu.memory_space<vmem>>, vector<22x128xf32>
    tpu.vector_store %arg5[%c0_10, %c0_11], %7 {strides = array<i32>} : memref<22x128xf32, #tpu.memory_space<vmem>>, vector<22x128xf32>,
    %c0_12 = arith.constant 0 : index
    %c0_13 = arith.constant 0 : index
    %c0_14 = arith.constant 0 : index
    %c0_15 = arith.constant 0 : index
    %9 = vector.load %arg3[%c0_12, %c0_13, %c0_14, %c0_15] : memref<1x1x22x134xf32, #tpu.memory_space<vmem>>, vector<1x1x22x128xf32>
    %10 = vector.shape_cast %9 : vector<1x1x22x128xf32> to vector<22x128xf32>
    %c0_16 = arith.constant 0 : index
    %c0_17 = arith.constant 0 : index
    %11 = vector.load %arg6[%c0_16, %c0_17] : memref<22x128xf32, #tpu.memory_space<vmem>>, vector<22x128xf32>
    tpu.vector_store %arg6[%c0_16, %c0_17], %10 {strides = array<i32>} : memref<22x128xf32, #tpu.memory_space<vmem>>, vector<22x128xf32>,
    %c0_18 = arith.constant 0 : index
    %c0_19 = arith.constant 0 : index
    %12 = vector.load %arg5[%c0_18, %c0_19] : memref<22x128xf32, #tpu.memory_space<vmem>>, vector<16x128xf32>
    %c0_20 = arith.constant 0 : index
    %c0_21 = arith.constant 0 : index
    %13 = vector.load %arg6[%c0_20, %c0_21] : memref<22x128xf32, #tpu.memory_space<vmem>>, vector<16x128xf32>
    %14 = arith.subf %12, %2 : vector<16x128xf32>
    %15 = arith.mulf %14, %14 : vector<16x128xf32>
    %cst_22 = arith.constant 8.100000e-01 : f32
    %16 = vector.broadcast %cst_22 : f32 to vector<16x128xf32>
    %17 = arith.addf %16, %15 : vector<16x128xf32>
    %18 = math.rsqrt %17 : vector<16x128xf32>
    %19 = arith.mulf %14, %18 : vector<16x128xf32>
    %20 = arith.subf %13, %4 : vector<16x128xf32>
    %21 = arith.mulf %20, %20 : vector<16x128xf32>
    %cst_23 = arith.constant 8.100000e-01 : f32
    %22 = vector.broadcast %cst_23 : f32 to vector<16x128xf32>
    %23 = arith.addf %22, %21 : vector<16x128xf32>
    %24 = math.rsqrt %23 : vector<16x128xf32>
    %25 = arith.mulf %20, %24 : vector<16x128xf32>
    %26 = arith.subf %19, %25 : vector<16x128xf32>
    %27 = arith.mulf %26, %26 : vector<16x128xf32>
    %cst_24 = arith.constant 1.000000e-01 : f32
    %28 = vector.broadcast %cst_24 : f32 to vector<16x128xf32>
    %29 = arith.addf %28, %27 : vector<16x128xf32>
    %30 = tpu.reciprocal %29 {approx = true} : vector<16x128xf32> -> vector<16x128xf32>
    %31 = arith.mulf %27, %30 : vector<16x128xf32>
    %32 = arith.addf %5, %31 : vector<16x128xf32>
    %c1 = arith.constant 1 : index
    %c0_25 = arith.constant 0 : index
    %33 = vector.load %arg5[%c1, %c0_25] : memref<22x128xf32, #tpu.memory_space<vmem>>, vector<16x128xf32>
    %c1_26 = arith.constant 1 : index
    %c0_27 = arith.constant 0 : index
    %34 = vector.load %arg6[%c1_26, %c0_27] : memref<22x128xf32, #tpu.memory_space<vmem>>, vector<16x128xf32>
    %35 = arith.subf %33, %2 : vector<16x128xf32>
    %36 = arith.mulf %35, %35 : vector<16x128xf32>
    %cst_28 = arith.constant 8.100000e-01 : f32
    %37 = vector.broadcast %cst_28 : f32 to vector<16x128xf32>
    %38 = arith.addf %37, %36 : vector<16x128xf32>
    %39 = math.rsqrt %38 : vector<16x128xf32>
    %40 = arith.mulf %35, %39 : vector<16x128xf32>
    %41 = arith.subf %34, %4 : vector<16x128xf32>
    %42 = arith.mulf %41, %41 : vector<16x128xf32>
    %cst_29 = arith.constant 8.100000e-01 : f32
    %43 = vector.broadcast %cst_29 : f32 to vector<16x128xf32>
    %44 = arith.addf %43, %42 : vector<16x128xf32>
    %45 = math.rsqrt %44 : vector<16x128xf32>
    %46 = arith.mulf %41, %45 : vector<16x128xf32>
    %47 = arith.subf %40, %46 : vector<16x128xf32>
    %48 = arith.mulf %47, %47 : vector<16x128xf32>
    %cst_30 = arith.constant 1.000000e-01 : f32
    %49 = vector.broadcast %cst_30 : f32 to vector<16x128xf32>
    %50 = arith.addf %49, %48 : vector<16x128xf32>
    %51 = tpu.reciprocal %50 {approx = true} : vector<16x128xf32> -> vector<16x128xf32>
    %52 = arith.mulf %48, %51 : vector<16x128xf32>
    %53 = arith.addf %32, %52 : vector<16x128xf32>
    %c2 = arith.constant 2 : index
    %c0_31 = arith.constant 0 : index
    %54 = vector.load %arg5[%c2, %c0_31] : memref<22x128xf32, #tpu.memory_space<vmem>>, vector<16x128xf32>
    %c2_32 = arith.constant 2 : index
    %c0_33 = arith.constant 0 : index
    %55 = vector.load %arg6[%c2_32, %c0_33] : memref<22x128xf32, #tpu.memory_space<vmem>>, vector<16x128xf32>
    %56 = arith.subf %54, %2 : vector<16x128xf32>
    %57 = arith.mulf %56, %56 : vector<16x128xf32>
    %cst_34 = arith.constant 8.100000e-01 : f32
    %58 = vector.broadcast %cst_34 : f32 to vector<16x128xf32>
    %59 = arith.addf %58, %57 : vector<16x128xf32>
    %60 = math.rsqrt %59 : vector<16x128xf32>
    %61 = arith.mulf %56, %60 : vector<16x128xf32>
    %62 = arith.subf %55, %4 : vector<16x128xf32>
    %63 = arith.mulf %62, %62 : vector<16x128xf32>
    %cst_35 = arith.constant 8.100000e-01 : f32
    %64 = vector.broadcast %cst_35 : f32 to vector<16x128xf32>
    %65 = arith.addf %64, %63 : vector<16x128xf32>
    %66 = math.rsqrt %65 : vector<16x128xf32>
    %67 = arith.mulf %62, %66 : vector<16x128xf32>
    %68 = arith.subf %61, %67 : vector<16x128xf32>
    %69 = arith.mulf %68, %68 : vector<16x128xf32>
    %cst_36 = arith.constant 1.000000e-01 : f32
    %70 = vector.broadcast %cst_36 : f32 to vector<16x128xf32>
    %71 = arith.addf %70, %69 : vector<16x128xf32>
    %72 = tpu.reciprocal %71 {approx = true} : vector<16x128xf32> -> vector<16x128xf32>
    %73 = arith.mulf %69, %72 : vector<16x128xf32>
    %74 = arith.addf %53, %73 : vector<16x128xf32>
    %c3_37 = arith.constant 3 : index
    %c0_38 = arith.constant 0 : index
    %75 = vector.load %arg5[%c3_37, %c0_38] : memref<22x128xf32, #tpu.memory_space<vmem>>, vector<16x128xf32>
    %c3_39 = arith.constant 3 : index
    %c0_40 = arith.constant 0 : index
    %76 = vector.load %arg6[%c3_39, %c0_40] : memref<22x128xf32, #tpu.memory_space<vmem>>, vector<16x128xf32>
    %77 = arith.subf %75, %2 : vector<16x128xf32>
    %78 = arith.mulf %77, %77 : vector<16x128xf32>
    %cst_41 = arith.constant 8.100000e-01 : f32
    %79 = vector.broadcast %cst_41 : f32 to vector<16x128xf32>
    %80 = arith.addf %79, %78 : vector<16x128xf32>
    %81 = math.rsqrt %80 : vector<16x128xf32>
    %82 = arith.mulf %77, %81 : vector<16x128xf32>
    %83 = arith.subf %76, %4 : vector<16x128xf32>
    %84 = arith.mulf %83, %83 : vector<16x128xf32>
    %cst_42 = arith.constant 8.100000e-01 : f32
    %85 = vector.broadcast %cst_42 : f32 to vector<16x128xf32>
    %86 = arith.addf %85, %84 : vector<16x128xf32>
    %87 = math.rsqrt %86 : vector<16x128xf32>
    %88 = arith.mulf %83, %87 : vector<16x128xf32>
    %89 = arith.subf %82, %88 : vector<16x128xf32>
    %90 = arith.mulf %89, %89 : vector<16x128xf32>
    %cst_43 = arith.constant 1.000000e-01 : f32
    %91 = vector.broadcast %cst_43 : f32 to vector<16x128xf32>
    %92 = arith.addf %91, %90 : vector<16x128xf32>
    %93 = tpu.reciprocal %92 {approx = true} : vector<16x128xf32> -> vector<16x128xf32>
    %94 = arith.mulf %90, %93 : vector<16x128xf32>
    %95 = arith.addf %74, %94 : vector<16x128xf32>
    %c4 = arith.constant 4 : index
    %c0_44 = arith.constant 0 : index
    %96 = vector.load %arg5[%c4, %c0_44] : memref<22x128xf32, #tpu.memory_space<vmem>>, vector<16x128xf32>
    %c4_45 = arith.constant 4 : index
    %c0_46 = arith.constant 0 : index
    %97 = vector.load %arg6[%c4_45, %c0_46] : memref<22x128xf32, #tpu.memory_space<vmem>>, vector<16x128xf32>
    %98 = arith.subf %96, %2 : vector<16x128xf32>
    %99 = arith.mulf %98, %98 : vector<16x128xf32>
    %cst_47 = arith.constant 8.100000e-01 : f32
    %100 = vector.broadcast %cst_47 : f32 to vector<16x128xf32>
    %101 = arith.addf %100, %99 : vector<16x128xf32>
    %102 = math.rsqrt %101 : vector<16x128xf32>
    %103 = arith.mulf %98, %102 : vector<16x128xf32>
    %104 = arith.subf %97, %4 : vector<16x128xf32>
    %105 = arith.mulf %104, %104 : vector<16x128xf32>
    %cst_48 = arith.constant 8.100000e-01 : f32
    %106 = vector.broadcast %cst_48 : f32 to vector<16x128xf32>
    %107 = arith.addf %106, %105 : vector<16x128xf32>
    %108 = math.rsqrt %107 : vector<16x128xf32>
    %109 = arith.mulf %104, %108 : vector<16x128xf32>
    %110 = arith.subf %103, %109 : vector<16x128xf32>
    %111 = arith.mulf %110, %110 : vector<16x128xf32>
    %cst_49 = arith.constant 1.000000e-01 : f32
    %112 = vector.broadcast %cst_49 : f32 to vector<16x128xf32>
    %113 = arith.addf %112, %111 : vector<16x128xf32>
    %114 = tpu.reciprocal %113 {approx = true} : vector<16x128xf32> -> vector<16x128xf32>
    %115 = arith.mulf %111, %114 : vector<16x128xf32>
    %116 = arith.addf %95, %115 : vector<16x128xf32>
    %c5 = arith.constant 5 : index
    %c0_50 = arith.constant 0 : index
    %117 = vector.load %arg5[%c5, %c0_50] : memref<22x128xf32, #tpu.memory_space<vmem>>, vector<16x128xf32>
    %c5_51 = arith.constant 5 : index
    %c0_52 = arith.constant 0 : index
    %118 = vector.load %arg6[%c5_51, %c0_52] : memref<22x128xf32, #tpu.memory_space<vmem>>, vector<16x128xf32>
    %119 = arith.subf %117, %2 : vector<16x128xf32>
    %120 = arith.mulf %119, %119 : vector<16x128xf32>
    %cst_53 = arith.constant 8.100000e-01 : f32
    %121 = vector.broadcast %cst_53 : f32 to vector<16x128xf32>
    %122 = arith.addf %121, %120 : vector<16x128xf32>
    %123 = math.rsqrt %122 : vector<16x128xf32>
    %124 = arith.mulf %119, %123 : vector<16x128xf32>
    %125 = arith.subf %118, %4 : vector<16x128xf32>
    %126 = arith.mulf %125, %125 : vector<16x128xf32>
    %cst_54 = arith.constant 8.100000e-01 : f32
    %127 = vector.broadcast %cst_54 : f32 to vector<16x128xf32>
    %128 = arith.addf %127, %126 : vector<16x128xf32>
    %129 = math.rsqrt %128 : vector<16x128xf32>
    %130 = arith.mulf %125, %129 : vector<16x128xf32>
    %131 = arith.subf %124, %130 : vector<16x128xf32>
    %132 = arith.mulf %131, %131 : vector<16x128xf32>
    %cst_55 = arith.constant 1.000000e-01 : f32
    %133 = vector.broadcast %cst_55 : f32 to vector<16x128xf32>
    %134 = arith.addf %133, %132 : vector<16x128xf32>
    %135 = tpu.reciprocal %134 {approx = true} : vector<16x128xf32> -> vector<16x128xf32>
    %136 = arith.mulf %132, %135 : vector<16x128xf32>
    %137 = arith.addf %116, %136 : vector<16x128xf32>
    %c6 = arith.constant 6 : index
    %c0_56 = arith.constant 0 : index
    %138 = vector.load %arg5[%c6, %c0_56] : memref<22x128xf32, #tpu.memory_space<vmem>>, vector<16x128xf32>
    %c6_57 = arith.constant 6 : index
    %c0_58 = arith.constant 0 : index
    %139 = vector.load %arg6[%c6_57, %c0_58] : memref<22x128xf32, #tpu.memory_space<vmem>>, vector<16x128xf32>
    %140 = arith.subf %138, %2 : vector<16x128xf32>
    %141 = arith.mulf %140, %140 : vector<16x128xf32>
    %cst_59 = arith.constant 8.100000e-01 : f32
    %142 = vector.broadcast %cst_59 : f32 to vector<16x128xf32>
    %143 = arith.addf %142, %141 : vector<16x128xf32>
    %144 = math.rsqrt %143 : vector<16x128xf32>
    %145 = arith.mulf %140, %144 : vector<16x128xf32>
    %146 = arith.subf %139, %4 : vector<16x128xf32>
    %147 = arith.mulf %146, %146 : vector<16x128xf32>
    %cst_60 = arith.constant 8.100000e-01 : f32
    %148 = vector.broadcast %cst_60 : f32 to vector<16x128xf32>
    %149 = arith.addf %148, %147 : vector<16x128xf32>
    %150 = math.rsqrt %149 : vector<16x128xf32>
    %151 = arith.mulf %146, %150 : vector<16x128xf32>
    %152 = arith.subf %145, %151 : vector<16x128xf32>
    %153 = arith.mulf %152, %152 : vector<16x128xf32>
    %cst_61 = arith.constant 1.000000e-01 : f32
    %154 = vector.broadcast %cst_61 : f32 to vector<16x128xf32>
    %155 = arith.addf %154, %153 : vector<16x128xf32>
    %156 = tpu.reciprocal %155 {approx = true} : vector<16x128xf32> -> vector<16x128xf32>
    %157 = arith.mulf %153, %156 : vector<16x128xf32>
    %158 = arith.addf %137, %157 : vector<16x128xf32>
    %c0_62 = arith.constant 0 : index
    %c0_63 = arith.constant 0 : index
    %c0_64 = arith.constant 0 : index
    %c1_65 = arith.constant 1 : index
    %159 = vector.load %arg2[%c0_62, %c0_63, %c0_64, %c1_65] : memref<1x1x22x134xf32, #tpu.memory_space<vmem>>, vector<1x1x22x128xf32>
    %160 = vector.shape_cast %159 : vector<1x1x22x128xf32> to vector<22x128xf32>
    %c0_66 = arith.constant 0 : index
    %c0_67 = arith.constant 0 : index
    %161 = vector.load %arg5[%c0_66, %c0_67] : memref<22x128xf32, #tpu.memory_space<vmem>>, vector<22x128xf32>
    tpu.vector_store %arg5[%c0_66, %c0_67], %160 {strides = array<i32>} : memref<22x128xf32, #tpu.memory_space<vmem>>, vector<22x128xf32>,
    %c0_68 = arith.constant 0 : index
    %c0_69 = arith.constant 0 : index
    %c0_70 = arith.constant 0 : index
    %c1_71 = arith.constant 1 : index
    %162 = vector.load %arg3[%c0_68, %c0_69, %c0_70, %c1_71] : memref<1x1x22x134xf32, #tpu.memory_space<vmem>>, vector<1x1x22x128xf32>
    %163 = vector.shape_cast %162 : vector<1x1x22x128xf32> to vector<22x128xf32>
    %c0_72 = arith.constant 0 : index
    %c0_73 = arith.constant 0 : index
    %164 = vector.load %arg6[%c0_72, %c0_73] : memref<22x128xf32, #tpu.memory_space<vmem>>, vector<22x128xf32>
    tpu.vector_store %arg6[%c0_72, %c0_73], %163 {strides = array<i32>} : memref<22x128xf32, #tpu.memory_space<vmem>>, vector<22x128xf32>,
    %c0_74 = arith.constant 0 : index
    %c0_75 = arith.constant 0 : index
    %165 = vector.load %arg5[%c0_74, %c0_75] : memref<22x128xf32, #tpu.memory_space<vmem>>, vector<16x128xf32>
    %c0_76 = arith.constant 0 : index
    %c0_77 = arith.constant 0 : index
    %166 = vector.load %arg6[%c0_76, %c0_77] : memref<22x128xf32, #tpu.memory_space<vmem>>, vector<16x128xf32>
    %167 = arith.subf %165, %2 : vector<16x128xf32>
    %168 = arith.mulf %167, %167 : vector<16x128xf32>
    %cst_78 = arith.constant 8.100000e-01 : f32
    %169 = vector.broadcast %cst_78 : f32 to vector<16x128xf32>
    %170 = arith.addf %169, %168 : vector<16x128xf32>
    %171 = math.rsqrt %170 : vector<16x128xf32>
    %172 = arith.mulf %167, %171 : vector<16x128xf32>
    %173 = arith.subf %166, %4 : vector<16x128xf32>
    %174 = arith.mulf %173, %173 : vector<16x128xf32>
    %cst_79 = arith.constant 8.100000e-01 : f32
    %175 = vector.broadcast %cst_79 : f32 to vector<16x128xf32>
    %176 = arith.addf %175, %174 : vector<16x128xf32>
    %177 = math.rsqrt %176 : vector<16x128xf32>
    %178 = arith.mulf %173, %177 : vector<16x128xf32>
    %179 = arith.subf %172, %178 : vector<16x128xf32>
    %180 = arith.mulf %179, %179 : vector<16x128xf32>
    %cst_80 = arith.constant 1.000000e-01 : f32
    %181 = vector.broadcast %cst_80 : f32 to vector<16x128xf32>
    %182 = arith.addf %181, %180 : vector<16x128xf32>
    %183 = tpu.reciprocal %182 {approx = true} : vector<16x128xf32> -> vector<16x128xf32>
    %184 = arith.mulf %180, %183 : vector<16x128xf32>
    %185 = arith.addf %158, %184 : vector<16x128xf32>
    %c1_81 = arith.constant 1 : index
    %c0_82 = arith.constant 0 : index
    %186 = vector.load %arg5[%c1_81, %c0_82] : memref<22x128xf32, #tpu.memory_space<vmem>>, vector<16x128xf32>
    %c1_83 = arith.constant 1 : index
    %c0_84 = arith.constant 0 : index
    %187 = vector.load %arg6[%c1_83, %c0_84] : memref<22x128xf32, #tpu.memory_space<vmem>>, vector<16x128xf32>
    %188 = arith.subf %186, %2 : vector<16x128xf32>
    %189 = arith.mulf %188, %188 : vector<16x128xf32>
    %cst_85 = arith.constant 8.100000e-01 : f32
    %190 = vector.broadcast %cst_85 : f32 to vector<16x128xf32>
    %191 = arith.addf %190, %189 : vector<16x128xf32>
    %192 = math.rsqrt %191 : vector<16x128xf32>
    %193 = arith.mulf %188, %192 : vector<16x128xf32>
    %194 = arith.subf %187, %4 : vector<16x128xf32>
    %195 = arith.mulf %194, %194 : vector<16x128xf32>
    %cst_86 = arith.constant 8.100000e-01 : f32
    %196 = vector.broadcast %cst_86 : f32 to vector<16x128xf32>
    %197 = arith.addf %196, %195 : vector<16x128xf32>
    %198 = math.rsqrt %197 : vector<16x128xf32>
    %199 = arith.mulf %194, %198 : vector<16x128xf32>
    %200 = arith.subf %193, %199 : vector<16x128xf32>
    %201 = arith.mulf %200, %200 : vector<16x128xf32>
    %cst_87 = arith.constant 1.000000e-01 : f32
    %202 = vector.broadcast %cst_87 : f32 to vector<16x128xf32>
    %203 = arith.addf %202, %201 : vector<16x128xf32>
    %204 = tpu.reciprocal %203 {approx = true} : vector<16x128xf32> -> vector<16x128xf32>
    %205 = arith.mulf %201, %204 : vector<16x128xf32>
    %206 = arith.addf %185, %205 : vector<16x128xf32>
    %c2_88 = arith.constant 2 : index
    %c0_89 = arith.constant 0 : index
    %207 = vector.load %arg5[%c2_88, %c0_89] : memref<22x128xf32, #tpu.memory_space<vmem>>, vector<16x128xf32>
    %c2_90 = arith.constant 2 : index
    %c0_91 = arith.constant 0 : index
    %208 = vector.load %arg6[%c2_90, %c0_91] : memref<22x128xf32, #tpu.memory_space<vmem>>, vector<16x128xf32>
    %209 = arith.subf %207, %2 : vector<16x128xf32>
    %210 = arith.mulf %209, %209 : vector<16x128xf32>
    %cst_92 = arith.constant 8.100000e-01 : f32
    %211 = vector.broadcast %cst_92 : f32 to vector<16x128xf32>
    %212 = arith.addf %211, %210 : vector<16x128xf32>
    %213 = math.rsqrt %212 : vector<16x128xf32>
    %214 = arith.mulf %209, %213 : vector<16x128xf32>
    %215 = arith.subf %208, %4 : vector<16x128xf32>
    %216 = arith.mulf %215, %215 : vector<16x128xf32>
    %cst_93 = arith.constant 8.100000e-01 : f32
    %217 = vector.broadcast %cst_93 : f32 to vector<16x128xf32>
    %218 = arith.addf %217, %216 : vector<16x128xf32>
    %219 = math.rsqrt %218 : vector<16x128xf32>
    %220 = arith.mulf %215, %219 : vector<16x128xf32>
    %221 = arith.subf %214, %220 : vector<16x128xf32>
    %222 = arith.mulf %221, %221 : vector<16x128xf32>
    %cst_94 = arith.constant 1.000000e-01 : f32
    %223 = vector.broadcast %cst_94 : f32 to vector<16x128xf32>
    %224 = arith.addf %223, %222 : vector<16x128xf32>
    %225 = tpu.reciprocal %224 {approx = true} : vector<16x128xf32> -> vector<16x128xf32>
    %226 = arith.mulf %222, %225 : vector<16x128xf32>
    %227 = arith.addf %206, %226 : vector<16x128xf32>
    %c3_95 = arith.constant 3 : index
    %c0_96 = arith.constant 0 : index
    %228 = vector.load %arg5[%c3_95, %c0_96] : memref<22x128xf32, #tpu.memory_space<vmem>>, vector<16x128xf32>
    %c3_97 = arith.constant 3 : index
    %c0_98 = arith.constant 0 : index
    %229 = vector.load %arg6[%c3_97, %c0_98] : memref<22x128xf32, #tpu.memory_space<vmem>>, vector<16x128xf32>
    %230 = arith.subf %228, %2 : vector<16x128xf32>
    %231 = arith.mulf %230, %230 : vector<16x128xf32>
    %cst_99 = arith.constant 8.100000e-01 : f32
    %232 = vector.broadcast %cst_99 : f32 to vector<16x128xf32>
    %233 = arith.addf %232, %231 : vector<16x128xf32>
    %234 = math.rsqrt %233 : vector<16x128xf32>
    %235 = arith.mulf %230, %234 : vector<16x128xf32>
    %236 = arith.subf %229, %4 : vector<16x128xf32>
    %237 = arith.mulf %236, %236 : vector<16x128xf32>
    %cst_100 = arith.constant 8.100000e-01 : f32
    %238 = vector.broadcast %cst_100 : f32 to vector<16x128xf32>
    %239 = arith.addf %238, %237 : vector<16x128xf32>
    %240 = math.rsqrt %239 : vector<16x128xf32>
    %241 = arith.mulf %236, %240 : vector<16x128xf32>
    %242 = arith.subf %235, %241 : vector<16x128xf32>
    %243 = arith.mulf %242, %242 : vector<16x128xf32>
    %cst_101 = arith.constant 1.000000e-01 : f32
    %244 = vector.broadcast %cst_101 : f32 to vector<16x128xf32>
    %245 = arith.addf %244, %243 : vector<16x128xf32>
    %246 = tpu.reciprocal %245 {approx = true} : vector<16x128xf32> -> vector<16x128xf32>
    %247 = arith.mulf %243, %246 : vector<16x128xf32>
    %248 = arith.addf %227, %247 : vector<16x128xf32>
    %c4_102 = arith.constant 4 : index
    %c0_103 = arith.constant 0 : index
    %249 = vector.load %arg5[%c4_102, %c0_103] : memref<22x128xf32, #tpu.memory_space<vmem>>, vector<16x128xf32>
    %c4_104 = arith.constant 4 : index
    %c0_105 = arith.constant 0 : index
    %250 = vector.load %arg6[%c4_104, %c0_105] : memref<22x128xf32, #tpu.memory_space<vmem>>, vector<16x128xf32>
    %251 = arith.subf %249, %2 : vector<16x128xf32>
    %252 = arith.mulf %251, %251 : vector<16x128xf32>
    %cst_106 = arith.constant 8.100000e-01 : f32
    %253 = vector.broadcast %cst_106 : f32 to vector<16x128xf32>
    %254 = arith.addf %253, %252 : vector<16x128xf32>
    %255 = math.rsqrt %254 : vector<16x128xf32>
    %256 = arith.mulf %251, %255 : vector<16x128xf32>
    %257 = arith.subf %250, %4 : vector<16x128xf32>
    %258 = arith.mulf %257, %257 : vector<16x128xf32>
    %cst_107 = arith.constant 8.100000e-01 : f32
    %259 = vector.broadcast %cst_107 : f32 to vector<16x128xf32>
    %260 = arith.addf %259, %258 : vector<16x128xf32>
    %261 = math.rsqrt %260 : vector<16x128xf32>
    %262 = arith.mulf %257, %261 : vector<16x128xf32>
    %263 = arith.subf %256, %262 : vector<16x128xf32>
    %264 = arith.mulf %263, %263 : vector<16x128xf32>
    %cst_108 = arith.constant 1.000000e-01 : f32
    %265 = vector.broadcast %cst_108 : f32 to vector<16x128xf32>
    %266 = arith.addf %265, %264 : vector<16x128xf32>
    %267 = tpu.reciprocal %266 {approx = true} : vector<16x128xf32> -> vector<16x128xf32>
    %268 = arith.mulf %264, %267 : vector<16x128xf32>
    %269 = arith.addf %248, %268 : vector<16x128xf32>
    %c5_109 = arith.constant 5 : index
    %c0_110 = arith.constant 0 : index
    %270 = vector.load %arg5[%c5_109, %c0_110] : memref<22x128xf32, #tpu.memory_space<vmem>>, vector<16x128xf32>
    %c5_111 = arith.constant 5 : index
    %c0_112 = arith.constant 0 : index
    %271 = vector.load %arg6[%c5_111, %c0_112] : memref<22x128xf32, #tpu.memory_space<vmem>>, vector<16x128xf32>
    %272 = arith.subf %270, %2 : vector<16x128xf32>
    %273 = arith.mulf %272, %272 : vector<16x128xf32>
    %cst_113 = arith.constant 8.100000e-01 : f32
    %274 = vector.broadcast %cst_113 : f32 to vector<16x128xf32>
    %275 = arith.addf %274, %273 : vector<16x128xf32>
    %276 = math.rsqrt %275 : vector<16x128xf32>
    %277 = arith.mulf %272, %276 : vector<16x128xf32>
    %278 = arith.subf %271, %4 : vector<16x128xf32>
    %279 = arith.mulf %278, %278 : vector<16x128xf32>
    %cst_114 = arith.constant 8.100000e-01 : f32
    %280 = vector.broadcast %cst_114 : f32 to vector<16x128xf32>
    %281 = arith.addf %280, %279 : vector<16x128xf32>
    %282 = math.rsqrt %281 : vector<16x128xf32>
    %283 = arith.mulf %278, %282 : vector<16x128xf32>
    %284 = arith.subf %277, %283 : vector<16x128xf32>
    %285 = arith.mulf %284, %284 : vector<16x128xf32>
    %cst_115 = arith.constant 1.000000e-01 : f32
    %286 = vector.broadcast %cst_115 : f32 to vector<16x128xf32>
    %287 = arith.addf %286, %285 : vector<16x128xf32>
    %288 = tpu.reciprocal %287 {approx = true} : vector<16x128xf32> -> vector<16x128xf32>
    %289 = arith.mulf %285, %288 : vector<16x128xf32>
    %290 = arith.addf %269, %289 : vector<16x128xf32>
    %c6_116 = arith.constant 6 : index
    %c0_117 = arith.constant 0 : index
    %291 = vector.load %arg5[%c6_116, %c0_117] : memref<22x128xf32, #tpu.memory_space<vmem>>, vector<16x128xf32>
    %c6_118 = arith.constant 6 : index
    %c0_119 = arith.constant 0 : index
    %292 = vector.load %arg6[%c6_118, %c0_119] : memref<22x128xf32, #tpu.memory_space<vmem>>, vector<16x128xf32>
    %293 = arith.subf %291, %2 : vector<16x128xf32>
    %294 = arith.mulf %293, %293 : vector<16x128xf32>
    %cst_120 = arith.constant 8.100000e-01 : f32
    %295 = vector.broadcast %cst_120 : f32 to vector<16x128xf32>
    %296 = arith.addf %295, %294 : vector<16x128xf32>
    %297 = math.rsqrt %296 : vector<16x128xf32>
    %298 = arith.mulf %293, %297 : vector<16x128xf32>
    %299 = arith.subf %292, %4 : vector<16x128xf32>
    %300 = arith.mulf %299, %299 : vector<16x128xf32>
    %cst_121 = arith.constant 8.100000e-01 : f32
    %301 = vector.broadcast %cst_121 : f32 to vector<16x128xf32>
    %302 = arith.addf %301, %300 : vector<16x128xf32>
    %303 = math.rsqrt %302 : vector<16x128xf32>
    %304 = arith.mulf %299, %303 : vector<16x128xf32>
    %305 = arith.subf %298, %304 : vector<16x128xf32>
    %306 = arith.mulf %305, %305 : vector<16x128xf32>
    %cst_122 = arith.constant 1.000000e-01 : f32
    %307 = vector.broadcast %cst_122 : f32 to vector<16x128xf32>
    %308 = arith.addf %307, %306 : vector<16x128xf32>
    %309 = tpu.reciprocal %308 {approx = true} : vector<16x128xf32> -> vector<16x128xf32>
    %310 = arith.mulf %306, %309 : vector<16x128xf32>
    %311 = arith.addf %290, %310 : vector<16x128xf32>
    %c0_123 = arith.constant 0 : index
    %c0_124 = arith.constant 0 : index
    %c0_125 = arith.constant 0 : index
    %c2_126 = arith.constant 2 : index
    %312 = vector.load %arg2[%c0_123, %c0_124, %c0_125, %c2_126] : memref<1x1x22x134xf32, #tpu.memory_space<vmem>>, vector<1x1x22x128xf32>
    %313 = vector.shape_cast %312 : vector<1x1x22x128xf32> to vector<22x128xf32>
    %c0_127 = arith.constant 0 : index
    %c0_128 = arith.constant 0 : index
    %314 = vector.load %arg5[%c0_127, %c0_128] : memref<22x128xf32, #tpu.memory_space<vmem>>, vector<22x128xf32>
    tpu.vector_store %arg5[%c0_127, %c0_128], %313 {strides = array<i32>} : memref<22x128xf32, #tpu.memory_space<vmem>>, vector<22x128xf32>,
    %c0_129 = arith.constant 0 : index
    %c0_130 = arith.constant 0 : index
    %c0_131 = arith.constant 0 : index
    %c2_132 = arith.constant 2 : index
    %315 = vector.load %arg3[%c0_129, %c0_130, %c0_131, %c2_132] : memref<1x1x22x134xf32, #tpu.memory_space<vmem>>, vector<1x1x22x128xf32>
    %316 = vector.shape_cast %315 : vector<1x1x22x128xf32> to vector<22x128xf32>
    %c0_133 = arith.constant 0 : index
    %c0_134 = arith.constant 0 : index
    %317 = vector.load %arg6[%c0_133, %c0_134] : memref<22x128xf32, #tpu.memory_space<vmem>>, vector<22x128xf32>
    tpu.vector_store %arg6[%c0_133, %c0_134], %316 {strides = array<i32>} : memref<22x128xf32, #tpu.memory_space<vmem>>, vector<22x128xf32>,
    %c0_135 = arith.constant 0 : index
    %c0_136 = arith.constant 0 : index
    %318 = vector.load %arg5[%c0_135, %c0_136] : memref<22x128xf32, #tpu.memory_space<vmem>>, vector<16x128xf32>
    %c0_137 = arith.constant 0 : index
    %c0_138 = arith.constant 0 : index
    %319 = vector.load %arg6[%c0_137, %c0_138] : memref<22x128xf32, #tpu.memory_space<vmem>>, vector<16x128xf32>
    %320 = arith.subf %318, %2 : vector<16x128xf32>
    %321 = arith.mulf %320, %320 : vector<16x128xf32>
    %cst_139 = arith.constant 8.100000e-01 : f32
    %322 = vector.broadcast %cst_139 : f32 to vector<16x128xf32>
    %323 = arith.addf %322, %321 : vector<16x128xf32>
    %324 = math.rsqrt %323 : vector<16x128xf32>
    %325 = arith.mulf %320, %324 : vector<16x128xf32>
    %326 = arith.subf %319, %4 : vector<16x128xf32>
    %327 = arith.mulf %326, %326 : vector<16x128xf32>
    %cst_140 = arith.constant 8.100000e-01 : f32
    %328 = vector.broadcast %cst_140 : f32 to vector<16x128xf32>
    %329 = arith.addf %328, %327 : vector<16x128xf32>
    %330 = math.rsqrt %329 : vector<16x128xf32>
    %331 = arith.mulf %326, %330 : vector<16x128xf32>
    %332 = arith.subf %325, %331 : vector<16x128xf32>
    %333 = arith.mulf %332, %332 : vector<16x128xf32>
    %cst_141 = arith.constant 1.000000e-01 : f32
    %334 = vector.broadcast %cst_141 : f32 to vector<16x128xf32>
    %335 = arith.addf %334, %333 : vector<16x128xf32>
    %336 = tpu.reciprocal %335 {approx = true} : vector<16x128xf32> -> vector<16x128xf32>
    %337 = arith.mulf %333, %336 : vector<16x128xf32>
    %338 = arith.addf %311, %337 : vector<16x128xf32>
    %c1_142 = arith.constant 1 : index
    %c0_143 = arith.constant 0 : index
    %339 = vector.load %arg5[%c1_142, %c0_143] : memref<22x128xf32, #tpu.memory_space<vmem>>, vector<16x128xf32>
    %c1_144 = arith.constant 1 : index
    %c0_145 = arith.constant 0 : index
    %340 = vector.load %arg6[%c1_144, %c0_145] : memref<22x128xf32, #tpu.memory_space<vmem>>, vector<16x128xf32>
    %341 = arith.subf %339, %2 : vector<16x128xf32>
    %342 = arith.mulf %341, %341 : vector<16x128xf32>
    %cst_146 = arith.constant 8.100000e-01 : f32
    %343 = vector.broadcast %cst_146 : f32 to vector<16x128xf32>
    %344 = arith.addf %343, %342 : vector<16x128xf32>
    %345 = math.rsqrt %344 : vector<16x128xf32>
    %346 = arith.mulf %341, %345 : vector<16x128xf32>
    %347 = arith.subf %340, %4 : vector<16x128xf32>
    %348 = arith.mulf %347, %347 : vector<16x128xf32>
    %cst_147 = arith.constant 8.100000e-01 : f32
    %349 = vector.broadcast %cst_147 : f32 to vector<16x128xf32>
    %350 = arith.addf %349, %348 : vector<16x128xf32>
    %351 = math.rsqrt %350 : vector<16x128xf32>
    %352 = arith.mulf %347, %351 : vector<16x128xf32>
    %353 = arith.subf %346, %352 : vector<16x128xf32>
    %354 = arith.mulf %353, %353 : vector<16x128xf32>
    %cst_148 = arith.constant 1.000000e-01 : f32
    %355 = vector.broadcast %cst_148 : f32 to vector<16x128xf32>
    %356 = arith.addf %355, %354 : vector<16x128xf32>
    %357 = tpu.reciprocal %356 {approx = true} : vector<16x128xf32> -> vector<16x128xf32>
    %358 = arith.mulf %354, %357 : vector<16x128xf32>
    %359 = arith.addf %338, %358 : vector<16x128xf32>
    %c2_149 = arith.constant 2 : index
    %c0_150 = arith.constant 0 : index
    %360 = vector.load %arg5[%c2_149, %c0_150] : memref<22x128xf32, #tpu.memory_space<vmem>>, vector<16x128xf32>
    %c2_151 = arith.constant 2 : index
    %c0_152 = arith.constant 0 : index
    %361 = vector.load %arg6[%c2_151, %c0_152] : memref<22x128xf32, #tpu.memory_space<vmem>>, vector<16x128xf32>
    %362 = arith.subf %360, %2 : vector<16x128xf32>
    %363 = arith.mulf %362, %362 : vector<16x128xf32>
    %cst_153 = arith.constant 8.100000e-01 : f32
    %364 = vector.broadcast %cst_153 : f32 to vector<16x128xf32>
    %365 = arith.addf %364, %363 : vector<16x128xf32>
    %366 = math.rsqrt %365 : vector<16x128xf32>
    %367 = arith.mulf %362, %366 : vector<16x128xf32>
    %368 = arith.subf %361, %4 : vector<16x128xf32>
    %369 = arith.mulf %368, %368 : vector<16x128xf32>
    %cst_154 = arith.constant 8.100000e-01 : f32
    %370 = vector.broadcast %cst_154 : f32 to vector<16x128xf32>
    %371 = arith.addf %370, %369 : vector<16x128xf32>
    %372 = math.rsqrt %371 : vector<16x128xf32>
    %373 = arith.mulf %368, %372 : vector<16x128xf32>
    %374 = arith.subf %367, %373 : vector<16x128xf32>
    %375 = arith.mulf %374, %374 : vector<16x128xf32>
    %cst_155 = arith.constant 1.000000e-01 : f32
    %376 = vector.broadcast %cst_155 : f32 to vector<16x128xf32>
    %377 = arith.addf %376, %375 : vector<16x128xf32>
    %378 = tpu.reciprocal %377 {approx = true} : vector<16x128xf32> -> vector<16x128xf32>
    %379 = arith.mulf %375, %378 : vector<16x128xf32>
    %380 = arith.addf %359, %379 : vector<16x128xf32>
    %c3_156 = arith.constant 3 : index
    %c0_157 = arith.constant 0 : index
    %381 = vector.load %arg5[%c3_156, %c0_157] : memref<22x128xf32, #tpu.memory_space<vmem>>, vector<16x128xf32>
    %c3_158 = arith.constant 3 : index
    %c0_159 = arith.constant 0 : index
    %382 = vector.load %arg6[%c3_158, %c0_159] : memref<22x128xf32, #tpu.memory_space<vmem>>, vector<16x128xf32>
    %383 = arith.subf %381, %2 : vector<16x128xf32>
    %384 = arith.mulf %383, %383 : vector<16x128xf32>
    %cst_160 = arith.constant 8.100000e-01 : f32
    %385 = vector.broadcast %cst_160 : f32 to vector<16x128xf32>
    %386 = arith.addf %385, %384 : vector<16x128xf32>
    %387 = math.rsqrt %386 : vector<16x128xf32>
    %388 = arith.mulf %383, %387 : vector<16x128xf32>
    %389 = arith.subf %382, %4 : vector<16x128xf32>
    %390 = arith.mulf %389, %389 : vector<16x128xf32>
    %cst_161 = arith.constant 8.100000e-01 : f32
    %391 = vector.broadcast %cst_161 : f32 to vector<16x128xf32>
    %392 = arith.addf %391, %390 : vector<16x128xf32>
    %393 = math.rsqrt %392 : vector<16x128xf32>
    %394 = arith.mulf %389, %393 : vector<16x128xf32>
    %395 = arith.subf %388, %394 : vector<16x128xf32>
    %396 = arith.mulf %395, %395 : vector<16x128xf32>
    %cst_162 = arith.constant 1.000000e-01 : f32
    %397 = vector.broadcast %cst_162 : f32 to vector<16x128xf32>
    %398 = arith.addf %397, %396 : vector<16x128xf32>
    %399 = tpu.reciprocal %398 {approx = true} : vector<16x128xf32> -> vector<16x128xf32>
    %400 = arith.mulf %396, %399 : vector<16x128xf32>
    %401 = arith.addf %380, %400 : vector<16x128xf32>
    %c4_163 = arith.constant 4 : index
    %c0_164 = arith.constant 0 : index
    %402 = vector.load %arg5[%c4_163, %c0_164] : memref<22x128xf32, #tpu.memory_space<vmem>>, vector<16x128xf32>
    %c4_165 = arith.constant 4 : index
    %c0_166 = arith.constant 0 : index
    %403 = vector.load %arg6[%c4_165, %c0_166] : memref<22x128xf32, #tpu.memory_space<vmem>>, vector<16x128xf32>
    %404 = arith.subf %402, %2 : vector<16x128xf32>
    %405 = arith.mulf %404, %404 : vector<16x128xf32>
    %cst_167 = arith.constant 8.100000e-01 : f32
    %406 = vector.broadcast %cst_167 : f32 to vector<16x128xf32>
    %407 = arith.addf %406, %405 : vector<16x128xf32>
    %408 = math.rsqrt %407 : vector<16x128xf32>
    %409 = arith.mulf %404, %408 : vector<16x128xf32>
    %410 = arith.subf %403, %4 : vector<16x128xf32>
    %411 = arith.mulf %410, %410 : vector<16x128xf32>
    %cst_168 = arith.constant 8.100000e-01 : f32
    %412 = vector.broadcast %cst_168 : f32 to vector<16x128xf32>
    %413 = arith.addf %412, %411 : vector<16x128xf32>
    %414 = math.rsqrt %413 : vector<16x128xf32>
    %415 = arith.mulf %410, %414 : vector<16x128xf32>
    %416 = arith.subf %409, %415 : vector<16x128xf32>
    %417 = arith.mulf %416, %416 : vector<16x128xf32>
    %cst_169 = arith.constant 1.000000e-01 : f32
    %418 = vector.broadcast %cst_169 : f32 to vector<16x128xf32>
    %419 = arith.addf %418, %417 : vector<16x128xf32>
    %420 = tpu.reciprocal %419 {approx = true} : vector<16x128xf32> -> vector<16x128xf32>
    %421 = arith.mulf %417, %420 : vector<16x128xf32>
    %422 = arith.addf %401, %421 : vector<16x128xf32>
    %c5_170 = arith.constant 5 : index
    %c0_171 = arith.constant 0 : index
    %423 = vector.load %arg5[%c5_170, %c0_171] : memref<22x128xf32, #tpu.memory_space<vmem>>, vector<16x128xf32>
    %c5_172 = arith.constant 5 : index
    %c0_173 = arith.constant 0 : index
    %424 = vector.load %arg6[%c5_172, %c0_173] : memref<22x128xf32, #tpu.memory_space<vmem>>, vector<16x128xf32>
    %425 = arith.subf %423, %2 : vector<16x128xf32>
    %426 = arith.mulf %425, %425 : vector<16x128xf32>
    %cst_174 = arith.constant 8.100000e-01 : f32
    %427 = vector.broadcast %cst_174 : f32 to vector<16x128xf32>
    %428 = arith.addf %427, %426 : vector<16x128xf32>
    %429 = math.rsqrt %428 : vector<16x128xf32>
    %430 = arith.mulf %425, %429 : vector<16x128xf32>
    %431 = arith.subf %424, %4 : vector<16x128xf32>
    %432 = arith.mulf %431, %431 : vector<16x128xf32>
    %cst_175 = arith.constant 8.100000e-01 : f32
    %433 = vector.broadcast %cst_175 : f32 to vector<16x128xf32>
    %434 = arith.addf %433, %432 : vector<16x128xf32>
    %435 = math.rsqrt %434 : vector<16x128xf32>
    %436 = arith.mulf %431, %435 : vector<16x128xf32>
    %437 = arith.subf %430, %436 : vector<16x128xf32>
    %438 = arith.mulf %437, %437 : vector<16x128xf32>
    %cst_176 = arith.constant 1.000000e-01 : f32
    %439 = vector.broadcast %cst_176 : f32 to vector<16x128xf32>
    %440 = arith.addf %439, %438 : vector<16x128xf32>
    %441 = tpu.reciprocal %440 {approx = true} : vector<16x128xf32> -> vector<16x128xf32>
    %442 = arith.mulf %438, %441 : vector<16x128xf32>
    %443 = arith.addf %422, %442 : vector<16x128xf32>
    %c6_177 = arith.constant 6 : index
    %c0_178 = arith.constant 0 : index
    %444 = vector.load %arg5[%c6_177, %c0_178] : memref<22x128xf32, #tpu.memory_space<vmem>>, vector<16x128xf32>
    %c6_179 = arith.constant 6 : index
    %c0_180 = arith.constant 0 : index
    %445 = vector.load %arg6[%c6_179, %c0_180] : memref<22x128xf32, #tpu.memory_space<vmem>>, vector<16x128xf32>
    %446 = arith.subf %444, %2 : vector<16x128xf32>
    %447 = arith.mulf %446, %446 : vector<16x128xf32>
    %cst_181 = arith.constant 8.100000e-01 : f32
    %448 = vector.broadcast %cst_181 : f32 to vector<16x128xf32>
    %449 = arith.addf %448, %447 : vector<16x128xf32>
    %450 = math.rsqrt %449 : vector<16x128xf32>
    %451 = arith.mulf %446, %450 : vector<16x128xf32>
    %452 = arith.subf %445, %4 : vector<16x128xf32>
    %453 = arith.mulf %452, %452 : vector<16x128xf32>
    %cst_182 = arith.constant 8.100000e-01 : f32
    %454 = vector.broadcast %cst_182 : f32 to vector<16x128xf32>
    %455 = arith.addf %454, %453 : vector<16x128xf32>
    %456 = math.rsqrt %455 : vector<16x128xf32>
    %457 = arith.mulf %452, %456 : vector<16x128xf32>
    %458 = arith.subf %451, %457 : vector<16x128xf32>
    %459 = arith.mulf %458, %458 : vector<16x128xf32>
    %cst_183 = arith.constant 1.000000e-01 : f32
    %460 = vector.broadcast %cst_183 : f32 to vector<16x128xf32>
    %461 = arith.addf %460, %459 : vector<16x128xf32>
    %462 = tpu.reciprocal %461 {approx = true} : vector<16x128xf32> -> vector<16x128xf32>
    %463 = arith.mulf %459, %462 : vector<16x128xf32>
    %464 = arith.addf %443, %463 : vector<16x128xf32>
    %c0_184 = arith.constant 0 : index
    %c0_185 = arith.constant 0 : index
    %c0_186 = arith.constant 0 : index
    %c3_187 = arith.constant 3 : index
    %465 = vector.load %arg2[%c0_184, %c0_185, %c0_186, %c3_187] : memref<1x1x22x134xf32, #tpu.memory_space<vmem>>, vector<1x1x22x128xf32>
    %466 = vector.shape_cast %465 : vector<1x1x22x128xf32> to vector<22x128xf32>
    %c0_188 = arith.constant 0 : index
    %c0_189 = arith.constant 0 : index
    %467 = vector.load %arg5[%c0_188, %c0_189] : memref<22x128xf32, #tpu.memory_space<vmem>>, vector<22x128xf32>
    tpu.vector_store %arg5[%c0_188, %c0_189], %466 {strides = array<i32>} : memref<22x128xf32, #tpu.memory_space<vmem>>, vector<22x128xf32>,
    %c0_190 = arith.constant 0 : index
    %c0_191 = arith.constant 0 : index
    %c0_192 = arith.constant 0 : index
    %c3_193 = arith.constant 3 : index
    %468 = vector.load %arg3[%c0_190, %c0_191, %c0_192, %c3_193] : memref<1x1x22x134xf32, #tpu.memory_space<vmem>>, vector<1x1x22x128xf32>
    %469 = vector.shape_cast %468 : vector<1x1x22x128xf32> to vector<22x128xf32>
    %c0_194 = arith.constant 0 : index
    %c0_195 = arith.constant 0 : index
    %470 = vector.load %arg6[%c0_194, %c0_195] : memref<22x128xf32, #tpu.memory_space<vmem>>, vector<22x128xf32>
    tpu.vector_store %arg6[%c0_194, %c0_195], %469 {strides = array<i32>} : memref<22x128xf32, #tpu.memory_space<vmem>>, vector<22x128xf32>,
    %c0_196 = arith.constant 0 : index
    %c0_197 = arith.constant 0 : index
    %471 = vector.load %arg5[%c0_196, %c0_197] : memref<22x128xf32, #tpu.memory_space<vmem>>, vector<16x128xf32>
    %c0_198 = arith.constant 0 : index
    %c0_199 = arith.constant 0 : index
    %472 = vector.load %arg6[%c0_198, %c0_199] : memref<22x128xf32, #tpu.memory_space<vmem>>, vector<16x128xf32>
    %473 = arith.subf %471, %2 : vector<16x128xf32>
    %474 = arith.mulf %473, %473 : vector<16x128xf32>
    %cst_200 = arith.constant 8.100000e-01 : f32
    %475 = vector.broadcast %cst_200 : f32 to vector<16x128xf32>
    %476 = arith.addf %475, %474 : vector<16x128xf32>
    %477 = math.rsqrt %476 : vector<16x128xf32>
    %478 = arith.mulf %473, %477 : vector<16x128xf32>
    %479 = arith.subf %472, %4 : vector<16x128xf32>
    %480 = arith.mulf %479, %479 : vector<16x128xf32>
    %cst_201 = arith.constant 8.100000e-01 : f32
    %481 = vector.broadcast %cst_201 : f32 to vector<16x128xf32>
    %482 = arith.addf %481, %480 : vector<16x128xf32>
    %483 = math.rsqrt %482 : vector<16x128xf32>
    %484 = arith.mulf %479, %483 : vector<16x128xf32>
    %485 = arith.subf %478, %484 : vector<16x128xf32>
    %486 = arith.mulf %485, %485 : vector<16x128xf32>
    %cst_202 = arith.constant 1.000000e-01 : f32
    %487 = vector.broadcast %cst_202 : f32 to vector<16x128xf32>
    %488 = arith.addf %487, %486 : vector<16x128xf32>
    %489 = tpu.reciprocal %488 {approx = true} : vector<16x128xf32> -> vector<16x128xf32>
    %490 = arith.mulf %486, %489 : vector<16x128xf32>
    %491 = arith.addf %464, %490 : vector<16x128xf32>
    %c1_203 = arith.constant 1 : index
    %c0_204 = arith.constant 0 : index
    %492 = vector.load %arg5[%c1_203, %c0_204] : memref<22x128xf32, #tpu.memory_space<vmem>>, vector<16x128xf32>
    %c1_205 = arith.constant 1 : index
    %c0_206 = arith.constant 0 : index
    %493 = vector.load %arg6[%c1_205, %c0_206] : memref<22x128xf32, #tpu.memory_space<vmem>>, vector<16x128xf32>
    %494 = arith.subf %492, %2 : vector<16x128xf32>
    %495 = arith.mulf %494, %494 : vector<16x128xf32>
    %cst_207 = arith.constant 8.100000e-01 : f32
    %496 = vector.broadcast %cst_207 : f32 to vector<16x128xf32>
    %497 = arith.addf %496, %495 : vector<16x128xf32>
    %498 = math.rsqrt %497 : vector<16x128xf32>
    %499 = arith.mulf %494, %498 : vector<16x128xf32>
    %500 = arith.subf %493, %4 : vector<16x128xf32>
    %501 = arith.mulf %500, %500 : vector<16x128xf32>
    %cst_208 = arith.constant 8.100000e-01 : f32
    %502 = vector.broadcast %cst_208 : f32 to vector<16x128xf32>
    %503 = arith.addf %502, %501 : vector<16x128xf32>
    %504 = math.rsqrt %503 : vector<16x128xf32>
    %505 = arith.mulf %500, %504 : vector<16x128xf32>
    %506 = arith.subf %499, %505 : vector<16x128xf32>
    %507 = arith.mulf %506, %506 : vector<16x128xf32>
    %cst_209 = arith.constant 1.000000e-01 : f32
    %508 = vector.broadcast %cst_209 : f32 to vector<16x128xf32>
    %509 = arith.addf %508, %507 : vector<16x128xf32>
    %510 = tpu.reciprocal %509 {approx = true} : vector<16x128xf32> -> vector<16x128xf32>
    %511 = arith.mulf %507, %510 : vector<16x128xf32>
    %512 = arith.addf %491, %511 : vector<16x128xf32>
    %c2_210 = arith.constant 2 : index
    %c0_211 = arith.constant 0 : index
    %513 = vector.load %arg5[%c2_210, %c0_211] : memref<22x128xf32, #tpu.memory_space<vmem>>, vector<16x128xf32>
    %c2_212 = arith.constant 2 : index
    %c0_213 = arith.constant 0 : index
    %514 = vector.load %arg6[%c2_212, %c0_213] : memref<22x128xf32, #tpu.memory_space<vmem>>, vector<16x128xf32>
    %515 = arith.subf %513, %2 : vector<16x128xf32>
    %516 = arith.mulf %515, %515 : vector<16x128xf32>
    %cst_214 = arith.constant 8.100000e-01 : f32
    %517 = vector.broadcast %cst_214 : f32 to vector<16x128xf32>
    %518 = arith.addf %517, %516 : vector<16x128xf32>
    %519 = math.rsqrt %518 : vector<16x128xf32>
    %520 = arith.mulf %515, %519 : vector<16x128xf32>
    %521 = arith.subf %514, %4 : vector<16x128xf32>
    %522 = arith.mulf %521, %521 : vector<16x128xf32>
    %cst_215 = arith.constant 8.100000e-01 : f32
    %523 = vector.broadcast %cst_215 : f32 to vector<16x128xf32>
    %524 = arith.addf %523, %522 : vector<16x128xf32>
    %525 = math.rsqrt %524 : vector<16x128xf32>
    %526 = arith.mulf %521, %525 : vector<16x128xf32>
    %527 = arith.subf %520, %526 : vector<16x128xf32>
    %528 = arith.mulf %527, %527 : vector<16x128xf32>
    %cst_216 = arith.constant 1.000000e-01 : f32
    %529 = vector.broadcast %cst_216 : f32 to vector<16x128xf32>
    %530 = arith.addf %529, %528 : vector<16x128xf32>
    %531 = tpu.reciprocal %530 {approx = true} : vector<16x128xf32> -> vector<16x128xf32>
    %532 = arith.mulf %528, %531 : vector<16x128xf32>
    %533 = arith.addf %512, %532 : vector<16x128xf32>
    %c4_217 = arith.constant 4 : index
    %c0_218 = arith.constant 0 : index
    %534 = vector.load %arg5[%c4_217, %c0_218] : memref<22x128xf32, #tpu.memory_space<vmem>>, vector<16x128xf32>
    %c4_219 = arith.constant 4 : index
    %c0_220 = arith.constant 0 : index
    %535 = vector.load %arg6[%c4_219, %c0_220] : memref<22x128xf32, #tpu.memory_space<vmem>>, vector<16x128xf32>
    %536 = arith.subf %534, %2 : vector<16x128xf32>
    %537 = arith.mulf %536, %536 : vector<16x128xf32>
    %cst_221 = arith.constant 8.100000e-01 : f32
    %538 = vector.broadcast %cst_221 : f32 to vector<16x128xf32>
    %539 = arith.addf %538, %537 : vector<16x128xf32>
    %540 = math.rsqrt %539 : vector<16x128xf32>
    %541 = arith.mulf %536, %540 : vector<16x128xf32>
    %542 = arith.subf %535, %4 : vector<16x128xf32>
    %543 = arith.mulf %542, %542 : vector<16x128xf32>
    %cst_222 = arith.constant 8.100000e-01 : f32
    %544 = vector.broadcast %cst_222 : f32 to vector<16x128xf32>
    %545 = arith.addf %544, %543 : vector<16x128xf32>
    %546 = math.rsqrt %545 : vector<16x128xf32>
    %547 = arith.mulf %542, %546 : vector<16x128xf32>
    %548 = arith.subf %541, %547 : vector<16x128xf32>
    %549 = arith.mulf %548, %548 : vector<16x128xf32>
    %cst_223 = arith.constant 1.000000e-01 : f32
    %550 = vector.broadcast %cst_223 : f32 to vector<16x128xf32>
    %551 = arith.addf %550, %549 : vector<16x128xf32>
    %552 = tpu.reciprocal %551 {approx = true} : vector<16x128xf32> -> vector<16x128xf32>
    %553 = arith.mulf %549, %552 : vector<16x128xf32>
    %554 = arith.addf %533, %553 : vector<16x128xf32>
    %c5_224 = arith.constant 5 : index
    %c0_225 = arith.constant 0 : index
    %555 = vector.load %arg5[%c5_224, %c0_225] : memref<22x128xf32, #tpu.memory_space<vmem>>, vector<16x128xf32>
    %c5_226 = arith.constant 5 : index
    %c0_227 = arith.constant 0 : index
    %556 = vector.load %arg6[%c5_226, %c0_227] : memref<22x128xf32, #tpu.memory_space<vmem>>, vector<16x128xf32>
    %557 = arith.subf %555, %2 : vector<16x128xf32>
    %558 = arith.mulf %557, %557 : vector<16x128xf32>
    %cst_228 = arith.constant 8.100000e-01 : f32
    %559 = vector.broadcast %cst_228 : f32 to vector<16x128xf32>
    %560 = arith.addf %559, %558 : vector<16x128xf32>
    %561 = math.rsqrt %560 : vector<16x128xf32>
    %562 = arith.mulf %557, %561 : vector<16x128xf32>
    %563 = arith.subf %556, %4 : vector<16x128xf32>
    %564 = arith.mulf %563, %563 : vector<16x128xf32>
    %cst_229 = arith.constant 8.100000e-01 : f32
    %565 = vector.broadcast %cst_229 : f32 to vector<16x128xf32>
    %566 = arith.addf %565, %564 : vector<16x128xf32>
    %567 = math.rsqrt %566 : vector<16x128xf32>
    %568 = arith.mulf %563, %567 : vector<16x128xf32>
    %569 = arith.subf %562, %568 : vector<16x128xf32>
    %570 = arith.mulf %569, %569 : vector<16x128xf32>
    %cst_230 = arith.constant 1.000000e-01 : f32
    %571 = vector.broadcast %cst_230 : f32 to vector<16x128xf32>
    %572 = arith.addf %571, %570 : vector<16x128xf32>
    %573 = tpu.reciprocal %572 {approx = true} : vector<16x128xf32> -> vector<16x128xf32>
    %574 = arith.mulf %570, %573 : vector<16x128xf32>
    %575 = arith.addf %554, %574 : vector<16x128xf32>
    %c6_231 = arith.constant 6 : index
    %c0_232 = arith.constant 0 : index
    %576 = vector.load %arg5[%c6_231, %c0_232] : memref<22x128xf32, #tpu.memory_space<vmem>>, vector<16x128xf32>
    %c6_233 = arith.constant 6 : index
    %c0_234 = arith.constant 0 : index
    %577 = vector.load %arg6[%c6_233, %c0_234] : memref<22x128xf32, #tpu.memory_space<vmem>>, vector<16x128xf32>
    %578 = arith.subf %576, %2 : vector<16x128xf32>
    %579 = arith.mulf %578, %578 : vector<16x128xf32>
    %cst_235 = arith.constant 8.100000e-01 : f32
    %580 = vector.broadcast %cst_235 : f32 to vector<16x128xf32>
    %581 = arith.addf %580, %579 : vector<16x128xf32>
    %582 = math.rsqrt %581 : vector<16x128xf32>
    %583 = arith.mulf %578, %582 : vector<16x128xf32>
    %584 = arith.subf %577, %4 : vector<16x128xf32>
    %585 = arith.mulf %584, %584 : vector<16x128xf32>
    %cst_236 = arith.constant 8.100000e-01 : f32
    %586 = vector.broadcast %cst_236 : f32 to vector<16x128xf32>
    %587 = arith.addf %586, %585 : vector<16x128xf32>
    %588 = math.rsqrt %587 : vector<16x128xf32>
    %589 = arith.mulf %584, %588 : vector<16x128xf32>
    %590 = arith.subf %583, %589 : vector<16x128xf32>
    %591 = arith.mulf %590, %590 : vector<16x128xf32>
    %cst_237 = arith.constant 1.000000e-01 : f32
    %592 = vector.broadcast %cst_237 : f32 to vector<16x128xf32>
    %593 = arith.addf %592, %591 : vector<16x128xf32>
    %594 = tpu.reciprocal %593 {approx = true} : vector<16x128xf32> -> vector<16x128xf32>
    %595 = arith.mulf %591, %594 : vector<16x128xf32>
    %596 = arith.addf %575, %595 : vector<16x128xf32>
    %c0_238 = arith.constant 0 : index
    %c0_239 = arith.constant 0 : index
    %c0_240 = arith.constant 0 : index
    %c4_241 = arith.constant 4 : index
    %597 = vector.load %arg2[%c0_238, %c0_239, %c0_240, %c4_241] : memref<1x1x22x134xf32, #tpu.memory_space<vmem>>, vector<1x1x22x128xf32>
    %598 = vector.shape_cast %597 : vector<1x1x22x128xf32> to vector<22x128xf32>
    %c0_242 = arith.constant 0 : index
    %c0_243 = arith.constant 0 : index
    %599 = vector.load %arg5[%c0_242, %c0_243] : memref<22x128xf32, #tpu.memory_space<vmem>>, vector<22x128xf32>
    tpu.vector_store %arg5[%c0_242, %c0_243], %598 {strides = array<i32>} : memref<22x128xf32, #tpu.memory_space<vmem>>, vector<22x128xf32>,
    %c0_244 = arith.constant 0 : index
    %c0_245 = arith.constant 0 : index
    %c0_246 = arith.constant 0 : index
    %c4_247 = arith.constant 4 : index
    %600 = vector.load %arg3[%c0_244, %c0_245, %c0_246, %c4_247] : memref<1x1x22x134xf32, #tpu.memory_space<vmem>>, vector<1x1x22x128xf32>
    %601 = vector.shape_cast %600 : vector<1x1x22x128xf32> to vector<22x128xf32>
    %c0_248 = arith.constant 0 : index
    %c0_249 = arith.constant 0 : index
    %602 = vector.load %arg6[%c0_248, %c0_249] : memref<22x128xf32, #tpu.memory_space<vmem>>, vector<22x128xf32>
    tpu.vector_store %arg6[%c0_248, %c0_249], %601 {strides = array<i32>} : memref<22x128xf32, #tpu.memory_space<vmem>>, vector<22x128xf32>,
    %c0_250 = arith.constant 0 : index
    %c0_251 = arith.constant 0 : index
    %603 = vector.load %arg5[%c0_250, %c0_251] : memref<22x128xf32, #tpu.memory_space<vmem>>, vector<16x128xf32>
    %c0_252 = arith.constant 0 : index
    %c0_253 = arith.constant 0 : index
    %604 = vector.load %arg6[%c0_252, %c0_253] : memref<22x128xf32, #tpu.memory_space<vmem>>, vector<16x128xf32>
    %605 = arith.subf %603, %2 : vector<16x128xf32>
    %606 = arith.mulf %605, %605 : vector<16x128xf32>
    %cst_254 = arith.constant 8.100000e-01 : f32
    %607 = vector.broadcast %cst_254 : f32 to vector<16x128xf32>
    %608 = arith.addf %607, %606 : vector<16x128xf32>
    %609 = math.rsqrt %608 : vector<16x128xf32>
    %610 = arith.mulf %605, %609 : vector<16x128xf32>
    %611 = arith.subf %604, %4 : vector<16x128xf32>
    %612 = arith.mulf %611, %611 : vector<16x128xf32>
    %cst_255 = arith.constant 8.100000e-01 : f32
    %613 = vector.broadcast %cst_255 : f32 to vector<16x128xf32>
    %614 = arith.addf %613, %612 : vector<16x128xf32>
    %615 = math.rsqrt %614 : vector<16x128xf32>
    %616 = arith.mulf %611, %615 : vector<16x128xf32>
    %617 = arith.subf %610, %616 : vector<16x128xf32>
    %618 = arith.mulf %617, %617 : vector<16x128xf32>
    %cst_256 = arith.constant 1.000000e-01 : f32
    %619 = vector.broadcast %cst_256 : f32 to vector<16x128xf32>
    %620 = arith.addf %619, %618 : vector<16x128xf32>
    %621 = tpu.reciprocal %620 {approx = true} : vector<16x128xf32> -> vector<16x128xf32>
    %622 = arith.mulf %618, %621 : vector<16x128xf32>
    %623 = arith.addf %596, %622 : vector<16x128xf32>
    %c1_257 = arith.constant 1 : index
    %c0_258 = arith.constant 0 : index
    %624 = vector.load %arg5[%c1_257, %c0_258] : memref<22x128xf32, #tpu.memory_space<vmem>>, vector<16x128xf32>
    %c1_259 = arith.constant 1 : index
    %c0_260 = arith.constant 0 : index
    %625 = vector.load %arg6[%c1_259, %c0_260] : memref<22x128xf32, #tpu.memory_space<vmem>>, vector<16x128xf32>
    %626 = arith.subf %624, %2 : vector<16x128xf32>
    %627 = arith.mulf %626, %626 : vector<16x128xf32>
    %cst_261 = arith.constant 8.100000e-01 : f32
    %628 = vector.broadcast %cst_261 : f32 to vector<16x128xf32>
    %629 = arith.addf %628, %627 : vector<16x128xf32>
    %630 = math.rsqrt %629 : vector<16x128xf32>
    %631 = arith.mulf %626, %630 : vector<16x128xf32>
    %632 = arith.subf %625, %4 : vector<16x128xf32>
    %633 = arith.mulf %632, %632 : vector<16x128xf32>
    %cst_262 = arith.constant 8.100000e-01 : f32
    %634 = vector.broadcast %cst_262 : f32 to vector<16x128xf32>
    %635 = arith.addf %634, %633 : vector<16x128xf32>
    %636 = math.rsqrt %635 : vector<16x128xf32>
    %637 = arith.mulf %632, %636 : vector<16x128xf32>
    %638 = arith.subf %631, %637 : vector<16x128xf32>
    %639 = arith.mulf %638, %638 : vector<16x128xf32>
    %cst_263 = arith.constant 1.000000e-01 : f32
    %640 = vector.broadcast %cst_263 : f32 to vector<16x128xf32>
    %641 = arith.addf %640, %639 : vector<16x128xf32>
    %642 = tpu.reciprocal %641 {approx = true} : vector<16x128xf32> -> vector<16x128xf32>
    %643 = arith.mulf %639, %642 : vector<16x128xf32>
    %644 = arith.addf %623, %643 : vector<16x128xf32>
    %c2_264 = arith.constant 2 : index
    %c0_265 = arith.constant 0 : index
    %645 = vector.load %arg5[%c2_264, %c0_265] : memref<22x128xf32, #tpu.memory_space<vmem>>, vector<16x128xf32>
    %c2_266 = arith.constant 2 : index
    %c0_267 = arith.constant 0 : index
    %646 = vector.load %arg6[%c2_266, %c0_267] : memref<22x128xf32, #tpu.memory_space<vmem>>, vector<16x128xf32>
    %647 = arith.subf %645, %2 : vector<16x128xf32>
    %648 = arith.mulf %647, %647 : vector<16x128xf32>
    %cst_268 = arith.constant 8.100000e-01 : f32
    %649 = vector.broadcast %cst_268 : f32 to vector<16x128xf32>
    %650 = arith.addf %649, %648 : vector<16x128xf32>
    %651 = math.rsqrt %650 : vector<16x128xf32>
    %652 = arith.mulf %647, %651 : vector<16x128xf32>
    %653 = arith.subf %646, %4 : vector<16x128xf32>
    %654 = arith.mulf %653, %653 : vector<16x128xf32>
    %cst_269 = arith.constant 8.100000e-01 : f32
    %655 = vector.broadcast %cst_269 : f32 to vector<16x128xf32>
    %656 = arith.addf %655, %654 : vector<16x128xf32>
    %657 = math.rsqrt %656 : vector<16x128xf32>
    %658 = arith.mulf %653, %657 : vector<16x128xf32>
    %659 = arith.subf %652, %658 : vector<16x128xf32>
    %660 = arith.mulf %659, %659 : vector<16x128xf32>
    %cst_270 = arith.constant 1.000000e-01 : f32
    %661 = vector.broadcast %cst_270 : f32 to vector<16x128xf32>
    %662 = arith.addf %661, %660 : vector<16x128xf32>
    %663 = tpu.reciprocal %662 {approx = true} : vector<16x128xf32> -> vector<16x128xf32>
    %664 = arith.mulf %660, %663 : vector<16x128xf32>
    %665 = arith.addf %644, %664 : vector<16x128xf32>
    %c3_271 = arith.constant 3 : index
    %c0_272 = arith.constant 0 : index
    %666 = vector.load %arg5[%c3_271, %c0_272] : memref<22x128xf32, #tpu.memory_space<vmem>>, vector<16x128xf32>
    %c3_273 = arith.constant 3 : index
    %c0_274 = arith.constant 0 : index
    %667 = vector.load %arg6[%c3_273, %c0_274] : memref<22x128xf32, #tpu.memory_space<vmem>>, vector<16x128xf32>
    %668 = arith.subf %666, %2 : vector<16x128xf32>
    %669 = arith.mulf %668, %668 : vector<16x128xf32>
    %cst_275 = arith.constant 8.100000e-01 : f32
    %670 = vector.broadcast %cst_275 : f32 to vector<16x128xf32>
    %671 = arith.addf %670, %669 : vector<16x128xf32>
    %672 = math.rsqrt %671 : vector<16x128xf32>
    %673 = arith.mulf %668, %672 : vector<16x128xf32>
    %674 = arith.subf %667, %4 : vector<16x128xf32>
    %675 = arith.mulf %674, %674 : vector<16x128xf32>
    %cst_276 = arith.constant 8.100000e-01 : f32
    %676 = vector.broadcast %cst_276 : f32 to vector<16x128xf32>
    %677 = arith.addf %676, %675 : vector<16x128xf32>
    %678 = math.rsqrt %677 : vector<16x128xf32>
    %679 = arith.mulf %674, %678 : vector<16x128xf32>
    %680 = arith.subf %673, %679 : vector<16x128xf32>
    %681 = arith.mulf %680, %680 : vector<16x128xf32>
    %cst_277 = arith.constant 1.000000e-01 : f32
    %682 = vector.broadcast %cst_277 : f32 to vector<16x128xf32>
    %683 = arith.addf %682, %681 : vector<16x128xf32>
    %684 = tpu.reciprocal %683 {approx = true} : vector<16x128xf32> -> vector<16x128xf32>
    %685 = arith.mulf %681, %684 : vector<16x128xf32>
    %686 = arith.addf %665, %685 : vector<16x128xf32>
    %c4_278 = arith.constant 4 : index
    %c0_279 = arith.constant 0 : index
    %687 = vector.load %arg5[%c4_278, %c0_279] : memref<22x128xf32, #tpu.memory_space<vmem>>, vector<16x128xf32>
    %c4_280 = arith.constant 4 : index
    %c0_281 = arith.constant 0 : index
    %688 = vector.load %arg6[%c4_280, %c0_281] : memref<22x128xf32, #tpu.memory_space<vmem>>, vector<16x128xf32>
    %689 = arith.subf %687, %2 : vector<16x128xf32>
    %690 = arith.mulf %689, %689 : vector<16x128xf32>
    %cst_282 = arith.constant 8.100000e-01 : f32
    %691 = vector.broadcast %cst_282 : f32 to vector<16x128xf32>
    %692 = arith.addf %691, %690 : vector<16x128xf32>
    %693 = math.rsqrt %692 : vector<16x128xf32>
    %694 = arith.mulf %689, %693 : vector<16x128xf32>
    %695 = arith.subf %688, %4 : vector<16x128xf32>
    %696 = arith.mulf %695, %695 : vector<16x128xf32>
    %cst_283 = arith.constant 8.100000e-01 : f32
    %697 = vector.broadcast %cst_283 : f32 to vector<16x128xf32>
    %698 = arith.addf %697, %696 : vector<16x128xf32>
    %699 = math.rsqrt %698 : vector<16x128xf32>
    %700 = arith.mulf %695, %699 : vector<16x128xf32>
    %701 = arith.subf %694, %700 : vector<16x128xf32>
    %702 = arith.mulf %701, %701 : vector<16x128xf32>
    %cst_284 = arith.constant 1.000000e-01 : f32
    %703 = vector.broadcast %cst_284 : f32 to vector<16x128xf32>
    %704 = arith.addf %703, %702 : vector<16x128xf32>
    %705 = tpu.reciprocal %704 {approx = true} : vector<16x128xf32> -> vector<16x128xf32>
    %706 = arith.mulf %702, %705 : vector<16x128xf32>
    %707 = arith.addf %686, %706 : vector<16x128xf32>
    %c5_285 = arith.constant 5 : index
    %c0_286 = arith.constant 0 : index
    %708 = vector.load %arg5[%c5_285, %c0_286] : memref<22x128xf32, #tpu.memory_space<vmem>>, vector<16x128xf32>
    %c5_287 = arith.constant 5 : index
    %c0_288 = arith.constant 0 : index
    %709 = vector.load %arg6[%c5_287, %c0_288] : memref<22x128xf32, #tpu.memory_space<vmem>>, vector<16x128xf32>
    %710 = arith.subf %708, %2 : vector<16x128xf32>
    %711 = arith.mulf %710, %710 : vector<16x128xf32>
    %cst_289 = arith.constant 8.100000e-01 : f32
    %712 = vector.broadcast %cst_289 : f32 to vector<16x128xf32>
    %713 = arith.addf %712, %711 : vector<16x128xf32>
    %714 = math.rsqrt %713 : vector<16x128xf32>
    %715 = arith.mulf %710, %714 : vector<16x128xf32>
    %716 = arith.subf %709, %4 : vector<16x128xf32>
    %717 = arith.mulf %716, %716 : vector<16x128xf32>
    %cst_290 = arith.constant 8.100000e-01 : f32
    %718 = vector.broadcast %cst_290 : f32 to vector<16x128xf32>
    %719 = arith.addf %718, %717 : vector<16x128xf32>
    %720 = math.rsqrt %719 : vector<16x128xf32>
    %721 = arith.mulf %716, %720 : vector<16x128xf32>
    %722 = arith.subf %715, %721 : vector<16x128xf32>
    %723 = arith.mulf %722, %722 : vector<16x128xf32>
    %cst_291 = arith.constant 1.000000e-01 : f32
    %724 = vector.broadcast %cst_291 : f32 to vector<16x128xf32>
    %725 = arith.addf %724, %723 : vector<16x128xf32>
    %726 = tpu.reciprocal %725 {approx = true} : vector<16x128xf32> -> vector<16x128xf32>
    %727 = arith.mulf %723, %726 : vector<16x128xf32>
    %728 = arith.addf %707, %727 : vector<16x128xf32>
    %c6_292 = arith.constant 6 : index
    %c0_293 = arith.constant 0 : index
    %729 = vector.load %arg5[%c6_292, %c0_293] : memref<22x128xf32, #tpu.memory_space<vmem>>, vector<16x128xf32>
    %c6_294 = arith.constant 6 : index
    %c0_295 = arith.constant 0 : index
    %730 = vector.load %arg6[%c6_294, %c0_295] : memref<22x128xf32, #tpu.memory_space<vmem>>, vector<16x128xf32>
    %731 = arith.subf %729, %2 : vector<16x128xf32>
    %732 = arith.mulf %731, %731 : vector<16x128xf32>
    %cst_296 = arith.constant 8.100000e-01 : f32
    %733 = vector.broadcast %cst_296 : f32 to vector<16x128xf32>
    %734 = arith.addf %733, %732 : vector<16x128xf32>
    %735 = math.rsqrt %734 : vector<16x128xf32>
    %736 = arith.mulf %731, %735 : vector<16x128xf32>
    %737 = arith.subf %730, %4 : vector<16x128xf32>
    %738 = arith.mulf %737, %737 : vector<16x128xf32>
    %cst_297 = arith.constant 8.100000e-01 : f32
    %739 = vector.broadcast %cst_297 : f32 to vector<16x128xf32>
    %740 = arith.addf %739, %738 : vector<16x128xf32>
    %741 = math.rsqrt %740 : vector<16x128xf32>
    %742 = arith.mulf %737, %741 : vector<16x128xf32>
    %743 = arith.subf %736, %742 : vector<16x128xf32>
    %744 = arith.mulf %743, %743 : vector<16x128xf32>
    %cst_298 = arith.constant 1.000000e-01 : f32
    %745 = vector.broadcast %cst_298 : f32 to vector<16x128xf32>
    %746 = arith.addf %745, %744 : vector<16x128xf32>
    %747 = tpu.reciprocal %746 {approx = true} : vector<16x128xf32> -> vector<16x128xf32>
    %748 = arith.mulf %744, %747 : vector<16x128xf32>
    %749 = arith.addf %728, %748 : vector<16x128xf32>
    %c0_299 = arith.constant 0 : index
    %c0_300 = arith.constant 0 : index
    %c0_301 = arith.constant 0 : index
    %c5_302 = arith.constant 5 : index
    %750 = vector.load %arg2[%c0_299, %c0_300, %c0_301, %c5_302] : memref<1x1x22x134xf32, #tpu.memory_space<vmem>>, vector<1x1x22x128xf32>
    %751 = vector.shape_cast %750 : vector<1x1x22x128xf32> to vector<22x128xf32>
    %c0_303 = arith.constant 0 : index
    %c0_304 = arith.constant 0 : index
    %752 = vector.load %arg5[%c0_303, %c0_304] : memref<22x128xf32, #tpu.memory_space<vmem>>, vector<22x128xf32>
    tpu.vector_store %arg5[%c0_303, %c0_304], %751 {strides = array<i32>} : memref<22x128xf32, #tpu.memory_space<vmem>>, vector<22x128xf32>,
    %c0_305 = arith.constant 0 : index
    %c0_306 = arith.constant 0 : index
    %c0_307 = arith.constant 0 : index
    %c5_308 = arith.constant 5 : index
    %753 = vector.load %arg3[%c0_305, %c0_306, %c0_307, %c5_308] : memref<1x1x22x134xf32, #tpu.memory_space<vmem>>, vector<1x1x22x128xf32>
    %754 = vector.shape_cast %753 : vector<1x1x22x128xf32> to vector<22x128xf32>
    %c0_309 = arith.constant 0 : index
    %c0_310 = arith.constant 0 : index
    %755 = vector.load %arg6[%c0_309, %c0_310] : memref<22x128xf32, #tpu.memory_space<vmem>>, vector<22x128xf32>
    tpu.vector_store %arg6[%c0_309, %c0_310], %754 {strides = array<i32>} : memref<22x128xf32, #tpu.memory_space<vmem>>, vector<22x128xf32>,
    %c0_311 = arith.constant 0 : index
    %c0_312 = arith.constant 0 : index
    %756 = vector.load %arg5[%c0_311, %c0_312] : memref<22x128xf32, #tpu.memory_space<vmem>>, vector<16x128xf32>
    %c0_313 = arith.constant 0 : index
    %c0_314 = arith.constant 0 : index
    %757 = vector.load %arg6[%c0_313, %c0_314] : memref<22x128xf32, #tpu.memory_space<vmem>>, vector<16x128xf32>
    %758 = arith.subf %756, %2 : vector<16x128xf32>
    %759 = arith.mulf %758, %758 : vector<16x128xf32>
    %cst_315 = arith.constant 8.100000e-01 : f32
    %760 = vector.broadcast %cst_315 : f32 to vector<16x128xf32>
    %761 = arith.addf %760, %759 : vector<16x128xf32>
    %762 = math.rsqrt %761 : vector<16x128xf32>
    %763 = arith.mulf %758, %762 : vector<16x128xf32>
    %764 = arith.subf %757, %4 : vector<16x128xf32>
    %765 = arith.mulf %764, %764 : vector<16x128xf32>
    %cst_316 = arith.constant 8.100000e-01 : f32
    %766 = vector.broadcast %cst_316 : f32 to vector<16x128xf32>
    %767 = arith.addf %766, %765 : vector<16x128xf32>
    %768 = math.rsqrt %767 : vector<16x128xf32>
    %769 = arith.mulf %764, %768 : vector<16x128xf32>
    %770 = arith.subf %763, %769 : vector<16x128xf32>
    %771 = arith.mulf %770, %770 : vector<16x128xf32>
    %cst_317 = arith.constant 1.000000e-01 : f32
    %772 = vector.broadcast %cst_317 : f32 to vector<16x128xf32>
    %773 = arith.addf %772, %771 : vector<16x128xf32>
    %774 = tpu.reciprocal %773 {approx = true} : vector<16x128xf32> -> vector<16x128xf32>
    %775 = arith.mulf %771, %774 : vector<16x128xf32>
    %776 = arith.addf %749, %775 : vector<16x128xf32>
    %c1_318 = arith.constant 1 : index
    %c0_319 = arith.constant 0 : index
    %777 = vector.load %arg5[%c1_318, %c0_319] : memref<22x128xf32, #tpu.memory_space<vmem>>, vector<16x128xf32>
    %c1_320 = arith.constant 1 : index
    %c0_321 = arith.constant 0 : index
    %778 = vector.load %arg6[%c1_320, %c0_321] : memref<22x128xf32, #tpu.memory_space<vmem>>, vector<16x128xf32>
    %779 = arith.subf %777, %2 : vector<16x128xf32>
    %780 = arith.mulf %779, %779 : vector<16x128xf32>
    %cst_322 = arith.constant 8.100000e-01 : f32
    %781 = vector.broadcast %cst_322 : f32 to vector<16x128xf32>
    %782 = arith.addf %781, %780 : vector<16x128xf32>
    %783 = math.rsqrt %782 : vector<16x128xf32>
    %784 = arith.mulf %779, %783 : vector<16x128xf32>
    %785 = arith.subf %778, %4 : vector<16x128xf32>
    %786 = arith.mulf %785, %785 : vector<16x128xf32>
    %cst_323 = arith.constant 8.100000e-01 : f32
    %787 = vector.broadcast %cst_323 : f32 to vector<16x128xf32>
    %788 = arith.addf %787, %786 : vector<16x128xf32>
    %789 = math.rsqrt %788 : vector<16x128xf32>
    %790 = arith.mulf %785, %789 : vector<16x128xf32>
    %791 = arith.subf %784, %790 : vector<16x128xf32>
    %792 = arith.mulf %791, %791 : vector<16x128xf32>
    %cst_324 = arith.constant 1.000000e-01 : f32
    %793 = vector.broadcast %cst_324 : f32 to vector<16x128xf32>
    %794 = arith.addf %793, %792 : vector<16x128xf32>
    %795 = tpu.reciprocal %794 {approx = true} : vector<16x128xf32> -> vector<16x128xf32>
    %796 = arith.mulf %792, %795 : vector<16x128xf32>
    %797 = arith.addf %776, %796 : vector<16x128xf32>
    %c2_325 = arith.constant 2 : index
    %c0_326 = arith.constant 0 : index
    %798 = vector.load %arg5[%c2_325, %c0_326] : memref<22x128xf32, #tpu.memory_space<vmem>>, vector<16x128xf32>
    %c2_327 = arith.constant 2 : index
    %c0_328 = arith.constant 0 : index
    %799 = vector.load %arg6[%c2_327, %c0_328] : memref<22x128xf32, #tpu.memory_space<vmem>>, vector<16x128xf32>
    %800 = arith.subf %798, %2 : vector<16x128xf32>
    %801 = arith.mulf %800, %800 : vector<16x128xf32>
    %cst_329 = arith.constant 8.100000e-01 : f32
    %802 = vector.broadcast %cst_329 : f32 to vector<16x128xf32>
    %803 = arith.addf %802, %801 : vector<16x128xf32>
    %804 = math.rsqrt %803 : vector<16x128xf32>
    %805 = arith.mulf %800, %804 : vector<16x128xf32>
    %806 = arith.subf %799, %4 : vector<16x128xf32>
    %807 = arith.mulf %806, %806 : vector<16x128xf32>
    %cst_330 = arith.constant 8.100000e-01 : f32
    %808 = vector.broadcast %cst_330 : f32 to vector<16x128xf32>
    %809 = arith.addf %808, %807 : vector<16x128xf32>
    %810 = math.rsqrt %809 : vector<16x128xf32>
    %811 = arith.mulf %806, %810 : vector<16x128xf32>
    %812 = arith.subf %805, %811 : vector<16x128xf32>
    %813 = arith.mulf %812, %812 : vector<16x128xf32>
    %cst_331 = arith.constant 1.000000e-01 : f32
    %814 = vector.broadcast %cst_331 : f32 to vector<16x128xf32>
    %815 = arith.addf %814, %813 : vector<16x128xf32>
    %816 = tpu.reciprocal %815 {approx = true} : vector<16x128xf32> -> vector<16x128xf32>
    %817 = arith.mulf %813, %816 : vector<16x128xf32>
    %818 = arith.addf %797, %817 : vector<16x128xf32>
    %c3_332 = arith.constant 3 : index
    %c0_333 = arith.constant 0 : index
    %819 = vector.load %arg5[%c3_332, %c0_333] : memref<22x128xf32, #tpu.memory_space<vmem>>, vector<16x128xf32>
    %c3_334 = arith.constant 3 : index
    %c0_335 = arith.constant 0 : index
    %820 = vector.load %arg6[%c3_334, %c0_335] : memref<22x128xf32, #tpu.memory_space<vmem>>, vector<16x128xf32>
    %821 = arith.subf %819, %2 : vector<16x128xf32>
    %822 = arith.mulf %821, %821 : vector<16x128xf32>
    %cst_336 = arith.constant 8.100000e-01 : f32
    %823 = vector.broadcast %cst_336 : f32 to vector<16x128xf32>
    %824 = arith.addf %823, %822 : vector<16x128xf32>
    %825 = math.rsqrt %824 : vector<16x128xf32>
    %826 = arith.mulf %821, %825 : vector<16x128xf32>
    %827 = arith.subf %820, %4 : vector<16x128xf32>
    %828 = arith.mulf %827, %827 : vector<16x128xf32>
    %cst_337 = arith.constant 8.100000e-01 : f32
    %829 = vector.broadcast %cst_337 : f32 to vector<16x128xf32>
    %830 = arith.addf %829, %828 : vector<16x128xf32>
    %831 = math.rsqrt %830 : vector<16x128xf32>
    %832 = arith.mulf %827, %831 : vector<16x128xf32>
    %833 = arith.subf %826, %832 : vector<16x128xf32>
    %834 = arith.mulf %833, %833 : vector<16x128xf32>
    %cst_338 = arith.constant 1.000000e-01 : f32
    %835 = vector.broadcast %cst_338 : f32 to vector<16x128xf32>
    %836 = arith.addf %835, %834 : vector<16x128xf32>
    %837 = tpu.reciprocal %836 {approx = true} : vector<16x128xf32> -> vector<16x128xf32>
    %838 = arith.mulf %834, %837 : vector<16x128xf32>
    %839 = arith.addf %818, %838 : vector<16x128xf32>
    %c4_339 = arith.constant 4 : index
    %c0_340 = arith.constant 0 : index
    %840 = vector.load %arg5[%c4_339, %c0_340] : memref<22x128xf32, #tpu.memory_space<vmem>>, vector<16x128xf32>
    %c4_341 = arith.constant 4 : index
    %c0_342 = arith.constant 0 : index
    %841 = vector.load %arg6[%c4_341, %c0_342] : memref<22x128xf32, #tpu.memory_space<vmem>>, vector<16x128xf32>
    %842 = arith.subf %840, %2 : vector<16x128xf32>
    %843 = arith.mulf %842, %842 : vector<16x128xf32>
    %cst_343 = arith.constant 8.100000e-01 : f32
    %844 = vector.broadcast %cst_343 : f32 to vector<16x128xf32>
    %845 = arith.addf %844, %843 : vector<16x128xf32>
    %846 = math.rsqrt %845 : vector<16x128xf32>
    %847 = arith.mulf %842, %846 : vector<16x128xf32>
    %848 = arith.subf %841, %4 : vector<16x128xf32>
    %849 = arith.mulf %848, %848 : vector<16x128xf32>
    %cst_344 = arith.constant 8.100000e-01 : f32
    %850 = vector.broadcast %cst_344 : f32 to vector<16x128xf32>
    %851 = arith.addf %850, %849 : vector<16x128xf32>
    %852 = math.rsqrt %851 : vector<16x128xf32>
    %853 = arith.mulf %848, %852 : vector<16x128xf32>
    %854 = arith.subf %847, %853 : vector<16x128xf32>
    %855 = arith.mulf %854, %854 : vector<16x128xf32>
    %cst_345 = arith.constant 1.000000e-01 : f32
    %856 = vector.broadcast %cst_345 : f32 to vector<16x128xf32>
    %857 = arith.addf %856, %855 : vector<16x128xf32>
    %858 = tpu.reciprocal %857 {approx = true} : vector<16x128xf32> -> vector<16x128xf32>
    %859 = arith.mulf %855, %858 : vector<16x128xf32>
    %860 = arith.addf %839, %859 : vector<16x128xf32>
    %c5_346 = arith.constant 5 : index
    %c0_347 = arith.constant 0 : index
    %861 = vector.load %arg5[%c5_346, %c0_347] : memref<22x128xf32, #tpu.memory_space<vmem>>, vector<16x128xf32>
    %c5_348 = arith.constant 5 : index
    %c0_349 = arith.constant 0 : index
    %862 = vector.load %arg6[%c5_348, %c0_349] : memref<22x128xf32, #tpu.memory_space<vmem>>, vector<16x128xf32>
    %863 = arith.subf %861, %2 : vector<16x128xf32>
    %864 = arith.mulf %863, %863 : vector<16x128xf32>
    %cst_350 = arith.constant 8.100000e-01 : f32
    %865 = vector.broadcast %cst_350 : f32 to vector<16x128xf32>
    %866 = arith.addf %865, %864 : vector<16x128xf32>
    %867 = math.rsqrt %866 : vector<16x128xf32>
    %868 = arith.mulf %863, %867 : vector<16x128xf32>
    %869 = arith.subf %862, %4 : vector<16x128xf32>
    %870 = arith.mulf %869, %869 : vector<16x128xf32>
    %cst_351 = arith.constant 8.100000e-01 : f32
    %871 = vector.broadcast %cst_351 : f32 to vector<16x128xf32>
    %872 = arith.addf %871, %870 : vector<16x128xf32>
    %873 = math.rsqrt %872 : vector<16x128xf32>
    %874 = arith.mulf %869, %873 : vector<16x128xf32>
    %875 = arith.subf %868, %874 : vector<16x128xf32>
    %876 = arith.mulf %875, %875 : vector<16x128xf32>
    %cst_352 = arith.constant 1.000000e-01 : f32
    %877 = vector.broadcast %cst_352 : f32 to vector<16x128xf32>
    %878 = arith.addf %877, %876 : vector<16x128xf32>
    %879 = tpu.reciprocal %878 {approx = true} : vector<16x128xf32> -> vector<16x128xf32>
    %880 = arith.mulf %876, %879 : vector<16x128xf32>
    %881 = arith.addf %860, %880 : vector<16x128xf32>
    %c6_353 = arith.constant 6 : index
    %c0_354 = arith.constant 0 : index
    %882 = vector.load %arg5[%c6_353, %c0_354] : memref<22x128xf32, #tpu.memory_space<vmem>>, vector<16x128xf32>
    %c6_355 = arith.constant 6 : index
    %c0_356 = arith.constant 0 : index
    %883 = vector.load %arg6[%c6_355, %c0_356] : memref<22x128xf32, #tpu.memory_space<vmem>>, vector<16x128xf32>
    %884 = arith.subf %882, %2 : vector<16x128xf32>
    %885 = arith.mulf %884, %884 : vector<16x128xf32>
    %cst_357 = arith.constant 8.100000e-01 : f32
    %886 = vector.broadcast %cst_357 : f32 to vector<16x128xf32>
    %887 = arith.addf %886, %885 : vector<16x128xf32>
    %888 = math.rsqrt %887 : vector<16x128xf32>
    %889 = arith.mulf %884, %888 : vector<16x128xf32>
    %890 = arith.subf %883, %4 : vector<16x128xf32>
    %891 = arith.mulf %890, %890 : vector<16x128xf32>
    %cst_358 = arith.constant 8.100000e-01 : f32
    %892 = vector.broadcast %cst_358 : f32 to vector<16x128xf32>
    %893 = arith.addf %892, %891 : vector<16x128xf32>
    %894 = math.rsqrt %893 : vector<16x128xf32>
    %895 = arith.mulf %890, %894 : vector<16x128xf32>
    %896 = arith.subf %889, %895 : vector<16x128xf32>
    %897 = arith.mulf %896, %896 : vector<16x128xf32>
    %cst_359 = arith.constant 1.000000e-01 : f32
    %898 = vector.broadcast %cst_359 : f32 to vector<16x128xf32>
    %899 = arith.addf %898, %897 : vector<16x128xf32>
    %900 = tpu.reciprocal %899 {approx = true} : vector<16x128xf32> -> vector<16x128xf32>
    %901 = arith.mulf %897, %900 : vector<16x128xf32>
    %902 = arith.addf %881, %901 : vector<16x128xf32>
    %c0_360 = arith.constant 0 : index
    %c0_361 = arith.constant 0 : index
    %c0_362 = arith.constant 0 : index
    %c6_363 = arith.constant 6 : index
    %903 = vector.load %arg2[%c0_360, %c0_361, %c0_362, %c6_363] : memref<1x1x22x134xf32, #tpu.memory_space<vmem>>, vector<1x1x22x128xf32>
    %904 = vector.shape_cast %903 : vector<1x1x22x128xf32> to vector<22x128xf32>
    %c0_364 = arith.constant 0 : index
    %c0_365 = arith.constant 0 : index
    %905 = vector.load %arg5[%c0_364, %c0_365] : memref<22x128xf32, #tpu.memory_space<vmem>>, vector<22x128xf32>
    tpu.vector_store %arg5[%c0_364, %c0_365], %904 {strides = array<i32>} : memref<22x128xf32, #tpu.memory_space<vmem>>, vector<22x128xf32>,
    %c0_366 = arith.constant 0 : index
    %c0_367 = arith.constant 0 : index
    %c0_368 = arith.constant 0 : index
    %c6_369 = arith.constant 6 : index
    %906 = vector.load %arg3[%c0_366, %c0_367, %c0_368, %c6_369] : memref<1x1x22x134xf32, #tpu.memory_space<vmem>>, vector<1x1x22x128xf32>
    %907 = vector.shape_cast %906 : vector<1x1x22x128xf32> to vector<22x128xf32>
    %c0_370 = arith.constant 0 : index
    %c0_371 = arith.constant 0 : index
    %908 = vector.load %arg6[%c0_370, %c0_371] : memref<22x128xf32, #tpu.memory_space<vmem>>, vector<22x128xf32>
    tpu.vector_store %arg6[%c0_370, %c0_371], %907 {strides = array<i32>} : memref<22x128xf32, #tpu.memory_space<vmem>>, vector<22x128xf32>,
    %c0_372 = arith.constant 0 : index
    %c0_373 = arith.constant 0 : index
    %909 = vector.load %arg5[%c0_372, %c0_373] : memref<22x128xf32, #tpu.memory_space<vmem>>, vector<16x128xf32>
    %c0_374 = arith.constant 0 : index
    %c0_375 = arith.constant 0 : index
    %910 = vector.load %arg6[%c0_374, %c0_375] : memref<22x128xf32, #tpu.memory_space<vmem>>, vector<16x128xf32>
    %911 = arith.subf %909, %2 : vector<16x128xf32>
    %912 = arith.mulf %911, %911 : vector<16x128xf32>
    %cst_376 = arith.constant 8.100000e-01 : f32
    %913 = vector.broadcast %cst_376 : f32 to vector<16x128xf32>
    %914 = arith.addf %913, %912 : vector<16x128xf32>
    %915 = math.rsqrt %914 : vector<16x128xf32>
    %916 = arith.mulf %911, %915 : vector<16x128xf32>
    %917 = arith.subf %910, %4 : vector<16x128xf32>
    %918 = arith.mulf %917, %917 : vector<16x128xf32>
    %cst_377 = arith.constant 8.100000e-01 : f32
    %919 = vector.broadcast %cst_377 : f32 to vector<16x128xf32>
    %920 = arith.addf %919, %918 : vector<16x128xf32>
    %921 = math.rsqrt %920 : vector<16x128xf32>
    %922 = arith.mulf %917, %921 : vector<16x128xf32>
    %923 = arith.subf %916, %922 : vector<16x128xf32>
    %924 = arith.mulf %923, %923 : vector<16x128xf32>
    %cst_378 = arith.constant 1.000000e-01 : f32
    %925 = vector.broadcast %cst_378 : f32 to vector<16x128xf32>
    %926 = arith.addf %925, %924 : vector<16x128xf32>
    %927 = tpu.reciprocal %926 {approx = true} : vector<16x128xf32> -> vector<16x128xf32>
    %928 = arith.mulf %924, %927 : vector<16x128xf32>
    %929 = arith.addf %902, %928 : vector<16x128xf32>
    %c1_379 = arith.constant 1 : index
    %c0_380 = arith.constant 0 : index
    %930 = vector.load %arg5[%c1_379, %c0_380] : memref<22x128xf32, #tpu.memory_space<vmem>>, vector<16x128xf32>
    %c1_381 = arith.constant 1 : index
    %c0_382 = arith.constant 0 : index
    %931 = vector.load %arg6[%c1_381, %c0_382] : memref<22x128xf32, #tpu.memory_space<vmem>>, vector<16x128xf32>
    %932 = arith.subf %930, %2 : vector<16x128xf32>
    %933 = arith.mulf %932, %932 : vector<16x128xf32>
    %cst_383 = arith.constant 8.100000e-01 : f32
    %934 = vector.broadcast %cst_383 : f32 to vector<16x128xf32>
    %935 = arith.addf %934, %933 : vector<16x128xf32>
    %936 = math.rsqrt %935 : vector<16x128xf32>
    %937 = arith.mulf %932, %936 : vector<16x128xf32>
    %938 = arith.subf %931, %4 : vector<16x128xf32>
    %939 = arith.mulf %938, %938 : vector<16x128xf32>
    %cst_384 = arith.constant 8.100000e-01 : f32
    %940 = vector.broadcast %cst_384 : f32 to vector<16x128xf32>
    %941 = arith.addf %940, %939 : vector<16x128xf32>
    %942 = math.rsqrt %941 : vector<16x128xf32>
    %943 = arith.mulf %938, %942 : vector<16x128xf32>
    %944 = arith.subf %937, %943 : vector<16x128xf32>
    %945 = arith.mulf %944, %944 : vector<16x128xf32>
    %cst_385 = arith.constant 1.000000e-01 : f32
    %946 = vector.broadcast %cst_385 : f32 to vector<16x128xf32>
    %947 = arith.addf %946, %945 : vector<16x128xf32>
    %948 = tpu.reciprocal %947 {approx = true} : vector<16x128xf32> -> vector<16x128xf32>
    %949 = arith.mulf %945, %948 : vector<16x128xf32>
    %950 = arith.addf %929, %949 : vector<16x128xf32>
    %c2_386 = arith.constant 2 : index
    %c0_387 = arith.constant 0 : index
    %951 = vector.load %arg5[%c2_386, %c0_387] : memref<22x128xf32, #tpu.memory_space<vmem>>, vector<16x128xf32>
    %c2_388 = arith.constant 2 : index
    %c0_389 = arith.constant 0 : index
    %952 = vector.load %arg6[%c2_388, %c0_389] : memref<22x128xf32, #tpu.memory_space<vmem>>, vector<16x128xf32>
    %953 = arith.subf %951, %2 : vector<16x128xf32>
    %954 = arith.mulf %953, %953 : vector<16x128xf32>
    %cst_390 = arith.constant 8.100000e-01 : f32
    %955 = vector.broadcast %cst_390 : f32 to vector<16x128xf32>
    %956 = arith.addf %955, %954 : vector<16x128xf32>
    %957 = math.rsqrt %956 : vector<16x128xf32>
    %958 = arith.mulf %953, %957 : vector<16x128xf32>
    %959 = arith.subf %952, %4 : vector<16x128xf32>
    %960 = arith.mulf %959, %959 : vector<16x128xf32>
    %cst_391 = arith.constant 8.100000e-01 : f32
    %961 = vector.broadcast %cst_391 : f32 to vector<16x128xf32>
    %962 = arith.addf %961, %960 : vector<16x128xf32>
    %963 = math.rsqrt %962 : vector<16x128xf32>
    %964 = arith.mulf %959, %963 : vector<16x128xf32>
    %965 = arith.subf %958, %964 : vector<16x128xf32>
    %966 = arith.mulf %965, %965 : vector<16x128xf32>
    %cst_392 = arith.constant 1.000000e-01 : f32
    %967 = vector.broadcast %cst_392 : f32 to vector<16x128xf32>
    %968 = arith.addf %967, %966 : vector<16x128xf32>
    %969 = tpu.reciprocal %968 {approx = true} : vector<16x128xf32> -> vector<16x128xf32>
    %970 = arith.mulf %966, %969 : vector<16x128xf32>
    %971 = arith.addf %950, %970 : vector<16x128xf32>
    %c3_393 = arith.constant 3 : index
    %c0_394 = arith.constant 0 : index
    %972 = vector.load %arg5[%c3_393, %c0_394] : memref<22x128xf32, #tpu.memory_space<vmem>>, vector<16x128xf32>
    %c3_395 = arith.constant 3 : index
    %c0_396 = arith.constant 0 : index
    %973 = vector.load %arg6[%c3_395, %c0_396] : memref<22x128xf32, #tpu.memory_space<vmem>>, vector<16x128xf32>
    %974 = arith.subf %972, %2 : vector<16x128xf32>
    %975 = arith.mulf %974, %974 : vector<16x128xf32>
    %cst_397 = arith.constant 8.100000e-01 : f32
    %976 = vector.broadcast %cst_397 : f32 to vector<16x128xf32>
    %977 = arith.addf %976, %975 : vector<16x128xf32>
    %978 = math.rsqrt %977 : vector<16x128xf32>
    %979 = arith.mulf %974, %978 : vector<16x128xf32>
    %980 = arith.subf %973, %4 : vector<16x128xf32>
    %981 = arith.mulf %980, %980 : vector<16x128xf32>
    %cst_398 = arith.constant 8.100000e-01 : f32
    %982 = vector.broadcast %cst_398 : f32 to vector<16x128xf32>
    %983 = arith.addf %982, %981 : vector<16x128xf32>
    %984 = math.rsqrt %983 : vector<16x128xf32>
    %985 = arith.mulf %980, %984 : vector<16x128xf32>
    %986 = arith.subf %979, %985 : vector<16x128xf32>
    %987 = arith.mulf %986, %986 : vector<16x128xf32>
    %cst_399 = arith.constant 1.000000e-01 : f32
    %988 = vector.broadcast %cst_399 : f32 to vector<16x128xf32>
    %989 = arith.addf %988, %987 : vector<16x128xf32>
    %990 = tpu.reciprocal %989 {approx = true} : vector<16x128xf32> -> vector<16x128xf32>
    %991 = arith.mulf %987, %990 : vector<16x128xf32>
    %992 = arith.addf %971, %991 : vector<16x128xf32>
    %c4_400 = arith.constant 4 : index
    %c0_401 = arith.constant 0 : index
    %993 = vector.load %arg5[%c4_400, %c0_401] : memref<22x128xf32, #tpu.memory_space<vmem>>, vector<16x128xf32>
    %c4_402 = arith.constant 4 : index
    %c0_403 = arith.constant 0 : index
    %994 = vector.load %arg6[%c4_402, %c0_403] : memref<22x128xf32, #tpu.memory_space<vmem>>, vector<16x128xf32>
    %995 = arith.subf %993, %2 : vector<16x128xf32>
    %996 = arith.mulf %995, %995 : vector<16x128xf32>
    %cst_404 = arith.constant 8.100000e-01 : f32
    %997 = vector.broadcast %cst_404 : f32 to vector<16x128xf32>
    %998 = arith.addf %997, %996 : vector<16x128xf32>
    %999 = math.rsqrt %998 : vector<16x128xf32>
    %1000 = arith.mulf %995, %999 : vector<16x128xf32>
    %1001 = arith.subf %994, %4 : vector<16x128xf32>
    %1002 = arith.mulf %1001, %1001 : vector<16x128xf32>
    %cst_405 = arith.constant 8.100000e-01 : f32
    %1003 = vector.broadcast %cst_405 : f32 to vector<16x128xf32>
    %1004 = arith.addf %1003, %1002 : vector<16x128xf32>
    %1005 = math.rsqrt %1004 : vector<16x128xf32>
    %1006 = arith.mulf %1001, %1005 : vector<16x128xf32>
    %1007 = arith.subf %1000, %1006 : vector<16x128xf32>
    %1008 = arith.mulf %1007, %1007 : vector<16x128xf32>
    %cst_406 = arith.constant 1.000000e-01 : f32
    %1009 = vector.broadcast %cst_406 : f32 to vector<16x128xf32>
    %1010 = arith.addf %1009, %1008 : vector<16x128xf32>
    %1011 = tpu.reciprocal %1010 {approx = true} : vector<16x128xf32> -> vector<16x128xf32>
    %1012 = arith.mulf %1008, %1011 : vector<16x128xf32>
    %1013 = arith.addf %992, %1012 : vector<16x128xf32>
    %c5_407 = arith.constant 5 : index
    %c0_408 = arith.constant 0 : index
    %1014 = vector.load %arg5[%c5_407, %c0_408] : memref<22x128xf32, #tpu.memory_space<vmem>>, vector<16x128xf32>
    %c5_409 = arith.constant 5 : index
    %c0_410 = arith.constant 0 : index
    %1015 = vector.load %arg6[%c5_409, %c0_410] : memref<22x128xf32, #tpu.memory_space<vmem>>, vector<16x128xf32>
    %1016 = arith.subf %1014, %2 : vector<16x128xf32>
    %1017 = arith.mulf %1016, %1016 : vector<16x128xf32>
    %cst_411 = arith.constant 8.100000e-01 : f32
    %1018 = vector.broadcast %cst_411 : f32 to vector<16x128xf32>
    %1019 = arith.addf %1018, %1017 : vector<16x128xf32>
    %1020 = math.rsqrt %1019 : vector<16x128xf32>
    %1021 = arith.mulf %1016, %1020 : vector<16x128xf32>
    %1022 = arith.subf %1015, %4 : vector<16x128xf32>
    %1023 = arith.mulf %1022, %1022 : vector<16x128xf32>
    %cst_412 = arith.constant 8.100000e-01 : f32
    %1024 = vector.broadcast %cst_412 : f32 to vector<16x128xf32>
    %1025 = arith.addf %1024, %1023 : vector<16x128xf32>
    %1026 = math.rsqrt %1025 : vector<16x128xf32>
    %1027 = arith.mulf %1022, %1026 : vector<16x128xf32>
    %1028 = arith.subf %1021, %1027 : vector<16x128xf32>
    %1029 = arith.mulf %1028, %1028 : vector<16x128xf32>
    %cst_413 = arith.constant 1.000000e-01 : f32
    %1030 = vector.broadcast %cst_413 : f32 to vector<16x128xf32>
    %1031 = arith.addf %1030, %1029 : vector<16x128xf32>
    %1032 = tpu.reciprocal %1031 {approx = true} : vector<16x128xf32> -> vector<16x128xf32>
    %1033 = arith.mulf %1029, %1032 : vector<16x128xf32>
    %1034 = arith.addf %1013, %1033 : vector<16x128xf32>
    %c6_414 = arith.constant 6 : index
    %c0_415 = arith.constant 0 : index
    %1035 = vector.load %arg5[%c6_414, %c0_415] : memref<22x128xf32, #tpu.memory_space<vmem>>, vector<16x128xf32>
    %c6_416 = arith.constant 6 : index
    %c0_417 = arith.constant 0 : index
    %1036 = vector.load %arg6[%c6_416, %c0_417] : memref<22x128xf32, #tpu.memory_space<vmem>>, vector<16x128xf32>
    %1037 = arith.subf %1035, %2 : vector<16x128xf32>
    %1038 = arith.mulf %1037, %1037 : vector<16x128xf32>
    %cst_418 = arith.constant 8.100000e-01 : f32
    %1039 = vector.broadcast %cst_418 : f32 to vector<16x128xf32>
    %1040 = arith.addf %1039, %1038 : vector<16x128xf32>
    %1041 = math.rsqrt %1040 : vector<16x128xf32>
    %1042 = arith.mulf %1037, %1041 : vector<16x128xf32>
    %1043 = arith.subf %1036, %4 : vector<16x128xf32>
    %1044 = arith.mulf %1043, %1043 : vector<16x128xf32>
    %cst_419 = arith.constant 8.100000e-01 : f32
    %1045 = vector.broadcast %cst_419 : f32 to vector<16x128xf32>
    %1046 = arith.addf %1045, %1044 : vector<16x128xf32>
    %1047 = math.rsqrt %1046 : vector<16x128xf32>
    %1048 = arith.mulf %1043, %1047 : vector<16x128xf32>
    %1049 = arith.subf %1042, %1048 : vector<16x128xf32>
    %1050 = arith.mulf %1049, %1049 : vector<16x128xf32>
    %cst_420 = arith.constant 1.000000e-01 : f32
    %1051 = vector.broadcast %cst_420 : f32 to vector<16x128xf32>
    %1052 = arith.addf %1051, %1050 : vector<16x128xf32>
    %1053 = tpu.reciprocal %1052 {approx = true} : vector<16x128xf32> -> vector<16x128xf32>
    %1054 = arith.mulf %1050, %1053 : vector<16x128xf32>
    %1055 = arith.addf %1034, %1054 : vector<16x128xf32>
    %cst_421 = arith.constant 0.0204081628 : f32
    %1056 = vector.broadcast %cst_421 : f32 to vector<16x128xf32>
    %1057 = arith.mulf %1055, %1056 : vector<16x128xf32>
    %1058 = tpu.iota {dimensions = array<i32: 0>} : vector<16x128xi32>
    %1059 = vector.broadcast %0 : i32 to vector<16x128xi32>
    %1060 = arith.addi %1058, %1059 : vector<16x128xi32>
    %1061 = tpu.iota {dimensions = array<i32: 1>} : vector<16x128xi32>
    %c1_i32 = arith.constant 1 : i32
    %1062 = vector.broadcast %c1_i32 : i32 to vector<16x128xi32>
    %1063 = arith.cmpi sge, %1060, %1062 : vector<16x128xi32>
    %c14_i32 = arith.constant 14 : i32
    %1064 = vector.broadcast %c14_i32 : i32 to vector<16x128xi32>
    %1065 = arith.cmpi sle, %1060, %1064 : vector<16x128xi32>
    %1066 = arith.andi %1063, %1065 : vector<16x128xi1>
    %c1_i32_422 = arith.constant 1 : i32
    %1067 = vector.broadcast %c1_i32_422 : i32 to vector<16x128xi32>
    %1068 = arith.cmpi sge, %1061, %1067 : vector<16x128xi32>
    %1069 = arith.andi %1066, %1068 : vector<16x128xi1>
    %c14_i32_423 = arith.constant 14 : i32
    %1070 = vector.broadcast %c14_i32_423 : i32 to vector<16x128xi32>
    %1071 = arith.cmpi sle, %1061, %1070 : vector<16x128xi32>
    %1072 = arith.andi %1069, %1071 : vector<16x128xi1>
    %cst_424 = arith.constant 0.000000e+00 : f32
    %1073 = vector.broadcast %cst_424 : f32 to vector<16x128xf32>
    %1074 = arith.select %1072, %1057, %1073 : vector<16x128xi1>, vector<16x128xf32>
    %1075 = vector.shape_cast %1074 : vector<16x128xf32> to vector<1x16x128xf32>
    %cst_425 = arith.constant dense<0.000000e+00> : vector<1xf32>
    %1076 = vector.multi_reduction <add>, %1075, %cst_425 [1, 2] : vector<1x16x128xf32> to vector<1xf32>
    %1077 = vector.shape_cast %1076 : vector<1xf32> to vector<1x1x1xf32>
    %1078 = vector.extract %1077[0, 0, 0] : f32 from vector<1x1x1xf32>
    %1079 = vector.broadcast %1078 : f32 to vector<1x1x8x128xf32>
    %c0_426 = arith.constant 0 : index
    %c0_427 = arith.constant 0 : index
    %c0_428 = arith.constant 0 : index
    %c0_429 = arith.constant 0 : index
    %1080 = vector.load %arg4[%c0_426, %c0_427, %c0_428, %c0_429] : memref<1x1x8x128xf32, #tpu.memory_space<vmem>>, vector<1x1x8x128xf32>
    tpu.vector_store %arg4[%c0_426, %c0_427, %c0_428, %c0_429], %1079 {strides = array<i32>} : memref<1x1x8x128xf32, #tpu.memory_space<vmem>>, vector<1x1x8x128xf32>,
    return
  }
  func.func @transform_0(%arg0: i32, %arg1: i32) -> (i32, i32, i32, i32) {
    %c0_i32 = arith.constant 0 : i32
    %c0_i32_0 = arith.constant 0 : i32
    %c0_i32_1 = arith.constant 0 : i32
    return %arg0, %arg1, %c0_i32, %c0_i32_0 : i32, i32, i32, i32
  }
  func.func @transform_1(%arg0: i32, %arg1: i32) -> (i32, i32, i32, i32) {
    %c0_i32 = arith.constant 0 : i32
    %c0_i32_0 = arith.constant 0 : i32
    %c0_i32_1 = arith.constant 0 : i32
    return %arg0, %arg1, %c0_i32, %c0_i32_0 : i32, i32, i32, i32
  }
  func.func @transform_2(%arg0: i32, %arg1: i32) -> (i32, i32, i32, i32) {
    %c0_i32 = arith.constant 0 : i32
    %c0_i32_0 = arith.constant 0 : i32
    %c0_i32_1 = arith.constant 0 : i32
    return %arg0, %arg1, %c0_i32, %c0_i32_0 : i32, i32, i32, i32
  }
}

</mosaic_0001>

<bundles_post_ra>
// kernel: tpu_custom_call.1
= control target key start
LH: loop header
LB: loop body
LE: loop exit
PB: predicated region body
PF: predicated region fallthrough
CT: control target
= control target key end

     0   :  { %7 = vsyncpa [#allocation5], 0  ;;  %s10804_s0 = inlined_call_operand.vmem [shape: f32[2,1,22,134], index: 0, kind: input, shape index: {}]   ;;  %s10805_s1 = inlined_call_operand.vmem [shape: f32[2,1,22,134], index: 1, kind: input, shape index: {}]   ;;  %s10806_s2 = inlined_call_operand.hbm [shape: f32[2,1,8,128], index: 2, kind: output, shape index: {}]  }
   0x1   :  { %9 = vsyncpa [#allocation5 + $0x1], 0  ;;  %s5047_s9 = smov 0   ;;  %s5049_s10 = smov 0  }
   0x2   :  { %s5051_s11 = smov 0   ;;  %s5053_s12 = smov 0  }
   0x3   :  { %s5055_s13 = smov 0   ;;  %s5057_s14 = smov 0  }
   0x4 LB: > { %s4294_s15 = sadd.s32 4294967295, %s5024_s14   ;;  %s4295_s16 = sadd.s32 4294967294, %s5024_s14   ;;  %s5024_s14 = sphi %s5057_s14, %s15_s14   ;;  %s5020_s13 = sphi %s5055_s13, %s11251_s13   ;;  %s5016_s12 = sphi %s5053_s12, %s11250_s12   ;;  %s5012_s11 = sphi %s5051_s11, %s11249_s11   ;;  %s5008_s10 = sphi %s5049_s10, %s11248_s10   ;;  %s5004_s9 = sphi %s5047_s9, %s11247_s9  }
   0x5   : > { %s27_s17 = sadd.s32 1, %s5020_s13  ;;  %s92_s18 = sadd.s32 1, %s5012_s11 }
   0x6   : > { %p29_p0 = scmp.ge.s32.totalorder %s27_s17, 2  ;;  %p102_p1 = scmp.ne.s32.totalorder %s5012_s11, %s5008_s10 }
   0x7   : > { %p103_p2 = scmp.eq.s32.totalorder %s4294_s15, 1  ;;  %p108_p3 = scmp.ne.s32.totalorder %s5008_s10, %s5004_s9 }
   0x8   : > { %s11253_s17 = smov (%p29_p0, %s27_s17), 0  ;;  %p109_p5 = scmp.eq.s32.totalorder %s4295_s16, 1 }
   0x9   : > { %p5087_p4 = por %p103_p2, %p102_p1  ;;  %s87_s20 = ssub.s32 %s5020_s13, %s11253_s17 }
   0xa   : > { %p4298_p6 = scmp.ge.s32.totalorder %s5024_s14, 1  ;;  %p90_p7 = scmp.eq.s32.totalorder %s87_s20, 0 }
   0xb   : > { %p5094_p8 = por %p109_p5, %p108_p3  ;;  %p151_p9 = scmp.lt.s32.totalorder %s5024_s14, 3 }
   0xc   : > { %s5100_s22 = scalar_select %p90_p7, %s5012_s11, %s92_s18  }
   0xd   : > { %p152_p10 = pnand %p4298_p6, %p151_p9 }
   0xf   : > { %155 = sbr.rel (%p152_p10) target bundleno = 1124 (0x464), region = 28 }
  0x14   : > { %p186_p11 = scmp.lt.s32.totalorder %s5016_s12, 1  ;;  %vm238_vm0 = vcmask 1044480   ;;  %s5026_s3 = smov 125   ;;  %vm257_vm1 = vcmask 1022976   ;;  %vm814_vm2 = vcmask 1039360  }
  0x15   : > { %s5027_s4 = smov 127   ;;  %s5028_s5 = smov 126  }
  0x16   : > { %s187_s23 = scalar_select %p186_p11, %s5016_s12, 1 }
  0x17   : > { %s5029_s6 = smov 124   ;;  %s5030_s7 = smov 123  }
  0x18   : > { %s4306_s24 = smul.u32 48, %s187_s23  ;;  %s5031_s8 = smov 122  }
  0x19   : > { %s183_s15 = sand.u32 1, %s5008_s10   ;;  %s4303_s18 = sshll.u32 %s5016_s12, 3 }
  0x1a   : > { %s5107_s27 = scalar_lea.vmem %s10804_s0, %s4306_s24  ;;  %s5112_s30 = scalar_lea.vmem %s10805_s1, %s4306_s24 }
  0x1b   : > { %v5115_v0 = vld [vmem:[%s5107_s27 + $0x10] sm:$0xff]  ;;  %v209_v1 = vld [vmem:[%s5107_s27 + $0x20] sm:$0x7]  ;;  %v205_v6 = vld [vmem:[%s5107_s27] sm:$0xf8]  ;;  %s4299_s16 = sshll.u32 %s183_s15, 3  ;;  %s4191_s24 = scalar_lea.hbm %s10806_s2, %s4303_s18 }
  0x1c   : > { %v5119_v2 = vld [vmem:[%s5107_s27] sm:$0xff]  ;;  %v5123_v3 = vld [vmem:[%s5112_s30 + $0x10] sm:$0xff]  ;;  %v240_v4 = vrot.slane %v5115_v0, 3  ;;  %v245_v5 = vrot.slane %v209_v1, 3  ;;  %v239_v7 = vrot.slane %v205_v6, 3  ;;  %v5131_v10 = vld [vmem:[%s5107_s27 + $0x18] sm:$0xff] }
  0x1d   : > { %219 = vst [vmem:[#allocation2] sm:$0xff] %v5119_v2  ;;  %v211_v8 = vld [vmem:[%s5112_s30] sm:$0xf8]  ;;  %v297_v9 = vrot.slane %v5123_v3, 3  ;;  %v210_v13 = vld [vmem:[%s5107_s27 + $0x28] sm:$0x7] }
  0x1e   : > { %226 = vst [vmem:[#allocation3 + $0x8] sm:$0xff] %v5123_v3  ;;  %v246_v11 = vsel %vm238_vm0, %v240_v4, %v245_v5  ;;  %v296_v12 = vrot.slane %v211_v8, 3  ;;  %v241_v14 = vsel %vm238_vm0, %v239_v7, %v240_v4  ;;  %v206_v15 = vld [vmem:[%s5107_s27 + $0x8] sm:$0xf8]  ;;  %v5141_v17 = vld [vmem:[%s5112_s30 + $0x18] sm:$0xff]  ;;  %v243_v19 = vrot.slane %v5131_v10, 3 }
  0x1f   : > { %220 = vst [vmem:[#allocation2 + $0x8] sm:$0xff] %v5115_v0  ;;  %253 = vrot.lane.b32.xlu1 %v246_v11, %s5026_s3  ;;  %v212_v16 = vld [vmem:[%s5112_s30 + $0x8] sm:$0xf8]  ;;  %249 = vrot.lane.b32.xlu0 %v241_v14, %s5026_s3  ;;  %v247_v20 = vrot.slane %v210_v13, 3  ;;  %v242_v21 = vrot.slane %v206_v15, 3  ;;  %v5148_v22 = vld [vmem:[%s5112_s30] sm:$0xff] }
  0x20   : > { %v298_v18 = vsel %vm238_vm0, %v296_v12, %v297_v9  ;;  %v299_v23 = vrot.slane %v212_v16, 3  ;;  %v300_v24 = vrot.slane %v5141_v17, 3  ;;  %225 = vst [vmem:[#allocation3] sm:$0xff] %v5148_v22  ;;  %v216_v27 = vld [vmem:[%s5112_s30 + $0x28] sm:$0x7]  ;;  %s185_s25 = scalar_lea.vmem [#allocation4], %s4299_s16 }
  0x21   : > { %306 = vrot.lane.b32.xlu2 %v298_v18, %s5026_s3  ;;  %v248_v25 = vsel %vm238_vm0, %v243_v19, %v247_v20  ;;  %v244_v26 = vsel %vm238_vm0, %v242_v21, %v243_v19  ;;  %v215_v29 = vld [vmem:[%s5112_s30 + $0x20] sm:$0x7]  ;;  %v304_v30 = vrot.slane %v216_v27, 3  ;;  %v5166_v34 = vld [vmem:[%s5107_s27 + $0x8] sm:$0xff]  ;;  %s4193_s26 = sshll.u32 %s185_s25, 4  ;;  %s4180_s29 = scalar_lea.sflag [#allocation5], %s183_s15  ;;  %s4194_s26 = int_to_ptr.vmem [resolvable:$true] %s4193_s26 }
  0x22   : > { %v301_v28 = vsel %vm238_vm0, %v299_v23, %v300_v24  ;;  %v302_v31 = vrot.slane %v215_v29, 3  ;;  %v5172_v35 = vld [vmem:[%s5112_s30 + $0x8] sm:$0xff]  ;;  %v794_v36 = vld [vmem:[%s5107_s27 + $0x20] sm:$0x3f] }
  0x23   : > { %v305_v32 = vsel %vm238_vm0, %v300_v24, %v304_v30  ;;  %v795_v37 = vld [vmem:[%s5107_s27 + $0x28] sm:$0x3f]  ;;  %v828_v39 = vld [vmem:[%s5112_s30 + $0x20] sm:$0x3f] }
  0x24   : > { %v303_v33 = vsel %vm238_vm0, %v297_v9, %v302_v31  ;;  %v829_v38 = vld [vmem:[%s5112_s30 + $0x28] sm:$0x3f]  ;;  %v1365_v40 = vld [vmem:[%s5107_s27 + $0x20] sm:$0x3f] }
  0x25   : > { %v1366_v41 = vld [vmem:[%s5107_s27 + $0x28] sm:$0x3f]  ;;  %v1399_v43 = vld [vmem:[%s5112_s30 + $0x20] sm:$0x3f] }
  0x26   : > { %v1400_v42 = vld [vmem:[%s5112_s30 + $0x28] sm:$0x3f]  ;;  %v1936_v47 = vld [vmem:[%s5107_s27 + $0x20] sm:$0x3f] }
  0x27   : > { %255 = vrot.lane.b32.xlu1 %v248_v25, %s5026_s3  ;;  %251 = vrot.lane.b32.xlu0 %v244_v26, %s5026_s3  ;;  %v360_v48 = vld [vmem:[#allocation3 + $0x1] sm:$0xff]  ;;  %v1937_v50 = vld [vmem:[%s5107_s27 + $0x28] sm:$0x3f] }
  0x28   : > { %v432_v49 = vld [vmem:[#allocation3 + $0x2] sm:$0xff]  ;;  %v1970_v57 = vld [vmem:[%s5112_s30 + $0x28] sm:$0x3f] }
  0x29   : > { %308 = vrot.lane.b32.xlu2 %v301_v28, %s5026_s3  ;;  %v504_v54 = vld [vmem:[#allocation3 + $0x3] sm:$0xff]  ;;  %v502_v30 = vld [vmem:[#allocation2 + $0x3] sm:$0xff] }
  0x2a   : > { %v1969_v60 = vld [vmem:[%s5112_s30 + $0x20] sm:$0x3f] }
  0x2b   : > { %v576_v62 = vld [vmem:[#allocation3 + $0x4] sm:$0xff] }
  0x2c   : > { %v648_v5 = vld [vmem:[#allocation3 + $0x5] sm:$0xff] }
  0x2d   : > { %v720_v13 = vld [vmem:[#allocation3 + $0x6] sm:$0xff] }
  0x2e   : > { %v358_v18 = vld [vmem:[#allocation2 + $0x1] sm:$0xff] }
  0x2f   : > { %312 = vrot.lane.b32.xlu1 %v305_v32, %s5026_s3  ;;  %310 = vrot.lane.b32.xlu0 %v303_v33, %s5026_s3  ;;  %v430_v19 = vld [vmem:[#allocation2 + $0x2] sm:$0xff] }
  0x31   : > { %802 = vrot.lane.b32.xlu2 %v5119_v2, %s5027_s4 }
  0x37   : > { %806 = vrot.lane.b32.xlu1 %v5115_v0, %s5027_s4  ;;  %804 = vrot.lane.b32.xlu0 %v5166_v34, %s5027_s4 }
  0x39   : > { %808 = vrot.lane.b32.xlu2 %v5131_v10, %s5027_s4 }
  0x3f   : > { %838 = vrot.lane.b32.xlu1 %v5172_v35, %s5027_s4  ;;  %836 = vrot.lane.b32.xlu0 %v5148_v22, %s5027_s4 }
  0x41   : > { %840 = vrot.lane.b32.xlu2 %v5123_v3, %s5027_s4 }
  0x47   : > { %810 = vrot.lane.b32.xlu1 %v794_v36, %s5027_s4  ;;  %842 = vrot.lane.b32.xlu0 %v5141_v17, %s5027_s4 }
  0x49   : > { %812 = vrot.lane.b32.xlu2 %v795_v37, %s5027_s4 }
  0x4f   : > { %846 = vrot.lane.b32.xlu1 %v829_v38, %s5027_s4  ;;  %844 = vrot.lane.b32.xlu0 %v828_v39, %s5027_s4 }
  0x51   : > { %1373 = vrot.lane.b32.xlu2 %v5119_v2, %s5028_s5 }
  0x57   : > { %1377 = vrot.lane.b32.xlu1 %v5115_v0, %s5028_s5  ;;  %1375 = vrot.lane.b32.xlu0 %v5166_v34, %s5028_s5 }
  0x59   : > { %1379 = vrot.lane.b32.xlu2 %v5131_v10, %s5028_s5 }
  0x5f   : > { %1409 = vrot.lane.b32.xlu1 %v5172_v35, %s5028_s5  ;;  %1407 = vrot.lane.b32.xlu0 %v5148_v22, %s5028_s5 }
  0x61   : > { %1411 = vrot.lane.b32.xlu2 %v5123_v3, %s5028_s5 }
  0x67   : > { %1381 = vrot.lane.b32.xlu1 %v1365_v40, %s5028_s5  ;;  %1413 = vrot.lane.b32.xlu0 %v5141_v17, %s5028_s5 }
  0x69   : > { %1383 = vrot.lane.b32.xlu2 %v1366_v41, %s5028_s5 }
  0x6f   : > { %1417 = vrot.lane.b32.xlu1 %v1400_v42, %s5028_s5  ;;  %1415 = vrot.lane.b32.xlu0 %v1399_v43, %s5028_s5  ;;  %s4966_s5 = scalar_lea.hbm %s10806_s2, 16 }
  0x71   : > { %1944 = vrot.lane.b32.xlu2 %v5119_v2, %s5026_s3 }
  0x77   : > { %1948 = vrot.lane.b32.xlu1 %v5115_v0, %s5026_s3  ;;  %1946 = vrot.lane.b32.xlu0 %v5166_v34, %s5026_s3 }
  0x79   : > { %1950 = vrot.lane.b32.xlu2 %v5131_v10, %s5026_s3 }
  0x7b   : > { %v307_v44 = vpop.permute.xlu2 %306 }
  0x7f   : > { %1979 = vrot.lane.b32.xlu1 %v5172_v35, %s5026_s3  ;;  %1977 = vrot.lane.b32.xlu0 %v5148_v22, %s5026_s3 }
  0x81   : > { %1981 = vrot.lane.b32.xlu2 %v5123_v3, %s5026_s3 }
  0x83   : > { %v309_v45 = vpop.permute.xlu2 %308 }
  0x84   : > { %v5209_v46 = vsel %vm257_vm1, %v307_v44, %v309_v45 }
  0x85   : > { %10855 = vst [vmem:[#allocation7_spill] sm:$0xff] %v5209_v46  ;;  %v5215_v51 = vsub.f32 %v5148_v22, %v5209_v46  ;;  %v5219_v52 = vsub.f32 %v360_v48, %v5209_v46  ;;  %v5224_v53 = vsub.f32 %v432_v49, %v5209_v46  ;;  %v5235_v59 = vsub.f32 %v504_v54, %v5209_v46 }
  0x86   : > { %v5251_v7 = vsub.f32 %v576_v62, %v5209_v46  ;;  %v5256_v9 = vsub.f32 %v648_v5, %v5209_v46  ;;  %v5279_v23 = vsub.f32 %v720_v13, %v5209_v46  ;;  %v2434_v13 = vld [vmem:[%s5107_s27 + $0x20] sm:$0x3f] }
  0x87   : > { %1952 = vrot.lane.b32.xlu1 %v1936_v47, %s5026_s3  ;;  %1983 = vrot.lane.b32.xlu0 %v5141_v17, %s5026_s3  ;;  %v320_v55 = vmul.f32 %v5215_v51, %v5215_v51  ;;  %v392_v56 = vmul.f32 %v5219_v52, %v5219_v52  ;;  %v464_v58 = vmul.f32 %v5224_v53, %v5224_v53  ;;  %v218_v47 = vld [vmem:[%s5107_s27 + $0x20] sm:$0x3f] }
  0x88   : > { %v536_v4 = vmul.f32 %v5235_v59, %v5235_v59  ;;  %10856 = vst [vmem:[#allocation8_spill] sm:$0xff] %v5256_v9  ;;  %v608_v12 = vmul.f32 %v5251_v7, %v5251_v7  ;;  %v680_v14 = vmul.f32 %v5256_v9, %v5256_v9 }
  0x89   : > { %1954 = vrot.lane.b32.xlu2 %v1937_v50, %s5026_s3  ;;  %v5238_v61 = vadd.f32 0.81, %v320_v55  ;;  %v5241_v63 = vadd.f32 0.81, %v392_v56  ;;  %v5244_v1 = vadd.f32 0.81, %v464_v58 }
  0x8a   : > { %v5259_v11 = vadd.f32 0.81, %v536_v4  ;;  %v5276_v21 = vadd.f32 0.81, %v608_v12  ;;  %10857 = vst [vmem:[#allocation9_spill] sm:$0xff] %v5279_v23 }
  0x8b   : > { %4370 = vrsqrt.f32 %v5238_v61  ;;  %v5295_v29 = vadd.f32 0.81, %v680_v14  ;;  %v5309_v37 = vpop.permute.xlu2 %802  ;;  %221 = vst [vmem:[#allocation2 + $0x10] sm:$0x3f] %v218_v47  ;;  %vm330_vm3 = vweird.f32 %v5238_v61  ;;  %vm402_vm4 = vweird.f32 %v5241_v63 }
  0x8c   : > { %4372 = vrsqrt.f32 %v5241_v63  ;;  %vm474_vm5 = vweird.f32 %v5244_v1  ;;  %vm546_vm9 = vweird.f32 %v5259_v11 }
  0x8d   : > { %4374 = vrsqrt.f32 %v5244_v1 }
  0x8e   : > { %4376 = vrsqrt.f32 %v5259_v11 }
  0x8f   : > { %1987 = vrot.lane.b32.xlu1 %v1970_v57, %s5026_s3  ;;  %1985 = vrot.lane.b32.xlu0 %v1969_v60, %s5026_s3  ;;  %4378 = vrsqrt.f32 %v5276_v21 }
  0x90   : > { %4380 = vrsqrt.f32 %v5295_v29 }
  0x91   : > { %v254_v6 = vpop.permute.xlu1 %253  ;;  %2442 = vrot.lane.b32.xlu2 %v5119_v2, %s5029_s6  ;;  %v250_v8 = vpop.permute.xlu0 %249 }
  0x92   : > { %v5267_v15 = vpop.eup %4370 }
  0x93   : > { %v5272_v16 = vpop.eup %4372  ;;  %vm331_vm6 = vweird.f32 %v5267_v15 }
  0x94   : > { %v5281_v24 = vpop.eup %4374  ;;  %v397_v33 = vmul.f32 %v5272_v16, %v5241_v63  ;;  %vm403_vm7 = vweird.f32 %v5272_v16  ;;  %vm5466_vm11 = vmor %vm330_vm3, %vm331_vm6 }
  0x95   : > { %v469_v38 = vmul.f32 %v5281_v24, %v5244_v1  ;;  %v5316_v39 = vpop.eup %4376  ;;  %vm475_vm8 = vweird.f32 %v5281_v24  ;;  %vm5481_vm13 = vmor %vm402_vm4, %vm403_vm7  ;;  %vm618_vm4 = vweird.f32 %v5276_v21 }
  0x96   : > { %v398_v50 = vmul.f32 %v5272_v16, %v397_v33  ;;  %v541_v57 = vmul.f32 %v5316_v39, %v5259_v11  ;;  %v5355_v4 = vpop.eup %4378  ;;  %v809_v33 = vpop.permute.xlu2 %808  ;;  %vm547_vm10 = vweird.f32 %v5316_v39  ;;  %vm5494_vm14 = vmor %vm474_vm5, %vm475_vm8 }
  0x97   : > { %2446 = vrot.lane.b32.xlu1 %v5115_v0, %s5029_s6  ;;  %2444 = vrot.lane.b32.xlu0 %v5166_v34, %s5029_s6  ;;  %v470_v60 = vmul.f32 %v5281_v24, %v469_v38  ;;  %vm5534_vm3 = vmor %vm546_vm9, %vm547_vm10  ;;  %vm619_vm5 = vweird.f32 %v5355_v4 }
  0x98   : > { %v399_v14 = vmul.f32 0.5, %v398_v50 }
  0x99   : > { %v256_v20 = vpop.permute.xlu1 %255  ;;  %2448 = vrot.lane.b32.xlu2 %v5131_v10, %s5029_s6  ;;  %v252_v26 = vpop.permute.xlu0 %251  ;;  %v325_v10 = vmul.f32 %v5267_v15, %v5238_v61 }
  0x9a   : > { %v5284_v25 = vsel %vm257_vm1, %v254_v6, %v256_v20  ;;  %v5291_v28 = vsel %vm257_vm1, %v250_v8, %v252_v26  ;;  %v646_v20 = vld [vmem:[#allocation2 + $0x5] sm:$0xff]  ;;  %v542_v26 = vmul.f32 %v5316_v39, %v541_v57 }
  0x9b   : > { %10858 = vst [vmem:[#allocation10_spill] sm:$0xff] %v5284_v25  ;;  %v5288_v27 = vsub.f32 %v5115_v0, %v5284_v25  ;;  %v5299_v31 = vsub.f32 %v5119_v2, %v5291_v28  ;;  %v5302_v32 = vsub.f32 %v358_v18, %v5291_v28  ;;  %v5307_v36 = vsub.f32 %v430_v19, %v5291_v28  ;;  %v5373_v19 = vpop.eup %4380  ;;  %v5414_v57 = vld [vmem:[#allocation2 + $0xa] sm:$0xff] }
  0x9c   : > { %10859 = vst [vmem:[#allocation11_spill] sm:$0xff] %v5291_v28  ;;  %v752_v2 = vmul.f32 %v5279_v23, %v5279_v23  ;;  %v326_v44 = vmul.f32 %v5267_v15, %v325_v10  ;;  %v5330_v45 = vsub.f32 %v502_v30, %v5291_v28  ;;  %v471_v10 = vmul.f32 0.5, %v470_v60  ;;  %v5430_v23 = vld [vmem:[#allocation2 + $0xe] sm:$0xff] }
  0x9d   : > { %v265_v40 = vmul.f32 %v5288_v27, %v5288_v27  ;;  %v264_v41 = vmul.f32 %v5299_v31, %v5299_v31  ;;  %v364_v42 = vmul.f32 %v5302_v32, %v5302_v32  ;;  %v436_v43 = vmul.f32 %v5307_v36, %v5307_v36  ;;  %10864 = vst [vmem:[#allocation16_spill] sm:$0xff] %v5414_v57 }
  0x9e   : > { %v508_v56 = vmul.f32 %v5330_v45, %v5330_v45  ;;  %v5353_v62 = vadd.f32 0.81, %v752_v2  ;;  %v327_v6 = vmul.f32 0.5, %v326_v44  ;;  %10869 = vst [vmem:[#allocation21_spill] sm:$0xff] %v5430_v23 }
  0x9f   : > { %2478 = vrot.lane.b32.xlu1 %v5172_v35, %s5029_s6  ;;  %2476 = vrot.lane.b32.xlu0 %v5148_v22, %s5029_s6  ;;  %v5336_v48 = vadd.f32 0.81, %v264_v41  ;;  %v5338_v49 = vadd.f32 0.81, %v364_v42  ;;  %v5341_v54 = vadd.f32 0.81, %v436_v43  ;;  %v5398_v43 = vsub.f32 %v646_v20, %v5291_v28 }
  0xa0   : > { %v574_v35 = vld [vmem:[#allocation2 + $0x4] sm:$0xff]  ;;  %v5349_v22 = vadd.f32 0.81, %v265_v40  ;;  %v5362_v8 = vadd.f32 0.81, %v508_v56  ;;  %v328_v38 = vsub.f32 1.5, %v327_v6 }
  0xa1   : > { %v313_v55 = vpop.permute.xlu1 %312  ;;  %2480 = vrot.lane.b32.xlu2 %v5123_v3, %s5029_s6  ;;  %v311_v58 = vpop.permute.xlu0 %310  ;;  %4382 = vrsqrt.f32 %v5336_v48  ;;  %v5371_v18 = vsub.f32 %v574_v35, %v5291_v28  ;;  %v5390_v40 = vld [vmem:[#allocation2 + $0x6] sm:$0xff]  ;;  %v400_v42 = vsub.f32 1.5, %v399_v14  ;;  %10862 = vst [vmem:[#allocation14_spill] sm:$0xff] %v5398_v43  ;;  %v5404_v35 = vmul.f32 0.5, %v542_v26 }
  0xa2   : > { %v5358_v5 = vsel %vm257_vm1, %v311_v58, %v313_v55  ;;  %4384 = vrsqrt.f32 %v5338_v49  ;;  %v685_v55 = vmul.f32 %v5373_v19, %v5295_v29  ;;  %v5412_v56 = vld [vmem:[#allocation2 + $0x9] sm:$0xff]  ;;  %v472_v14 = vsub.f32 1.5, %v471_v10 }
  0xa3   : > { %10860 = vst [vmem:[#allocation12_spill] sm:$0xff] %v5358_v5  ;;  %v5366_v12 = vsub.f32 %v5123_v3, %v5358_v5  ;;  %4386 = vrsqrt.f32 %v5341_v54  ;;  %v580_v30 = vmul.f32 %v5371_v18, %v5371_v18  ;;  %v5416_v58 = vld [vmem:[#allocation2 + $0xb] sm:$0xff]  ;;  %vm274_vm15 = vweird.f32 %v5336_v48 }
  0xa4   : > { %4388 = vrsqrt.f32 %v5362_v8  ;;  %10863 = vst [vmem:[#allocation15_spill] sm:$0xff] %v5412_v56  ;;  %v5426_v26 = vld [vmem:[#allocation2 + $0xc] sm:$0xff]  ;;  %vm374_vm7 = vweird.f32 %v5338_v49  ;;  %vm446_vm10 = vweird.f32 %v5341_v54 }
  0xa5   : > { %10861 = vst [vmem:[#allocation13_spill] sm:$0xff] %v5366_v12  ;;  %4390 = vrsqrt.f32 %v5349_v22  ;;  %v321_v3 = vmul.f32 %v5366_v12, %v5366_v12  ;;  %v5424_v20 = vadd.f32 0.81, %v580_v30  ;;  %v224_v30 = vld [vmem:[%s5112_s30 + $0x20] sm:$0x3f] }
  0xa6   : > { %4392 = vrsqrt.f32 %v5353_v62  ;;  %10865 = vst [vmem:[#allocation17_spill] sm:$0xff] %v5416_v58 }
  0xa7   : > { %2450 = vrot.lane.b32.xlu1 %v2434_v13, %s5029_s6  ;;  %v5388_v2 = vpop.eup %4382  ;;  %v5392_v41 = vadd.f32 0.81, %v321_v3  ;;  %2482 = vrot.lane.b32.xlu0 %v5141_v17, %s5029_s6  ;;  %v613_v17 = vmul.f32 %v5355_v4, %v5276_v21  ;;  %10867 = vst [vmem:[#allocation19_spill] sm:$0xff] %v5426_v26  ;;  %v5428_v3 = vld [vmem:[#allocation2 + $0xd] sm:$0xff] }
  0xa8   : > { %v5400_v44 = vpop.eup %4384  ;;  %v269_v50 = vmul.f32 %v5388_v2, %v5336_v48  ;;  %10868 = vst [vmem:[#allocation20_spill] sm:$0xff] %v5428_v3  ;;  %v2469_v3 = vld [vmem:[%s5112_s30 + $0x28] sm:$0x3f]  ;;  %vm275_vm12 = vweird.f32 %v5388_v2 }
  0xa9   : > { %v807_v47 = vpop.permute.xlu1 %806  ;;  %v5418_v60 = vpop.eup %4386  ;;  %4394 = vrsqrt.f32 %v5392_v41  ;;  %v369_v10 = vmul.f32 %v5400_v44, %v5338_v49  ;;  %227 = vst [vmem:[#allocation3 + $0x10] sm:$0x3f] %v224_v30  ;;  %vm5516_vm0 = vmor %vm274_vm15, %vm275_vm12  ;;  %vm375_vm6 = vweird.f32 %v5400_v44  ;;  %vm284_vm12 = vweird.f32 %v5349_v22 }
  0xaa   : > { %v5422_v6 = vsel %vm814_vm2, %v807_v47, %v809_v33  ;;  %v805_v13 = vpop.permute.xlu0 %804  ;;  %v5432_v58 = vpop.eup %4388  ;;  %v270_v5 = vmul.f32 %v5388_v2, %v269_v50  ;;  %v329_v47 = vmul.f32 %v5267_v15, %v328_v38  ;;  %v401_v50 = vmul.f32 %v5272_v16, %v400_v42  ;;  %vm5565_vm9 = vmor %vm374_vm7, %vm375_vm6 }
  0xab   : > { %10866 = vst [vmem:[#allocation18_spill] sm:$0xff] %v5422_v6  ;;  %v815_v33 = vsel %vm814_vm2, %v5309_v37, %v805_v13  ;;  %v5442_v26 = vpop.eup %4390  ;;  %v441_v37 = vmul.f32 %v5418_v60, %v5341_v54  ;;  %v652_v38 = vmul.f32 %v5398_v43, %v5398_v43  ;;  %v370_v9 = vmul.f32 %v5400_v44, %v369_v10  ;;  %vm5624_vm7 = vmor %vm618_vm4, %vm619_vm5 }
  0xac   : > { %822 = vst [vmem:[#allocation2 + $0x8] sm:$0xff] %v5422_v6  ;;  %v5445_v23 = vsub.f32 %v815_v33, %v5291_v28  ;;  %v5453_v13 = vpop.eup %4392  ;;  %v271_v57 = vmul.f32 0.5, %v270_v5  ;;  %v2468_v6 = vld [vmem:[%s5112_s30 + $0x20] sm:$0x3f]  ;;  %v513_v56 = vmul.f32 %v5432_v58, %v5362_v8  ;;  %v473_v10 = vmul.f32 %v5281_v24, %v472_v14 }
  0xad   : > { %821 = vst [vmem:[#allocation2] sm:$0xff] %v815_v33  ;;  %v544_v33 = vsub.f32 1.5, %v5404_v35  ;;  %v442_v5 = vmul.f32 %v5418_v60, %v441_v37  ;;  %4396 = vrsqrt.f32 %v5424_v20  ;;  %v279_v35 = vmul.f32 %v5442_v26, %v5349_v22 }
  0xae   : > { %10870 = vst [vmem:[#allocation22_spill] sm:$0xff] %v5445_v23  ;;  %v863_v42 = vmul.f32 %v5445_v23, %v5445_v23  ;;  %v272_v30 = vsub.f32 1.5, %v271_v57  ;;  %v371_v23 = vmul.f32 0.5, %v370_v9  ;;  %v514_v63 = vmul.f32 %v5432_v58, %v513_v56 }
  0xaf   : > { %2486 = vrot.lane.b32.xlu1 %v2469_v3, %s5029_s6  ;;  %v5485_v14 = vpop.eup %4394  ;;  %2484 = vrot.lane.b32.xlu0 %v2468_v6, %s5029_s6  ;;  %v443_v57 = vmul.f32 0.5, %v442_v5  ;;  %v5499_v3 = vadd.f32 0.81, %v652_v38  ;;  %v614_v6 = vmul.f32 %v5355_v4, %v613_v17  ;;  %v686_v5 = vmul.f32 %v5373_v19, %v685_v55 }
  0xb0   : > { %v5487_v37 = vadd.f32 0.81, %v863_v42  ;;  %v273_v25 = vmul.f32 %v5388_v2, %v272_v30  ;;  %v333_v42 = vsel %vm5466_vm11, %v5267_v15, %v329_v47  ;;  %v335_v1 = vmul.f32 %v5485_v14, %v5392_v41 }
  0xb1   : > { %v372_v12 = vsub.f32 1.5, %v371_v23  ;;  %v405_v56 = vsel %vm5481_vm13, %v5272_v16, %v401_v50  ;;  %v280_v38 = vmul.f32 %v5442_v26, %v279_v35  ;;  %v477_v43 = vsel %vm5494_vm14, %v5281_v24, %v473_v10 }
  0xb2   : > { %4398 = vrsqrt.f32 %v5487_v37  ;;  %v545_v23 = vmul.f32 %v5316_v39, %v544_v33  ;;  %v277_v16 = vsel %vm5516_vm0, %v5388_v2, %v273_v25  ;;  %v444_v17 = vsub.f32 1.5, %v443_v57 }
  0xb3   : > { %v5525_v48 = vpop.eup %4396  ;;  %v515_v55 = vmul.f32 0.5, %v514_v63  ;;  %4400 = vrsqrt.f32 %v5499_v3  ;;  %v344_v24 = vmul.f32 %v333_v42, %v5215_v51  ;;  %v416_v25 = vmul.f32 %v405_v56, %v5219_v52  ;;  %v839_v56 = vpop.permute.xlu1 %838 }
  0xb4   : > { %v585_v2 = vmul.f32 %v5525_v48, %v5424_v20  ;;  %v615_v50 = vmul.f32 0.5, %v614_v6  ;;  %v336_v11 = vmul.f32 %v5485_v14, %v335_v1  ;;  %v373_v33 = vmul.f32 %v5400_v44, %v372_v12  ;;  %v5593_v1 = vpop.permute.xlu2 %840 }
  0xb5   : > { %v516_v10 = vsub.f32 1.5, %v515_v55  ;;  %v288_v35 = vmul.f32 %v277_v16, %v5299_v31  ;;  %v5550_v30 = vmul.f32 %v477_v43, %v5224_v53  ;;  %v549_v51 = vsel %vm5534_vm3, %v5316_v39, %v545_v23 }
  0xb6   : > { %v586_v52 = vmul.f32 %v5525_v48, %v585_v2  ;;  %v281_v61 = vmul.f32 0.5, %v280_v38  ;;  %v445_v12 = vmul.f32 %v5418_v60, %v444_v17  ;;  %vm447_vm8 = vweird.f32 %v5418_v60 }
  0xb7   : > { %3017 = vrot.lane.b32.xlu1 %v5115_v0, %s5030_s7  ;;  %3015 = vrot.lane.b32.xlu0 %v5166_v34, %s5030_s7  ;;  %vm519_vm11 = vweird.f32 %v5432_v58  ;;  %v616_v0 = vsub.f32 1.5, %v615_v50  ;;  %v5571_v39 = vmul.f32 0.5, %v686_v5  ;;  %v337_v57 = vmul.f32 0.5, %v336_v11  ;;  %vm5582_vm13 = vmor %vm446_vm10, %vm447_vm8 }
  0xb8   : > { %v5563_v53 = vpop.eup %4398  ;;  %v377_v34 = vsel %vm5565_vm9, %v5400_v44, %v373_v33  ;;  %v517_v9 = vmul.f32 %v5432_v58, %v516_v10  ;;  %v587_v63 = vmul.f32 0.5, %v586_v52  ;;  %v346_v42 = vsub.f32 %v288_v35, %v344_v24  ;;  %v837_v10 = vpop.permute.xlu0 %836  ;;  %v5745_v35 = vld [vmem:[%s5112_s30] sm:$0xff] }
  0xb9   : > { %v5573_v49 = vpop.eup %4400  ;;  %vm518_vm14 = vweird.f32 %v5362_v8  ;;  %v5589_v6 = vsub.f32 %v5390_v40, %v5291_v28  ;;  %v282_v5 = vsub.f32 1.5, %v281_v61  ;;  %v868_v44 = vmul.f32 %v5563_v53, %v5487_v37  ;;  %v10897_v8 = vld [vmem:[#allocation13_spill] sm:$0xff] }
  0xba   : > { %v449_v38 = vsel %vm5582_vm13, %v5418_v60, %v445_v12  ;;  %v588_v15 = vsub.f32 1.5, %v587_v63  ;;  %v388_v43 = vmul.f32 %v377_v34, %v5302_v32  ;;  %vm5601_vm15 = vmor %vm518_vm14, %vm519_vm11  ;;  %v560_v40 = vmul.f32 %v549_v51, %v5235_v59 }
  0xbb   : > { %v617_v23 = vmul.f32 %v5355_v4, %v616_v0  ;;  %v657_v16 = vmul.f32 %v5573_v49, %v5499_v3  ;;  %v338_v17 = vsub.f32 1.5, %v337_v57  ;;  %v521_v60 = vsel %vm5601_vm15, %v5432_v58, %v517_v9  ;;  %v811_v63 = vpop.permute.xlu1 %810 }
  0xbc   : > { %vm591_vm0 = vweird.f32 %v5525_v48  ;;  %v688_v32 = vsub.f32 1.5, %v5571_v39  ;;  %vm690_vm3 = vweird.f32 %v5295_v29  ;;  %vm691_vm6 = vweird.f32 %v5373_v19  ;;  %v813_v9 = vpop.permute.xlu2 %812 }
  0xbd   : > { %v5616_v55 = vmul.f32 %v346_v42, %v346_v42  ;;  %v460_v59 = vmul.f32 %v449_v38, %v5307_v36  ;;  %v589_v47 = vmul.f32 %v5525_v48, %v588_v15  ;;  %v658_v24 = vmul.f32 %v5573_v49, %v657_v16  ;;  %vm5701_vm15 = vmor %vm690_vm3, %vm691_vm6 }
  0xbe   : > { %vm285_vm8 = vweird.f32 %v5442_v26  ;;  %v283_v2 = vmul.f32 %v5442_v26, %v282_v5  ;;  %v869_v50 = vmul.f32 %v5563_v53, %v868_v44  ;;  %v724_v36 = vmul.f32 %v5589_v6, %v5589_v6 }
  0xbf   : > { %v418_v11 = vsub.f32 %v388_v43, %v416_v25  ;;  %v532_v33 = vmul.f32 %v521_v60, %v5330_v45  ;;  %vm590_vm9 = vweird.f32 %v5424_v20  ;;  %v659_v21 = vmul.f32 0.5, %v658_v24  ;;  %vm5652_vm10 = vmor %vm284_vm12, %vm285_vm8  ;;  %v10901_v24 = vld [vmem:[#allocation15_spill] sm:$0xff]  ;;  %3047 = vrot.lane.b32.xlu0 %v5745_v35, %s5030_s7 }
  0xc0   : > { %vm341_vm4 = vweird.f32 %v5485_v14  ;;  %vm5639_vm5 = vmor %vm590_vm9, %vm591_vm0  ;;  %v621_v51 = vsel %vm5624_vm7, %v5355_v4, %v617_v23  ;;  %v5646_v52 = vadd.f32 0.81, %v724_v36  ;;  %v757_v45 = vmul.f32 %v5453_v13, %v5353_v62  ;;  %v5734_v36 = vld [vmem:[%s5112_s30 + $0x8] sm:$0xff] }
  0xc1   : > { %v339_v25 = vmul.f32 %v5485_v14, %v338_v17  ;;  %v350_v61 = vadd.f32 0.1, %v5616_v55  ;;  %v490_v12 = vsub.f32 %v460_v59, %v5550_v30  ;;  %v593_v4 = vsel %vm5639_vm5, %v5525_v48, %v589_v47  ;;  %3049 = vrot.lane.b32.xlu1 %v5734_v36, %s5030_s7 }
  0xc2   : > { %v287_v31 = vsel %vm5652_vm10, %v5442_v26, %v283_v2  ;;  %vm340_vm11 = vweird.f32 %v5392_v41  ;;  %v870_v22 = vmul.f32 0.5, %v869_v50  ;;  %4402 = vrsqrt.f32 %v5646_v52  ;;  %v2435_v50 = vld [vmem:[%s5107_s27 + $0x28] sm:$0x3f] }
  0xc3   : > { %v5667_v0 = vmul.f32 %v418_v11, %v418_v11  ;;  %v562_v39 = vsub.f32 %v532_v33, %v560_v40  ;;  %v660_v57 = vsub.f32 1.5, %v659_v21  ;;  %v848_v34 = vsel %vm814_vm2, %v837_v10, %v839_v56  ;;  %vm5672_vm12 = vmor %vm340_vm11, %vm341_vm4  ;;  %v361_v11 = vld [vmem:[#allocation3 + $0x9] sm:$0xff]  ;;  %2452 = vrot.lane.b32.xlu2 %v2435_v50, %s5029_s6 }
  0xc4   : > { %vm873_vm13 = vweird.f32 %v5487_v37  ;;  %v604_v26 = vmul.f32 %v593_v4, %v5371_v18  ;;  %v632_v41 = vmul.f32 %v621_v51, %v5251_v7  ;;  %854 = vst [vmem:[#allocation3] sm:$0xff] %v848_v34  ;;  %v5680_v48 = vsub.f32 %v848_v34, %v5209_v46  ;;  %v5747_v51 = vld [vmem:[#allocation3 + $0xa] sm:$0xff]  ;;  %v10908_v37 = vld [vmem:[#allocation14_spill] sm:$0xff] }
  0xc5   : > { %v289_v42 = vmul.f32 %v287_v31, %v5288_v27  ;;  %v343_v54 = vsel %vm5672_vm12, %v5485_v14, %v339_v25  ;;  %4404 = vrcp.f32 %v350_v61  ;;  %v5686_v5 = vmul.f32 %v490_v12, %v490_v12  ;;  %v5761_v12 = vld [vmem:[#allocation3 + $0xc] sm:$0xff] }
  0xc6   : > { %v871_v44 = vsub.f32 1.5, %v870_v22  ;;  %v689_v18 = vmul.f32 %v5373_v19, %v688_v32  ;;  %v891_v7 = vmul.f32 %v5680_v48, %v5680_v48  ;;  %v817_v56 = vsel %vm814_vm2, %v811_v63, %v813_v9  ;;  %v843_v32 = vpop.permute.xlu0 %842  ;;  %v5763_v4 = vld [vmem:[#allocation3 + $0xd] sm:$0xff] }
  0xc7   : > { %v422_v38 = vadd.f32 0.1, %v5667_v0  ;;  %v5693_v15 = vmul.f32 %v562_v39, %v562_v39  ;;  %v661_v27 = vmul.f32 %v5573_v49, %v660_v57  ;;  %vm663_vm14 = vweird.f32 %v5573_v49  ;;  %823 = vst [vmem:[#allocation2 + $0x10] sm:$0x3f] %v817_v56  ;;  %v5765_v31 = vld [vmem:[#allocation3 + $0xe] sm:$0xff] }
  0xc8   : > { %v5705_v43 = vpop.eup %4402  ;;  %v345_v40 = vmul.f32 %v343_v54, %v10897_v8  ;;  %v634_v23 = vsub.f32 %v604_v26, %v632_v41  ;;  %v758_v16 = vmul.f32 %v5453_v13, %v757_v45  ;;  %v5709_v17 = vadd.f32 0.81, %v891_v7  ;;  %v5749_v45 = vld [vmem:[#allocation3 + $0xb] sm:$0xff]  ;;  %10903 = vst [vmem:[#allocation15_spill] sm:$0xff] %v5763_v4  ;;  %v6033_v4 = vld [vmem:[%s5112_s30 + $0x10] sm:$0xff] }
  0xc9   : > { %vm874_vm0 = vweird.f32 %v5563_v53  ;;  %v494_v29 = vadd.f32 0.1, %v5686_v5  ;;  %vm662_vm3 = vweird.f32 %v5499_v3  ;;  %v729_v60 = vmul.f32 %v5705_v43, %v5646_v52  ;;  %v10900_v3 = vld [vmem:[#allocation10_spill] sm:$0xff]  ;;  %10904 = vst [vmem:[#allocation23_spill] sm:$0xff] %v5765_v31 }
  0xca   : > { %v5717_v59 = vmul.f32 %v5563_v53, %v871_v44  ;;  %vm5719_vm6 = vmor %vm662_vm3, %vm663_vm14  ;;  %v693_v58 = vsel %vm5701_vm15, %v5373_v19, %v689_v18  ;;  %vm762_vm7 = vweird.f32 %v5353_v62  ;;  %4406 = vrsqrt.f32 %v5709_v17  ;;  %10935 = vst [vmem:[#allocation36_spill] sm:$0xff] %v6033_v4 }
  0xcb   : > { %v5730_v2 = vsub.f32 %v10901_v24, %v10900_v3  ;;  %v4405_v33 = vpop.eup %4404  ;;  %4408 = vrcp.f32 %v422_v38  ;;  %v566_v21 = vadd.f32 0.1, %v5693_v15  ;;  %v665_v19 = vsel %vm5719_vm6, %v5573_v49, %v661_v27  ;;  %vm5771_vm8 = vmor %vm873_vm13, %vm874_vm0 }
  0xcc   : > { %v730_v10 = vmul.f32 %v5705_v43, %v729_v60  ;;  %v5751_v20 = vsub.f32 %v289_v42, %v345_v40  ;;  %v5753_v25 = vmul.f32 %v634_v23, %v634_v23  ;;  %v759_v61 = vmul.f32 0.5, %v758_v16  ;;  %v10909_v23 = vld [vmem:[#allocation16_spill] sm:$0xff] }
  0xcd   : > { %v5757_v49 = vsel %vm814_vm2, %v5593_v1, %v843_v32  ;;  %4410 = vrcp.f32 %v494_v29  ;;  %v10907_v1 = vld [vmem:[#allocation8_spill] sm:$0xff]  ;;  %vm763_vm9 = vweird.f32 %v5453_v13  ;;  %v876_v34 = vsel %vm5771_vm8, %v5563_v53, %v5717_v59 }
  0xce   : > { %10902 = vst [vmem:[#allocation13_spill] sm:$0xff] %v5757_v49  ;;  %v704_v39 = vmul.f32 %v693_v58, %v10907_v1  ;;  %v731_v57 = vmul.f32 0.5, %v730_v10  ;;  %v354_v30 = vmul.f32 %v4405_v33, %v5616_v55  ;;  %v676_v26 = vmul.f32 %v665_v19, %v10908_v37  ;;  %v930_v9 = vld [vmem:[#allocation2 + $0x9] sm:$0xff]  ;;  %vm5834_vm10 = vmor %vm762_vm7, %vm763_vm9  ;;  %v5908_v37 = vld [vmem:[%s5112_s30 + $0x18] sm:$0xff] }
  0xcf   : > { %855 = vst [vmem:[#allocation3 + $0x8] sm:$0xff] %v5757_v49  ;;  %v365_v41 = vmul.f32 %v5730_v2, %v5730_v2  ;;  %v1002_v63 = vld [vmem:[#allocation2 + $0xa] sm:$0xff]  ;;  %4412 = vrcp.f32 %v566_v21  ;;  %vm734_vm4 = vweird.f32 %v5646_v52  ;;  %v5788_v54 = vsub.f32 %v930_v9, %v10900_v3  ;;  %v847_v9 = vpop.permute.xlu1 %846  ;;  %3053 = vrot.lane.b32.xlu0 %v5908_v37, %s5030_s7 }
  0xd0   : > { %v1074_v42 = vld [vmem:[#allocation2 + $0xb] sm:$0xff]  ;;  %v5791_v44 = vsub.f32 %v1002_v63, %v10900_v3  ;;  %v5793_v7 = vpop.eup %4406  ;;  %v638_v55 = vadd.f32 0.1, %v5753_v25  ;;  %v760_v56 = vsub.f32 1.5, %v759_v61  ;;  %v732_v8 = vsub.f32 1.5, %v731_v57 }
  0xd1   : > { %v1146_v18 = vld [vmem:[#allocation2 + $0xc] sm:$0xff]  ;;  %v5797_v38 = vsub.f32 %v1074_v42, %v10900_v3  ;;  %v4409_v14 = vpop.eup %4408  ;;  %v896_v40 = vmul.f32 %v5793_v7, %v5709_v17  ;;  %v5806_v16 = vsub.f32 %v10909_v23, %v10900_v3  ;;  %v936_v29 = vmul.f32 %v5788_v54, %v5788_v54  ;;  %v845_v42 = vpop.permute.xlu0 %844 }
  0xd2   : > { %v5800_v27 = vsub.f32 %v1146_v18, %v10900_v3  ;;  %v706_v60 = vsub.f32 %v676_v26, %v704_v39  ;;  %v5810_v32 = vadd.f32 0.81, %v365_v41  ;;  %v1008_v47 = vmul.f32 %v5791_v44, %v5791_v44  ;;  %v10911_v58 = vld [vmem:[#allocation12_spill] sm:$0xff]  ;;  %v5840_v41 = vpop.permute.xlu2 %1373 }
  0xd3   : > { %10910 = vst [vmem:[#allocation8_spill] sm:$0xff] %v5806_v16  ;;  %v5815_v24 = vsub.f32 %v361_v11, %v10911_v58  ;;  %v4411_v50 = vpop.eup %4410  ;;  %v897_v33 = vmul.f32 %v5793_v7, %v896_v40  ;;  %v5818_v21 = vadd.f32 0.81, %v936_v29  ;;  %v1080_v19 = vmul.f32 %v5797_v38, %v5797_v38  ;;  %v1218_v52 = vld [vmem:[#allocation2 + $0xd] sm:$0xff] }
  0xd4   : > { %v1152_v10 = vmul.f32 %v5800_v27, %v5800_v27  ;;  %v426_v61 = vmul.f32 %v4409_v14, %v5667_v0  ;;  %4414 = vrcp.f32 %v638_v55  ;;  %v761_v1 = vmul.f32 %v5453_v13, %v760_v56  ;;  %v1290_v59 = vld [vmem:[#allocation2 + $0xe] sm:$0xff] }
  0xd5   : > { %v5826_v39 = vadd.f32 0.81, %v1008_v47  ;;  %v4413_v11 = vpop.eup %4412  ;;  %v733_v57 = vmul.f32 %v5705_v43, %v732_v8  ;;  %vm735_vm5 = vweird.f32 %v5705_v43  ;;  %v898_v26 = vmul.f32 0.5, %v897_v33 }
  0xd6   : > { %v437_v0 = vmul.f32 %v5806_v16, %v5806_v16  ;;  %v5842_v63 = vmul.f32 %v706_v60, %v706_v60  ;;  %vm902_vm11 = vweird.f32 %v5793_v7  ;;  %4416 = vrsqrt.f32 %v5810_v32  ;;  %vm5857_vm12 = vmor %vm734_vm4, %vm735_vm5 }
  0xd7   : > { %v393_v62 = vmul.f32 %v5815_v24, %v5815_v24  ;;  %v899_v18 = vsub.f32 1.5, %v898_v26  ;;  %4418 = vrsqrt.f32 %v5818_v21  ;;  %v5849_v55 = vadd.f32 0.81, %v1080_v19 }
  0xd8   : > { %v5851_v56 = vadd.f32 0.81, %v1152_v10  ;;  %v428_v14 = vadd.f32 %v426_v61, %v354_v30  ;;  %v765_v40 = vsel %vm5834_vm10, %v5453_v13, %v761_v1  ;;  %vm901_vm13 = vweird.f32 %v5709_v17  ;;  %v10917_v1 = vld [vmem:[#allocation22_spill] sm:$0xff] }
  0xd9   : > { %4420 = vrsqrt.f32 %v5826_v39  ;;  %v737_v30 = vsel %vm5857_vm12, %v5705_v43, %v733_v57  ;;  %v900_v23 = vmul.f32 %v5793_v7, %v899_v18  ;;  %v5870_v29 = vadd.f32 0.81, %v437_v0  ;;  %vm903_vm14 = vmor %vm901_vm13, %vm902_vm11  ;;  %v10919_v0 = vld [vmem:[#allocation9_spill] sm:$0xff] }
  0xda   : > { %4422 = vrsqrt.f32 %v5849_v55  ;;  %v4415_v60 = vpop.eup %4414  ;;  %v710_v47 = vadd.f32 0.1, %v5842_v63  ;;  %v5878_v13 = vmul.f32 %v5751_v20, %v5751_v20  ;;  %v5883_v43 = vsub.f32 %v5747_v51, %v10911_v58  ;;  %v1380_v18 = vpop.permute.xlu2 %1379 }
  0xdb   : > { %4424 = vrsqrt.f32 %v5851_v56  ;;  %v498_v17 = vmul.f32 %v4411_v50, %v5686_v5  ;;  %v904_v33 = vsel %vm903_vm14, %v5793_v7, %v900_v23  ;;  %v5887_v19 = vadd.f32 0.81, %v393_v62  ;;  %v5904_v7 = vld [vmem:[%s5107_s27] sm:$0xff]  ;;  %v1376_v23 = vpop.permute.xlu0 %1375 }
  0xdc   : > { %10916 = vst [vmem:[#allocation14_spill] sm:$0xff] %v5883_v43  ;;  %v850_v10 = vsel %vm814_vm2, %v845_v42, %v847_v9  ;;  %v5890_v61 = vpop.eup %4416  ;;  %v887_v20 = vmul.f32 %v876_v34, %v10917_v1  ;;  %v748_v51 = vmul.f32 %v737_v30, %v5589_v6  ;;  %v915_v57 = vmul.f32 %v904_v33, %v5680_v48  ;;  %v3005_v50 = vld [vmem:[%s5107_s27 + $0x20] sm:$0x3f] }
  0xdd   : > { %v5901_v5 = vsub.f32 %v1218_v52, %v10900_v3  ;;  %856 = vst [vmem:[#allocation3 + $0x10] sm:$0x3f] %v850_v10  ;;  %v5910_v26 = vpop.eup %4418  ;;  %v500_v22 = vadd.f32 %v498_v17, %v428_v14  ;;  %v776_v9 = vmul.f32 %v765_v40, %v10919_v0  ;;  %4426 = vrsqrt.f32 %v5870_v29  ;;  %3013 = vrot.lane.b32.xlu2 %v5904_v7, %s5030_s7  ;;  %v1378_v14 = vpop.permute.xlu1 %1377  ;;  %v5934_v52 = vld [vmem:[#allocation2 + $0x1] sm:$0xff] }
  0xde   : > { %3021 = vrot.lane.b32.xlu1 %v3005_v50, %s5030_s7  ;;  %4428 = vrcp.f32 %v710_v47  ;;  %v5919_v6 = vsub.f32 %v887_v20, %v915_v57  ;;  %v351_v48 = vadd.f32 0.1, %v5878_v13  ;;  %v465_v34 = vmul.f32 %v5883_v43, %v5883_v43  ;;  %10920 = vst [vmem:[#allocation12_spill] sm:$0xff] %v5934_v52  ;;  %v5936_v47 = vld [vmem:[#allocation2 + $0x2] sm:$0xff] }
  0xdf   : > { %10918 = vst [vmem:[#allocation16_spill] sm:$0xff] %v5901_v5  ;;  %v5917_v53 = vpop.eup %4420  ;;  %v570_v42 = vmul.f32 %v4413_v11, %v5693_v15  ;;  %vm1385_vm2 = vcmask 1031168   ;;  %v778_v40 = vsub.f32 %v748_v51, %v776_v9  ;;  %v1224_v30 = vmul.f32 %v5901_v5, %v5901_v5  ;;  %v5938_v17 = vld [vmem:[#allocation2 + $0x3] sm:$0xff] }
  0xe0   : > { %v5926_v62 = vpop.eup %4422  ;;  %4430 = vrsqrt.f32 %v5887_v19  ;;  %10921 = vst [vmem:[#allocation22_spill] sm:$0xff] %v5936_v47  ;;  %v642_v15 = vmul.f32 %v4415_v60, %v5753_v25  ;;  %v5942_v11 = vsub.f32 %v1290_v59, %v10900_v3  ;;  %v1387_v10 = vsel %vm1385_vm2, %v1378_v14, %v1380_v18  ;;  %v5945_v1 = vld [vmem:[#allocation2 + $0x4] sm:$0xff] }
  0xe1   : > { %v5929_v8 = vpop.eup %4424  ;;  %10922 = vst [vmem:[#allocation9_spill] sm:$0xff] %v5938_v17  ;;  %v572_v33 = vadd.f32 %v570_v42, %v500_v22  ;;  %v5947_v20 = vld [vmem:[#allocation2 + $0x5] sm:$0xff]  ;;  %4432 = vrcp.f32 %v351_v48  ;;  %v379_v57 = vmul.f32 %v5890_v61, %v5810_v32  ;;  %v950_v50 = vmul.f32 %v5910_v26, %v5818_v21 }
  0xe2   : > { %10923 = vst [vmem:[#allocation24_spill] sm:$0xff] %v5942_v11  ;;  %v5949_v51 = vld [vmem:[#allocation2 + $0x6] sm:$0xff]  ;;  %v5955_v25 = vadd.f32 0.81, %v465_v34  ;;  %v1022_v22 = vmul.f32 %v5917_v53, %v5826_v39  ;;  %v1094_v0 = vmul.f32 %v5926_v62, %v5849_v55  ;;  %v1166_v9 = vmul.f32 %v5929_v8, %v5851_v56  ;;  %v6083_v43 = vld [vmem:[#allocation3 + $0x6] sm:$0xff] }
  0xe3   : > { %10924 = vst [vmem:[#allocation25_spill] sm:$0xff] %v5945_v1  ;;  %v5957_v60 = vpop.eup %4426  ;;  %v1386_v48 = vsel %vm1385_vm2, %v5840_v41, %v1376_v23  ;;  %v5967_v34 = vmul.f32 %v778_v40, %v778_v40  ;;  %v5969_v42 = vadd.f32 0.81, %v1224_v30  ;;  %v1296_v5 = vmul.f32 %v5942_v11, %v5942_v11  ;;  %v3039_v1 = vld [vmem:[%s5112_s30 + $0x20] sm:$0x3f] }
  0xe4   : > { %10925 = vst [vmem:[#allocation26_spill] sm:$0xff] %v5947_v20  ;;  %v4429_v59 = vpop.eup %4428  ;;  %v932_v18 = vld [vmem:[#allocation3 + $0x9] sm:$0xff]  ;;  %v380_v41 = vmul.f32 %v5890_v61, %v379_v57  ;;  %v5983_v40 = vmul.f32 %v5957_v60, %v5870_v29  ;;  %v951_v30 = vmul.f32 %v5910_v26, %v950_v50  ;;  %4434 = vrsqrt.f32 %v5955_v25  ;;  %3055 = vrot.lane.b32.xlu0 %v3039_v1, %s5030_s7  ;;  %v5995_v50 = vpop.permute.xlu2 %1411 }
  0xe5   : > { %10926 = vst [vmem:[#allocation27_spill] sm:$0xff] %v5949_v51  ;;  %v1004_v14 = vld [vmem:[#allocation3 + $0xa] sm:$0xff]  ;;  %v5974_v51 = vld [vmem:[%s5107_s27 + $0x18] sm:$0xff]  ;;  %v1095_v57 = vmul.f32 %v5926_v62, %v1094_v0  ;;  %v1410_v47 = vpop.permute.xlu1 %1409  ;;  %v782_v52 = vadd.f32 0.1, %v5967_v34  ;;  %4436 = vrsqrt.f32 %v5969_v42  ;;  %v6007_v1 = vmul.f32 %v5919_v6, %v5919_v6 }
  0xe6   : > { %1393 = vst [vmem:[#allocation2 + $0x8] sm:$0xff] %v1387_v10  ;;  %v644_v10 = vadd.f32 %v642_v15, %v572_v33  ;;  %v3040_v20 = vld [vmem:[%s5112_s30 + $0x28] sm:$0x3f]  ;;  %v5978_v17 = vpop.eup %4430  ;;  %3019 = vrot.lane.b32.xlu2 %v5974_v51, %s5030_s7  ;;  %v714_v33 = vmul.f32 %v4429_v59, %v5842_v63  ;;  %v1023_v15 = vmul.f32 %v5917_v53, %v1022_v22  ;;  %v1408_v22 = vpop.permute.xlu0 %1407  ;;  %v6009_v0 = vadd.f32 0.81, %v1296_v5 }
  0xe7   : > { %10927 = vst [vmem:[#allocation28_spill] sm:$0xff] %v5969_v42  ;;  %v1076_v23 = vld [vmem:[#allocation3 + $0xb] sm:$0xff]  ;;  %3057 = vrot.lane.b32.xlu1 %v3040_v20, %s5030_s7  ;;  %v4433_v46 = vpop.eup %4432  ;;  %v6000_v63 = vsub.f32 %v932_v18, %v10911_v58  ;;  %v6003_v20 = vsub.f32 %v1004_v14, %v10911_v58  ;;  %v6016_v18 = vmul.f32 0.5, %v951_v30  ;;  %v6028_v31 = vmul.f32 0.5, %v1095_v57  ;;  %v3574_v30 = vld [vmem:[%s5107_s27 + $0x10] sm:$0xff] }
  0xe8   : > { %1392 = vst [vmem:[#allocation2] sm:$0xff] %v1386_v48  ;;  %v1167_v48 = vmul.f32 %v5929_v8, %v1166_v9  ;;  %v1148_v11 = vld [vmem:[#allocation3 + $0xc] sm:$0xff]  ;;  %v407_v9 = vmul.f32 %v5978_v17, %v5887_v19  ;;  %v6014_v59 = vsub.f32 %v1076_v23, %v10911_v58  ;;  %v6026_v5 = vmul.f32 %v4433_v46, %v5878_v13 }
  0xe9   : > { %10928 = vst [vmem:[#allocation29_spill] sm:$0xff] %v5974_v51  ;;  %v964_v14 = vmul.f32 %v6000_v63, %v6000_v63  ;;  %v1036_v28 = vmul.f32 %v6003_v20, %v6003_v20  ;;  %v6023_v6 = vsub.f32 %v1148_v11, %v10911_v58  ;;  %v1024_v49 = vmul.f32 0.5, %v1023_v15  ;;  %v3573_v13 = vld [vmem:[%s5107_s27 + $0x8] sm:$0xff] }
  0xea   : > { %10929 = vst [vmem:[#allocation30_spill] sm:$0xff] %v6000_v63  ;;  %v6030_v23 = vmul.f32 0.5, %v1167_v48  ;;  %v6036_v16 = vpop.eup %4434  ;;  %v6038_v63 = vadd.f32 %v714_v33, %v644_v10  ;;  %vm955_vm15 = vweird.f32 %v5818_v21  ;;  %v1108_v46 = vmul.f32 %v6014_v59, %v6014_v59 }
  0xeb   : > { %10930 = vst [vmem:[#allocation31_spill] sm:$0xff] %v6003_v20  ;;  %v6041_v20 = vadd.f32 0.81, %v964_v14  ;;  %v6046_v11 = vmul.f32 0.5, %v380_v41  ;;  %4438 = vrcp.f32 %v782_v52  ;;  %vm956_vm0 = vweird.f32 %v5910_v26  ;;  %v6053_v10 = vpop.eup %4436  ;;  %v1220_v41 = vld [vmem:[#allocation3 + $0xd] sm:$0xff]  ;;  %v6061_v14 = vld [vmem:[#allocation3 + $0x1] sm:$0xff] }
  0xec   : > { %10931 = vst [vmem:[#allocation32_spill] sm:$0xff] %v6009_v0  ;;  %vm1027_vm3 = vweird.f32 %v5826_v39  ;;  %v408_v15 = vmul.f32 %v5978_v17, %v407_v9  ;;  %v6051_v57 = vadd.f32 0.81, %v1036_v28  ;;  %v921_v33 = vadd.f32 0.1, %v6007_v1  ;;  %3586 = vrot.lane.b32.xlu0 %v3573_v13, %s5031_s8  ;;  %vm6115_vm5 = vmor %vm955_vm15, %vm956_vm0 }
  0xed   : > { %10932 = vst [vmem:[#allocation33_spill] sm:$0xff] %v6014_v59  ;;  %v953_v48 = vsub.f32 1.5, %v6016_v18  ;;  %vm1099_vm6 = vweird.f32 %v5849_v55  ;;  %4440 = vrsqrt.f32 %v6009_v0  ;;  %v1180_v52 = vmul.f32 %v6023_v6, %v6023_v6  ;;  %v6073_v59 = vld [vmem:[#allocation3 + $0x3] sm:$0xff] }
  0xee   : > { %10933 = vst [vmem:[#allocation34_spill] sm:$0xff] %v6023_v6  ;;  %3051 = vrot.lane.b32.xlu2 %v6033_v4, %s5030_s7  ;;  %v1025_v28 = vsub.f32 1.5, %v1024_v49  ;;  %v1097_v9 = vsub.f32 1.5, %v6028_v31  ;;  %v1169_v18 = vsub.f32 1.5, %v6030_v23  ;;  %vm1171_vm7 = vweird.f32 %v5851_v56  ;;  %v6071_v6 = vld [vmem:[#allocation3 + $0x2] sm:$0xff]  ;;  %v1384_v4 = vpop.permute.xlu2 %1383  ;;  %v1292_v31 = vld [vmem:[#allocation3 + $0xe] sm:$0xff] }
  0xef   : > { %10934 = vst [vmem:[#allocation35_spill] sm:$0xff] %v6026_v5  ;;  %3588 = vrot.lane.b32.xlu1 %v3574_v30, %s5031_s8  ;;  %v479_v5 = vmul.f32 %v6036_v16, %v5955_v25  ;;  %v1382_v30 = vpop.permute.xlu1 %1381  ;;  %4442 = vrsqrt.f32 %v6041_v20  ;;  %v6079_v49 = vadd.f32 0.81, %v1108_v46  ;;  %v6081_v23 = vld [vmem:[#allocation3 + $0x5] sm:$0xff]  ;;  %v1419_v51 = vsel %vm1385_vm2, %v1408_v22, %v1410_v47 }
  0xf0   : > { %10936 = vst [vmem:[#allocation37_spill] sm:$0xff] %v6053_v10  ;;  %4444 = vrsqrt.f32 %v6051_v57  ;;  %v6089_v13 = vsub.f32 %v1220_v41, %v10911_v58  ;;  %vm1028_vm8 = vweird.f32 %v5917_v53  ;;  %vm1100_vm9 = vweird.f32 %v5926_v62 }
  0xf1   : > { %10937 = vst [vmem:[#allocation38_spill] sm:$0xff] %v6061_v14  ;;  %v6075_v14 = vld [vmem:[#allocation3 + $0x4] sm:$0xff]  ;;  %4446 = vrcp.f32 %v921_v33  ;;  %v6095_v47 = vadd.f32 0.81, %v1180_v52  ;;  %v954_v22 = vmul.f32 %v5910_v26, %v953_v48  ;;  %v6102_v41 = vsub.f32 %v1292_v31, %v10911_v58  ;;  %vm6131_vm11 = vmor %vm1027_vm3, %vm1028_vm8 }
  0xf2   : > { %10938 = vst [vmem:[#allocation39_spill] sm:$0xff] %v6071_v6  ;;  %v1388_v6 = vsel %vm1385_vm2, %v1382_v30, %v1384_v4  ;;  %v4439_v4 = vpop.eup %4438  ;;  %v1026_v30 = vmul.f32 %v5917_v53, %v1025_v28  ;;  %4448 = vrsqrt.f32 %v6079_v49  ;;  %vm384_vm4 = vweird.f32 %v5810_v32  ;;  %vm6154_vm13 = vmor %vm1099_vm6, %vm1100_vm9 }
  0xf3   : > { %10939 = vst [vmem:[#allocation40_spill] sm:$0xff] %v6073_v59  ;;  %v1414_v59 = vpop.permute.xlu0 %1413  ;;  %v480_v33 = vmul.f32 %v6036_v16, %v479_v5  ;;  %v1170_v52 = vmul.f32 %v5929_v8, %v1169_v18  ;;  %vm1172_vm10 = vweird.f32 %v5929_v8  ;;  %v1252_v28 = vmul.f32 %v6089_v13, %v6089_v13 }
  0xf4   : > { %10940 = vst [vmem:[#allocation41_spill] sm:$0xff] %v6075_v14  ;;  %v1420_v46 = vsel %vm1385_vm2, %v5995_v50, %v1414_v59  ;;  %v409_v14 = vmul.f32 0.5, %v408_v15  ;;  %v3006_v50 = vld [vmem:[%s5107_s27 + $0x28] sm:$0x3f]  ;;  %v6105_v59 = vpop.eup %4440  ;;  %v1098_v15 = vmul.f32 %v5926_v62, %v1097_v9  ;;  %v382_v9 = vsub.f32 1.5, %v6046_v11  ;;  %3618 = vrot.lane.b32.xlu0 %v5745_v35, %s5031_s8  ;;  %vm6172_vm14 = vmor %vm1171_vm7, %vm1172_vm10 }
  0xf5   : > { %10941 = vst [vmem:[#allocation42_spill] sm:$0xff] %v6083_v43  ;;  %v786_v5 = vmul.f32 %v4439_v4, %v5967_v34  ;;  %4450 = vrsqrt.f32 %v6095_v47  ;;  %vm385_vm12 = vweird.f32 %v5890_v61  ;;  %v452_v34 = vmul.f32 %v5957_v60, %v5983_v40 }
  0xf6   : > { %10942 = vst [vmem:[#allocation43_spill] sm:$0xff] %v6089_v13  ;;  %3023 = vrot.lane.b32.xlu2 %v3006_v50, %s5030_s7  ;;  %v958_v39 = vsel %vm6115_vm5, %v5910_v26, %v954_v22  ;;  %v1030_v18 = vsel %vm6131_vm11, %v5917_v53, %v1026_v30  ;;  %v1324_v31 = vmul.f32 %v6102_v41, %v6102_v41  ;;  %v1945_v26 = vpop.permute.xlu2 %1944  ;;  %vm413_vm15 = vweird.f32 %v5978_v17  ;;  %vm6231_vm3 = vmor %vm384_vm4, %vm385_vm12 }
  0xf7   : > { %1425 = vst [vmem:[#allocation3] sm:$0xff] %v1419_v51  ;;  %v1238_v51 = vmul.f32 %v6053_v10, %v5969_v42  ;;  %3620 = vrot.lane.b32.xlu1 %v5734_v36, %s5031_s8  ;;  %v1102_v55 = vsel %vm6154_vm13, %v5926_v62, %v1098_v15  ;;  %v481_v35 = vmul.f32 0.5, %v480_v33  ;;  %v6183_v50 = vadd.f32 0.81, %v1252_v28  ;;  %v3576_v36 = vld [vmem:[%s5107_s27 + $0x20] sm:$0x3f] }
  0xf8   : > { %1394 = vst [vmem:[#allocation2 + $0x10] sm:$0x3f] %v1388_v6  ;;  %v410_v6 = vsub.f32 1.5, %v409_v14  ;;  %v6124_v14 = vpop.eup %4442  ;;  %v383_v48 = vmul.f32 %v5890_v61, %v382_v9  ;;  %vm412_vm0 = vweird.f32 %v5887_v19  ;;  %v453_v33 = vmul.f32 0.5, %v452_v34 }
  0xf9   : > { %10943 = vst [vmem:[#allocation44_spill] sm:$0xff] %v6102_v41  ;;  %v6142_v11 = vpop.eup %4444  ;;  %v6159_v40 = vmul.f32 %v6053_v10, %v1238_v51  ;;  %v1174_v51 = vsel %vm6172_vm14, %v5929_v8, %v1170_v52  ;;  %v978_v62 = vmul.f32 %v6124_v14, %v6041_v20  ;;  %v788_v8 = vadd.f32 %v786_v5, %v6038_v63 }
  0xfa   : > { %1426 = vst [vmem:[#allocation3 + $0x8] sm:$0xff] %v1420_v46  ;;  %v1418_v46 = vpop.permute.xlu1 %1417  ;;  %v4447_v53 = vpop.eup %4446  ;;  %v411_v30 = vmul.f32 %v5978_v17, %v410_v6  ;;  %v1050_v6 = vmul.f32 %v6142_v11, %v6051_v57  ;;  %v6196_v28 = vmul.f32 %v6105_v59, %v6009_v0  ;;  %v6198_v21 = vadd.f32 0.81, %v1324_v31 }
  0xfb   : > { %10944 = vst [vmem:[#allocation45_spill] sm:$0xff] %v6105_v59  ;;  %v1416_v22 = vpop.permute.xlu0 %1415  ;;  %v6186_v15 = vpop.eup %4448  ;;  %v925_v52 = vmul.f32 %v4447_v53, %v6007_v1  ;;  %v6210_v19 = vmul.f32 %v958_v39, %v5788_v54  ;;  %v6213_v63 = vmul.f32 %v1030_v18, %v5791_v44  ;;  %v482_v5 = vsub.f32 1.5, %v481_v35 }
  0xfc   : > { %10953 = vst [vmem:[#allocation46_spill] sm:$0xff] %v6183_v50  ;;  %v1421_v56 = vsel %vm1385_vm2, %v1416_v22, %v1418_v46  ;;  %vm6203_vm2 = vmor %vm412_vm0, %vm413_vm15  ;;  %v6207_v9 = vpop.eup %4450  ;;  %v6219_v34 = vmul.f32 %v1102_v55, %v5797_v38  ;;  %v6222_v31 = vmul.f32 %v1174_v51, %v5800_v27  ;;  %v979_v53 = vmul.f32 %v6124_v14, %v978_v62  ;;  %v10967_v46 = vld [vmem:[#allocation19_spill] sm:$0xff] }
  0xfd   : > { %1427 = vst [vmem:[#allocation3 + $0x10] sm:$0x3f] %v1421_v56  ;;  %v415_v1 = vsel %vm6203_vm2, %v5978_v17, %v411_v30  ;;  %v1122_v54 = vmul.f32 %v6186_v15, %v6079_v49  ;;  %v1051_v17 = vmul.f32 %v6142_v11, %v1050_v6  ;;  %4452 = vrsqrt.f32 %v6183_v50  ;;  %3624 = vrot.lane.b32.xlu0 %v5908_v37, %s5031_s8  ;;  %v3611_v6 = vld [vmem:[%s5112_s30 + $0x28] sm:$0x3f] }
  0xfe   : > { %10954 = vst [vmem:[#allocation47_spill] sm:$0xff] %v6196_v28  ;;  %3584 = vrot.lane.b32.xlu2 %v5904_v7, %s5031_s8  ;;  %v387_v38 = vsel %vm6231_vm3, %v5890_v61, %v383_v48  ;;  %v454_v27 = vsub.f32 1.5, %v453_v33  ;;  %v6243_v39 = vadd.f32 %v925_v52, %v788_v8  ;;  %v1194_v32 = vmul.f32 %v6207_v9, %v6095_v47  ;;  %v1951_v18 = vpop.permute.xlu2 %1950  ;;  %v3610_v52 = vld [vmem:[%s5112_s30 + $0x20] sm:$0x3f] }
  0xff   : > { %10955 = vst [vmem:[#allocation48_spill] sm:$0xff] %v6198_v21  ;;  %3592 = vrot.lane.b32.xlu1 %v3576_v36, %s5031_s8  ;;  %4454 = vrsqrt.f32 %v6198_v21  ;;  %v417_v7 = vmul.f32 %v415_v1, %v5815_v24  ;;  %vm456_vm6 = vweird.f32 %v5870_v29  ;;  %v483_v22 = vmul.f32 %v6036_v16, %v482_v5 }
 0x100   : > { %10960 = vst [vmem:[#allocation49_spill] sm:$0xff] %v6243_v39  ;;  %vm485_vm7 = vweird.f32 %v6036_v16  ;;  %v980_v30 = vmul.f32 0.5, %v979_v53  ;;  %v1123_v35 = vmul.f32 %v6186_v15, %v1122_v54  ;;  %v389_v24 = vmul.f32 %v387_v38, %v5730_v2  ;;  %v10965_v2 = vld [vmem:[#allocation17_spill] sm:$0xff] }
 0x101   : > { %v1052_v51 = vmul.f32 0.5, %v1051_v17  ;;  %v455_v62 = vmul.f32 %v5957_v60, %v454_v27  ;;  %vm457_vm8 = vweird.f32 %v5957_v60  ;;  %vm484_vm9 = vweird.f32 %v5955_v25  ;;  %v10971_v17 = vld [vmem:[#allocation20_spill] sm:$0xff]  ;;  %v10972_v27 = vld [vmem:[#allocation29_spill] sm:$0xff] }
 0x102   : > { %v1949_v55 = vpop.permute.xlu1 %1948  ;;  %vm983_vm4 = vweird.f32 %v6041_v20  ;;  %vm984_vm5 = vweird.f32 %v6124_v14  ;;  %v1195_v56 = vmul.f32 %v6207_v9, %v1194_v32  ;;  %v419_v48 = vsub.f32 %v389_v24, %v417_v7  ;;  %vm6269_vm10 = vmor %vm484_vm9, %vm485_vm7 }
 0x103   : > { %v6252_v4 = vsel %vm257_vm1, %v1949_v55, %v1951_v18  ;;  %v1947_v61 = vpop.permute.xlu0 %1946  ;;  %v6275_v33 = vsub.f32 %v10965_v2, %v10900_v3  ;;  %v6277_v8 = vpop.eup %4452  ;;  %v487_v25 = vsel %vm6269_vm10, %v6036_v16, %v483_v22  ;;  %v6285_v36 = vsub.f32 %v5749_v45, %v10911_v58  ;;  %vm6301_vm11 = vmor %vm456_vm6, %vm457_vm8 }
 0x104   : > { %10961 = vst [vmem:[#allocation50_spill] sm:$0xff] %v6252_v4  ;;  %v6259_v37 = vsel %vm257_vm1, %v1945_v26, %v1947_v61  ;;  %v6289_v1 = vsub.f32 %v10967_v46, %v10900_v3  ;;  %v6293_v5 = vsub.f32 %v5761_v12, %v10911_v58  ;;  %v981_v54 = vsub.f32 1.5, %v980_v30  ;;  %v10973_v61 = vld [vmem:[#allocation14_spill] sm:$0xff]  ;;  %vm6364_vm14 = vmor %vm983_vm4, %vm984_vm5  ;;  %v6494_v59 = vld [vmem:[#allocation3 + $0xa] sm:$0xff] }
 0x105   : > { %10962 = vst [vmem:[#allocation51_spill] sm:$0xff] %v6259_v37  ;;  %v6295_v53 = vpop.eup %4454  ;;  %v1124_v44 = vmul.f32 0.5, %v1123_v35  ;;  %v509_v45 = vmul.f32 %v6275_v33, %v6275_v33  ;;  %v6309_v38 = vsub.f32 %v10971_v17, %v10900_v3  ;;  %v1053_v12 = vsub.f32 1.5, %v1052_v51  ;;  %3626 = vrot.lane.b32.xlu0 %v3610_v52, %s5031_s8  ;;  %v6496_v28 = vld [vmem:[#allocation3 + $0xb] sm:$0xff] }
 0x106   : > { %10966 = vst [vmem:[#allocation17_spill] sm:$0xff] %v6277_v8  ;;  %vm1056_vm12 = vweird.f32 %v6142_v11  ;;  %3590 = vrot.lane.b32.xlu2 %v10972_v27, %s5031_s8  ;;  %v459_v29 = vsel %vm6301_vm11, %v5957_v60, %v455_v62  ;;  %v537_v32 = vmul.f32 %v6285_v36, %v6285_v36  ;;  %v581_v18 = vmul.f32 %v6289_v1, %v6289_v1  ;;  %v1982_v55 = vpop.permute.xlu2 %1981 }
 0x107   : > { %10968 = vst [vmem:[#allocation19_spill] sm:$0xff] %v6295_v53  ;;  %3628 = vrot.lane.b32.xlu1 %v3611_v6, %s5031_s8  ;;  %v489_v22 = vmul.f32 %v487_v25, %v10973_v61  ;;  %v6324_v30 = vadd.f32 0.81, %v509_v45  ;;  %v609_v35 = vmul.f32 %v6293_v5, %v6293_v5  ;;  %v653_v60 = vmul.f32 %v6309_v38, %v6309_v38  ;;  %v10975_v25 = vld [vmem:[#allocation8_spill] sm:$0xff]  ;;  %v10981_v61 = vld [vmem:[#allocation23_spill] sm:$0xff] }
 0x108   : > { %vm1055_vm13 = vweird.f32 %v6051_v57  ;;  %v1196_v24 = vmul.f32 0.5, %v1195_v56  ;;  %v1266_v51 = vmul.f32 %v6277_v8, %v6183_v50  ;;  %v6333_v6 = vmul.f32 %v419_v48, %v419_v48  ;;  %10995 = vst [vmem:[#allocation52_spill] sm:$0xff] %v6494_v59 }
 0x109   : > { %v6335_v26 = vadd.f32 0.81, %v537_v32  ;;  %v982_v2 = vmul.f32 %v6124_v14, %v981_v54  ;;  %v461_v46 = vmul.f32 %v459_v29, %v10975_v25  ;;  %v6342_v16 = vadd.f32 0.81, %v581_v18  ;;  %v10977_v32 = vld [vmem:[#allocation15_spill] sm:$0xff]  ;;  %v10980_v18 = vld [vmem:[#allocation21_spill] sm:$0xff]  ;;  %vm6432_vm15 = vmor %vm1055_vm13, %vm1056_vm12 }
 0x10a   : > { %v1980_v7 = vpop.permute.xlu1 %1979  ;;  %v6345_v45 = vmul.f32 %v6142_v11, %v1053_v12  ;;  %v1125_v56 = vsub.f32 1.5, %v1124_v44  ;;  %v6349_v17 = vmul.f32 %v6295_v53, %v6198_v21  ;;  %4456 = vrsqrt.f32 %v6324_v30  ;;  %v6400_v44 = vld [vmem:[#allocation2 + $0xa] sm:$0xff]  ;;  %v10990_v21 = vld [vmem:[#allocation30_spill] sm:$0xff]  ;;  %10996 = vst [vmem:[#allocation53_spill] sm:$0xff] %v6496_v28 }
 0x10b   : > { %v1978_v62 = vpop.permute.xlu0 %1977  ;;  %v491_v48 = vsub.f32 %v461_v46, %v489_v22  ;;  %v6352_v27 = vadd.f32 0.81, %v609_v35  ;;  %v6354_v54 = vadd.f32 0.81, %v653_v60  ;;  %v6358_v29 = vsub.f32 %v10977_v32, %v10911_v58  ;;  %10985 = vst [vmem:[#allocation8_spill] sm:$0xff] %v6400_v44  ;;  %v6418_v44 = vld [vmem:[#allocation2 + $0xe] sm:$0xff] }
 0x10c   : > { %v6339_v52 = vsel %vm257_vm1, %v1978_v62, %v1980_v7  ;;  %10976 = vst [vmem:[#allocation29_spill] sm:$0xff] %v6349_v17  ;;  %v1197_v12 = vsub.f32 1.5, %v1196_v24  ;;  %4458 = vrsqrt.f32 %v6335_v26  ;;  %v6371_v7 = vsub.f32 %v10980_v18, %v10900_v3  ;;  %v6384_v24 = vld [vmem:[#allocation2 + $0x9] sm:$0xff] }
 0x10d   : > { %10974 = vst [vmem:[#allocation20_spill] sm:$0xff] %v6339_v52  ;;  %v6375_v22 = vsub.f32 %v10981_v61, %v10911_v58  ;;  %v986_v35 = vsel %vm6364_vm14, %v6124_v14, %v982_v2  ;;  %v423_v20 = vadd.f32 0.1, %v6333_v6  ;;  %4460 = vrsqrt.f32 %v6342_v16  ;;  %v10983_v62 = vld [vmem:[#allocation36_spill] sm:$0xff]  ;;  %v10984_v2 = vld [vmem:[#allocation18_spill] sm:$0xff] }
 0x10e   : > { %v681_v60 = vmul.f32 %v6358_v29, %v6358_v29  ;;  %10982 = vst [vmem:[#allocation14_spill] sm:$0xff] %v6384_v24  ;;  %3622 = vrot.lane.b32.xlu2 %v10983_v62, %s5031_s8  ;;  %4462 = vrsqrt.f32 %v6352_v27  ;;  %v725_v25 = vmul.f32 %v6371_v7, %v6371_v7  ;;  %v6395_v46 = vsub.f32 %v10984_v2, %v10900_v3  ;;  %v6402_v18 = vld [vmem:[#allocation2 + $0xb] sm:$0xff]  ;;  %v1955_v62 = vpop.permute.xlu2 %1954 }
 0x10f   : > { %v753_v14 = vmul.f32 %v6375_v22, %v6375_v22  ;;  %v6398_v32 = vmul.f32 %v6277_v8, %v1266_v51  ;;  %10986 = vst [vmem:[#allocation15_spill] sm:$0xff] %v6402_v18  ;;  %v6404_v61 = vld [vmem:[#allocation2 + $0xc] sm:$0xff]  ;;  %v6406_v4 = vmul.f32 %v491_v48, %v491_v48  ;;  %4464 = vrsqrt.f32 %v6354_v54 }
 0x110   : > { %10987 = vst [vmem:[#allocation21_spill] sm:$0xff] %v6404_v61  ;;  %v6409_v37 = vadd.f32 0.81, %v681_v60  ;;  %v6411_v24 = vpop.eup %4456  ;;  %v6414_v2 = vmul.f32 %v6186_v15, %v1125_v56  ;;  %v6416_v51 = vld [vmem:[#allocation2 + $0xd] sm:$0xff]  ;;  %v6421_v41 = vadd.f32 0.81, %v725_v25  ;;  %v6426_v60 = vmul.f32 %v986_v35, %v10990_v21 }
 0x111   : > { %10988 = vst [vmem:[#allocation23_spill] sm:$0xff] %v6416_v51  ;;  %v6423_v48 = vadd.f32 0.81, %v753_v14  ;;  %v523_v25 = vmul.f32 %v6411_v24, %v6324_v30  ;;  %v6449_v21 = vmul.f32 %v6207_v9, %v1197_v12  ;;  %vm528_vm0 = vweird.f32 %v6324_v30  ;;  %v6506_v8 = vld [vmem:[#allocation3 + $0xd] sm:$0xff] }
 0x112   : > { %v1953_v52 = vpop.permute.xlu1 %1952  ;;  %10989 = vst [vmem:[#allocation36_spill] sm:$0xff] %v6418_v44  ;;  %4466 = vrsqrt.f32 %v6409_v37  ;;  %v6442_v14 = vpop.eup %4458  ;;  %vm556_vm2 = vweird.f32 %v6335_v26  ;;  %vm1128_vm3 = vweird.f32 %v6186_v15  ;;  %vm628_vm6 = vweird.f32 %v6352_v27 }
 0x113   : > { %v1958_v18 = vsel %vm257_vm1, %v1953_v52, %v1955_v62  ;;  %v1984_v61 = vpop.permute.xlu0 %1983  ;;  %4468 = vrcp.f32 %v423_v20  ;;  %v6453_v35 = vpop.eup %4460  ;;  %v524_v62 = vmul.f32 %v6411_v24, %v523_v25  ;;  %v551_v44 = vmul.f32 %v6442_v14, %v6335_v26  ;;  %10997 = vst [vmem:[#allocation54_spill] sm:$0xff] %v6506_v8 }
 0x114   : > { %1964 = vst [vmem:[#allocation2 + $0x10] sm:$0x3f] %v1958_v18  ;;  %v6437_v52 = vsel %vm257_vm1, %v1982_v55, %v1984_v61  ;;  %v864_v55 = vmul.f32 %v6395_v46, %v6395_v46  ;;  %v3577_v18 = vld [vmem:[%s5107_s27 + $0x28] sm:$0x3f]  ;;  %v6457_v61 = vadd.f32 0.1, %v6406_v4  ;;  %4470 = vrsqrt.f32 %v6421_v41  ;;  %v6463_v57 = vpop.eup %4462 }
 0x115   : > { %10993 = vst [vmem:[#allocation18_spill] sm:$0xff] %v6437_v52  ;;  %v595_v12 = vmul.f32 %v6453_v35, %v6342_v16  ;;  %4472 = vrsqrt.f32 %v6423_v48  ;;  %v6470_v20 = vpop.eup %4464  ;;  %v525_v25 = vmul.f32 0.5, %v524_v62  ;;  %v552_v51 = vmul.f32 %v6442_v14, %v551_v44  ;;  %s4195_s27 = sshll.u32 %s4191_s24, 4  ;;  %s4196_s27 = int_to_ptr.hbm [resolvable:$true] %s4195_s27 }
 0x116   : > { %v623_v52 = vmul.f32 %v6463_v57, %v6352_v27  ;;  %3594 = vrot.lane.b32.xlu2 %v3577_v18, %s5031_s8  ;;  %vm529_vm7 = vweird.f32 %v6411_v24  ;;  %vm600_vm8 = vweird.f32 %v6342_v16  ;;  %v667_v0 = vmul.f32 %v6470_v20, %v6354_v54  ;;  %s4960_s30 = sshra.s32 %s4196_s27, 4  ;;  %s4961_s30 = int_to_ptr.hbm [resolvable:$true] %s4960_s30 }
 0x117   : > { %v596_v3 = vmul.f32 %v6453_v35, %v595_v12  ;;  %v6483_v53 = vadd.f32 0.81, %v864_v55  ;;  %vm1127_vm9 = vweird.f32 %v6079_v49  ;;  %v526_v17 = vsub.f32 1.5, %v525_v25  ;;  %v6492_v12 = vld [vmem:[#allocation3 + $0x9] sm:$0xff]  ;;  %vm6519_vm11 = vmor %vm528_vm0, %vm529_vm7  ;;  %s4962_s3 = scalar_lea.hbm %s4961_s30, 8  ;;  %p4967_p1 = scmp.lt.s32.totalorder %s4961_s30, %s10806_s2 }
 0x118   : > { %v6485_v62 = vpop.eup %4466  ;;  %v553_v43 = vmul.f32 0.5, %v552_v51  ;;  %vm557_vm4 = vweird.f32 %v6442_v14  ;;  %v624_v18 = vmul.f32 %v6463_v57, %v623_v52  ;;  %10994 = vst [vmem:[#allocation30_spill] sm:$0xff] %v6492_v12  ;;  %vm601_vm5 = vweird.f32 %v6453_v35  ;;  %v6504_v52 = vld [vmem:[#allocation3 + $0xc] sm:$0xff]  ;;  %p4963_p12 = scmp.ne.s32.totalorder %s4961_s30, %s4962_s3  ;;  %p4968_p2 = scmp.lt.s32.totalorder %s4966_s5, %s4962_s3 }
 0x119   : > { %v6490_v13 = vpop.eup %4468  ;;  %v597_v39 = vmul.f32 0.5, %v596_v3  ;;  %v668_v50 = vmul.f32 %v6470_v20, %v667_v0  ;;  %v695_v51 = vmul.f32 %v6485_v62, %v6409_v37  ;;  %v6508_v12 = vld [vmem:[#allocation3 + $0xe] sm:$0xff]  ;;  %v527_v28 = vmul.f32 %v6411_v24, %v526_v17  ;;  %vm558_vm13 = vmor %vm556_vm2, %vm557_vm4 }
 0x11a   : > { %v1988_v44 = vpop.permute.xlu1 %1987  ;;  %v6502_v25 = vpop.eup %4470  ;;  %10998 = vst [vmem:[#allocation55_spill] sm:$0xff] %v6508_v12  ;;  %v554_v3 = vsub.f32 1.5, %v553_v43  ;;  %v625_v10 = vmul.f32 0.5, %v624_v18  ;;  %vm1200_vm10 = vweird.f32 %v6207_v9  ;;  %4474 = vrsqrt.f32 %v6483_v53  ;;  %vm6553_vm2 = vmor %vm600_vm8, %vm601_vm5  ;;  %p4964_p13 = pnand %p4963_p12, %p5087_p4  ;;  %p4969_p3 = por %p4968_p2, %p4967_p1 }
 0x11b   : > { %v1986_v55 = vpop.permute.xlu0 %1985  ;;  %v6512_v42 = vpop.eup %4472  ;;  %v598_v12 = vsub.f32 1.5, %v597_v39  ;;  %v669_v8 = vmul.f32 0.5, %v668_v50  ;;  %v531_v43 = vsel %vm6519_vm11, %v6411_v24, %v527_v28  ;;  %vm1199_vm12 = vweird.f32 %v6095_v47 }
 0x11c   : > { %v1991_v59 = vsel %vm257_vm1, %v1986_v55, %v1988_v44  ;;  %v696_v44 = vmul.f32 %v6485_v62, %v695_v51  ;;  %v626_v17 = vsub.f32 1.5, %v625_v10  ;;  %vm629_vm1 = vweird.f32 %v6463_v57  ;;  %p4965_p0 = pneg %p4964_p13 }
 0x11d   : > { %1997 = vst [vmem:[#allocation3 + $0x10] sm:$0x3f] %v1991_v59  ;;  %v555_v59 = vmul.f32 %v6442_v14, %v554_v3  ;;  %v599_v50 = vmul.f32 %v6453_v35, %v598_v12  ;;  %v670_v39 = vsub.f32 1.5, %v669_v8  ;;  %v739_v18 = vmul.f32 %v6502_v25, %v6421_v41  ;;  %vm630_vm0 = vmor %vm628_vm6, %vm629_vm1 }
 0x11e   : > { %v697_v30 = vmul.f32 0.5, %v696_v44  ;;  %v627_v10 = vmul.f32 %v6463_v57, %v626_v17  ;;  %vm673_vm14 = vweird.f32 %v6470_v20  ;;  %v767_v24 = vmul.f32 %v6512_v42, %v6423_v48  ;;  %vm6566_vm6 = vmor %vm1127_vm9, %vm1128_vm3  ;;  %v11007_v44 = vld [vmem:[#allocation13_spill] sm:$0xff]  ;;  %p4970_p5 = pnand %p4969_p3, %p4965_p0 }
 0x11f   : > { %v559_v28 = vsel %vm558_vm13, %v6442_v14, %v555_v59  ;;  %v533_v55 = vmul.f32 %v531_v43, %v6275_v33  ;;  %v671_v8 = vmul.f32 %v6470_v20, %v670_v39  ;;  %4476 = vrcp.f32 %v6457_v61  ;;  %v11011_v39 = vld [vmem:[#allocation12_spill] sm:$0xff] }
 0x120   : > { %v561_v26 = vmul.f32 %v559_v28, %v6285_v36  ;;  %v698_v12 = vsub.f32 1.5, %v697_v30  ;;  %v631_v33 = vsel %vm630_vm0, %v6463_v57, %v627_v10  ;;  %vm701_vm7 = vweird.f32 %v6485_v62  ;;  %v6560_v27 = vpop.eup %4474 }
 0x121   : > { %v768_v36 = vmul.f32 %v6512_v42, %v767_v24  ;;  %v603_v51 = vsel %vm6553_vm2, %v6453_v35, %v599_v50  ;;  %vm672_vm8 = vweird.f32 %v6354_v54  ;;  %v740_v57 = vmul.f32 %v6502_v25, %v739_v18  ;;  %v11008_v35 = vld [vmem:[#allocation31_spill] sm:$0xff] }
 0x122   : > { %v563_v16 = vsub.f32 %v533_v55, %v561_v26  ;;  %v633_v3 = vmul.f32 %v631_v33, %v6293_v5  ;;  %vm6578_vm4 = vmor %vm672_vm8, %vm673_vm14  ;;  %v699_v49 = vmul.f32 %v6485_v62, %v698_v12  ;;  %vm700_vm3 = vweird.f32 %v6409_v37  ;;  %v11015_v33 = vld [vmem:[#allocation7_spill] sm:$0xff] }
 0x123   : > { %v6586_v43 = vsub.f32 %v11007_v44, %v10911_v58  ;;  %v11009_v5 = vsel %vm6432_vm15, %v6142_v11, %v6345_v45  ;;  %v1130_v59 = vsel %vm6566_vm6, %v6186_v15, %v6414_v2  ;;  %v675_v37 = vsel %vm6578_vm4, %v6470_v20, %v671_v8  ;;  %vm702_vm9 = vmor %vm700_vm3, %vm701_vm7  ;;  %v11010_v45 = vld [vmem:[#allocation11_spill] sm:$0xff] }
 0x124   : > { %v1060_v54 = vmul.f32 %v11009_v5, %v11008_v35  ;;  %v769_v17 = vmul.f32 0.5, %v768_v36  ;;  %v605_v50 = vmul.f32 %v603_v51, %v6289_v1  ;;  %v703_v56 = vsel %vm702_vm9, %v6485_v62, %v699_v49  ;;  %vm6620_vm15 = vmor %vm1199_vm12, %vm1200_vm10  ;;  %v11016_v36 = vld [vmem:[#allocation38_spill] sm:$0xff] }
 0x125   : > { %v878_v11 = vmul.f32 %v6560_v27, %v6483_v53  ;;  %v6609_v30 = vsub.f32 %v11011_v39, %v11010_v45  ;;  %v990_v15 = vsub.f32 %v6210_v19, %v6426_v60  ;;  %v6613_v2 = vmul.f32 %v563_v16, %v563_v16  ;;  %v4477_v28 = vpop.eup %4476  ;;  %v11017_v16 = vld [vmem:[#allocation22_spill] sm:$0xff] }
 0x126   : > { %v705_v20 = vmul.f32 %v703_v56, %v6358_v29  ;;  %v741_v18 = vmul.f32 0.5, %v740_v57  ;;  %v427_v62 = vmul.f32 %v6490_v13, %v6333_v6  ;;  %v635_v10 = vsub.f32 %v605_v50, %v633_v3  ;;  %v11014_v29 = vld [vmem:[#allocation33_spill] sm:$0xff]  ;;  %v11018_v57 = vld [vmem:[#allocation35_spill] sm:$0xff] }
 0x127   : > { %v677_v19 = vmul.f32 %v675_v37, %v6309_v38  ;;  %v892_v60 = vmul.f32 %v6586_v43, %v6586_v43  ;;  %v6630_v24 = vmul.f32 %v1130_v59, %v11014_v29  ;;  %v1202_v47 = vsel %vm6620_vm15, %v6207_v9, %v6449_v21 }
 0x128   : > { %v770_v55 = vsub.f32 1.5, %v769_v17  ;;  %v879_v26 = vmul.f32 %v6560_v27, %v878_v11  ;;  %v1062_v8 = vsub.f32 %v6213_v63, %v1060_v54  ;;  %v935_v38 = vmul.f32 %v6609_v30, %v6609_v30 }
 0x129   : > { %v707_v13 = vsub.f32 %v677_v19, %v705_v20  ;;  %v6638_v6 = vadd.f32 0.81, %v892_v60  ;;  %v567_v12 = vadd.f32 0.1, %v6613_v2  ;;  %v742_v14 = vsub.f32 1.5, %v741_v18  ;;  %v11022_v18 = vld [vmem:[#allocation9_spill] sm:$0xff] }
 0x12a   : > { %v6645_v61 = vsub.f32 %v11016_v36, %v11015_v33  ;;  %v6649_v51 = vsub.f32 %v11017_v16, %v11010_v45  ;;  %v429_v3 = vadd.f32 %v427_v62, %v11018_v57  ;;  %v499_v63 = vmul.f32 %v4477_v28, %v6406_v4  ;;  %v11019_v4 = vld [vmem:[#allocation39_spill] sm:$0xff]  ;;  %v11025_v36 = vld [vmem:[#allocation40_spill] sm:$0xff] }
 0x12b   : > { %v6653_v0 = vmul.f32 %v635_v10, %v635_v10  ;;  %4478 = vrsqrt.f32 %v6638_v6  ;;  %v771_v49 = vmul.f32 %v6512_v42, %v770_v55  ;;  %vm773_vm5 = vweird.f32 %v6512_v42 }
 0x12c   : > { %v880_v44 = vmul.f32 0.5, %v879_v26  ;;  %v6658_v35 = vadd.f32 0.81, %v935_v38  ;;  %v6660_v5 = vmul.f32 %v707_v13, %v707_v13  ;;  %v963_v54 = vmul.f32 %v6645_v61, %v6645_v61 }
 0x12d   : > { %v1007_v59 = vmul.f32 %v6649_v51, %v6649_v51  ;;  %v6668_v37 = vsub.f32 %v11019_v4, %v11015_v33  ;;  %4480 = vrcp.f32 %v567_v12  ;;  %v743_v17 = vmul.f32 %v6502_v25, %v742_v14 }
 0x12e   : > { %vm745_vm10 = vweird.f32 %v6502_v25  ;;  %vm772_vm11 = vweird.f32 %v6423_v48  ;;  %v639_v50 = vadd.f32 0.1, %v6653_v0  ;;  %vm744_vm1 = vweird.f32 %v6421_v41 }
 0x12f   : > { %vm6675_vm12 = vmor %vm772_vm11, %vm773_vm5  ;;  %4482 = vrsqrt.f32 %v6658_v35  ;;  %v6680_v11 = vadd.f32 0.81, %v963_v54  ;;  %v6685_v20 = vadd.f32 0.81, %v1007_v59  ;;  %v1035_v48 = vmul.f32 %v6668_v37, %v6668_v37 }
 0x130   : > { %v775_v39 = vsel %vm6675_vm12, %v6512_v42, %v771_v49  ;;  %v6691_v41 = vsub.f32 %v11022_v18, %v11010_v45  ;;  %v6693_v62 = vmul.f32 %v990_v15, %v990_v15  ;;  %v711_v10 = vadd.f32 0.1, %v6660_v5  ;;  %vm6696_vm13 = vmor %vm744_vm1, %vm745_vm10 }
 0x131   : > { %v4479_v28 = vpop.eup %4478  ;;  %v881_v60 = vsub.f32 1.5, %v880_v44  ;;  %4484 = vrsqrt.f32 %v6680_v11  ;;  %v6701_v42 = vmul.f32 %v1062_v8, %v1062_v8  ;;  %v6703_v29 = vadd.f32 %v499_v63, %v429_v3 }
 0x132   : > { %v747_v55 = vsel %vm6696_vm13, %v6502_v25, %v743_v17  ;;  %v906_v15 = vmul.f32 %v4479_v28, %v6638_v6  ;;  %v777_v26 = vmul.f32 %v775_v39, %v6375_v22  ;;  %vm883_vm14 = vweird.f32 %v6483_v53 }
 0x133   : > { %vm884_vm0 = vweird.f32 %v6560_v27  ;;  %4486 = vrsqrt.f32 %v6685_v20  ;;  %v4481_v13 = vpop.eup %4480  ;;  %v6713_v38 = vadd.f32 0.81, %v1035_v48  ;;  %v1079_v12 = vmul.f32 %v6691_v41, %v6691_v41 }
 0x134   : > { %4488 = vrcp.f32 %v639_v50  ;;  %v907_v8 = vmul.f32 %v4479_v28, %v906_v15  ;;  %v749_v25 = vmul.f32 %v747_v55, %v6371_v7  ;;  %v882_v22 = vmul.f32 %v6560_v27, %v881_v60  ;;  %vm6738_vm6 = vmor %vm883_vm14, %vm884_vm0 }
 0x135   : > { %v6717_v14 = vpop.eup %4482  ;;  %4490 = vrcp.f32 %v711_v10  ;;  %v6723_v16 = vsub.f32 %v11025_v36, %v11015_v33  ;;  %vm911_vm2 = vweird.f32 %v6638_v6  ;;  %vm945_vm7 = vweird.f32 %v6658_v35 }
 0x136   : > { %v908_v57 = vmul.f32 0.5, %v907_v8  ;;  %v940_v3 = vmul.f32 %v6717_v14, %v6658_v35  ;;  %4492 = vrsqrt.f32 %v6713_v38  ;;  %v779_v49 = vsub.f32 %v749_v25, %v777_v26 }
 0x137   : > { %v4485_v63 = vpop.eup %4484  ;;  %v6730_v44 = vadd.f32 0.81, %v1079_v12  ;;  %v1107_v7 = vmul.f32 %v6723_v16, %v6723_v16  ;;  %vm912_vm8 = vweird.f32 %v4479_v28  ;;  %v571_v56 = vmul.f32 %v4481_v13, %v6613_v2 }
 0x138   : > { %v909_v59 = vsub.f32 1.5, %v908_v57  ;;  %v941_v4 = vmul.f32 %v6717_v14, %v940_v3  ;;  %v968_v17 = vmul.f32 %v4485_v63, %v6680_v11  ;;  %v886_v39 = vsel %vm6738_vm6, %v6560_v27, %v882_v22  ;;  %vm913_vm4 = vmor %vm911_vm2, %vm912_vm8  ;;  %v11028_v27 = vld [vmem:[#allocation25_spill] sm:$0xff] }
 0x139   : > { %v6744_v50 = vpop.eup %4486  ;;  %4494 = vrsqrt.f32 %v6730_v44  ;;  %v6751_v53 = vadd.f32 0.81, %v1107_v7  ;;  %v6759_v15 = vmul.f32 %v779_v49, %v779_v49  ;;  %vm946_vm3 = vweird.f32 %v6717_v14 }
 0x13a   : > { %v6753_v48 = vpop.eup %4488  ;;  %v910_v18 = vmul.f32 %v4479_v28, %v909_v59  ;;  %v942_v10 = vmul.f32 0.5, %v941_v4  ;;  %v969_v19 = vmul.f32 %v4485_v63, %v968_v17  ;;  %v1012_v60 = vmul.f32 %v6744_v50, %v6685_v20  ;;  %vm6782_vm10 = vmor %vm945_vm7, %vm946_vm3  ;;  %v11031_v59 = vld [vmem:[#allocation41_spill] sm:$0xff] }
 0x13b   : > { %v6757_v55 = vpop.eup %4490  ;;  %4496 = vrsqrt.f32 %v6751_v53  ;;  %v6768_v2 = vsub.f32 %v11028_v27, %v11010_v45  ;;  %v888_v22 = vmul.f32 %v886_v39, %v6395_v46  ;;  %vm973_vm9 = vweird.f32 %v6680_v11 }
 0x13c   : > { %v4493_v26 = vpop.eup %4492  ;;  %v914_v13 = vsel %vm913_vm4, %v4479_v28, %v910_v18  ;;  %v943_v8 = vsub.f32 1.5, %v942_v10  ;;  %v970_v12 = vmul.f32 0.5, %v969_v19  ;;  %v1013_v25 = vmul.f32 %v6744_v50, %v1012_v60 }
 0x13d   : > { %v916_v36 = vmul.f32 %v914_v13, %v6586_v43  ;;  %v1040_v6 = vmul.f32 %v4493_v26, %v6713_v38  ;;  %vm974_vm5 = vweird.f32 %v4485_v63  ;;  %v1151_v54 = vmul.f32 %v6768_v2, %v6768_v2 }
 0x13e   : > { %v944_v57 = vmul.f32 %v6717_v14, %v943_v8  ;;  %v971_v3 = vsub.f32 1.5, %v970_v12  ;;  %v1014_v49 = vmul.f32 0.5, %v1013_v25  ;;  %v6790_v4 = vsub.f32 %v11031_v59, %v11015_v33  ;;  %vm975_vm11 = vmor %vm973_vm9, %vm974_vm5 }
 0x13f   : > { %v6776_v7 = vpop.eup %4494  ;;  %v918_v28 = vsub.f32 %v888_v22, %v916_v36  ;;  %v1041_v43 = vmul.f32 %v4493_v26, %v1040_v6  ;;  %v783_v19 = vadd.f32 0.1, %v6759_v15  ;;  %vm1017_vm1 = vweird.f32 %v6685_v20  ;;  %v6814_v20 = vpop.permute.xlu2 %2442 }
 0x140   : > { %v948_v17 = vsel %vm6782_vm10, %v6717_v14, %v944_v57  ;;  %v972_v39 = vmul.f32 %v4485_v63, %v971_v3  ;;  %v1015_v18 = vsub.f32 1.5, %v1014_v49  ;;  %v1084_v35 = vmul.f32 %v6776_v7, %v6730_v44 }
 0x141   : > { %v6797_v10 = vpop.eup %4496  ;;  %vm1018_vm12 = vweird.f32 %v6744_v50  ;;  %v1042_v60 = vmul.f32 0.5, %v1041_v43  ;;  %v6804_v27 = vmul.f32 %v918_v28, %v918_v28  ;;  %v959_v12 = vmul.f32 %v948_v17, %v6609_v30 }
 0x142   : > { %v976_v14 = vsel %vm975_vm11, %v4485_v63, %v972_v39  ;;  %v1016_v13 = vmul.f32 %v6744_v50, %v1015_v18  ;;  %v1085_v8 = vmul.f32 %v6776_v7, %v1084_v35  ;;  %v6810_v22 = vadd.f32 0.81, %v1151_v54  ;;  %vm6816_vm13 = vmor %vm1017_vm1, %vm1018_vm12  ;;  %v11034_v35 = vld [vmem:[#allocation26_spill] sm:$0xff] }
 0x143   : > { %v987_v25 = vmul.f32 %v976_v14, %v6645_v61  ;;  %v1179_v11 = vmul.f32 %v6790_v4, %v6790_v4  ;;  %v1043_v63 = vsub.f32 1.5, %v1042_v60  ;;  %vm1046_vm14 = vweird.f32 %v4493_v26 }
 0x144   : > { %v1086_v6 = vmul.f32 0.5, %v1085_v8  ;;  %v1112_v57 = vmul.f32 %v6797_v10, %v6751_v53  ;;  %v573_v30 = vadd.f32 %v571_v56, %v6703_v29  ;;  %4498 = vrcp.f32 %v783_v19 }
 0x145   : > { %v989_v61 = vsub.f32 %v959_v12, %v987_v25  ;;  %v1020_v3 = vsel %vm6816_vm13, %v6744_v50, %v1016_v13  ;;  %v922_v49 = vadd.f32 0.1, %v6804_v27  ;;  %v1044_v28 = vmul.f32 %v4493_v26, %v1043_v63  ;;  %v11035_v25 = vld [vmem:[#allocation34_spill] sm:$0xff] }
 0x146   : > { %vm1045_vm0 = vweird.f32 %v6713_v38  ;;  %v1113_v46 = vmul.f32 %v6797_v10, %v1112_v57  ;;  %v994_v43 = vadd.f32 0.1, %v6693_v62  ;;  %v643_v54 = vmul.f32 %v6753_v48, %v6653_v0 }
 0x147   : > { %vm1047_vm2 = vmor %vm1045_vm0, %vm1046_vm14  ;;  %4500 = vrsqrt.f32 %v6810_v22  ;;  %v6833_v29 = vadd.f32 0.81, %v1179_v11  ;;  %v1031_v56 = vmul.f32 %v1020_v3, %v6649_v51  ;;  %v1087_v59 = vsub.f32 1.5, %v1086_v6 }
 0x148   : > { %v1048_v50 = vsel %vm1047_vm2, %v4493_v26, %v1044_v28  ;;  %v1114_v17 = vmul.f32 0.5, %v1113_v46  ;;  %v6836_v39 = vmul.f32 %v989_v61, %v989_v61  ;;  %v1134_v18 = vsub.f32 %v6219_v34, %v6630_v24 }
 0x149   : > { %v1059_v38 = vmul.f32 %v1048_v50, %v6668_v37  ;;  %4502 = vrsqrt.f32 %v6833_v29  ;;  %v645_v0 = vadd.f32 %v643_v54, %v573_v30  ;;  %v6844_v19 = vsub.f32 %v11034_v35, %v11010_v45 }
 0x14a   : > { %4504 = vrcp.f32 %v922_v49  ;;  %v1115_v48 = vsub.f32 1.5, %v1114_v17  ;;  %v4499_v51 = vpop.eup %4498  ;;  %v1066_v26 = vadd.f32 0.1, %v6701_v42  ;;  %vm1118_vm7 = vweird.f32 %v6797_v10 }
 0x14b   : > { %4506 = vrcp.f32 %v994_v43  ;;  %v1061_v60 = vsub.f32 %v1031_v56, %v1059_v38  ;;  %v715_v37 = vmul.f32 %v6757_v55, %v6660_v5  ;;  %vm1117_vm6 = vweird.f32 %v6751_v53  ;;  %v2449_v53 = vpop.permute.xlu2 %2448  ;;  %v2447_v55 = vpop.permute.xlu1 %2446 }
 0x14c   : > { %v1116_v34 = vmul.f32 %v6797_v10, %v1115_v48  ;;  %v1223_v24 = vmul.f32 %v6844_v19, %v6844_v19  ;;  %v993_v13 = vadd.f32 0.1, %v6836_v39  ;;  %v1088_v8 = vmul.f32 %v6776_v7, %v1087_v59  ;;  %vm6869_vm3 = vmor %vm1117_vm6, %vm1118_vm7 }
 0x14d   : > { %v6854_v14 = vpop.eup %4500  ;;  %vm1090_vm8 = vweird.f32 %v6776_v7  ;;  %v6859_v12 = vmul.f32 %v1134_v18, %v1134_v18  ;;  %v1204_v5 = vmul.f32 %v1202_v47, %v11035_v25  ;;  %vm2454_vm4 = vcmask 1014784  }
 0x14e   : > { %v717_v11 = vadd.f32 %v715_v37, %v645_v0  ;;  %v1156_v63 = vmul.f32 %v6854_v14, %v6810_v22  ;;  %v6875_v57 = vmul.f32 %v1061_v60, %v1061_v60  ;;  %vm1089_vm9 = vweird.f32 %v6730_v44 }
 0x14f   : > { %v4503_v6 = vpop.eup %4502  ;;  %v1120_v9 = vsel %vm6869_vm3, %v6797_v10, %v1116_v34  ;;  %v6881_v21 = vadd.f32 0.81, %v1223_v24  ;;  %4508 = vrcp.f32 %v1066_v26  ;;  %v787_v47 = vmul.f32 %v4499_v51, %v6759_v15  ;;  %vm6886_vm15 = vmor %vm1089_vm9, %vm1090_vm8 }
 0x150   : > { %v4505_v1 = vpop.eup %4504  ;;  %v1157_v61 = vmul.f32 %v6854_v14, %v1156_v63  ;;  %v1184_v44 = vmul.f32 %v4503_v6, %v6833_v29  ;;  %v6893_v49 = vsel %vm2454_vm4, %v2447_v55, %v2449_v53  ;;  %4510 = vrcp.f32 %v993_v13 }
 0x151   : > { %v4507_v3 = vpop.eup %4506  ;;  %v1092_v10 = vsel %vm6886_vm15, %v6776_v7, %v1088_v8  ;;  %v1138_v15 = vadd.f32 0.1, %v6859_v12  ;;  %v789_v28 = vadd.f32 %v787_v47, %v717_v11  ;;  %v1131_v46 = vmul.f32 %v1120_v9, %v6723_v16  ;;  %v11042_v11 = vld [vmem:[#allocation28_spill] sm:$0xff] }
 0x152   : > { %v1158_v43 = vmul.f32 0.5, %v1157_v61  ;;  %v1185_v54 = vmul.f32 %v4503_v6, %v1184_v44  ;;  %v926_v56 = vmul.f32 %v4505_v1, %v6804_v27  ;;  %v1065_v50 = vadd.f32 0.1, %v6875_v57  ;;  %v11044_v1 = vld [vmem:[#allocation17_spill] sm:$0xff]  ;;  %v11046_v44 = vld [vmem:[#allocation46_spill] sm:$0xff] }
 0x153   : > { %vm1161_vm5 = vweird.f32 %v6810_v22  ;;  %4512 = vrsqrt.f32 %v6881_v21  ;;  %v1103_v59 = vmul.f32 %v1092_v10, %v6691_v41  ;;  %vm1162_vm10 = vweird.f32 %v6854_v14 }
 0x154   : > { %v1159_v17 = vsub.f32 1.5, %v1158_v43  ;;  %v1186_v7 = vmul.f32 0.5, %v1185_v54  ;;  %v998_v38 = vmul.f32 %v4507_v3, %v6693_v62  ;;  %4514 = vrcp.f32 %v1138_v15  ;;  %vm6915_vm1 = vmor %vm1161_vm5, %vm1162_vm10  ;;  %v11047_v3 = vld [vmem:[#allocation49_spill] sm:$0xff] }
 0x155   : > { %v1240_v16 = vmul.f32 0.5, %v6159_v40  ;;  %v6910_v27 = vsub.f32 %v6081_v23, %v11015_v33  ;;  %v4509_v18 = vpop.eup %4508  ;;  %v1133_v0 = vsub.f32 %v1103_v59, %v1131_v46  ;;  %vm1190_vm11 = vweird.f32 %v4503_v6  ;;  %v11050_v59 = vld [vmem:[#allocation47_spill] sm:$0xff] }
 0x156   : > { %v1160_v48 = vmul.f32 %v6854_v14, %v1159_v17  ;;  %v1187_v35 = vsub.f32 1.5, %v1186_v7  ;;  %v4511_v41 = vpop.eup %4510  ;;  %v928_v51 = vadd.f32 %v926_v56, %v789_v28  ;;  %4516 = vrcp.f32 %v1065_v50  ;;  %v11051_v17 = vld [vmem:[#allocation45_spill] sm:$0xff] }
 0x157   : > { %v1206_v40 = vsub.f32 %v6222_v31, %v1204_v5  ;;  %v1251_v23 = vmul.f32 %v6910_v27, %v6910_v27  ;;  %vm1189_vm12 = vweird.f32 %v6833_v29  ;;  %v1268_v37 = vmul.f32 0.5, %v6398_v32 }
 0x158   : > { %v1164_v26 = vsel %vm6915_vm1, %v6854_v14, %v1160_v48  ;;  %v1188_v60 = vmul.f32 %v4503_v6, %v1187_v35  ;;  %v1000_v22 = vadd.f32 %v998_v38, %v928_v51  ;;  %v1070_v24 = vmul.f32 %v4509_v18, %v6701_v42  ;;  %vm1191_vm13 = vmor %vm1189_vm12, %vm1190_vm11  ;;  %v11052_v48 = vld [vmem:[#allocation43_spill] sm:$0xff] }
 0x159   : > { %v6927_v34 = vpop.eup %4512  ;;  %v1241_v13 = vsub.f32 1.5, %v1240_v16  ;;  %v6930_v31 = vadd.f32 0.81, %v1251_v23  ;;  %v997_v8 = vmul.f32 %v4511_v41, %v6836_v39  ;;  %v6933_v25 = vmul.f32 %v1133_v0, %v1133_v0  ;;  %v11043_v39 = vld [vmem:[#allocation37_spill] sm:$0xff]  ;;  %v11053_v41 = vld [vmem:[#allocation42_spill] sm:$0xff]  ;;  %v11054_v23 = vld [vmem:[#allocation16_spill] sm:$0xff] }
 0x15a   : > { %v1192_v5 = vsel %vm1191_vm13, %v4503_v6, %v1188_v60  ;;  %v1228_v14 = vmul.f32 %v6927_v34, %v6881_v21  ;;  %v4515_v29 = vpop.eup %4514  ;;  %v1175_v32 = vmul.f32 %v1164_v26, %v6768_v2  ;;  %v6939_v55 = vmul.f32 %v1206_v40, %v1206_v40  ;;  %v11045_v2 = vld [vmem:[#allocation27_spill] sm:$0xff] }
 0x15b   : > { %v1203_v53 = vmul.f32 %v1192_v5, %v6790_v4  ;;  %4518 = vrsqrt.f32 %v6930_v31  ;;  %vm1243_vm14 = vweird.f32 %v11042_v11  ;;  %vm1244_vm0 = vweird.f32 %v11043_v39  ;;  %v11057_v11 = vld [vmem:[#allocation32_spill] sm:$0xff] }
 0x15c   : > { %v1229_v42 = vmul.f32 %v6927_v34, %v1228_v14  ;;  %v1269_v36 = vsub.f32 1.5, %v1268_v37  ;;  %v4517_v63 = vpop.eup %4516  ;;  %v1242_v9 = vmul.f32 %v11043_v39, %v1241_v13  ;;  %vm1272_vm2 = vweird.f32 %v11044_v1  ;;  %vm6964_vm8 = vmor %vm1243_vm14, %vm1244_vm0 }
 0x15d   : > { %v1205_v6 = vsub.f32 %v1175_v32, %v1203_v53  ;;  %v6949_v4 = vsub.f32 %v11045_v2, %v11010_v45  ;;  %v1137_v47 = vadd.f32 0.1, %v6933_v25  ;;  %vm1271_vm7 = vweird.f32 %v11046_v44  ;;  %v11056_v32 = vld [vmem:[#allocation19_spill] sm:$0xff]  ;;  %v11060_v44 = vld [vmem:[#allocation10_spill] sm:$0xff] }
 0x15e   : > { %v1230_v30 = vmul.f32 0.5, %v1229_v42  ;;  %v1270_v61 = vmul.f32 %v11044_v1, %v1269_v36  ;;  %v999_v10 = vadd.f32 %v997_v8, %v11047_v3  ;;  %v1072_v15 = vadd.f32 %v1070_v24, %v1000_v22  ;;  %vm1273_vm6 = vmor %vm1271_vm7, %vm1272_vm2  ;;  %v1428_v22 = vld [vmem:[#allocation2] sm:$0xff]  ;;  %v1429_v42 = vld [vmem:[#allocation2 + $0x8] sm:$0xff] }
 0x15f   : > { %v1210_v28 = vadd.f32 0.1, %v6939_v55  ;;  %v1295_v46 = vmul.f32 %v6949_v4, %v6949_v4  ;;  %v1069_v43 = vmul.f32 %v4517_v63, %v6875_v57  ;;  %v1142_v54 = vmul.f32 %v4515_v29, %v6859_v12  ;;  %v11055_v29 = vld [vmem:[#allocation29_spill] sm:$0xff] }
 0x160   : > { %v1274_v50 = vsel %vm1273_vm6, %v11044_v1, %v1270_v61  ;;  %v1311_v7 = vmul.f32 %v11051_v17, %v11050_v59  ;;  %v6971_v16 = vmul.f32 %v1205_v6, %v1205_v6  ;;  %v1231_v18 = vsub.f32 1.5, %v1230_v30  ;;  %v11061_v59 = vld [vmem:[#allocation48_spill] sm:$0xff] }
 0x161   : > { %v4519_v38 = vpop.eup %4518  ;;  %v1246_v12 = vsel %vm6964_vm8, %v11043_v39, %v1242_v9  ;;  %v6976_v57 = vadd.f32 0.81, %v1295_v46  ;;  %4520 = vrcp.f32 %v1137_v47  ;;  %v1276_v35 = vmul.f32 %v1274_v50, %v11052_v48  ;;  %v1430_v39 = vld [vmem:[#allocation3] sm:$0xff] }
 0x162   : > { %v1256_v0 = vmul.f32 %v4519_v38, %v6930_v31  ;;  %v6982_v51 = vsub.f32 %v11053_v41, %v11015_v33  ;;  %v6984_v62 = vadd.f32 %v1069_v43, %v999_v10  ;;  %v6986_v40 = vadd.f32 %v1142_v54, %v1072_v15 }
 0x163   : > { %4522 = vrcp.f32 %v1210_v28  ;;  %vm1233_vm3 = vweird.f32 %v6881_v21  ;;  %v1248_v26 = vmul.f32 %v1246_v12, %v11054_v23  ;;  %v1312_v37 = vmul.f32 0.5, %v1311_v7 }
 0x164   : > { %v1257_v60 = vmul.f32 %v4519_v38, %v1256_v0  ;;  %4524 = vrsqrt.f32 %v6976_v57  ;;  %v1209_v24 = vadd.f32 0.1, %v6971_v16  ;;  %v1232_v13 = vmul.f32 %v6927_v34, %v1231_v18  ;;  %v1431_v0 = vld [vmem:[#allocation3 + $0x8] sm:$0xff] }
 0x165   : > { %vm1234_vm9 = vweird.f32 %v6927_v34  ;;  %vm1261_vm15 = vweird.f32 %v6930_v31  ;;  %v1278_v5 = vsub.f32 %v1248_v26, %v1276_v35  ;;  %v1323_v14 = vmul.f32 %v6982_v51, %v6982_v51  ;;  %v2445_v35 = vpop.permute.xlu0 %2444 }
 0x166   : > { %v1258_v8 = vmul.f32 0.5, %v1257_v60  ;;  %v1339_v53 = vmul.f32 %v11056_v32, %v11055_v29  ;;  %vm1262_vm5 = vweird.f32 %v4519_v38  ;;  %vm1315_vm10 = vweird.f32 %v11057_v11  ;;  %vm7006_vm1 = vmor %vm1233_vm3, %vm1234_vm9  ;;  %v11066_v11 = vld [vmem:[#allocation44_spill] sm:$0xff] }
 0x167   : > { %vm1316_vm11 = vweird.f32 %v11051_v17  ;;  %v7002_v36 = vsub.f32 %v1428_v22, %v11010_v45  ;;  %v4521_v63 = vpop.eup %4520  ;;  %v1313_v1 = vsub.f32 1.5, %v1312_v37  ;;  %v7010_v2 = vadd.f32 0.81, %v1323_v14  ;;  %vm1263_vm12 = vmor %vm1261_vm15, %vm1262_vm5 }
 0x168   : > { %v1259_v9 = vsub.f32 1.5, %v1258_v8  ;;  %v1340_v47 = vmul.f32 0.5, %v1339_v53  ;;  %4526 = vrcp.f32 %v1209_v24  ;;  %v1236_v61 = vsel %vm7006_vm1, %v6927_v34, %v1232_v13  ;;  %vm7067_vm2 = vmor %vm1315_vm10, %vm1316_vm11 }
 0x169   : > { %v4523_v30 = vpop.eup %4522  ;;  %v7016_v3 = vsub.f32 %v1429_v42, %v11060_v44  ;;  %v1434_v21 = vmul.f32 %v7002_v36, %v7002_v36  ;;  %v7022_v28 = vmul.f32 %v1278_v5, %v1278_v5  ;;  %4528 = vrsqrt.f32 %v7010_v2  ;;  %v1502_v5 = vld [vmem:[#allocation3 + $0x1] sm:$0xff] }
 0x16a   : > { %v7020_v10 = vpop.eup %4524  ;;  %v1260_v15 = vmul.f32 %v4519_v38, %v1259_v9  ;;  %v7026_v46 = vsub.f32 %v1430_v39, %v11015_v33  ;;  %v1341_v43 = vsub.f32 1.5, %v1340_v47  ;;  %vm1344_vm13 = vweird.f32 %v11056_v32 }
 0x16b   : > { %v1300_v34 = vmul.f32 %v7020_v10, %v6976_v57  ;;  %v1435_v54 = vmul.f32 %v7016_v3, %v7016_v3  ;;  %v1314_v50 = vmul.f32 %v11051_v17, %v1313_v1  ;;  %vm1343_vm14 = vweird.f32 %v11061_v59 }
 0x16c   : > { %v1264_v56 = vsel %vm1263_vm12, %v4519_v38, %v1260_v15  ;;  %v7038_v7 = vadd.f32 0.81, %v1434_v21  ;;  %v1342_v12 = vmul.f32 %v11056_v32, %v1341_v43  ;;  %v1247_v41 = vmul.f32 %v1236_v61, %v6844_v19  ;;  %vm7046_vm0 = vmor %vm1343_vm14, %vm1344_vm13  ;;  %v1500_v15 = vld [vmem:[#allocation2 + $0x1] sm:$0xff] }
 0x16d   : > { %v1275_v18 = vmul.f32 %v1264_v56, %v6910_v27  ;;  %v1301_v31 = vmul.f32 %v7020_v10, %v1300_v34  ;;  %v7043_v48 = vadd.f32 0.81, %v1435_v54  ;;  %v7052_v23 = vsub.f32 %v1431_v0, %v10911_v58 }
 0x16e   : > { %4530 = vrsqrt.f32 %v7038_v7  ;;  %v1462_v27 = vmul.f32 %v7026_v46, %v7026_v46  ;;  %v4527_v26 = vpop.eup %4526  ;;  %v1282_v60 = vadd.f32 0.1, %v7022_v28  ;;  %v1346_v19 = vsel %vm7046_vm0, %v11056_v32, %v1342_v12 }
 0x16f   : > { %v1302_v37 = vmul.f32 0.5, %v1301_v31  ;;  %4532 = vrsqrt.f32 %v7043_v48  ;;  %v4529_v22 = vpop.eup %4528  ;;  %v1141_v24 = vmul.f32 %v4521_v63, %v6933_v25  ;;  %v1214_v13 = vmul.f32 %v4523_v30, %v6939_v55 }
 0x170   : > { %v1277_v8 = vsub.f32 %v1247_v41, %v1275_v18  ;;  %v1463_v14 = vmul.f32 %v7052_v23, %v7052_v23  ;;  %v7075_v29 = vsel %vm2454_vm4, %v6814_v20, %v2445_v35  ;;  %v1318_v25 = vsel %vm7067_vm2, %v11051_v17, %v1314_v50 }
 0x171   : > { %v1303_v32 = vsub.f32 1.5, %v1302_v37  ;;  %v1328_v55 = vmul.f32 %v4529_v22, %v7010_v2  ;;  %v1143_v53 = vadd.f32 %v1141_v24, %v6984_v62  ;;  %v7083_v42 = vadd.f32 %v1214_v13, %v6986_v40  ;;  %v11067_v62 = vld [vmem:[#allocation24_spill] sm:$0xff] }
 0x172   : > { %v1348_v39 = vmul.f32 %v1346_v19, %v11066_v11  ;;  %v7086_v63 = vadd.f32 0.81, %v1462_v27  ;;  %4534 = vrcp.f32 %v1282_v60  ;;  %vm1305_vm7 = vweird.f32 %v6976_v57  ;;  %v11070_v57 = vld [vmem:[#allocation14_spill] sm:$0xff] }
 0x173   : > { %v1329_v20 = vmul.f32 %v4529_v22, %v1328_v55  ;;  %v7089_v6 = vadd.f32 0.81, %v1463_v14  ;;  %v1213_v17 = vmul.f32 %v4527_v26, %v6971_v16  ;;  %v7094_v1 = vmul.f32 %v1277_v8, %v1277_v8  ;;  %v1572_v55 = vld [vmem:[#allocation2 + $0x2] sm:$0xff] }
 0x174   : > { %v7091_v9 = vpop.eup %4530  ;;  %v1320_v47 = vmul.f32 %v1318_v25, %v11067_v62  ;;  %4536 = vrsqrt.f32 %v7086_v63  ;;  %v1304_v30 = vmul.f32 %v7020_v10, %v1303_v32  ;;  %vm1306_vm6 = vweird.f32 %v7020_v10  ;;  %v11077_v62 = vld [vmem:[#allocation52_spill] sm:$0xff] }
 0x175   : > { %v7098_v40 = vpop.eup %4532  ;;  %v1330_v61 = vmul.f32 0.5, %v1329_v20  ;;  %v1439_v21 = vmul.f32 %v7091_v9, %v7038_v7  ;;  %v7104_v34 = vadd.f32 %v1213_v17, %v1143_v53  ;;  %vm1333_vm8 = vweird.f32 %v7010_v2  ;;  %vm7114_vm9 = vmor %vm1305_vm7, %vm1306_vm6 }
 0x176   : > { %v1350_v16 = vsub.f32 %v1320_v47, %v1348_v39  ;;  %v1449_v43 = vmul.f32 %v7098_v40, %v7043_v48  ;;  %vm1334_vm3 = vweird.f32 %v4529_v22  ;;  %4538 = vrsqrt.f32 %v7089_v6 }
 0x177   : > { %v1331_v54 = vsub.f32 1.5, %v1330_v61  ;;  %v1440_v56 = vmul.f32 %v7091_v9, %v1439_v21  ;;  %v1281_v50 = vadd.f32 0.1, %v7094_v1  ;;  %vm1444_vm15 = vweird.f32 %v7038_v7  ;;  %vm1335_vm5 = vmor %vm1333_vm8, %vm1334_vm3 }
 0x178   : > { %v1450_v18 = vmul.f32 %v7098_v40, %v1449_v43  ;;  %v7121_v31 = vsub.f32 %v1500_v15, %v11010_v45  ;;  %v7123_v12 = vpop.eup %4534  ;;  %v1308_v0 = vsel %vm7114_vm9, %v7020_v10, %v1304_v30  ;;  %v7130_v38 = vsub.f32 %v11070_v57, %v11060_v44  ;;  %v11073_v30 = vld [vmem:[#allocation30_spill] sm:$0xff] }
 0x179   : > { %v1332_v35 = vmul.f32 %v4529_v22, %v1331_v54  ;;  %v1441_v41 = vmul.f32 0.5, %v1440_v56  ;;  %v7134_v26 = vmul.f32 %v1350_v16, %v1350_v16  ;;  %vm1454_vm10 = vweird.f32 %v7043_v48 }
 0x17a   : > { %v4537_v27 = vpop.eup %4536  ;;  %v1451_v60 = vmul.f32 0.5, %v1450_v18  ;;  %v1506_v37 = vmul.f32 %v7121_v31, %v7121_v31  ;;  %vm1472_vm11 = vweird.f32 %v7086_v63  ;;  %4540 = vrcp.f32 %v1281_v50 }
 0x17b   : > { %v1336_v19 = vsel %vm1335_vm5, %v4529_v22, %v1332_v35  ;;  %v1442_v10 = vsub.f32 1.5, %v1441_v41  ;;  %v1467_v24 = vmul.f32 %v4537_v27, %v7086_v63  ;;  %v1319_v13 = vmul.f32 %v1308_v0, %v6949_v4  ;;  %v11076_v41 = vld [vmem:[#allocation8_spill] sm:$0xff] }
 0x17c   : > { %v1347_v2 = vmul.f32 %v1336_v19, %v6982_v51  ;;  %v1452_v8 = vsub.f32 1.5, %v1451_v60  ;;  %v4539_v14 = vpop.eup %4538  ;;  %vm1445_vm1 = vweird.f32 %v7091_v9  ;;  %v1507_v22 = vmul.f32 %v7130_v38, %v7130_v38 }
 0x17d   : > { %v1443_v32 = vmul.f32 %v7091_v9, %v1442_v10  ;;  %v1468_v25 = vmul.f32 %v4537_v27, %v1467_v24  ;;  %vm1455_vm12 = vweird.f32 %v7098_v40  ;;  %v1477_v11 = vmul.f32 %v4539_v14, %v7089_v6  ;;  %vm7160_vm14 = vmor %vm1444_vm15, %vm1445_vm1 }
 0x17e   : > { %v1349_v53 = vsub.f32 %v1319_v13, %v1347_v2  ;;  %v7149_v4 = vadd.f32 0.81, %v1506_v37  ;;  %v1453_v51 = vmul.f32 %v7098_v40, %v1452_v8  ;;  %vm1482_vm13 = vweird.f32 %v7089_v6  ;;  %vm7181_vm2 = vmor %vm1454_vm10, %vm1455_vm12 }
 0x17f   : > { %v1469_v39 = vmul.f32 0.5, %v1468_v25  ;;  %v7154_v20 = vsub.f32 %v1502_v5, %v11015_v33  ;;  %v1478_v47 = vmul.f32 %v4539_v14, %v1477_v11  ;;  %v7166_v61 = vsub.f32 %v11073_v30, %v10911_v58 }
 0x180   : > { %v7156_v17 = vmul.f32 %v1349_v53, %v1349_v53  ;;  %v7169_v21 = vsub.f32 %v1572_v55, %v11010_v45  ;;  %v1447_v15 = vsel %vm7160_vm14, %v7091_v9, %v1443_v32  ;;  %vm1473_vm0 = vweird.f32 %v4537_v27  ;;  %v4541_v7 = vpop.eup %4540 }
 0x181   : > { %v1470_v16 = vsub.f32 1.5, %v1469_v39  ;;  %v7174_v43 = vadd.f32 0.81, %v1507_v22  ;;  %v1479_v50 = vmul.f32 0.5, %v1478_v47  ;;  %vm1483_vm7 = vweird.f32 %v4539_v14  ;;  %vm1474_vm6 = vmor %vm1472_vm11, %vm1473_vm0 }
 0x182   : > { %v1353_v54 = vadd.f32 0.1, %v7156_v17  ;;  %4542 = vrsqrt.f32 %v7149_v4  ;;  %v1457_v9 = vsel %vm7181_vm2, %v7098_v40, %v1453_v51  ;;  %v1534_v18 = vmul.f32 %v7154_v20, %v7154_v20  ;;  %vm1484_vm8 = vmor %vm1482_vm13, %vm1483_vm7 }
 0x183   : > { %v1471_v59 = vmul.f32 %v4537_v27, %v1470_v16  ;;  %4544 = vrsqrt.f32 %v7174_v43  ;;  %v1458_v48 = vmul.f32 %v1447_v15, %v7002_v36  ;;  %v1480_v0 = vsub.f32 1.5, %v1479_v50 }
 0x184   : > { %v1535_v35 = vmul.f32 %v7166_v61, %v7166_v61  ;;  %v7199_v57 = vsub.f32 %v11076_v41, %v11060_v44  ;;  %4546 = vrcp.f32 %v1353_v54  ;;  %v7201_v60 = vadd.f32 0.81, %v1534_v18 }
 0x185   : > { %v1475_v40 = vsel %vm1474_vm6, %v4537_v27, %v1471_v59  ;;  %v1578_v37 = vmul.f32 %v7169_v21, %v7169_v21  ;;  %v1481_v19 = vmul.f32 %v4539_v14, %v1480_v0  ;;  %v7212_v24 = vmul.f32 %v7123_v12, %v7022_v28  ;;  %v1574_v27 = vld [vmem:[#allocation3 + $0x2] sm:$0xff] }
 0x186   : > { %v1486_v36 = vmul.f32 %v1475_v40, %v7026_v46  ;;  %v7206_v63 = vadd.f32 0.81, %v1535_v35  ;;  %v1579_v10 = vmul.f32 %v7199_v57, %v7199_v57  ;;  %v1354_v13 = vadd.f32 0.1, %v7134_v26 }
 0x187   : > { %4548 = vrsqrt.f32 %v7201_v60  ;;  %v7219_v2 = vadd.f32 0.81, %v1578_v37  ;;  %v1285_v8 = vmul.f32 %v4541_v7, %v7094_v1  ;;  %v1485_v5 = vsel %vm1484_vm8, %v4539_v14, %v1481_v19 }
 0x188   : > { %v7221_v46 = vpop.eup %4542  ;;  %v1488_v32 = vsub.f32 %v1458_v48, %v1486_v36  ;;  %4550 = vrsqrt.f32 %v7206_v63  ;;  %v1459_v12 = vmul.f32 %v1457_v9, %v7016_v3  ;;  %v1487_v6 = vmul.f32 %v1485_v5, %v7052_v23 }
 0x189   : > { %v7225_v28 = vpop.eup %4544  ;;  %v1511_v25 = vmul.f32 %v7221_v46, %v7149_v4  ;;  %v7231_v22 = vadd.f32 0.81, %v1579_v10  ;;  %4552 = vrsqrt.f32 %v7219_v2  ;;  %v7237_v1 = vsub.f32 %v1574_v27, %v11015_v33 }
 0x18a   : > { %v1490_v55 = vmul.f32 %v1488_v32, %v1488_v32  ;;  %v1521_v53 = vmul.f32 %v7225_v28, %v7174_v43  ;;  %v4547_v14 = vpop.eup %4546  ;;  %v1287_v11 = vadd.f32 %v1285_v8, %v7104_v34  ;;  %4554 = vrcp.f32 %v1354_v13 }
 0x18b   : > { %v1489_v3 = vsub.f32 %v1459_v12, %v1487_v6  ;;  %v1512_v23 = vmul.f32 %v7221_v46, %v1511_v25  ;;  %4556 = vrsqrt.f32 %v7231_v22  ;;  %v7245_v47 = vsub.f32 %v11077_v62, %v10911_v58  ;;  %v1644_v62 = vld [vmem:[#allocation2 + $0x3] sm:$0xff] }
 0x18c   : > { %v1492_v51 = vadd.f32 0.1, %v1490_v55  ;;  %v1522_v39 = vmul.f32 %v7225_v28, %v1521_v53  ;;  %vm1516_vm3 = vweird.f32 %v7149_v4  ;;  %vm1526_vm9 = vweird.f32 %v7174_v43 }
 0x18d   : > { %v4549_v30 = vpop.eup %4548  ;;  %v7247_v15 = vmul.f32 %v1489_v3, %v1489_v3  ;;  %v1513_v16 = vmul.f32 0.5, %v1512_v23  ;;  %v1606_v56 = vmul.f32 %v7237_v1, %v7237_v1  ;;  %vm1517_vm15 = vweird.f32 %v7221_v46 }
 0x18e   : > { %v4551_v34 = vpop.eup %4550  ;;  %4558 = vrcp.f32 %v1492_v51  ;;  %v1523_v7 = vmul.f32 0.5, %v1522_v39  ;;  %v1539_v54 = vmul.f32 %v4549_v30, %v7201_v60  ;;  %vm1544_vm5 = vweird.f32 %v7201_v60  ;;  %vm7281_vm12 = vmor %vm1516_vm3, %vm1517_vm15 }
 0x18f   : > { %v1514_v50 = vsub.f32 1.5, %v1513_v16  ;;  %v1549_v9 = vmul.f32 %v4551_v34, %v7206_v63  ;;  %v7257_v59 = vpop.eup %4552  ;;  %v1357_v18 = vmul.f32 %v4547_v14, %v7156_v17  ;;  %v1607_v35 = vmul.f32 %v7245_v47, %v7245_v47 }
 0x190   : > { %v1524_v48 = vsub.f32 1.5, %v1523_v7  ;;  %v1540_v0 = vmul.f32 %v4549_v30, %v1539_v54  ;;  %v4555_v41 = vpop.eup %4554  ;;  %v1493_v40 = vadd.f32 0.1, %v7247_v15  ;;  %vm1527_vm10 = vweird.f32 %v7225_v28 }
 0x191   : > { %v1550_v37 = vmul.f32 %v4551_v34, %v1549_v9  ;;  %v1583_v19 = vmul.f32 %v7257_v59, %v7219_v2  ;;  %v7266_v36 = vpop.eup %4556  ;;  %v1359_v10 = vadd.f32 %v1357_v18, %v1287_v11  ;;  %v1515_v13 = vmul.f32 %v7221_v46, %v1514_v50  ;;  %vm7292_vm13 = vmor %vm1526_vm9, %vm1527_vm10 }
 0x192   : > { %v1541_v17 = vmul.f32 0.5, %v1540_v0  ;;  %v7269_v27 = vadd.f32 0.81, %v1606_v56  ;;  %v1593_v32 = vmul.f32 %v7266_v36, %v7231_v22  ;;  %v7274_v12 = vadd.f32 0.81, %v1607_v35  ;;  %v11082_v0 = vld [vmem:[#allocation15_spill] sm:$0xff] }
 0x193   : > { %v1551_v8 = vmul.f32 0.5, %v1550_v37  ;;  %v1584_v5 = vmul.f32 %v7257_v59, %v1583_v19  ;;  %v1525_v25 = vmul.f32 %v7225_v28, %v1524_v48  ;;  %vm1545_vm11 = vweird.f32 %v4549_v30 }
 0x194   : > { %v4559_v6 = vpop.eup %4558  ;;  %v1542_v53 = vsub.f32 1.5, %v1541_v17  ;;  %vm1555_vm1 = vweird.f32 %v4551_v34  ;;  %4560 = vrcp.f32 %v1493_v40  ;;  %v1519_v51 = vsel %vm7281_vm12, %v7221_v46, %v1515_v13  ;;  %vm1546_vm14 = vmor %vm1544_vm5, %vm1545_vm11 }
 0x195   : > { %v1496_v14 = vmul.f32 %v4559_v6, %v1490_v55  ;;  %v1552_v3 = vsub.f32 1.5, %v1551_v8  ;;  %v1585_v23 = vmul.f32 0.5, %v1584_v5  ;;  %v1594_v4 = vmul.f32 %v7266_v36, %v1593_v32 }
 0x196   : > { %v1543_v39 = vmul.f32 %v4549_v30, %v1542_v53  ;;  %4562 = vrsqrt.f32 %v7269_v27  ;;  %vm1554_vm0 = vweird.f32 %v7206_v63  ;;  %v1529_v43 = vsel %vm7292_vm13, %v7225_v28, %v1525_v25 }
 0x197   : > { %v7298_v16 = vadd.f32 %v1496_v14, %v1359_v10  ;;  %v1553_v46 = vmul.f32 %v4551_v34, %v1552_v3  ;;  %4564 = vrsqrt.f32 %v7274_v12  ;;  %vm1556_vm2 = vmor %vm1554_vm0, %vm1555_vm1  ;;  %v1586_v54 = vsub.f32 1.5, %v1585_v23  ;;  %v11083_v10 = vld [vmem:[#allocation51_spill] sm:$0xff] }
 0x198   : > { %v1547_v7 = vsel %vm1546_vm14, %v4549_v30, %v1543_v39  ;;  %v1595_v56 = vmul.f32 0.5, %v1594_v4  ;;  %v1530_v50 = vmul.f32 %v1519_v51, %v7121_v31  ;;  %v7311_v18 = vsub.f32 %v1644_v62, %v11010_v45  ;;  %v1646_v30 = vld [vmem:[#allocation3 + $0x3] sm:$0xff]  ;;  %v11087_v39 = vld [vmem:[#allocation53_spill] sm:$0xff] }
 0x199   : > { %v1557_v9 = vsel %vm1556_vm2, %v4551_v34, %v1553_v46  ;;  %v1558_v60 = vmul.f32 %v1547_v7, %v7154_v20  ;;  %v7315_v63 = vadd.f32 %v7212_v24, %v7083_v42  ;;  %v7318_v48 = vmul.f32 %v4555_v41, %v7134_v26  ;;  %v1716_v20 = vld [vmem:[#allocation2 + $0x4] sm:$0xff] }
 0x19a   : > { %v1559_v28 = vmul.f32 %v1557_v9, %v7166_v61  ;;  %v7323_v35 = vsub.f32 %v11082_v0, %v11060_v44  ;;  %v4561_v31 = vpop.eup %4560  ;;  %vm1588_vm7 = vweird.f32 %v7219_v2  ;;  %vm1589_vm6 = vweird.f32 %v7257_v59  ;;  %v7329_v24 = vld [vmem:[#allocation2 + $0x5] sm:$0xff] }
 0x19b   : > { %v1560_v34 = vsub.f32 %v1530_v50, %v1558_v60  ;;  %v1650_v42 = vmul.f32 %v7311_v18, %v7311_v18  ;;  %v7331_v26 = vld [vmem:[#allocation2 + $0x6] sm:$0xff]  ;;  %v1531_v41 = vmul.f32 %v1529_v43, %v7130_v38  ;;  %v1587_v40 = vmul.f32 %v7257_v59, %v1586_v54  ;;  %v11084_v38 = vld [vmem:[#allocation50_spill] sm:$0xff]  ;;  %vm7356_vm15 = vmor %vm1588_vm7, %vm1589_vm6 }
 0x19c   : > { %v4563_v61 = vpop.eup %4562  ;;  %v1596_v37 = vsub.f32 1.5, %v1595_v56  ;;  %vm1598_vm8 = vweird.f32 %v7231_v22  ;;  %v1651_v19 = vmul.f32 %v7323_v35, %v7323_v35  ;;  %1962 = vst [vmem:[#allocation2] sm:$0xff] %v11083_v10  ;;  %vm1599_vm3 = vweird.f32 %v7266_v36  ;;  %v11088_v56 = vld [vmem:[#allocation21_spill] sm:$0xff] }
 0x19d   : > { %v4565_v13 = vpop.eup %4564  ;;  %v7339_v17 = vmul.f32 %v1560_v34, %v1560_v34  ;;  %v1611_v8 = vmul.f32 %v4563_v61, %v7269_v27  ;;  %v7343_v5 = vadd.f32 0.81, %v1650_v42  ;;  %1963 = vst [vmem:[#allocation2 + $0x8] sm:$0xff] %v11084_v38  ;;  %v1561_v32 = vsub.f32 %v1531_v41, %v1559_v28  ;;  %vm7395_vm1 = vmor %vm1598_vm8, %vm1599_vm3 }
 0x19e   : > { %vm1616_vm9 = vweird.f32 %v7269_v27  ;;  %v1621_v6 = vmul.f32 %v4565_v13, %v7274_v12  ;;  %v7349_v25 = vsub.f32 %v1646_v30, %v11015_v33  ;;  %v1497_v53 = vmul.f32 %v4561_v31, %v7247_v15  ;;  %v11092_v30 = vld [vmem:[#allocation18_spill] sm:$0xff] }
 0x19f   : > { %v1612_v11 = vmul.f32 %v4563_v61, %v1611_v8  ;;  %vm1626_vm5 = vweird.f32 %v7274_v12  ;;  %v7361_v3 = vadd.f32 0.81, %v1651_v19  ;;  %v1591_v23 = vsel %vm7356_vm15, %v7257_v59, %v1587_v40 }
 0x1a0   : > { %v1597_v51 = vmul.f32 %v7266_v36, %v1596_v37  ;;  %v1622_v15 = vmul.f32 %v4565_v13, %v1621_v6  ;;  %4566 = vrsqrt.f32 %v7343_v5  ;;  %v1564_v2 = vadd.f32 0.1, %v7339_v17 }
 0x1a1   : > { %v1613_v55 = vmul.f32 0.5, %v1612_v11  ;;  %vm1617_vm10 = vweird.f32 %v4563_v61  ;;  %v7371_v4 = vsub.f32 %v11087_v39, %v10911_v58  ;;  %v7373_v62 = vmul.f32 %v1561_v32, %v1561_v32  ;;  %v1718_v11 = vld [vmem:[#allocation3 + $0x4] sm:$0xff] }
 0x1a2   : > { %v1623_v46 = vmul.f32 0.5, %v1622_v15  ;;  %v1678_v43 = vmul.f32 %v7349_v25, %v7349_v25  ;;  %v7378_v59 = vsub.f32 %v1716_v20, %v11010_v45  ;;  %4568 = vrsqrt.f32 %v7361_v3  ;;  %vm1618_vm12 = vmor %vm1616_vm9, %vm1617_vm10 }
 0x1a3   : > { %v1614_v7 = vsub.f32 1.5, %v1613_v55  ;;  %v1679_v54 = vmul.f32 %v7371_v4, %v7371_v4  ;;  %v7385_v50 = vsub.f32 %v11088_v56, %v11060_v44  ;;  %vm1627_vm11 = vweird.f32 %v4565_v13 }
 0x1a4   : > { %v1624_v9 = vsub.f32 1.5, %v1623_v46  ;;  %v7387_v60 = vadd.f32 0.81, %v1678_v43  ;;  %v1722_v28 = vmul.f32 %v7378_v59, %v7378_v59  ;;  %4570 = vrcp.f32 %v1564_v2  ;;  %vm1628_vm13 = vmor %vm1626_vm5, %vm1627_vm11  ;;  %v7446_v2 = vpop.permute.xlu1 %2478  ;;  %v11091_v43 = vld [vmem:[#allocation20_spill] sm:$0xff] }
 0x1a5   : > { %v1615_v0 = vmul.f32 %v4563_v61, %v1614_v7  ;;  %v7399_v31 = vadd.f32 0.81, %v1679_v54  ;;  %v1723_v34 = vmul.f32 %v7385_v50, %v7385_v50  ;;  %v1565_v20 = vadd.f32 0.1, %v7373_v62 }
 0x1a6   : > { %v7403_v42 = vpop.eup %4566  ;;  %v1601_v41 = vsel %vm7395_vm1, %v7266_v36, %v1597_v51  ;;  %v1625_v22 = vmul.f32 %v4565_v13, %v1624_v9  ;;  %4572 = vrsqrt.f32 %v7387_v60  ;;  %v7419_v19 = vadd.f32 0.81, %v1722_v28 }
 0x1a7   : > { %v1619_v40 = vsel %vm1618_vm12, %v4563_v61, %v1615_v0  ;;  %v1655_v37 = vmul.f32 %v7403_v42, %v7343_v5  ;;  %4574 = vrsqrt.f32 %v7399_v31  ;;  %v1360_v36 = vadd.f32 %v7318_v48, %v7315_v63 }
 0x1a8   : > { %v1602_v27 = vmul.f32 %v1591_v23, %v7169_v21  ;;  %v1629_v8 = vsel %vm1628_vm13, %v4565_v13, %v1625_v22  ;;  %v1630_v32 = vmul.f32 %v1619_v40, %v7237_v1  ;;  %v7425_v61 = vpop.eup %4568  ;;  %v1603_v12 = vmul.f32 %v1601_v41, %v7199_v57  ;;  %v7438_v57 = vld [vmem:[#allocation3 + $0x5] sm:$0xff] }
 0x1a9   : > { %v1631_v6 = vmul.f32 %v1629_v8, %v7245_v47  ;;  %v1656_v14 = vmul.f32 %v7403_v42, %v1655_v37  ;;  %v7430_v51 = vadd.f32 0.81, %v1723_v34  ;;  %v7432_v15 = vadd.f32 %v1497_v53, %v1360_v36  ;;  %v7440_v47 = vld [vmem:[#allocation3 + $0x6] sm:$0xff]  ;;  %v7444_v53 = vpop.permute.xlu2 %2480 }
 0x1aa   : > { %4576 = vrcp.f32 %v1565_v20  ;;  %v1632_v63 = vsub.f32 %v1602_v27, %v1630_v32  ;;  %v1665_v21 = vmul.f32 %v7425_v61, %v7361_v3  ;;  %v4571_v48 = vpop.eup %4570  ;;  %vm1660_vm14 = vweird.f32 %v7343_v5  ;;  %1995 = vst [vmem:[#allocation3] sm:$0xff] %v11091_v43 }
 0x1ab   : > { %v1633_v1 = vsub.f32 %v1603_v12, %v1631_v6  ;;  %v1657_v13 = vmul.f32 0.5, %v1656_v14  ;;  %4578 = vrsqrt.f32 %v7419_v19  ;;  %vm1670_vm0 = vweird.f32 %v7361_v3  ;;  %1996 = vst [vmem:[#allocation3 + $0x8] sm:$0xff] %v11092_v30 }
 0x1ac   : > { %v7442_v23 = vpop.eup %4572  ;;  %v7448_v55 = vmul.f32 %v1632_v63, %v1632_v63  ;;  %v1666_v39 = vmul.f32 %v7425_v61, %v1665_v21  ;;  %4580 = vrsqrt.f32 %v7430_v51  ;;  %v7454_v46 = vsub.f32 %v1718_v11, %v11015_v33 }
 0x1ad   : > { %v7457_v7 = vpop.eup %4574  ;;  %v7459_v54 = vmul.f32 %v1633_v1, %v1633_v1  ;;  %v1658_v56 = vsub.f32 1.5, %v1657_v13  ;;  %v1683_v9 = vmul.f32 %v7442_v23, %v7387_v60  ;;  %v7465_v28 = vsub.f32 %v6504_v52, %v10911_v58 }
 0x1ae   : > { %vm1661_vm2 = vweird.f32 %v7403_v42  ;;  %v1667_v0 = vmul.f32 0.5, %v1666_v39  ;;  %vm1688_vm7 = vweird.f32 %v7387_v60  ;;  %v1693_v34 = vmul.f32 %v7457_v7, %v7399_v31 }
 0x1af   : > { %v1568_v20 = vmul.f32 %v4571_v48, %v7339_v17  ;;  %v1636_v41 = vadd.f32 0.1, %v7448_v55  ;;  %v1659_v22 = vmul.f32 %v7403_v42, %v1658_v56  ;;  %v1684_v40 = vmul.f32 %v7442_v23, %v1683_v9  ;;  %vm7492_vm3 = vmor %vm1660_vm14, %vm1661_vm2  ;;  %v2477_v9 = vpop.permute.xlu0 %2476 }
 0x1b0   : > { %v4577_v52 = vpop.eup %4576  ;;  %v1668_v37 = vsub.f32 1.5, %v1667_v0  ;;  %v1694_v36 = vmul.f32 %v7457_v7, %v1693_v34  ;;  %vm1698_vm6 = vweird.f32 %v7399_v31  ;;  %v1750_v27 = vmul.f32 %v7454_v46, %v7454_v46 }
 0x1b1   : > { %v7480_v8 = vpop.eup %4578  ;;  %v1637_v32 = vadd.f32 0.1, %v7459_v54  ;;  %vm1671_vm8 = vweird.f32 %v7425_v61  ;;  %v1685_v17 = vmul.f32 0.5, %v1684_v40  ;;  %v1751_v12 = vmul.f32 %v7465_v28, %v7465_v28  ;;  %v2451_v40 = vpop.permute.xlu1 %2450 }
 0x1b2   : > { %v7486_v6 = vpop.eup %4580  ;;  %vm1689_vm9 = vweird.f32 %v7442_v23  ;;  %v1695_v11 = vmul.f32 0.5, %v1694_v36  ;;  %vm1699_vm15 = vweird.f32 %v7457_v7  ;;  %v1727_v63 = vmul.f32 %v7480_v8, %v7419_v19  ;;  %vm7513_vm5 = vmor %vm1670_vm0, %vm1671_vm8 }
 0x1b3   : > { %4582 = vrcp.f32 %v1636_v41  ;;  %v1663_v21 = vsel %vm7492_vm3, %v7403_v42, %v1659_v22  ;;  %v1686_v48 = vsub.f32 1.5, %v1685_v17  ;;  %v1737_v5 = vmul.f32 %v7486_v6, %v7430_v51  ;;  %v2453_v22 = vpop.permute.xlu2 %2452  ;;  %vm1690_vm10 = vmor %vm1688_vm7, %vm1689_vm9 }
 0x1b4   : > { %v1669_v1 = vmul.f32 %v7425_v61, %v1668_v37  ;;  %v1696_v13 = vsub.f32 1.5, %v1695_v11  ;;  %v1728_v39 = vmul.f32 %v7480_v8, %v1727_v63  ;;  %v7507_v56 = vadd.f32 0.81, %v1750_v27  ;;  %vm1700_vm11 = vmor %vm1698_vm6, %vm1699_vm15 }
 0x1b5   : > { %4584 = vrcp.f32 %v1637_v32  ;;  %v1687_v42 = vmul.f32 %v7442_v23, %v1686_v48  ;;  %v1738_v34 = vmul.f32 %v7486_v6, %v1737_v5  ;;  %v7519_v41 = vadd.f32 0.81, %v1751_v12  ;;  %v11097_v48 = vld [vmem:[#allocation23_spill] sm:$0xff] }
 0x1b6   : > { %v1569_v37 = vmul.f32 %v4577_v52, %v7373_v62  ;;  %v1697_v3 = vmul.f32 %v7457_v7, %v1696_v13  ;;  %v1729_v36 = vmul.f32 0.5, %v1728_v39  ;;  %4586 = vrsqrt.f32 %v7507_v56  ;;  %v11098_v13 = vld [vmem:[#allocation54_spill] sm:$0xff] }
 0x1b7   : > { %v1674_v27 = vmul.f32 %v1663_v21, %v7311_v18  ;;  %v1691_v32 = vsel %vm1690_vm10, %v7442_v23, %v1687_v42  ;;  %v1739_v62 = vmul.f32 0.5, %v1738_v34  ;;  %4588 = vrsqrt.f32 %v7519_v41 }
 0x1b8   : > { %v1673_v60 = vsel %vm7513_vm5, %v7425_v61, %v1669_v1  ;;  %v1701_v52 = vsel %vm1700_vm11, %v7457_v7, %v1697_v3  ;;  %v1702_v17 = vmul.f32 %v1691_v32, %v7349_v25  ;;  %v1730_v12 = vsub.f32 1.5, %v1729_v36 }
 0x1b9   : > { %v4583_v18 = vpop.eup %4582  ;;  %v7542_v23 = vsel %vm2454_vm4, %v2477_v9, %v7446_v2  ;;  %v7545_v31 = vsel %vm2454_vm4, %v2451_v40, %v2453_v22  ;;  %v1570_v14 = vadd.f32 %v1568_v20, %v7298_v16  ;;  %v1703_v11 = vmul.f32 %v1701_v52, %v7371_v4 }
 0x1ba   : > { %v1571_v63 = vadd.f32 %v1569_v37, %v7432_v15  ;;  %v1704_v61 = vsub.f32 %v1674_v27, %v1702_v17  ;;  %vm1732_vm1 = vweird.f32 %v7419_v19  ;;  %v7553_v25 = vsub.f32 %v7329_v24, %v11010_v45 }
 0x1bb   : > { %v4585_v7 = vpop.eup %4584  ;;  %v1675_v2 = vmul.f32 %v1673_v60, %v7323_v35  ;;  %v1740_v21 = vsub.f32 1.5, %v1739_v62  ;;  %vm1742_vm12 = vweird.f32 %v7430_v51  ;;  %v7559_v16 = vsub.f32 %v11097_v48, %v11060_v44  ;;  %v11103_v48 = vld [vmem:[#allocation36_spill] sm:$0xff] }
 0x1bc   : > { %v4587_v4 = vpop.eup %4586  ;;  %v1731_v15 = vmul.f32 %v7480_v8, %v1730_v12  ;;  %vm1733_vm13 = vweird.f32 %v7480_v8  ;;  %v1794_v20 = vmul.f32 %v7553_v25, %v7553_v25  ;;  %v7567_v24 = vsub.f32 %v7438_v57, %v11015_v33 }
 0x1bd   : > { %v4589_v35 = vpop.eup %4588  ;;  %v1705_v5 = vsub.f32 %v1675_v2, %v1703_v11  ;;  %vm1743_vm14 = vweird.f32 %v7486_v6  ;;  %v1755_v1 = vmul.f32 %v4587_v4, %v7507_v56  ;;  %v7573_v39 = vsub.f32 %v11098_v13, %v10911_v58  ;;  %vm7583_vm2 = vmor %vm1732_vm1, %vm1733_vm13 }
 0x1be   : > { %v1640_v9 = vmul.f32 %v4583_v18, %v7448_v55  ;;  %v7576_v0 = vmul.f32 %v1704_v61, %v1704_v61  ;;  %vm1760_vm0 = vweird.f32 %v7507_v56  ;;  %v1765_v42 = vmul.f32 %v4589_v35, %v7519_v41  ;;  %vm7614_vm6 = vmor %vm1742_vm12, %vm1743_vm14 }
 0x1bf   : > { %v1641_v57 = vmul.f32 %v4585_v7, %v7459_v54  ;;  %v1741_v22 = vmul.f32 %v7486_v6, %v1740_v21  ;;  %v1756_v40 = vmul.f32 %v4587_v4, %v1755_v1  ;;  %v1795_v55 = vmul.f32 %v7559_v16, %v7559_v16 }
 0x1c0   : > { %v1735_v37 = vsel %vm7583_vm2, %v7480_v8, %v1731_v15  ;;  %v1766_v3 = vmul.f32 %v4589_v35, %v1765_v42  ;;  %v7593_v36 = vadd.f32 0.81, %v1794_v20  ;;  %v1822_v19 = vmul.f32 %v7567_v24, %v7567_v24 }
 0x1c1   : > { %v7597_v54 = vmul.f32 %v1705_v5, %v1705_v5  ;;  %v1757_v27 = vmul.f32 0.5, %v1756_v40  ;;  %v7599_v32 = vadd.f32 0.81, %v1795_v55  ;;  %v1823_v62 = vmul.f32 %v7573_v39, %v7573_v39 }
 0x1c2   : > { %v1708_v60 = vadd.f32 0.1, %v7576_v0  ;;  %v1767_v52 = vmul.f32 0.5, %v1766_v3  ;;  %4590 = vrsqrt.f32 %v7593_v36  ;;  %v7605_v8 = vadd.f32 0.81, %v1822_v19  ;;  %v11104_v19 = vld [vmem:[#allocation55_spill] sm:$0xff] }
 0x1c3   : > { %v1758_v17 = vsub.f32 1.5, %v1757_v27  ;;  %vm1761_vm7 = vweird.f32 %v4587_v4  ;;  %4592 = vrsqrt.f32 %v7599_v32  ;;  %v7608_v12 = vadd.f32 0.81, %v1823_v62  ;;  %v2483_v62 = vpop.permute.xlu0 %2482 }
 0x1c4   : > { %v1768_v11 = vsub.f32 1.5, %v1767_v52  ;;  %vm1771_vm8 = vweird.f32 %v4589_v35  ;;  %4594 = vrsqrt.f32 %v7605_v8  ;;  %v7621_v61 = vsub.f32 %v7331_v26, %v11010_v45  ;;  %vm1762_vm3 = vmor %vm1760_vm0, %vm1761_vm7 }
 0x1c5   : > { %v1709_v7 = vadd.f32 0.1, %v7597_v54  ;;  %v1745_v2 = vsel %vm7614_vm6, %v7486_v6, %v1741_v22  ;;  %v1759_v21 = vmul.f32 %v4587_v4, %v1758_v17  ;;  %4596 = vrsqrt.f32 %v7608_v12 }
 0x1c6   : > { %v1769_v51 = vmul.f32 %v4589_v35, %v1768_v11  ;;  %vm1770_vm9 = vweird.f32 %v7519_v41  ;;  %v7633_v15 = vsub.f32 %v11103_v48, %v11060_v44  ;;  %v1866_v26 = vmul.f32 %v7621_v61, %v7621_v61 }
 0x1c7   : > { %v7637_v20 = vadd.f32 %v1640_v9, %v1570_v14  ;;  %v7639_v5 = vadd.f32 %v1641_v57, %v1571_v63  ;;  %v1746_v6 = vmul.f32 %v1735_v37, %v7378_v59  ;;  %v1763_v1 = vsel %vm1762_vm3, %v4587_v4, %v1759_v21  ;;  %vm1772_vm15 = vmor %vm1770_vm9, %vm1771_vm8 }
 0x1c8   : > { %v7643_v56 = vpop.eup %4590  ;;  %4598 = vrcp.f32 %v1708_v60  ;;  %v1747_v41 = vmul.f32 %v1745_v2, %v7385_v50  ;;  %v1773_v13 = vsel %vm1772_vm15, %v4589_v35, %v1769_v51  ;;  %v1774_v42 = vmul.f32 %v1763_v1, %v7454_v46 }
 0x1c9   : > { %v7647_v34 = vpop.eup %4592  ;;  %4600 = vrcp.f32 %v1709_v7  ;;  %v1775_v14 = vmul.f32 %v1773_v13, %v7465_v28  ;;  %v1799_v63 = vmul.f32 %v7643_v56, %v7593_v36  ;;  %vm1804_vm5 = vweird.f32 %v7593_v36 }
 0x1ca   : > { %v7653_v59 = vpop.eup %4594  ;;  %v1776_v4 = vsub.f32 %v1746_v6, %v1774_v42  ;;  %v1809_v9 = vmul.f32 %v7647_v34, %v7599_v32  ;;  %vm1814_vm10 = vweird.f32 %v7599_v32  ;;  %v1867_v50 = vmul.f32 %v7633_v15, %v7633_v15 }
 0x1cb   : > { %v7660_v46 = vadd.f32 0.81, %v1866_v26  ;;  %v7662_v35 = vpop.eup %4596  ;;  %v1777_v28 = vsub.f32 %v1747_v41, %v1775_v14  ;;  %v1800_v57 = vmul.f32 %v7643_v56, %v1799_v63  ;;  %v1827_v22 = vmul.f32 %v7653_v59, %v7605_v8 }
 0x1cc   : > { %vm1832_vm11 = vweird.f32 %v7605_v8  ;;  %v7670_v40 = vsub.f32 %v7440_v47, %v11015_v33  ;;  %v7672_v55 = vmul.f32 %v1776_v4, %v1776_v4  ;;  %v1810_v37 = vmul.f32 %v7647_v34, %v1809_v9 }
 0x1cd   : > { %v1837_v3 = vmul.f32 %v7662_v35, %v7608_v12  ;;  %vm1842_vm1 = vweird.f32 %v7608_v12  ;;  %v7680_v27 = vsub.f32 %v11104_v19, %v10911_v58  ;;  %v7682_v60 = vmul.f32 %v1777_v28, %v1777_v28 }
 0x1ce   : > { %v1801_v52 = vmul.f32 0.5, %v1800_v57  ;;  %vm1805_vm12 = vweird.f32 %v7643_v56  ;;  %v1828_v47 = vmul.f32 %v7653_v59, %v1827_v22  ;;  %v4599_v17 = vpop.eup %4598  ;;  %v1811_v18 = vmul.f32 0.5, %v1810_v37 }
 0x1cf   : > { %v1838_v11 = vmul.f32 %v7662_v35, %v1837_v3  ;;  %v7687_v7 = vadd.f32 0.81, %v1867_v50  ;;  %4602 = vrsqrt.f32 %v7660_v46  ;;  %v4601_v2 = vpop.eup %4600  ;;  %vm1815_vm13 = vweird.f32 %v7647_v34  ;;  %vm7702_vm2 = vmor %vm1804_vm5, %vm1805_vm12 }
 0x1d0   : > { %v1802_v21 = vsub.f32 1.5, %v1801_v52  ;;  %v1829_v51 = vmul.f32 0.5, %v1828_v47  ;;  %vm1833_vm14 = vweird.f32 %v7653_v59  ;;  %v1780_v48 = vadd.f32 0.1, %v7672_v55  ;;  %vm7717_vm7 = vmor %vm1814_vm10, %vm1815_vm13 }
 0x1d1   : > { %v1812_v26 = vsub.f32 1.5, %v1811_v18  ;;  %v1839_v6 = vmul.f32 0.5, %v1838_v11  ;;  %vm1843_vm0 = vweird.f32 %v7662_v35  ;;  %v1781_v1 = vadd.f32 0.1, %v7682_v60  ;;  %vm1834_vm6 = vmor %vm1832_vm11, %vm1833_vm14  ;;  %v2485_v18 = vpop.permute.xlu0 %2484 }
 0x1d2   : > { %v1803_v41 = vmul.f32 %v7643_v56, %v1802_v21  ;;  %v1830_v13 = vsub.f32 1.5, %v1829_v51  ;;  %v1894_v42 = vmul.f32 %v7670_v40, %v7670_v40  ;;  %4604 = vrsqrt.f32 %v7687_v7  ;;  %vm1844_vm8 = vmor %vm1842_vm1, %vm1843_vm0 }
 0x1d3   : > { %v1813_v63 = vmul.f32 %v7647_v34, %v1812_v26  ;;  %v1840_v4 = vsub.f32 1.5, %v1839_v6  ;;  %v1895_v9 = vmul.f32 %v7680_v27, %v7680_v27  ;;  %v7726_v22 = vsub.f32 %v11083_v10, %v11010_v45 }
 0x1d4   : > { %v1807_v50 = vsel %vm7702_vm2, %v7643_v56, %v1803_v41  ;;  %v1831_v28 = vmul.f32 %v7653_v59, %v1830_v13  ;;  %v7722_v57 = vadd.f32 0.81, %v1894_v42  ;;  %4606 = vrcp.f32 %v1780_v48 }
 0x1d5   : > { %v7728_v37 = vpop.eup %4602  ;;  %v1817_v56 = vsel %vm7717_vm7, %v7647_v34, %v1813_v63  ;;  %v1841_v32 = vmul.f32 %v7662_v35, %v1840_v4  ;;  %v7738_v3 = vadd.f32 0.81, %v1895_v9  ;;  %4608 = vrcp.f32 %v1781_v1 }
 0x1d6   : > { %v1835_v10 = vsel %vm1834_vm6, %v7653_v59, %v1831_v28  ;;  %v1871_v34 = vmul.f32 %v7728_v37, %v7660_v46  ;;  %v7749_v19 = vsub.f32 %v11084_v38, %v11060_v44  ;;  %v1818_v8 = vmul.f32 %v1807_v50, %v7553_v25  ;;  %v2487_v59 = vpop.permute.xlu1 %2486 }
 0x1d7   : > { %v1845_v52 = vsel %vm1844_vm8, %v7662_v35, %v1841_v32  ;;  %v1846_v47 = vmul.f32 %v1835_v10, %v7567_v24  ;;  %4610 = vrsqrt.f32 %v7722_v57  ;;  %v1819_v12 = vmul.f32 %v1817_v56, %v7559_v16 }
 0x1d8   : > { %v1847_v11 = vmul.f32 %v1845_v52, %v7573_v39  ;;  %v1872_v21 = vmul.f32 %v7728_v37, %v1871_v34  ;;  %4612 = vrsqrt.f32 %v7738_v3  ;;  %v7759_v38 = vpop.eup %4604  ;;  %v7763_v25 = vsel %vm2454_vm4, %v7444_v53, %v2483_v62 }
 0x1d9   : > { %v1712_v24 = vmul.f32 %v4599_v17, %v7576_v0  ;;  %v1848_v35 = vsub.f32 %v1818_v8, %v1846_v47  ;;  %v2004_v51 = vmul.f32 %v7726_v22, %v7726_v22  ;;  %v1713_v16 = vmul.f32 %v4601_v2, %v7597_v54  ;;  %v2070_v8 = vld [vmem:[#allocation2 + $0x1] sm:$0xff] }
 0x1da   : > { %v1849_v48 = vsub.f32 %v1819_v12, %v1847_v11  ;;  %v1873_v39 = vmul.f32 0.5, %v1872_v21  ;;  %v1881_v26 = vmul.f32 %v7759_v38, %v7687_v7  ;;  %v4607_v6 = vpop.eup %4606  ;;  %v7772_v1 = vsel %vm2454_vm4, %v2485_v18, %v2487_v59 }
 0x1db   : > { %v1714_v53 = vadd.f32 %v1712_v24, %v7637_v20  ;;  %v7775_v62 = vmul.f32 %v1848_v35, %v1848_v35  ;;  %v2005_v0 = vmul.f32 %v7749_v19, %v7749_v19  ;;  %v4609_v17 = vpop.eup %4608  ;;  %v1715_v41 = vadd.f32 %v1713_v16, %v7639_v5 }
 0x1dc   : > { %v7780_v54 = vmul.f32 %v1849_v48, %v1849_v48  ;;  %vm1876_vm3 = vweird.f32 %v7660_v46  ;;  %v1882_v2 = vmul.f32 %v7759_v38, %v1881_v26  ;;  %vm1877_vm4 = vweird.f32 %v7728_v37 }
 0x1dd   : > { %v7784_v13 = vpop.eup %4610  ;;  %v1852_v42 = vadd.f32 0.1, %v7775_v62  ;;  %vm1886_vm9 = vweird.f32 %v7687_v7  ;;  %v7789_v20 = vadd.f32 0.81, %v2004_v51  ;;  %v1874_v63 = vsub.f32 1.5, %v1873_v39  ;;  %vm7833_vm11 = vmor %vm1876_vm3, %vm1877_vm4 }
 0x1de   : > { %v7791_v14 = vpop.eup %4612  ;;  %v1883_v5 = vmul.f32 0.5, %v1882_v2  ;;  %v1899_v4 = vmul.f32 %v7784_v13, %v7722_v57  ;;  %vm1904_vm15 = vweird.f32 %v7722_v57  ;;  %v7796_v9 = vadd.f32 0.81, %v2005_v0 }
 0x1df   : > { %v1784_v50 = vmul.f32 %v4607_v6, %v7672_v55  ;;  %v1909_v36 = vmul.f32 %v7791_v14, %v7738_v3  ;;  %v7803_v28 = vsub.f32 %v11091_v43, %v11015_v33  ;;  %v7807_v56 = vsub.f32 %v11092_v30, %v10911_v58  ;;  %v2071_v43 = vld [vmem:[#allocation2 + $0x9] sm:$0xff] }
 0x1e0   : > { %v1853_v32 = vadd.f32 0.1, %v7780_v54  ;;  %4614 = vrcp.f32 %v1852_v42  ;;  %v1884_v10 = vsub.f32 1.5, %v1883_v5  ;;  %v1900_v34 = vmul.f32 %v7784_v13, %v1899_v4 }
 0x1e1   : > { %v1785_v55 = vmul.f32 %v4609_v17, %v7682_v60  ;;  %vm1887_vm5 = vweird.f32 %v7759_v38  ;;  %v1910_v52 = vmul.f32 %v7791_v14, %v1909_v36  ;;  %4616 = vrsqrt.f32 %v7789_v20 }
 0x1e2   : > { %v1875_v47 = vmul.f32 %v7728_v37, %v1874_v63  ;;  %v1885_v30 = vmul.f32 %v7759_v38, %v1884_v10  ;;  %v1901_v59 = vmul.f32 0.5, %v1900_v34  ;;  %4618 = vrsqrt.f32 %v7796_v9  ;;  %vm7848_vm13 = vmor %vm1886_vm9, %vm1887_vm5 }
 0x1e3   : > { %v1911_v18 = vmul.f32 0.5, %v1910_v52  ;;  %v2032_v12 = vmul.f32 %v7803_v28, %v7803_v28  ;;  %v2033_v60 = vmul.f32 %v7807_v56, %v7807_v56  ;;  %v7823_v11 = vsub.f32 %v2070_v8, %v11010_v45 }
 0x1e4   : > { %4620 = vrcp.f32 %v1853_v32  ;;  %v1902_v21 = vsub.f32 1.5, %v1901_v59  ;;  %vm1905_vm10 = vweird.f32 %v7784_v13  ;;  %v7827_v24 = vsub.f32 %v2071_v43, %v11060_v44 }
 0x1e5   : > { %v1912_v51 = vsub.f32 1.5, %v1911_v18  ;;  %vm1914_vm1 = vweird.f32 %v7738_v3  ;;  %vm1915_vm12 = vweird.f32 %v7791_v14  ;;  %v7839_v16 = vadd.f32 0.81, %v2032_v12  ;;  %vm1906_vm14 = vmor %vm1904_vm15, %vm1905_vm10 }
 0x1e6   : > { %v4615_v48 = vpop.eup %4614  ;;  %v1786_v39 = vadd.f32 %v1784_v50, %v1714_v53  ;;  %v1879_v26 = vsel %vm7833_vm11, %v7728_v37, %v1875_v47  ;;  %v1903_v6 = vmul.f32 %v7784_v13, %v1902_v21  ;;  %v7853_v0 = vadd.f32 0.81, %v2033_v60  ;;  %vm1916_vm0 = vmor %vm1914_vm1, %vm1915_vm12 }
 0x1e7   : > { %v7855_v17 = vpop.eup %4616  ;;  %v1889_v53 = vsel %vm7848_vm13, %v7759_v38, %v1885_v30  ;;  %v1913_v7 = vmul.f32 %v7791_v14, %v1912_v51  ;;  %4622 = vrsqrt.f32 %v7839_v16  ;;  %v2076_v37 = vmul.f32 %v7823_v11, %v7823_v11  ;;  %v2072_v38 = vld [vmem:[#allocation3 + $0x1] sm:$0xff] }
 0x1e8   : > { %v7868_v2 = vpop.eup %4618  ;;  %v1787_v42 = vadd.f32 %v1785_v55, %v1715_v41  ;;  %v1907_v63 = vsel %vm1906_vm14, %v7784_v13, %v1903_v6  ;;  %v2009_v57 = vmul.f32 %v7855_v17, %v7789_v20  ;;  %v2077_v5 = vmul.f32 %v7827_v24, %v7827_v24 }
 0x1e9   : > { %v1890_v4 = vmul.f32 %v1879_v26, %v7621_v61  ;;  %v1917_v50 = vsel %vm1916_vm0, %v7791_v14, %v1913_v7  ;;  %v1918_v41 = vmul.f32 %v1907_v63, %v7670_v40  ;;  %v2019_v13 = vmul.f32 %v7868_v2, %v7796_v9  ;;  %v2073_v14 = vld [vmem:[#allocation3 + $0x9] sm:$0xff] }
 0x1ea   : > { %v4621_v36 = vpop.eup %4620  ;;  %v1891_v3 = vmul.f32 %v1889_v53, %v7633_v15  ;;  %v1919_v32 = vmul.f32 %v1917_v50, %v7680_v27  ;;  %v2010_v10 = vmul.f32 %v7855_v17, %v2009_v57  ;;  %4624 = vrsqrt.f32 %v7853_v0  ;;  %v2142_v57 = vld [vmem:[#allocation2 + $0x2] sm:$0xff] }
 0x1eb   : > { %v1920_v34 = vsub.f32 %v1890_v4, %v1918_v41  ;;  %vm2014_vm2 = vweird.f32 %v7789_v20  ;;  %v2020_v61 = vmul.f32 %v7868_v2, %v2019_v13  ;;  %v7890_v8 = vadd.f32 0.81, %v2076_v37  ;;  %v7939_v4 = vld [vmem:[#allocation2 + $0x4] sm:$0xff] }
 0x1ec   : > { %v7893_v40 = vsub.f32 %v2072_v38, %v11015_v33  ;;  %v1856_v55 = vmul.f32 %v4615_v48, %v7775_v62  ;;  %v1921_v15 = vsub.f32 %v1891_v3, %v1919_v32  ;;  %v2011_v52 = vmul.f32 0.5, %v2010_v10  ;;  %v7941_v50 = vld [vmem:[#allocation2 + $0x5] sm:$0xff] }
 0x1ed   : > { %vm2024_vm7 = vweird.f32 %v7796_v9  ;;  %v7897_v27 = vadd.f32 0.81, %v2077_v5  ;;  %v7899_v43 = vpop.eup %4622  ;;  %v1857_v47 = vmul.f32 %v4621_v36, %v7780_v54  ;;  %v7902_v30 = vmul.f32 %v1920_v34, %v1920_v34  ;;  %v7943_v41 = vld [vmem:[#allocation2 + $0x6] sm:$0xff] }
 0x1ee   : > { %v2021_v59 = vmul.f32 0.5, %v2020_v61  ;;  %4626 = vrsqrt.f32 %v7890_v8  ;;  %v7905_v18 = vmul.f32 %v1921_v15, %v1921_v15  ;;  %v2012_v12 = vsub.f32 1.5, %v2011_v52  ;;  %2461 = vst [vmem:[#allocation2] sm:$0xff] %v7075_v29  ;;  %v2143_v15 = vld [vmem:[#allocation2 + $0xa] sm:$0xff] }
 0x1ef   : > { %v2037_v62 = vmul.f32 %v7899_v43, %v7839_v16  ;;  %v7910_v60 = vsub.f32 %v2073_v14, %v10911_v58  ;;  %v1924_v21 = vadd.f32 0.1, %v7902_v30  ;;  %vm2042_vm6 = vweird.f32 %v7839_v16 }
 0x1f0   : > { %v2022_v35 = vsub.f32 1.5, %v2021_v59  ;;  %4628 = vrsqrt.f32 %v7897_v27  ;;  %v7915_v54 = vpop.eup %4624  ;;  %v7917_v51 = vadd.f32 %v1856_v55, %v1786_v39  ;;  %v1925_v48 = vadd.f32 0.1, %v7905_v18 }
 0x1f1   : > { %v2038_v26 = vmul.f32 %v7899_v43, %v2037_v62  ;;  %v2104_v46 = vmul.f32 %v7893_v40, %v7893_v40  ;;  %v7923_v6 = vadd.f32 %v1857_v47, %v1787_v42  ;;  %v2013_v53 = vmul.f32 %v7855_v17, %v2012_v12 }
 0x1f2   : > { %vm2015_vm8 = vweird.f32 %v7855_v17  ;;  %v2047_v7 = vmul.f32 %v7915_v54, %v7853_v0  ;;  %v2023_v37 = vmul.f32 %v7868_v2, %v2022_v35  ;;  %vm2025_vm3 = vweird.f32 %v7868_v2 }
 0x1f3   : > { %v2039_v39 = vmul.f32 0.5, %v2038_v26  ;;  %v2105_v63 = vmul.f32 %v7910_v60, %v7910_v60  ;;  %4630 = vrcp.f32 %v1924_v21  ;;  %vm2052_vm4 = vweird.f32 %v7853_v0  ;;  %vm7949_vm9 = vmor %vm2014_vm2, %vm2015_vm8 }
 0x1f4   : > { %v7933_v38 = vpop.eup %4626  ;;  %v2048_v42 = vmul.f32 %v7915_v54, %v2047_v7  ;;  %v7937_v5 = vadd.f32 0.81, %v2104_v46  ;;  %4632 = vrcp.f32 %v1925_v48  ;;  %vm2043_vm15 = vweird.f32 %v7899_v43  ;;  %vm7966_vm5 = vmor %vm2024_vm7, %vm2025_vm3 }
 0x1f5   : > { %v2040_v36 = vsub.f32 1.5, %v2039_v39  ;;  %v2081_v3 = vmul.f32 %v7933_v38, %v7890_v8  ;;  %v2017_v10 = vsel %vm7949_vm9, %v7855_v17, %v2013_v53  ;;  %v7970_v61 = vadd.f32 0.81, %v2105_v63  ;;  %vm2044_vm10 = vmor %vm2042_vm6, %vm2043_vm15 }
 0x1f6   : > { %v7957_v32 = vpop.eup %4628  ;;  %v2049_v34 = vmul.f32 0.5, %v2048_v42  ;;  %4634 = vrsqrt.f32 %v7937_v5  ;;  %v2027_v14 = vsel %vm7966_vm5, %v7868_v2, %v2023_v37  ;;  %vm2053_vm11 = vweird.f32 %v7915_v54 }
 0x1f7   : > { %v2041_v55 = vmul.f32 %v7899_v43, %v2040_v36  ;;  %v2082_v17 = vmul.f32 %v7933_v38, %v2081_v3  ;;  %v2091_v9 = vmul.f32 %v7957_v32, %v7897_v27  ;;  %vm2086_vm1 = vweird.f32 %v7890_v8  ;;  %vm2054_vm13 = vmor %vm2052_vm4, %vm2053_vm11 }
 0x1f8   : > { %v2050_v52 = vsub.f32 1.5, %v2049_v34  ;;  %4636 = vrsqrt.f32 %v7970_v61  ;;  %v7986_v2 = vsub.f32 %v2142_v57, %v11010_v45  ;;  %v2028_v47 = vmul.f32 %v2017_v10, %v7726_v22 }
 0x1f9   : > { %v2045_v59 = vsel %vm2044_vm10, %v7899_v43, %v2041_v55  ;;  %v2083_v12 = vmul.f32 0.5, %v2082_v17  ;;  %v2092_v62 = vmul.f32 %v7957_v32, %v2091_v9  ;;  %vm2096_vm12 = vweird.f32 %v7897_v27  ;;  %v4631_v16 = vpop.eup %4630 }
 0x1fa   : > { %v2029_v21 = vmul.f32 %v2027_v14, %v7749_v19  ;;  %v2051_v35 = vmul.f32 %v7915_v54, %v2050_v52  ;;  %v2056_v48 = vmul.f32 %v2045_v59, %v7803_v28  ;;  %v7996_v26 = vsub.f32 %v2143_v15, %v11060_v44  ;;  %v4633_v46 = vpop.eup %4632  ;;  %v2144_v15 = vld [vmem:[#allocation3 + $0x2] sm:$0xff]  ;;  %v2145_v52 = vld [vmem:[#allocation3 + $0xa] sm:$0xff]  ;;  %v2215_v59 = vld [vmem:[#allocation2 + $0xc] sm:$0xff] }
 0x1fb   : > { %v2084_v22 = vsub.f32 1.5, %v2083_v12  ;;  %vm2087_vm14 = vweird.f32 %v7933_v38  ;;  %v2093_v43 = vmul.f32 0.5, %v2092_v62  ;;  %v2148_v19 = vmul.f32 %v7986_v2, %v7986_v2 }
 0x1fc   : > { %v8005_v53 = vpop.eup %4634  ;;  %v2055_v28 = vsel %vm2054_vm13, %v7915_v54, %v2051_v35  ;;  %v2058_v7 = vsub.f32 %v2028_v47, %v2056_v48  ;;  %vm2097_vm0 = vweird.f32 %v7957_v32  ;;  %v2149_v37 = vmul.f32 %v7996_v26, %v7996_v26  ;;  %vm8041_vm6 = vmor %vm2086_vm1, %vm2087_vm14  ;;  %v2216_v35 = vld [vmem:[#allocation3 + $0x4] sm:$0xff] }
 0x1fd   : > { %v1928_v0 = vmul.f32 %v4631_v16, %v7902_v30  ;;  %v2057_v39 = vmul.f32 %v2055_v28, %v7807_v56  ;;  %v2094_v63 = vsub.f32 1.5, %v2093_v43  ;;  %v2109_v57 = vmul.f32 %v8005_v53, %v7937_v5  ;;  %vm8053_vm8 = vmor %vm2096_vm12, %vm2097_vm0 }
 0x1fe   : > { %vm2114_vm2 = vweird.f32 %v7937_v5  ;;  %v8016_v42 = vpop.eup %4636  ;;  %v1929_v54 = vmul.f32 %v4633_v46, %v7905_v18  ;;  %v2060_v13 = vmul.f32 %v2058_v7, %v2058_v7  ;;  %v2085_v36 = vmul.f32 %v7933_v38, %v2084_v22  ;;  %v8074_v46 = vld [vmem:[#allocation2 + $0xd] sm:$0xff] }
 0x1ff   : > { %v8020_v3 = vadd.f32 0.81, %v2148_v19  ;;  %v2059_v10 = vsub.f32 %v2029_v21, %v2057_v39  ;;  %v2095_v30 = vmul.f32 %v7957_v32, %v2094_v63  ;;  %v2110_v56 = vmul.f32 %v8005_v53, %v2109_v57  ;;  %v8076_v22 = vld [vmem:[#allocation2 + $0xe] sm:$0xff]  ;;  %v2217_v19 = vld [vmem:[#allocation3 + $0xc] sm:$0xff] }
 0x200   : > { %v8024_v20 = vadd.f32 0.81, %v2149_v37  ;;  %v8027_v34 = vadd.f32 %v1928_v0, %v7917_v51  ;;  %v2062_v14 = vadd.f32 0.1, %v2060_v13  ;;  %v2119_v55 = vmul.f32 %v8016_v42, %v7970_v61  ;;  %2462 = vst [vmem:[#allocation2 + $0x8] sm:$0xff] %v6893_v49  ;;  %v8097_v0 = vld [vmem:[#allocation3 + $0x5] sm:$0xff] }
 0x201   : > { %vm2124_vm7 = vweird.f32 %v7970_v61  ;;  %v8033_v18 = vadd.f32 %v1929_v54, %v7923_v6  ;;  %v8035_v17 = vmul.f32 %v2059_v10, %v2059_v10  ;;  %v2111_v51 = vmul.f32 0.5, %v2110_v56  ;;  %v8099_v39 = vld [vmem:[#allocation3 + $0x6] sm:$0xff]  ;;  %2463 = vst [vmem:[#allocation2 + $0x10] sm:$0x3f] %v7545_v31 }
 0x202   : > { %4638 = vrsqrt.f32 %v8020_v3  ;;  %v2089_v6 = vsel %vm8041_vm6, %v7933_v38, %v2085_v36  ;;  %vm2115_vm3 = vweird.f32 %v8005_v53  ;;  %v2120_v47 = vmul.f32 %v8016_v42, %v2119_v55  ;;  %2494 = vst [vmem:[#allocation3] sm:$0xff] %v7542_v23 }
 0x203   : > { %4640 = vrcp.f32 %v2062_v14  ;;  %v2063_v12 = vadd.f32 0.1, %v8035_v17  ;;  %v2099_v62 = vsel %vm8053_vm8, %v7957_v32, %v2095_v30  ;;  %v2112_v38 = vsub.f32 1.5, %v2111_v51  ;;  %vm8088_vm4 = vmor %vm2114_vm2, %vm2115_vm3 }
 0x204   : > { %4642 = vrsqrt.f32 %v8024_v20  ;;  %v2121_v16 = vmul.f32 0.5, %v2120_v47  ;;  %v8065_v27 = vsub.f32 %v2144_v15, %v11015_v33  ;;  %v8068_v21 = vsub.f32 %v2145_v52, %v10911_v58 }
 0x205   : > { %v8072_v48 = vsub.f32 %v7939_v4, %v11010_v45  ;;  %4644 = vrcp.f32 %v2063_v12  ;;  %v2100_v32 = vmul.f32 %v2089_v6, %v7823_v11  ;;  %v2113_v43 = vmul.f32 %v8005_v53, %v2112_v38  ;;  %v8148_v38 = vld [vmem:[#allocation3 + $0xd] sm:$0xff] }
 0x206   : > { %v8081_v28 = vsub.f32 %v2215_v59, %v11060_v44  ;;  %v2122_v7 = vsub.f32 1.5, %v2121_v16  ;;  %vm2125_vm9 = vweird.f32 %v8016_v42  ;;  %v2176_v11 = vmul.f32 %v8065_v27, %v8065_v27  ;;  %v8150_v16 = vld [vmem:[#allocation3 + $0xe] sm:$0xff] }
 0x207   : > { %v2177_v37 = vmul.f32 %v8068_v21, %v8068_v21  ;;  %v2101_v63 = vmul.f32 %v2099_v62, %v7827_v24  ;;  %v2117_v57 = vsel %vm8088_vm4, %v8005_v53, %v2113_v43  ;;  %v2220_v54 = vmul.f32 %v8072_v48, %v8072_v48  ;;  %vm2126_vm15 = vmor %vm2124_vm7, %vm2125_vm9  ;;  %2495 = vst [vmem:[#allocation3 + $0x8] sm:$0xff] %v7763_v25 }
 0x208   : > { %v8102_v5 = vpop.eup %4638  ;;  %v8111_v36 = vsub.f32 %v2216_v35, %v11015_v33  ;;  %v2123_v30 = vmul.f32 %v8016_v42, %v2122_v7  ;;  %v2128_v31 = vmul.f32 %v2117_v57, %v7893_v40  ;;  %v2221_v56 = vmul.f32 %v8081_v28, %v8081_v28  ;;  %2496 = vst [vmem:[#allocation3 + $0x10] sm:$0x3f] %v7772_v1 }
 0x209   : > { %v4641_v10 = vpop.eup %4640  ;;  %v2153_v24 = vmul.f32 %v8102_v5, %v8020_v3  ;;  %v8126_v55 = vadd.f32 0.81, %v2176_v11  ;;  %v8128_v9 = vadd.f32 0.81, %v2177_v37  ;;  %v8131_v40 = vsub.f32 %v2217_v19, %v10911_v58 }
 0x20a   : > { %v8120_v53 = vpop.eup %4642  ;;  %v2066_v14 = vmul.f32 %v4641_v10, %v2060_v13  ;;  %v2127_v51 = vsel %vm2126_vm15, %v8016_v42, %v2123_v30  ;;  %v2130_v15 = vsub.f32 %v2100_v32, %v2128_v31  ;;  %v8142_v47 = vadd.f32 0.81, %v2220_v54 }
 0x20b   : > { %v2154_v52 = vmul.f32 %v8102_v5, %v2153_v24  ;;  %v2163_v13 = vmul.f32 %v8120_v53, %v8024_v20  ;;  %v4645_v6 = vpop.eup %4644  ;;  %v2129_v61 = vmul.f32 %v2127_v51, %v7910_v60  ;;  %4646 = vrsqrt.f32 %v8126_v55 }
 0x20c   : > { %v8138_v8 = vadd.f32 %v2066_v14, %v8027_v34  ;;  %v2067_v59 = vmul.f32 %v4645_v6, %v8035_v17  ;;  %v8145_v12 = vmul.f32 %v2130_v15, %v2130_v15  ;;  %4648 = vrsqrt.f32 %v8128_v9 }
 0x20d   : > { %v2155_v42 = vmul.f32 0.5, %v2154_v52  ;;  %v2164_v62 = vmul.f32 %v8120_v53, %v2163_v13  ;;  %v2131_v35 = vsub.f32 %v2101_v63, %v2129_v61  ;;  %v2248_v60 = vmul.f32 %v8111_v36, %v8111_v36 }
 0x20e   : > { %v8157_v34 = vadd.f32 %v2067_v59, %v8033_v18  ;;  %v8162_v19 = vadd.f32 0.81, %v2221_v56  ;;  %4650 = vrsqrt.f32 %v8142_v47  ;;  %v2134_v4 = vadd.f32 0.1, %v8145_v12 }
 0x20f   : > { %v2156_v17 = vsub.f32 1.5, %v2155_v42  ;;  %v2165_v32 = vmul.f32 0.5, %v2164_v62  ;;  %v8160_v43 = vmul.f32 %v2131_v35, %v2131_v35  ;;  %v2249_v11 = vmul.f32 %v8131_v40, %v8131_v40 }
 0x210   : > { %vm2159_vm5 = vweird.f32 %v8102_v5  ;;  %4652 = vrsqrt.f32 %v8162_v19  ;;  %v8173_v1 = vadd.f32 0.81, %v2248_v60  ;;  %vm2158_vm10 = vweird.f32 %v8020_v3 }
 0x211   : > { %v2166_v7 = vsub.f32 1.5, %v2165_v32  ;;  %v8168_v37 = vpop.eup %4646  ;;  %v2157_v18 = vmul.f32 %v8102_v5, %v2156_v17  ;;  %v2135_v63 = vadd.f32 0.1, %v8160_v43  ;;  %vm2168_vm11 = vweird.f32 %v8024_v20  ;;  %vm8187_vm13 = vmor %vm2158_vm10, %vm2159_vm5 }
 0x212   : > { %v2181_v57 = vmul.f32 %v8168_v37, %v8126_v55  ;;  %v8180_v54 = vpop.eup %4648  ;;  %vm2169_vm1 = vweird.f32 %v8120_v53  ;;  %vm2186_vm12 = vweird.f32 %v8126_v55  ;;  %v8185_v30 = vadd.f32 0.81, %v2249_v11 }
 0x213   : > { %v2167_v10 = vmul.f32 %v8120_v53, %v2166_v7  ;;  %4654 = vrcp.f32 %v2134_v4  ;;  %v2191_v24 = vmul.f32 %v8180_v54, %v8128_v9  ;;  %vm2196_vm14 = vweird.f32 %v8128_v9  ;;  %vm8208_vm2 = vmor %vm2168_vm11, %vm2169_vm1 }
 0x214   : > { %v2182_v3 = vmul.f32 %v8168_v37, %v2181_v57  ;;  %v8195_v56 = vpop.eup %4650  ;;  %v2161_v14 = vsel %vm8187_vm13, %v8102_v5, %v2157_v18  ;;  %vm2187_vm0 = vweird.f32 %v8168_v37  ;;  %4656 = vrsqrt.f32 %v8173_v1 }
 0x215   : > { %v8204_v51 = vsub.f32 %v7941_v50, %v11010_v45  ;;  %4658 = vrcp.f32 %v2135_v63  ;;  %v2192_v13 = vmul.f32 %v8180_v54, %v2191_v24  ;;  %v2225_v5 = vmul.f32 %v8195_v56, %v8142_v47  ;;  %vm2188_vm3 = vmor %vm2186_vm12, %vm2187_vm0 }
 0x216   : > { %v2183_v52 = vmul.f32 0.5, %v2182_v3  ;;  %v8215_v6 = vpop.eup %4652  ;;  %v2171_v50 = vsel %vm8208_vm2, %v8120_v53, %v2167_v10  ;;  %vm2230_vm7 = vweird.f32 %v8142_v47  ;;  %4660 = vrsqrt.f32 %v8185_v30 }
 0x217   : > { %v8224_v20 = vsub.f32 %v8074_v46, %v11060_v44  ;;  %v2292_v61 = vmul.f32 %v8204_v51, %v8204_v51  ;;  %v2193_v42 = vmul.f32 0.5, %v2192_v13  ;;  %v2226_v62 = vmul.f32 %v8195_v56, %v2225_v5 }
 0x218   : > { %v2184_v59 = vsub.f32 1.5, %v2183_v52  ;;  %v2235_v35 = vmul.f32 %v8215_v6, %v8162_v19  ;;  %v2172_v53 = vmul.f32 %v2161_v14, %v7986_v2  ;;  %vm2240_vm6 = vweird.f32 %v8162_v19 }
 0x219   : > { %v2293_v60 = vmul.f32 %v8224_v20, %v8224_v20  ;;  %v8235_v17 = vadd.f32 0.81, %v2292_v61  ;;  %v4655_v46 = vpop.eup %4654  ;;  %v2194_v4 = vsub.f32 1.5, %v2193_v42  ;;  %vm2197_vm8 = vweird.f32 %v8180_v54 }
 0x21a   : > { %v2185_v32 = vmul.f32 %v8168_v37, %v2184_v59  ;;  %v2227_v7 = vmul.f32 0.5, %v2226_v62  ;;  %v8239_v11 = vpop.eup %4656  ;;  %v2173_v18 = vmul.f32 %v2171_v50, %v7996_v26  ;;  %vm2231_vm4 = vweird.f32 %v8195_v56  ;;  %vm2198_vm9 = vmor %vm2196_vm14, %vm2197_vm8  ;;  %v8274_v50 = vpop.permute.xlu2 %3013 }
 0x21b   : > { %v2236_v2 = vmul.f32 %v8215_v6, %v2235_v35  ;;  %4662 = vrsqrt.f32 %v8235_v17  ;;  %v4659_v63 = vpop.eup %4658  ;;  %v2195_v10 = vmul.f32 %v8180_v54, %v2194_v4  ;;  %v8251_v3 = vadd.f32 0.81, %v2293_v60  ;;  %vm8283_vm11 = vmor %vm2230_vm7, %vm2231_vm4 }
 0x21c   : > { %v2189_v57 = vsel %vm2188_vm3, %v8168_v37, %v2185_v32  ;;  %v2228_v31 = vsub.f32 1.5, %v2227_v7  ;;  %v8253_v26 = vpop.eup %4660  ;;  %v8256_v24 = vmul.f32 %v4655_v46, %v8145_v12  ;;  %v2253_v37 = vmul.f32 %v8239_v11, %v8173_v1 }
 0x21d   : > { %v2200_v55 = vmul.f32 %v2189_v57, %v8065_v27  ;;  %v2237_v14 = vmul.f32 0.5, %v2236_v2  ;;  %vm2258_vm15 = vweird.f32 %v8173_v1  ;;  %v2199_v15 = vsel %vm2198_vm9, %v8180_v54, %v2195_v10  ;;  %v3016_v54 = vpop.permute.xlu0 %3015 }
 0x21e   : > { %v2229_v52 = vmul.f32 %v8195_v56, %v2228_v31  ;;  %vm2241_vm5 = vweird.f32 %v8215_v6  ;;  %v2263_v12 = vmul.f32 %v8253_v26, %v8185_v30  ;;  %vm2268_vm10 = vweird.f32 %v8185_v30 }
 0x21f   : > { %v2201_v9 = vmul.f32 %v2199_v15, %v8068_v21  ;;  %v2202_v27 = vsub.f32 %v2172_v53, %v2200_v55  ;;  %v2238_v13 = vsub.f32 1.5, %v2237_v14  ;;  %v2254_v5 = vmul.f32 %v8239_v11, %v2253_v37  ;;  %vm2242_vm13 = vmor %vm2240_vm6, %vm2241_vm5 }
 0x220   : > { %v8277_v61 = vmul.f32 %v4659_v63, %v8160_v43  ;;  %vm2259_vm1 = vweird.f32 %v8239_v11  ;;  %v2264_v21 = vmul.f32 %v8253_v26, %v2263_v12  ;;  %4664 = vrsqrt.f32 %v8251_v3  ;;  %v3018_v12 = vpop.permute.xlu1 %3017 }
 0x221   : > { %v8290_v59 = vpop.eup %4662  ;;  %v2203_v42 = vsub.f32 %v2173_v18, %v2201_v9  ;;  %v8292_v62 = vmul.f32 %v2202_v27, %v2202_v27  ;;  %v2233_v43 = vsel %vm8283_vm11, %v8195_v56, %v2229_v52  ;;  %v2239_v47 = vmul.f32 %v8215_v6, %v2238_v13  ;;  %vm2260_vm0 = vmor %vm2258_vm15, %vm2259_vm1 }
 0x222   : > { %vm3025_vm12 = vcmask 1006592   ;;  %v2255_v35 = vmul.f32 0.5, %v2254_v5  ;;  %v2265_v53 = vmul.f32 0.5, %v2264_v21  ;;  %vm2269_vm14 = vweird.f32 %v8253_v26  ;;  %v3020_v5 = vpop.permute.xlu2 %3019 }
 0x223   : > { %v2297_v60 = vmul.f32 %v8290_v59, %v8235_v17  ;;  %v8305_v46 = vmul.f32 %v2203_v42, %v2203_v42  ;;  %v2206_v32 = vadd.f32 0.1, %v8292_v62  ;;  %v2243_v56 = vsel %vm2242_vm13, %v8215_v6, %v2239_v47  ;;  %vm2270_vm2 = vmor %vm2268_vm10, %vm2269_vm14 }
 0x224   : > { %v8311_v4 = vsub.f32 %v8097_v0, %v11015_v33  ;;  %v2244_v19 = vmul.f32 %v2233_v43, %v8072_v48  ;;  %v2256_v7 = vsub.f32 1.5, %v2255_v35  ;;  %v2266_v18 = vsub.f32 1.5, %v2265_v53 }
 0x225   : > { %v2298_v2 = vmul.f32 %v8290_v59, %v2297_v60  ;;  %v2207_v63 = vadd.f32 0.1, %v8305_v46  ;;  %v2245_v57 = vmul.f32 %v2243_v56, %v8081_v28  ;;  %v8319_v10 = vsub.f32 %v8148_v38, %v10911_v58 }
 0x226   : > { %v2320_v6 = vmul.f32 %v8311_v4, %v8311_v4  ;;  %v8323_v31 = vpop.eup %4664  ;;  %4666 = vrcp.f32 %v2206_v32  ;;  %v2257_v48 = vmul.f32 %v8239_v11, %v2256_v7  ;;  %v2267_v0 = vmul.f32 %v8253_v26, %v2266_v18 }
 0x227   : > { %v2299_v28 = vmul.f32 0.5, %v2298_v2  ;;  %4668 = vrcp.f32 %v2207_v63  ;;  %v2307_v38 = vmul.f32 %v8323_v31, %v8251_v3  ;;  %v2321_v55 = vmul.f32 %v8319_v10, %v8319_v10 }
 0x228   : > { %v8341_v14 = vsub.f32 %v7943_v41, %v11010_v45  ;;  %v2261_v1 = vsel %vm2260_vm0, %v8239_v11, %v2257_v48  ;;  %v2271_v37 = vsel %vm2270_vm2, %v8253_v26, %v2267_v0  ;;  %v8345_v52 = vadd.f32 0.81, %v2320_v6 }
 0x229   : > { %v2300_v15 = vsub.f32 1.5, %v2299_v28  ;;  %v2272_v30 = vmul.f32 %v2261_v1, %v8111_v36  ;;  %v2273_v9 = vmul.f32 %v2271_v37, %v8131_v40  ;;  %v2308_v27 = vmul.f32 %v8323_v31, %v2307_v38 }
 0x22a   : > { %v8350_v13 = vadd.f32 0.81, %v2321_v55  ;;  %vm2303_vm7 = vweird.f32 %v8290_v59  ;;  %4670 = vrsqrt.f32 %v8345_v52  ;;  %v8357_v11 = vsub.f32 %v8076_v22, %v11060_v44 }
 0x22b   : > { %v2301_v41 = vmul.f32 %v8290_v59, %v2300_v15  ;;  %v2274_v26 = vsub.f32 %v2244_v19, %v2272_v30  ;;  %v2275_v36 = vsub.f32 %v2245_v57, %v2273_v9  ;;  %v2309_v21 = vmul.f32 0.5, %v2308_v27 }
 0x22c   : > { %4672 = vrsqrt.f32 %v8350_v13  ;;  %v4667_v40 = vpop.eup %4666  ;;  %v2364_v42 = vmul.f32 %v8341_v14, %v8341_v14  ;;  %v8363_v47 = vsel %vm3025_vm12, %v3018_v12, %v3020_v5  ;;  %v8367_v35 = vsel %vm3025_vm12, %v8274_v50, %v3016_v54 }
 0x22d   : > { %v4669_v43 = vpop.eup %4668  ;;  %v8369_v53 = vmul.f32 %v2274_v26, %v2274_v26  ;;  %vm2302_vm6 = vweird.f32 %v8235_v17  ;;  %v2140_v22 = vadd.f32 %v8256_v24, %v8138_v8  ;;  %v2310_v32 = vsub.f32 1.5, %v2309_v21 }
 0x22e   : > { %vm8376_vm8 = vmor %vm2302_vm6, %vm2303_vm7  ;;  %v2365_v56 = vmul.f32 %v8357_v11, %v8357_v11  ;;  %v8382_v19 = vadd.f32 0.81, %v2364_v42  ;;  %v2141_v50 = vadd.f32 %v8277_v61, %v8157_v34  ;;  %v8386_v7 = vmul.f32 %v2275_v36, %v2275_v36 }
 0x22f   : > { %v2305_v8 = vsel %vm8376_vm8, %v8290_v59, %v2301_v41  ;;  %vm2312_vm3 = vweird.f32 %v8251_v3  ;;  %vm2313_vm4 = vweird.f32 %v8323_v31  ;;  %v8398_v18 = vsub.f32 %v8099_v39, %v11015_v33 }
 0x230   : > { %v4671_v17 = vpop.eup %4670  ;;  %v8393_v24 = vadd.f32 0.81, %v2365_v56  ;;  %4674 = vrsqrt.f32 %v8382_v19  ;;  %v2210_v61 = vmul.f32 %v4667_v40, %v8292_v62  ;;  %v2278_v2 = vadd.f32 0.1, %v8369_v53  ;;  %vm8425_vm5 = vmor %vm2312_vm3, %vm2313_vm4 }
 0x231   : > { %v2325_v59 = vmul.f32 %v4671_v17, %v8345_v52  ;;  %vm2330_vm9 = vweird.f32 %v8345_v52  ;;  %v2311_v63 = vmul.f32 %v8323_v31, %v2310_v32  ;;  %v2316_v57 = vmul.f32 %v2305_v8, %v8204_v51 }
 0x232   : > { %v4673_v34 = vpop.eup %4672  ;;  %vm2340_vm15 = vweird.f32 %v8350_v13  ;;  %v2279_v39 = vadd.f32 0.1, %v8386_v7  ;;  %4676 = vrsqrt.f32 %v8393_v24  ;;  %v8412_v62 = vsub.f32 %v8150_v16, %v10911_v58 }
 0x233   : > { %v2335_v6 = vmul.f32 %v4673_v34, %v8350_v13  ;;  %v2326_v48 = vmul.f32 %v4671_v17, %v2325_v59  ;;  %v2211_v0 = vmul.f32 %v4669_v43, %v8305_v46  ;;  %v2392_v38 = vmul.f32 %v8398_v18, %v8398_v18 }
 0x234   : > { %v8419_v51 = vsub.f32 %v7075_v29, %v11010_v45  ;;  %4678 = vrcp.f32 %v2278_v2  ;;  %v2393_v46 = vmul.f32 %v8412_v62, %v8412_v62  ;;  %v8433_v1 = vsub.f32 %v6893_v49, %v11060_v44 }
 0x235   : > { %v2336_v28 = vmul.f32 %v4673_v34, %v2335_v6  ;;  %v2327_v16 = vmul.f32 0.5, %v2326_v48  ;;  %v2315_v29 = vsel %vm8425_vm5, %v8323_v31, %v2311_v63  ;;  %vm2331_vm10 = vweird.f32 %v4671_v17 }
 0x236   : > { %v8435_v37 = vpop.eup %4674  ;;  %v8440_v15 = vadd.f32 0.81, %v2392_v38  ;;  %4680 = vrcp.f32 %v2279_v39  ;;  %v8444_v9 = vadd.f32 0.81, %v2393_v46  ;;  %vm2341_vm11 = vweird.f32 %v4673_v34  ;;  %vm2332_vm1 = vmor %vm2330_vm9, %vm2331_vm10 }
 0x237   : > { %v2337_v3 = vmul.f32 0.5, %v2336_v28  ;;  %v2328_v12 = vsub.f32 1.5, %v2327_v16  ;;  %v2369_v30 = vmul.f32 %v8435_v37, %v8382_v19  ;;  %v2503_v49 = vmul.f32 %v8419_v51, %v8419_v51  ;;  %vm2342_vm13 = vmor %vm2340_vm15, %vm2341_vm11 }
 0x238   : > { %4682 = vrsqrt.f32 %v8440_v15  ;;  %v8449_v5 = vpop.eup %4676  ;;  %v2504_v41 = vmul.f32 %v8433_v1, %v8433_v1  ;;  %v2212_v26 = vadd.f32 %v2210_v61, %v2140_v22  ;;  %v2213_v36 = vadd.f32 %v2211_v0, %v2141_v50 }
 0x239   : > { %v2338_v27 = vsub.f32 1.5, %v2337_v3  ;;  %v2329_v31 = vmul.f32 %v4671_v17, %v2328_v12  ;;  %v2370_v54 = vmul.f32 %v8435_v37, %v2369_v30  ;;  %4684 = vrsqrt.f32 %v8444_v9 }
 0x23a   : > { %v2379_v40 = vmul.f32 %v8449_v5, %v8393_v24  ;;  %v4679_v42 = vpop.eup %4678  ;;  %v2317_v43 = vmul.f32 %v2315_v29, %v8224_v20  ;;  %v8466_v22 = vsub.f32 %v7542_v23, %v11015_v33  ;;  %vm2374_vm14 = vweird.f32 %v8382_v19 }
 0x23b   : > { %v2339_v21 = vmul.f32 %v4673_v34, %v2338_v27  ;;  %v2333_v60 = vsel %vm2332_vm1, %v4671_v17, %v2329_v31  ;;  %v2371_v32 = vmul.f32 0.5, %v2370_v54  ;;  %v8471_v8 = vadd.f32 0.81, %v2503_v49 }
 0x23c   : > { %v2344_v52 = vmul.f32 %v2333_v60, %v8311_v4  ;;  %v2380_v50 = vmul.f32 %v8449_v5, %v2379_v40  ;;  %v4681_v20 = vpop.eup %4680  ;;  %vm2384_vm0 = vweird.f32 %v8393_v24  ;;  %v8475_v13 = vadd.f32 0.81, %v2504_v41  ;;  %v2569_v41 = vld [vmem:[#allocation2 + $0x1] sm:$0xff]  ;;  %v2570_v40 = vld [vmem:[#allocation2 + $0x9] sm:$0xff] }
 0x23d   : > { %v2343_v56 = vsel %vm2342_vm13, %v4673_v34, %v2339_v21  ;;  %v8479_v23 = vsub.f32 %v7763_v25, %v10911_v58  ;;  %v2372_v61 = vsub.f32 1.5, %v2371_v32  ;;  %vm2375_vm2 = vweird.f32 %v8435_v37 }
 0x23e   : > { %v2345_v17 = vmul.f32 %v2343_v56, %v8319_v10  ;;  %v4683_v34 = vpop.eup %4682  ;;  %v2381_v4 = vmul.f32 0.5, %v2380_v50  ;;  %4686 = vrsqrt.f32 %v8471_v8  ;;  %v2282_v59 = vmul.f32 %v4679_v42, %v8369_v53  ;;  %vm8513_vm4 = vmor %vm2374_vm14, %vm2375_vm2 }
 0x23f   : > { %v4685_v2 = vpop.eup %4684  ;;  %v2346_v63 = vsub.f32 %v2316_v57, %v2344_v52  ;;  %v2397_v10 = vmul.f32 %v4683_v34, %v8440_v15  ;;  %vm2402_vm7 = vweird.f32 %v8440_v15  ;;  %v2283_v6 = vmul.f32 %v4681_v20, %v8386_v7 }
 0x240   : > { %v2382_v39 = vsub.f32 1.5, %v2381_v4  ;;  %v2407_v25 = vmul.f32 %v4685_v2, %v8444_v9  ;;  %v2531_v48 = vmul.f32 %v8466_v22, %v8466_v22  ;;  %v8490_v0 = vadd.f32 %v2282_v59, %v2212_v26 }
 0x241   : > { %v2347_v28 = vsub.f32 %v2317_v43, %v2345_v17  ;;  %v2398_v38 = vmul.f32 %v4683_v34, %v2397_v10  ;;  %4688 = vrsqrt.f32 %v8475_v13  ;;  %v8493_v53 = vadd.f32 %v2283_v6, %v2213_v36 }
 0x242   : > { %v2373_v57 = vmul.f32 %v8435_v37, %v2372_v61  ;;  %vm2385_vm6 = vweird.f32 %v8449_v5  ;;  %v2408_v55 = vmul.f32 %v4685_v2, %v2407_v25  ;;  %v8497_v7 = vmul.f32 %v2346_v63, %v2346_v63 }
 0x243   : > { %v2383_v16 = vmul.f32 %v8449_v5, %v2382_v39  ;;  %v2399_v46 = vmul.f32 0.5, %v2398_v38  ;;  %v2532_v29 = vmul.f32 %v8479_v23, %v8479_v23  ;;  %vm2403_vm8 = vweird.f32 %v4683_v34  ;;  %vm8526_vm15 = vmor %vm2384_vm0, %vm2385_vm6 }
 0x244   : > { %v8502_v3 = vpop.eup %4686  ;;  %v2409_v12 = vmul.f32 0.5, %v2408_v55  ;;  %vm2412_vm3 = vweird.f32 %v8444_v9  ;;  %v8505_v30 = vadd.f32 0.81, %v2531_v48  ;;  %v8507_v27 = vmul.f32 %v2347_v28, %v2347_v28  ;;  %vm2404_vm5 = vmor %vm2402_vm7, %vm2403_vm8 }
 0x245   : > { %v2400_v31 = vsub.f32 1.5, %v2399_v46  ;;  %vm2413_vm9 = vweird.f32 %v4685_v2  ;;  %v2508_v54 = vmul.f32 %v8502_v3, %v8471_v8  ;;  %v2377_v26 = vsel %vm8513_vm4, %v8435_v37, %v2373_v57 }
 0x246   : > { %v2410_v36 = vsub.f32 1.5, %v2409_v12  ;;  %v8530_v21 = vadd.f32 0.81, %v2532_v29  ;;  %4690 = vrsqrt.f32 %v8505_v30  ;;  %v2350_v43 = vadd.f32 0.1, %v8497_v7  ;;  %vm2414_vm10 = vmor %vm2412_vm3, %vm2413_vm9 }
 0x247   : > { %v8533_v42 = vpop.eup %4688  ;;  %v2387_v37 = vsel %vm8526_vm15, %v8449_v5, %v2383_v16  ;;  %v2401_v60 = vmul.f32 %v4683_v34, %v2400_v31  ;;  %v2509_v24 = vmul.f32 %v8502_v3, %v2508_v54  ;;  %v8547_v52 = vsub.f32 %v2569_v41, %v11010_v45  ;;  %v2571_v16 = vld [vmem:[#allocation3 + $0x1] sm:$0xff]  ;;  %v2572_v41 = vld [vmem:[#allocation3 + $0x9] sm:$0xff] }
 0x248   : > { %v2411_v32 = vmul.f32 %v4685_v2, %v2410_v36  ;;  %v2518_v56 = vmul.f32 %v8533_v42, %v8475_v13  ;;  %4692 = vrsqrt.f32 %v8530_v21  ;;  %v2351_v50 = vadd.f32 0.1, %v8507_v27 }
 0x249   : > { %v2405_v20 = vsel %vm2404_vm5, %v4683_v34, %v2401_v60  ;;  %v2510_v5 = vmul.f32 0.5, %v2509_v24  ;;  %v8554_v15 = vsub.f32 %v2570_v40, %v11060_v44  ;;  %v2388_v17 = vmul.f32 %v2377_v26, %v8341_v14  ;;  %v2641_v40 = vld [vmem:[#allocation2 + $0x2] sm:$0xff] }
 0x24a   : > { %v2415_v61 = vsel %vm2414_vm10, %v4685_v2, %v2411_v32  ;;  %v2416_v4 = vmul.f32 %v2405_v20, %v8398_v18  ;;  %v2519_v59 = vmul.f32 %v8533_v42, %v2518_v56  ;;  %v2389_v63 = vmul.f32 %v2387_v37, %v8357_v11  ;;  %v2642_v32 = vld [vmem:[#allocation2 + $0xa] sm:$0xff] }
 0x24b   : > { %v2417_v10 = vmul.f32 %v2415_v61, %v8412_v62  ;;  %v2511_v34 = vsub.f32 1.5, %v2510_v5  ;;  %vm2513_vm11 = vweird.f32 %v8471_v8  ;;  %4694 = vrcp.f32 %v2350_v43 }
 0x24c   : > { %v8562_v9 = vpop.eup %4690  ;;  %v2418_v6 = vsub.f32 %v2388_v17, %v2416_v4  ;;  %v2520_v39 = vmul.f32 0.5, %v2519_v59  ;;  %vm2523_vm1 = vweird.f32 %v8475_v13  ;;  %v2575_v14 = vmul.f32 %v8547_v52, %v8547_v52 }
 0x24d   : > { %4696 = vrcp.f32 %v2351_v50  ;;  %v2419_v18 = vsub.f32 %v2389_v63, %v2417_v10  ;;  %v2536_v11 = vmul.f32 %v8562_v9, %v8505_v30  ;;  %v2576_v62 = vmul.f32 %v8554_v15, %v8554_v15 }
 0x24e   : > { %v8571_v2 = vpop.eup %4692  ;;  %v8573_v25 = vmul.f32 %v2418_v6, %v2418_v6  ;;  %v2512_v48 = vmul.f32 %v8502_v3, %v2511_v34  ;;  %vm2514_vm13 = vweird.f32 %v8502_v3  ;;  %vm2541_vm14 = vweird.f32 %v8505_v30  ;;  %v8645_v6 = vpop.permute.xlu1 %3049 }
 0x24f   : > { %v8578_v28 = vmul.f32 %v2419_v18, %v2419_v18  ;;  %v2521_v38 = vsub.f32 1.5, %v2520_v39  ;;  %v2537_v57 = vmul.f32 %v8562_v9, %v2536_v11  ;;  %v2546_v55 = vmul.f32 %v8571_v2, %v8530_v21  ;;  %vm8591_vm7 = vmor %vm2513_vm11, %vm2514_vm13  ;;  %v8647_v39 = vpop.permute.xlu0 %3047  ;;  %v2643_v18 = vld [vmem:[#allocation3 + $0x2] sm:$0xff] }
 0x250   : > { %v2422_v46 = vadd.f32 0.1, %v8573_v25  ;;  %vm2524_vm0 = vweird.f32 %v8533_v42  ;;  %vm2551_vm2 = vweird.f32 %v8530_v21  ;;  %v8586_v29 = vadd.f32 0.81, %v2575_v14 }
 0x251   : > { %v2423_v12 = vadd.f32 0.1, %v8578_v28  ;;  %v2538_v31 = vmul.f32 0.5, %v2537_v57  ;;  %v2547_v54 = vmul.f32 %v8571_v2, %v2546_v55  ;;  %v8596_v26 = vadd.f32 0.81, %v2576_v62  ;;  %v4695_v19 = vpop.eup %4694  ;;  %vm8617_vm3 = vmor %vm2523_vm1, %vm2524_vm0 }
 0x252   : > { %4698 = vrcp.f32 %v2422_v46  ;;  %v2516_v36 = vsel %vm8591_vm7, %v8502_v3, %v2512_v48  ;;  %vm2542_vm6 = vweird.f32 %v8562_v9  ;;  %v8603_v8 = vsub.f32 %v2571_v16, %v11015_v33 }
 0x253   : > { %v4697_v43 = vpop.eup %4696  ;;  %4700 = vrcp.f32 %v2423_v12  ;;  %v2522_v37 = vmul.f32 %v8533_v42, %v2521_v38  ;;  %v2539_v60 = vsub.f32 1.5, %v2538_v31  ;;  %v2548_v24 = vmul.f32 0.5, %v2547_v54  ;;  %vm2543_vm4 = vmor %vm2541_vm14, %vm2542_vm6  ;;  %v2644_v38 = vld [vmem:[#allocation3 + $0xa] sm:$0xff] }
 0x254   : > { %vm2552_vm8 = vweird.f32 %v8571_v2  ;;  %4702 = vrsqrt.f32 %v8586_v29  ;;  %v8609_v56 = vsub.f32 %v2572_v41, %v10911_v58  ;;  %v2603_v3 = vmul.f32 %v8603_v8, %v8603_v8 }
 0x255   : > { %v2540_v20 = vmul.f32 %v8562_v9, %v2539_v60  ;;  %v2549_v5 = vsub.f32 1.5, %v2548_v24  ;;  %4704 = vrsqrt.f32 %v8596_v26  ;;  %v8624_v17 = vsub.f32 %v2641_v40, %v11010_v45  ;;  %vm2553_vm9 = vmor %vm2551_vm2, %vm2552_vm8  ;;  %v8694_v60 = vpop.permute.xlu2 %3051 }
 0x256   : > { %v2354_v61 = vmul.f32 %v4695_v19, %v8497_v7  ;;  %v2604_v13 = vmul.f32 %v8609_v56, %v8609_v56  ;;  %v8633_v4 = vadd.f32 0.81, %v2603_v3  ;;  %v8636_v59 = vsub.f32 %v2642_v32, %v11060_v44 }
 0x257   : > { %v2526_v63 = vsel %vm8617_vm3, %v8533_v42, %v2522_v37  ;;  %v2544_v10 = vsel %vm2543_vm4, %v8562_v9, %v2540_v20  ;;  %v2550_v7 = vmul.f32 %v8571_v2, %v2549_v5  ;;  %v2647_v30 = vmul.f32 %v8624_v17, %v8624_v17 }
 0x258   : > { %v4699_v34 = vpop.eup %4698  ;;  %v2527_v14 = vmul.f32 %v2516_v36, %v8419_v51  ;;  %v2555_v42 = vmul.f32 %v2544_v10, %v8466_v22  ;;  %v8655_v9 = vadd.f32 0.81, %v2604_v13  ;;  %4706 = vrsqrt.f32 %v8633_v4  ;;  %v3022_v13 = vpop.permute.xlu1 %3021 }
 0x259   : > { %v4701_v11 = vpop.eup %4700  ;;  %v2355_v62 = vmul.f32 %v4697_v43, %v8507_v27  ;;  %v2554_v48 = vsel %vm2553_vm9, %v8571_v2, %v2550_v7  ;;  %v2648_v51 = vmul.f32 %v8636_v59, %v8636_v59  ;;  %v8662_v57 = vadd.f32 0.81, %v2647_v30 }
 0x25a   : > { %v8664_v21 = vpop.eup %4702  ;;  %v2528_v22 = vmul.f32 %v2526_v63, %v8433_v1  ;;  %v2556_v55 = vmul.f32 %v2554_v48, %v8479_v23  ;;  %v2557_v16 = vsub.f32 %v2527_v14, %v2555_v42  ;;  %4708 = vrsqrt.f32 %v8655_v9  ;;  %v8707_v63 = vpop.permute.xlu0 %3053 }
 0x25b   : > { %v8669_v46 = vpop.eup %4704  ;;  %v2356_v27 = vadd.f32 %v2354_v61, %v8490_v0  ;;  %v2357_v2 = vadd.f32 %v2355_v62, %v8493_v53  ;;  %v2580_v12 = vmul.f32 %v8664_v21, %v8586_v29  ;;  %v8676_v49 = vsub.f32 %v2643_v18, %v11015_v33  ;;  %v2713_v62 = vld [vmem:[#allocation2 + $0x3] sm:$0xff] }
 0x25c   : > { %v2558_v31 = vsub.f32 %v2528_v22, %v2556_v55  ;;  %v2559_v54 = vmul.f32 %v2557_v16, %v2557_v16  ;;  %vm2585_vm15 = vweird.f32 %v8586_v29  ;;  %v2590_v1 = vmul.f32 %v8669_v46, %v8596_v26 }
 0x25d   : > { %v8682_v23 = vsub.f32 %v2644_v38, %v10911_v58  ;;  %v2426_v0 = vmul.f32 %v4699_v34, %v8573_v25  ;;  %v2581_v53 = vmul.f32 %v8664_v21, %v2580_v12  ;;  %v8686_v41 = vadd.f32 0.81, %v2648_v51 }
 0x25e   : > { %4710 = vrsqrt.f32 %v8662_v57  ;;  %v8689_v19 = vpop.eup %4706  ;;  %v2427_v36 = vmul.f32 %v4701_v11, %v8578_v28  ;;  %v2560_v40 = vmul.f32 %v2558_v31, %v2558_v31  ;;  %v2561_v43 = vadd.f32 0.1, %v2559_v54 }
 0x25f   : > { %v2591_v37 = vmul.f32 %v8669_v46, %v2590_v1  ;;  %vm2595_vm5 = vweird.f32 %v8596_v26  ;;  %v2428_v24 = vadd.f32 %v2426_v0, %v2356_v27  ;;  %v2582_v25 = vmul.f32 0.5, %v2581_v53 }
 0x260   : > { %v2608_v32 = vmul.f32 %v8689_v19, %v8633_v4  ;;  %vm2613_vm10 = vweird.f32 %v8633_v4  ;;  %4712 = vrsqrt.f32 %v8686_v41  ;;  %v8700_v3 = vpop.eup %4708  ;;  %v2562_v28 = vadd.f32 0.1, %v2560_v40 }
 0x261   : > { %4714 = vrcp.f32 %v2561_v43  ;;  %vm2586_vm11 = vweird.f32 %v8664_v21  ;;  %v2592_v50 = vmul.f32 0.5, %v2591_v37  ;;  %v2583_v20 = vsub.f32 1.5, %v2582_v25 }
 0x262   : > { %v2609_v5 = vmul.f32 %v8689_v19, %v2608_v32  ;;  %v2618_v61 = vmul.f32 %v8700_v3, %v8655_v9  ;;  %vm2623_vm1 = vweird.f32 %v8655_v9  ;;  %v2429_v10 = vadd.f32 %v2427_v36, %v2357_v2  ;;  %vm8729_vm14 = vmor %vm2585_vm15, %vm2586_vm11  ;;  %v3024_v32 = vpop.permute.xlu2 %3023 }
 0x263   : > { %4716 = vrcp.f32 %v2562_v28  ;;  %v2593_v7 = vsub.f32 1.5, %v2592_v50  ;;  %v2675_v30 = vmul.f32 %v8676_v49, %v8676_v49  ;;  %v2584_v14 = vmul.f32 %v8664_v21, %v2583_v20 }
 0x264   : > { %v8711_v34 = vpop.eup %4710  ;;  %v2610_v42 = vmul.f32 0.5, %v2609_v5  ;;  %v2619_v18 = vmul.f32 %v8700_v3, %v2618_v61  ;;  %v2676_v11 = vmul.f32 %v8682_v23, %v8682_v23  ;;  %vm2596_vm13 = vweird.f32 %v8669_v46  ;;  %v2714_v61 = vld [vmem:[#allocation2 + $0xb] sm:$0xff] }
 0x265   : > { %v2594_v48 = vmul.f32 %v8669_v46, %v2593_v7  ;;  %v2652_v38 = vmul.f32 %v8711_v34, %v8662_v57  ;;  %v8721_v51 = vadd.f32 0.81, %v2675_v30  ;;  %vm2614_vm0 = vweird.f32 %v8689_v19  ;;  %vm8748_vm7 = vmor %vm2595_vm5, %vm2596_vm13  ;;  %v2715_v7 = vld [vmem:[#allocation3 + $0x3] sm:$0xff] }
 0x266   : > { %v8723_v22 = vpop.eup %4712  ;;  %v2611_v16 = vsub.f32 1.5, %v2610_v42  ;;  %v2620_v27 = vmul.f32 0.5, %v2619_v18  ;;  %vm2624_vm2 = vweird.f32 %v8700_v3  ;;  %v2588_v12 = vsel %vm8729_vm14, %v8664_v21, %v2584_v14  ;;  %vm2615_vm6 = vmor %vm2613_vm10, %vm2614_vm0  ;;  %v2785_v18 = vld [vmem:[#allocation2 + $0x4] sm:$0xff] }
 0x267   : > { %v4715_v2 = vpop.eup %4714  ;;  %v2653_v31 = vmul.f32 %v8711_v34, %v2652_v38  ;;  %v2662_v29 = vmul.f32 %v8723_v22, %v8686_v41  ;;  %v8742_v1 = vsub.f32 %v2713_v62, %v11010_v45  ;;  %v8753_v43 = vadd.f32 0.81, %v2676_v11  ;;  %vm2625_vm8 = vmor %vm2623_vm1, %vm2624_vm2  ;;  %v8788_v11 = vld [vmem:[#allocation2 + $0x5] sm:$0xff] }
 0x268   : > { %v2565_v0 = vmul.f32 %v4715_v2, %v2559_v54  ;;  %v2612_v36 = vmul.f32 %v8689_v19, %v2611_v16  ;;  %v2621_v21 = vsub.f32 1.5, %v2620_v27  ;;  %v2598_v25 = vsel %vm8748_vm7, %v8669_v46, %v2594_v48  ;;  %v2716_v62 = vld [vmem:[#allocation3 + $0xb] sm:$0xff] }
 0x269   : > { %v4717_v37 = vpop.eup %4716  ;;  %v2654_v26 = vmul.f32 0.5, %v2653_v31  ;;  %v2663_v54 = vmul.f32 %v8723_v22, %v2662_v29  ;;  %4718 = vrsqrt.f32 %v8721_v51  ;;  %v8771_v46 = vsel %vm3025_vm12, %v8647_v39, %v8645_v6  ;;  %v3056_v39 = vpop.permute.xlu0 %3055 }
 0x26a   : > { %v2566_v28 = vmul.f32 %v4717_v37, %v2560_v40  ;;  %v8764_v50 = vadd.f32 %v2565_v0, %v2428_v24  ;;  %v2616_v20 = vsel %vm2615_vm6, %v8689_v19, %v2612_v36  ;;  %v2622_v5 = vmul.f32 %v8700_v3, %v2621_v21 }
 0x26b   : > { %v2599_v4 = vmul.f32 %v2588_v12, %v8547_v52  ;;  %v2627_v40 = vmul.f32 %v2616_v20, %v8603_v8  ;;  %v2655_v24 = vsub.f32 1.5, %v2654_v26  ;;  %v2664_v14 = vmul.f32 0.5, %v2663_v54  ;;  %v3058_v52 = vpop.permute.xlu1 %3057  ;;  %v2786_v54 = vld [vmem:[#allocation2 + $0xc] sm:$0xff] }
 0x26c   : > { %v8779_v19 = vadd.f32 %v2566_v28, %v2429_v10  ;;  %v2626_v30 = vsel %vm2625_vm8, %v8700_v3, %v2622_v5  ;;  %4720 = vrsqrt.f32 %v8753_v43  ;;  %v8784_v6 = vsel %vm3025_vm12, %v3022_v13, %v3024_v32  ;;  %v8790_v10 = vld [vmem:[#allocation2 + $0x6] sm:$0xff] }
 0x26d   : > { %v2600_v9 = vmul.f32 %v2598_v25, %v8554_v15  ;;  %v2628_v42 = vmul.f32 %v2626_v30, %v8609_v56  ;;  %v2629_v8 = vsub.f32 %v2599_v4, %v2627_v40  ;;  %v8795_v3 = vsel %vm3025_vm12, %v8694_v60, %v8707_v63  ;;  %3032 = vst [vmem:[#allocation2] sm:$0xff] %v8367_v35 }
 0x26e   : > { %v8798_v13 = vsub.f32 %v2714_v61, %v11060_v44  ;;  %v2719_v15 = vmul.f32 %v8742_v1, %v8742_v1  ;;  %v8803_v56 = vsub.f32 %v2715_v7, %v11015_v33  ;;  %v2656_v16 = vmul.f32 %v8711_v34, %v2655_v24 }
 0x26f   : > { %v4719_v48 = vpop.eup %4718  ;;  %v2630_v38 = vsub.f32 %v2600_v9, %v2628_v42  ;;  %v8806_v55 = vmul.f32 %v2629_v8, %v2629_v8  ;;  %vm2658_vm3 = vweird.f32 %v8711_v34  ;;  %v8811_v60 = vsel %vm3025_vm12, %v3056_v39, %v3058_v52 }
 0x270   : > { %v2665_v63 = vsub.f32 1.5, %v2664_v14  ;;  %v2680_v27 = vmul.f32 %v4719_v48, %v8721_v51  ;;  %v2720_v2 = vmul.f32 %v8798_v13, %v8798_v13  ;;  %vm2657_vm4 = vweird.f32 %v8662_v57 }
 0x271   : > { %v2633_v12 = vadd.f32 0.1, %v8806_v55  ;;  %v8818_v31 = vadd.f32 0.81, %v2719_v15  ;;  %v8821_v29 = vsub.f32 %v2716_v62, %v10911_v58  ;;  %vm8825_vm9 = vmor %vm2657_vm4, %vm2658_vm3  ;;  %vm2667_vm12 = vweird.f32 %v8686_v41 }
 0x272   : > { %v8823_v0 = vpop.eup %4720  ;;  %v2681_v36 = vmul.f32 %v4719_v48, %v2680_v27  ;;  %v8830_v21 = vadd.f32 0.81, %v2720_v2  ;;  %v2747_v37 = vmul.f32 %v8803_v56, %v8803_v56  ;;  %v8834_v57 = vmul.f32 %v2630_v38, %v2630_v38 }
 0x273   : > { %v2660_v25 = vsel %vm8825_vm9, %v8711_v34, %v2656_v16  ;;  %vm2668_vm15 = vweird.f32 %v8723_v22  ;;  %v2690_v26 = vmul.f32 %v8823_v0, %v8753_v43  ;;  %v2666_v32 = vmul.f32 %v8723_v22, %v2665_v63  ;;  %v2787_v63 = vld [vmem:[#allocation3 + $0x4] sm:$0xff] }
 0x274   : > { %v2682_v28 = vmul.f32 0.5, %v2681_v36  ;;  %vm2686_vm5 = vweird.f32 %v4719_v48  ;;  %4722 = vrsqrt.f32 %v8818_v31  ;;  %v2748_v5 = vmul.f32 %v8821_v29, %v8821_v29  ;;  %vm8864_vm10 = vmor %vm2667_vm12, %vm2668_vm15  ;;  %v8905_v36 = vld [vmem:[#allocation2 + $0xd] sm:$0xff] }
 0x275   : > { %4724 = vrcp.f32 %v2633_v12  ;;  %v2691_v20 = vmul.f32 %v8823_v0, %v2690_v26  ;;  %v8847_v4 = vadd.f32 0.81, %v2747_v37  ;;  %v8851_v40 = vsub.f32 %v2785_v18, %v11010_v45  ;;  %v8907_v37 = vld [vmem:[#allocation2 + $0xe] sm:$0xff] }
 0x276   : > { %v2683_v34 = vsub.f32 1.5, %v2682_v28  ;;  %4726 = vrsqrt.f32 %v8830_v21  ;;  %v8854_v24 = vsub.f32 %v2786_v54, %v11060_v44  ;;  %v2634_v61 = vadd.f32 0.1, %v8834_v57  ;;  %3033 = vst [vmem:[#allocation2 + $0x8] sm:$0xff] %v8363_v47 }
 0x277   : > { %v2692_v7 = vmul.f32 0.5, %v2691_v20  ;;  %v8857_v30 = vadd.f32 0.81, %v2748_v5  ;;  %4728 = vrsqrt.f32 %v8847_v4  ;;  %vm2685_vm11 = vweird.f32 %v8721_v51  ;;  %3034 = vst [vmem:[#allocation2 + $0x10] sm:$0x3f] %v8784_v6 }
 0x278   : > { %v2684_v52 = vmul.f32 %v4719_v48, %v2683_v34  ;;  %v2791_v39 = vmul.f32 %v8851_v40, %v8851_v40  ;;  %v2792_v9 = vmul.f32 %v8854_v24, %v8854_v24  ;;  %v2670_v42 = vsel %vm8864_vm10, %v8723_v22, %v2666_v32  ;;  %vm2687_vm1 = vmor %vm2685_vm11, %vm2686_vm5 }
 0x279   : > { %v2693_v41 = vsub.f32 1.5, %v2692_v7  ;;  %vm2696_vm13 = vweird.f32 %v8823_v0  ;;  %4730 = vrsqrt.f32 %v8857_v30  ;;  %v2671_v51 = vmul.f32 %v2660_v25, %v8624_v17  ;;  %v2788_v17 = vld [vmem:[#allocation3 + $0xc] sm:$0xff]  ;;  %v8909_v25 = vpop.permute.xlu2 %3584 }
 0x27a   : > { %v8879_v8 = vpop.eup %4722  ;;  %v2688_v18 = vsel %vm2687_vm1, %v4719_v48, %v2684_v52  ;;  %vm2695_vm14 = vweird.f32 %v8753_v43  ;;  %v8883_v62 = vadd.f32 0.81, %v2791_v39  ;;  %4732 = vrcp.f32 %v2634_v61  ;;  %v8929_v61 = vld [vmem:[#allocation3 + $0x6] sm:$0xff] }
 0x27b   : > { %v4725_v15 = vpop.eup %4724  ;;  %v2694_v22 = vmul.f32 %v8823_v0, %v2693_v41  ;;  %v2699_v38 = vmul.f32 %v2688_v18, %v8676_v49  ;;  %v2724_v16 = vmul.f32 %v8879_v8, %v8818_v31  ;;  %v2672_v2 = vmul.f32 %v2670_v42, %v8636_v59  ;;  %vm2697_vm0 = vmor %vm2695_vm14, %vm2696_vm13 }
 0x27c   : > { %v8889_v27 = vpop.eup %4726  ;;  %vm2729_vm2 = vweird.f32 %v8818_v31  ;;  %v8895_v43 = vadd.f32 0.81, %v2792_v9  ;;  %4734 = vrsqrt.f32 %v8883_v62  ;;  %vm2739_vm7 = vweird.f32 %v8830_v21 }
 0x27d   : > { %v8898_v48 = vpop.eup %4728  ;;  %v2698_v49 = vsel %vm2697_vm0, %v8823_v0, %v2694_v22  ;;  %v2701_v12 = vsub.f32 %v2671_v51, %v2699_v38  ;;  %v2725_v53 = vmul.f32 %v8879_v8, %v2724_v16  ;;  %v2734_v59 = vmul.f32 %v8889_v27, %v8830_v21 }
 0x27e   : > { %v2700_v26 = vmul.f32 %v2698_v49, %v8682_v23  ;;  %v2752_v54 = vmul.f32 %v8898_v48, %v8847_v4  ;;  %vm2757_vm6 = vweird.f32 %v8847_v4  ;;  %v8916_v0 = vsub.f32 %v2787_v63, %v11015_v33  ;;  %v8927_v23 = vld [vmem:[#allocation3 + $0x5] sm:$0xff] }
 0x27f   : > { %v8919_v32 = vpop.eup %4730  ;;  %v8921_v28 = vmul.f32 %v2701_v12, %v2701_v12  ;;  %v2726_v20 = vmul.f32 0.5, %v2725_v53  ;;  %v2735_v5 = vmul.f32 %v8889_v27, %v2734_v59  ;;  %v8925_v34 = vsub.f32 %v2788_v17, %v10911_v58  ;;  %3065 = vst [vmem:[#allocation3] sm:$0xff] %v8771_v46 }
 0x280   : > { %v8933_v7 = vmul.f32 %v4725_v15, %v8806_v55  ;;  %v2702_v14 = vsub.f32 %v2672_v2, %v2700_v26  ;;  %v2753_v52 = vmul.f32 %v8898_v48, %v2752_v54  ;;  %v2762_v39 = vmul.f32 %v8919_v32, %v8857_v30  ;;  %v4733_v9 = vpop.eup %4732  ;;  %v2860_v26 = vld [vmem:[#allocation3 + $0xd] sm:$0xff] }
 0x281   : > { %vm2767_vm8 = vweird.f32 %v8857_v30  ;;  %vm3596_vm3 = vcmask 998400   ;;  %v2727_v42 = vsub.f32 1.5, %v2726_v20  ;;  %vm2730_vm4 = vweird.f32 %v8879_v8  ;;  %v8967_v54 = vld [vmem:[#allocation3 + $0xe] sm:$0xff] }
 0x282   : > { %v2736_v41 = vmul.f32 0.5, %v2735_v5  ;;  %4736 = vrsqrt.f32 %v8895_v43  ;;  %v8942_v6 = vpop.eup %4734  ;;  %v8944_v55 = vmul.f32 %v2702_v14, %v2702_v14  ;;  %v2705_v51 = vadd.f32 0.1, %v8921_v28  ;;  %vm8959_vm5 = vmor %vm2729_vm2, %vm2730_vm4  ;;  %3066 = vst [vmem:[#allocation3 + $0x8] sm:$0xff] %v8795_v3 }
 0x283   : > { %v2754_v18 = vmul.f32 0.5, %v2753_v52  ;;  %v2763_v15 = vmul.f32 %v8919_v32, %v2762_v39  ;;  %v2728_v22 = vmul.f32 %v8879_v8, %v2727_v42  ;;  %vm2740_vm9 = vweird.f32 %v8889_v27  ;;  %3067 = vst [vmem:[#allocation3 + $0x10] sm:$0x3f] %v8811_v60 }
 0x284   : > { %v2737_v38 = vsub.f32 1.5, %v2736_v41  ;;  %v2796_v16 = vmul.f32 %v8942_v6, %v8883_v62  ;;  %vm2758_vm12 = vweird.f32 %v8898_v48  ;;  %vm2768_vm15 = vweird.f32 %v8919_v32  ;;  %vm8976_vm10 = vmor %vm2739_vm7, %vm2740_vm9 }
 0x285   : > { %v2755_v63 = vsub.f32 1.5, %v2754_v18  ;;  %v2764_v2 = vmul.f32 0.5, %v2763_v15  ;;  %v2706_v17 = vadd.f32 0.1, %v8944_v55  ;;  %v2819_v59 = vmul.f32 %v8916_v0, %v8916_v0  ;;  %vm8989_vm11 = vmor %vm2757_vm6, %vm2758_vm12  ;;  %v3589_v15 = vpop.permute.xlu1 %3588 }
 0x286   : > { %v2738_v12 = vmul.f32 %v8889_v27, %v2737_v38  ;;  %v2797_v53 = vmul.f32 %v8942_v6, %v2796_v16  ;;  %4738 = vrcp.f32 %v2705_v51  ;;  %v2732_v20 = vsel %vm8959_vm5, %v8879_v8, %v2728_v22  ;;  %v3591_v51 = vpop.permute.xlu2 %3590  ;;  %v3587_v22 = vpop.permute.xlu0 %3586  ;;  %vm2769_vm1 = vmor %vm2767_vm8, %vm2768_vm15 }
 0x287   : > { %v2756_v5 = vmul.f32 %v8898_v48, %v2755_v63  ;;  %v2765_v14 = vsub.f32 1.5, %v2764_v2  ;;  %v2638_v39 = vmul.f32 %v4733_v9, %v8834_v57  ;;  %v2820_v42 = vmul.f32 %v8925_v34, %v8925_v34 }
 0x288   : > { %v8982_v52 = vpop.eup %4736  ;;  %v2798_v21 = vmul.f32 0.5, %v2797_v53  ;;  %v8995_v41 = vadd.f32 0.81, %v2819_v59  ;;  %v2742_v57 = vsel %vm8976_vm10, %v8889_v27, %v2738_v12  ;;  %4740 = vrcp.f32 %v2706_v17 }
 0x289   : > { %v2760_v4 = vsel %vm8989_vm11, %v8898_v48, %v2756_v5  ;;  %v2766_v9 = vmul.f32 %v8919_v32, %v2765_v14  ;;  %v2806_v18 = vmul.f32 %v8982_v52, %v8895_v43  ;;  %v2743_v38 = vmul.f32 %v2732_v20, %v8742_v1 }
 0x28a   : > { %v2771_v60 = vmul.f32 %v2760_v4, %v8803_v56  ;;  %v9013_v27 = vadd.f32 0.81, %v2820_v42  ;;  %4742 = vrsqrt.f32 %v8995_v41  ;;  %v2744_v63 = vmul.f32 %v2742_v57, %v8798_v13 }
 0x28b   : > { %v2770_v48 = vsel %vm2769_vm1, %v8919_v32, %v2766_v9  ;;  %v2807_v16 = vmul.f32 %v8982_v52, %v2806_v18  ;;  %v2799_v17 = vsub.f32 1.5, %v2798_v21  ;;  %v9021_v30 = vsel %vm3596_vm3, %v3589_v15, %v3591_v51 }
 0x28c   : > { %v2772_v2 = vmul.f32 %v2770_v48, %v8821_v29  ;;  %v2773_v1 = vsub.f32 %v2743_v38, %v2771_v60  ;;  %v4739_v49 = vpop.eup %4738  ;;  %v9025_v56 = vsel %vm3596_vm3, %v8909_v25, %v3587_v22  ;;  %4744 = vrsqrt.f32 %v9013_v27 }
 0x28d   : > { %v2808_v12 = vmul.f32 0.5, %v2807_v16  ;;  %v2639_v32 = vadd.f32 %v8933_v7, %v8764_v50  ;;  %v2640_v13 = vadd.f32 %v2638_v39, %v8779_v19  ;;  %vm2801_vm13 = vweird.f32 %v8883_v62 }
 0x28e   : > { %v2774_v53 = vsub.f32 %v2744_v63, %v2772_v2  ;;  %v9032_v29 = vmul.f32 %v2773_v1, %v2773_v1  ;;  %vm2802_vm14 = vweird.f32 %v8942_v6  ;;  %vm2811_vm0 = vweird.f32 %v8895_v43  ;;  %v4741_v50 = vpop.eup %4740  ;;  %v9159_v9 = vpop.permute.xlu2 %3622 }
 0x28f   : > { %v9038_v25 = vsub.f32 %v8788_v11, %v11010_v45  ;;  %v9042_v59 = vsub.f32 %v8905_v36, %v11060_v44  ;;  %v2709_v19 = vmul.f32 %v4739_v49, %v8921_v28  ;;  %v2800_v7 = vmul.f32 %v8942_v6, %v2799_v17  ;;  %vm9076_vm6 = vmor %vm2801_vm13, %vm2802_vm14 }
 0x290   : > { %vm2812_vm2 = vweird.f32 %v8982_v52  ;;  %v9049_v20 = vsub.f32 %v8927_v23, %v11015_v33  ;;  %v4743_v31 = vpop.eup %4742  ;;  %v9051_v5 = vmul.f32 %v2774_v53, %v2774_v53  ;;  %v2809_v11 = vsub.f32 1.5, %v2808_v12 }
 0x291   : > { %v2863_v14 = vmul.f32 %v9038_v25, %v9038_v25  ;;  %v2864_v36 = vmul.f32 %v9042_v59, %v9042_v59  ;;  %v9057_v39 = vadd.f32 %v2709_v19, %v2639_v32  ;;  %v2824_v28 = vmul.f32 %v4743_v31, %v8995_v41  ;;  %vm9105_vm4 = vmor %vm2811_vm0, %vm2812_vm2 }
 0x292   : > { %vm2829_vm7 = vweird.f32 %v8995_v41  ;;  %v9062_v8 = vsub.f32 %v2860_v26, %v10911_v58  ;;  %v4745_v23 = vpop.eup %4744  ;;  %v2777_v21 = vadd.f32 0.1, %v9032_v29  ;;  %v2891_v57 = vmul.f32 %v9049_v20, %v9049_v20 }
 0x293   : > { %v9065_v42 = vadd.f32 0.81, %v2863_v14  ;;  %v9067_v51 = vadd.f32 0.81, %v2864_v36  ;;  %v2710_v4 = vmul.f32 %v4741_v50, %v8944_v55  ;;  %v2825_v26 = vmul.f32 %v4743_v31, %v2824_v28 }
 0x294   : > { %v2834_v18 = vmul.f32 %v4745_v23, %v9013_v27  ;;  %vm2839_vm8 = vweird.f32 %v9013_v27  ;;  %v2778_v15 = vadd.f32 0.1, %v9051_v5  ;;  %v2804_v22 = vsel %vm9076_vm6, %v8942_v6, %v2800_v7 }
 0x295   : > { %v2810_v55 = vmul.f32 %v8982_v52, %v2809_v11  ;;  %4746 = vrsqrt.f32 %v9065_v42  ;;  %v2826_v62 = vmul.f32 0.5, %v2825_v26  ;;  %v2892_v60 = vmul.f32 %v9062_v8, %v9062_v8 }
 0x296   : > { %v2835_v38 = vmul.f32 %v4745_v23, %v2834_v18  ;;  %4748 = vrsqrt.f32 %v9067_v51  ;;  %v9091_v48 = vadd.f32 0.81, %v2891_v57  ;;  %v9095_v16 = vsub.f32 %v8790_v10, %v11010_v45 }
 0x297   : > { %4750 = vrcp.f32 %v2777_v21  ;;  %v9099_v6 = vsub.f32 %v8907_v37, %v11060_v44  ;;  %v2827_v2 = vsub.f32 1.5, %v2826_v62  ;;  %vm2830_vm9 = vweird.f32 %v4743_v31 }
 0x298   : > { %v2836_v1 = vmul.f32 0.5, %v2835_v38  ;;  %v9109_v17 = vadd.f32 0.81, %v2892_v60  ;;  %v2814_v10 = vsel %vm9105_vm4, %v8982_v52, %v2810_v55  ;;  %v2815_v37 = vmul.f32 %v2804_v22, %v8851_v40  ;;  %vm2831_vm15 = vmor %vm2829_vm7, %vm2830_vm9  ;;  %v9167_v22 = vpop.permute.xlu1 %3620  ;;  %v9169_v55 = vpop.permute.xlu0 %3618 }
 0x299   : > { %4752 = vrsqrt.f32 %v9091_v48  ;;  %v2935_v43 = vmul.f32 %v9095_v16, %v9095_v16  ;;  %v2828_v49 = vmul.f32 %v4743_v31, %v2827_v2  ;;  %vm2840_vm12 = vweird.f32 %v4745_v23 }
 0x29a   : > { %v2837_v12 = vsub.f32 1.5, %v2836_v1  ;;  %4754 = vrsqrt.f32 %v9109_v17  ;;  %v9121_v53 = vadd.f32 %v2710_v4, %v2640_v13  ;;  %v2936_v40 = vmul.f32 %v9099_v6, %v9099_v6  ;;  %vm2841_vm5 = vmor %vm2839_vm8, %vm2840_vm12 }
 0x29b   : > { %v9119_v32 = vpop.eup %4746  ;;  %4756 = vrcp.f32 %v2778_v15  ;;  %v9127_v52 = vadd.f32 0.81, %v2935_v43  ;;  %v2816_v19 = vmul.f32 %v2814_v10, %v8854_v24  ;;  %v2832_v7 = vsel %vm2831_vm15, %v4743_v31, %v2828_v49 }
 0x29c   : > { %v9129_v50 = vpop.eup %4748  ;;  %v2838_v11 = vmul.f32 %v4745_v23, %v2837_v12  ;;  %v2868_v14 = vmul.f32 %v9119_v32, %v9065_v42  ;;  %v2843_v41 = vmul.f32 %v2832_v7, %v8916_v0  ;;  %vm2873_vm10 = vweird.f32 %v9065_v42 }
 0x29d   : > { %v4751_v13 = vpop.eup %4750  ;;  %v2878_v36 = vmul.f32 %v9129_v50, %v9067_v51  ;;  %v9142_v28 = vsub.f32 %v8929_v61, %v11015_v33  ;;  %v9145_v21 = vadd.f32 0.81, %v2936_v40  ;;  %4758 = vrsqrt.f32 %v9127_v52 }
 0x29e   : > { %v2842_v24 = vsel %vm2841_vm5, %v4745_v23, %v2838_v11  ;;  %v2869_v31 = vmul.f32 %v9119_v32, %v2868_v14  ;;  %v2845_v57 = vsub.f32 %v2815_v37, %v2843_v41  ;;  %vm2883_vm11 = vweird.f32 %v9067_v51 }
 0x29f   : > { %v9148_v27 = vpop.eup %4752  ;;  %v2844_v0 = vmul.f32 %v2842_v24, %v8925_v34  ;;  %v2879_v4 = vmul.f32 %v9129_v50, %v2878_v36  ;;  %v9155_v61 = vsub.f32 %v8967_v54, %v10911_v58  ;;  %v9162_v26 = vmul.f32 %v4751_v13, %v9032_v29 }
 0x2a0   : > { %v9157_v23 = vpop.eup %4754  ;;  %v2870_v18 = vmul.f32 0.5, %v2869_v31  ;;  %v2896_v34 = vmul.f32 %v9148_v27, %v9091_v48  ;;  %4760 = vrsqrt.f32 %v9145_v21  ;;  %v9171_v62 = vmul.f32 %v2845_v57, %v2845_v57 }
 0x2a1   : > { %v4757_v15 = vpop.eup %4756  ;;  %v2846_v54 = vsub.f32 %v2816_v19, %v2844_v0  ;;  %v2880_v38 = vmul.f32 0.5, %v2879_v4  ;;  %v2906_v60 = vmul.f32 %v9157_v23, %v9109_v17  ;;  %vm2874_vm1 = vweird.f32 %v9119_v32 }
 0x2a2   : > { %v2871_v29 = vsub.f32 1.5, %v2870_v18  ;;  %v2897_v63 = vmul.f32 %v9148_v27, %v2896_v34  ;;  %vm2901_vm13 = vweird.f32 %v9091_v48  ;;  %v2849_v1 = vadd.f32 0.1, %v9171_v62  ;;  %vm9198_vm0 = vmor %vm2873_vm10, %vm2874_vm1  ;;  %v3625_v48 = vpop.permute.xlu0 %3624 }
 0x2a3   : > { %v9178_v2 = vmul.f32 %v2846_v54, %v2846_v54  ;;  %v2881_v10 = vsub.f32 1.5, %v2880_v38  ;;  %v2907_v37 = vmul.f32 %v9157_v23, %v2906_v60  ;;  %v9182_v43 = vpop.eup %4758  ;;  %vm2884_vm14 = vweird.f32 %v9129_v50  ;;  %v3595_v38 = vpop.permute.xlu2 %3594 }
 0x2a4   : > { %v2872_v49 = vmul.f32 %v9119_v32, %v2871_v29  ;;  %v2898_v12 = vmul.f32 0.5, %v2897_v63  ;;  %v2963_v40 = vmul.f32 %v9142_v28, %v9142_v28  ;;  %v2964_v14 = vmul.f32 %v9155_v61, %v9155_v61  ;;  %vm9214_vm8 = vmor %vm2883_vm11, %vm2884_vm14 }
 0x2a5   : > { %v2850_v19 = vadd.f32 0.1, %v9178_v2  ;;  %v2882_v7 = vmul.f32 %v9129_v50, %v2881_v10  ;;  %v2908_v11 = vmul.f32 0.5, %v2907_v37  ;;  %vm2902_vm2 = vweird.f32 %v9148_v27 }
 0x2a6   : > { %v9192_v13 = vpop.eup %4760  ;;  %v2899_v36 = vsub.f32 1.5, %v2898_v12  ;;  %vm2911_vm7 = vweird.f32 %v9109_v17  ;;  %v2940_v24 = vmul.f32 %v9182_v43, %v9127_v52  ;;  %4762 = vrcp.f32 %v2849_v1  ;;  %vm2903_vm4 = vmor %vm2901_vm13, %vm2902_vm2  ;;  %v3593_v1 = vpop.permute.xlu1 %3592 }
 0x2a7   : > { %v2876_v31 = vsel %vm9198_vm0, %v9119_v32, %v2872_v49  ;;  %v2909_v0 = vsub.f32 1.5, %v2908_v11  ;;  %vm2912_vm6 = vweird.f32 %v9157_v23  ;;  %4764 = vrcp.f32 %v2850_v19 }
 0x2a8   : > { %v2900_v57 = vmul.f32 %v9148_v27, %v2899_v36  ;;  %v2941_v4 = vmul.f32 %v9182_v43, %v2940_v24  ;;  %v2950_v18 = vmul.f32 %v9192_v13, %v9145_v21  ;;  %v2886_v32 = vsel %vm9214_vm8, %v9129_v50, %v2882_v7  ;;  %vm2913_vm9 = vmor %vm2911_vm7, %vm2912_vm6 }
 0x2a9   : > { %v2910_v51 = vmul.f32 %v9157_v23, %v2909_v0  ;;  %v9228_v34 = vadd.f32 0.81, %v2963_v40  ;;  %v9230_v54 = vadd.f32 0.81, %v2964_v14  ;;  %v2887_v60 = vmul.f32 %v2876_v31, %v9038_v25 }
 0x2aa   : > { %v2904_v29 = vsel %vm2903_vm4, %v9148_v27, %v2900_v57  ;;  %v2942_v63 = vmul.f32 0.5, %v2941_v4  ;;  %v2951_v50 = vmul.f32 %v9192_v13, %v2950_v18  ;;  %v9242_v49 = vsub.f32 %v8367_v35, %v11010_v45  ;;  %v3140_v18 = vld [vmem:[#allocation2 + $0x1] sm:$0xff] }
 0x2ab   : > { %v2914_v10 = vsel %vm2913_vm9, %v9157_v23, %v2910_v51  ;;  %v2915_v37 = vmul.f32 %v2904_v29, %v9049_v20  ;;  %4766 = vrsqrt.f32 %v9228_v34  ;;  %v2782_v25 = vmul.f32 %v4757_v15, %v9051_v5 }
 0x2ac   : > { %v2888_v17 = vmul.f32 %v2886_v32, %v9042_v59  ;;  %v2916_v27 = vmul.f32 %v2914_v10, %v9062_v8  ;;  %v2943_v12 = vsub.f32 1.5, %v2942_v63  ;;  %v4763_v40 = vpop.eup %4762  ;;  %v2952_v7 = vmul.f32 0.5, %v2951_v50  ;;  %v3141_v32 = vld [vmem:[#allocation2 + $0x9] sm:$0xff] }
 0x2ad   : > { %v2917_v19 = vsub.f32 %v2887_v60, %v2915_v37  ;;  %4768 = vrsqrt.f32 %v9230_v54  ;;  %v9250_v20 = vsub.f32 %v8363_v47, %v11060_v44  ;;  %v4765_v23 = vpop.eup %4764  ;;  %v9255_v35 = vsel %vm3596_vm3, %v9169_v55, %v9167_v22 }
 0x2ae   : > { %v9258_v59 = vsel %vm3596_vm3, %v3593_v1, %v3595_v38  ;;  %v9262_v5 = vsel %vm3596_vm3, %v9159_v9, %v3625_v48  ;;  %v2918_v8 = vsub.f32 %v2888_v17, %v2916_v27  ;;  %v2783_v15 = vadd.f32 %v9162_v26, %v9057_v39 }
 0x2af   : > { %v2784_v47 = vadd.f32 %v2782_v25, %v9121_v53  ;;  %v3074_v11 = vmul.f32 %v9242_v49, %v9242_v49  ;;  %v3075_v22 = vmul.f32 %v9250_v20, %v9250_v20  ;;  %v9271_v55 = vmul.f32 %v2917_v19, %v2917_v19 }
 0x2b0   : > { %v2944_v14 = vmul.f32 %v9182_v43, %v2943_v12  ;;  %vm2945_vm12 = vweird.f32 %v9127_v52  ;;  %vm2946_vm15 = vweird.f32 %v9182_v43  ;;  %v9278_v41 = vmul.f32 %v2918_v8, %v2918_v8  ;;  %v3142_v8 = vld [vmem:[#allocation3 + $0x1] sm:$0xff] }
 0x2b1   : > { %v9276_v9 = vpop.eup %4766  ;;  %v2953_v39 = vsub.f32 1.5, %v2952_v7  ;;  %v9280_v53 = vadd.f32 0.81, %v3074_v11  ;;  %v9284_v26 = vsub.f32 %v8771_v46, %v11015_v33  ;;  %vm2955_vm5 = vweird.f32 %v9145_v21  ;;  %vm9296_vm11 = vmor %vm2945_vm12, %vm2946_vm15 }
 0x2b2   : > { %vm2956_vm10 = vweird.f32 %v9192_v13  ;;  %v2968_v52 = vmul.f32 %v9276_v9, %v9228_v34  ;;  %v9290_v36 = vadd.f32 0.81, %v3075_v22  ;;  %v2853_v31 = vmul.f32 %v4763_v40, %v9171_v62 }
 0x2b3   : > { %v9292_v24 = vpop.eup %4768  ;;  %v2854_v0 = vmul.f32 %v4765_v23, %v9178_v2  ;;  %vm2973_vm1 = vweird.f32 %v9228_v34  ;;  %v9303_v46 = vsub.f32 %v8795_v3, %v10911_v58  ;;  %v2921_v57 = vadd.f32 0.1, %v9271_v55  ;;  %vm9335_vm0 = vmor %vm2955_vm5, %vm2956_vm10 }
 0x2b4   : > { %v2948_v4 = vsel %vm9296_vm11, %v9182_v43, %v2944_v14  ;;  %v2969_v62 = vmul.f32 %v9276_v9, %v2968_v52  ;;  %v2978_v2 = vmul.f32 %v9292_v24, %v9230_v54  ;;  %vm2983_vm13 = vweird.f32 %v9230_v54 }
 0x2b5   : > { %v2922_v51 = vadd.f32 0.1, %v9278_v41  ;;  %v2954_v3 = vmul.f32 %v9192_v13, %v2953_v39  ;;  %4770 = vrsqrt.f32 %v9280_v53  ;;  %v3102_v38 = vmul.f32 %v9284_v26, %v9284_v26 }
 0x2b6   : > { %v2970_v60 = vmul.f32 0.5, %v2969_v62  ;;  %v2979_v43 = vmul.f32 %v9292_v24, %v2978_v2  ;;  %4772 = vrsqrt.f32 %v9290_v36  ;;  %v3103_v29 = vmul.f32 %v9303_v46, %v9303_v46 }
 0x2b7   : > { %vm2974_vm14 = vweird.f32 %v9276_v9  ;;  %v9323_v63 = vadd.f32 0.81, %v3102_v38  ;;  %v9326_v50 = vsub.f32 %v3140_v18, %v11010_v45  ;;  %v9329_v1 = vsub.f32 %v3141_v32, %v11060_v44 }
 0x2b8   : > { %4774 = vrcp.f32 %v2921_v57  ;;  %v2971_v10 = vsub.f32 1.5, %v2970_v60  ;;  %v2980_v37 = vmul.f32 0.5, %v2979_v43  ;;  %v9339_v25 = vadd.f32 0.81, %v3103_v29  ;;  %vm2975_vm7 = vmor %vm2973_vm1, %vm2974_vm14 }
 0x2b9   : > { %v2958_v17 = vsel %vm9335_vm0, %v9192_v13, %v2954_v3  ;;  %4776 = vrsqrt.f32 %v9323_v63  ;;  %v3146_v27 = vmul.f32 %v9326_v50, %v9326_v50  ;;  %v3147_v21 = vmul.f32 %v9329_v1, %v9329_v1 }
 0x2ba   : > { %v2972_v12 = vmul.f32 %v9276_v9, %v2971_v10  ;;  %v2981_v40 = vsub.f32 1.5, %v2980_v37  ;;  %vm2984_vm2 = vweird.f32 %v9292_v24  ;;  %4778 = vrsqrt.f32 %v9339_v25 }
 0x2bb   : > { %v9352_v19 = vpop.eup %4770  ;;  %v9354_v7 = vadd.f32 %v2853_v31, %v2783_v15  ;;  %v9356_v13 = vadd.f32 %v2854_v0, %v2784_v47  ;;  %v2959_v23 = vmul.f32 %v2948_v4, %v9095_v16  ;;  %v9363_v11 = vadd.f32 0.81, %v3146_v27  ;;  %v3143_v47 = vld [vmem:[#allocation3 + $0x9] sm:$0xff]  ;;  %vm2985_vm6 = vmor %vm2983_vm13, %vm2984_vm2 }
 0x2bc   : > { %v9365_v22 = vpop.eup %4772  ;;  %v2976_v14 = vsel %vm2975_vm7, %v9276_v9, %v2972_v12  ;;  %v2982_v39 = vmul.f32 %v9292_v24, %v2981_v40  ;;  %v3079_v15 = vmul.f32 %v9352_v19, %v9280_v53  ;;  %v9371_v52 = vadd.f32 0.81, %v3147_v21 }
 0x2bd   : > { %4780 = vrcp.f32 %v2922_v51  ;;  %v2960_v16 = vmul.f32 %v2958_v17, %v9099_v6  ;;  %v2987_v34 = vmul.f32 %v2976_v14, %v9142_v28  ;;  %vm3084_vm8 = vweird.f32 %v9280_v53 }
 0x2be   : > { %v3089_v9 = vmul.f32 %v9365_v22, %v9290_v36  ;;  %v4775_v31 = vpop.eup %4774  ;;  %v2986_v0 = vsel %vm2985_vm6, %v9292_v24, %v2982_v39  ;;  %v3080_v42 = vmul.f32 %v9352_v19, %v3079_v15  ;;  %4782 = vrsqrt.f32 %v9363_v11 }
 0x2bf   : > { %v9386_v6 = vsub.f32 %v3142_v8, %v11015_v33  ;;  %v4777_v57 = vpop.eup %4776  ;;  %v2988_v54 = vmul.f32 %v2986_v0, %v9155_v61  ;;  %v2989_v4 = vsub.f32 %v2959_v23, %v2987_v34  ;;  %vm3094_vm4 = vweird.f32 %v9290_v36 }
 0x2c0   : > { %v3090_v28 = vmul.f32 %v9365_v22, %v3089_v9  ;;  %v9392_v62 = vsub.f32 %v3143_v47, %v10911_v58  ;;  %v4779_v2 = vpop.eup %4778  ;;  %v3081_v24 = vmul.f32 0.5, %v3080_v42  ;;  %v3107_v18 = vmul.f32 %v4777_v57, %v9323_v63 }
 0x2c1   : > { %vm3112_vm9 = vweird.f32 %v9323_v63  ;;  %4784 = vrsqrt.f32 %v9371_v52  ;;  %v2990_v32 = vsub.f32 %v2960_v16, %v2988_v54  ;;  %v9397_v51 = vmul.f32 %v2989_v4, %v2989_v4  ;;  %v3212_v54 = vld [vmem:[#allocation2 + $0x2] sm:$0xff] }
 0x2c2   : > { %v3091_v61 = vmul.f32 0.5, %v3090_v28  ;;  %v3117_v3 = vmul.f32 %v4779_v2, %v9339_v25  ;;  %v2925_v38 = vmul.f32 %v4775_v31, %v9271_v55  ;;  %v3082_v60 = vsub.f32 1.5, %v3081_v24 }
 0x2c3   : > { %vm3085_vm12 = vweird.f32 %v9352_v19  ;;  %v3108_v43 = vmul.f32 %v4777_v57, %v3107_v18  ;;  %v4781_v29 = vpop.eup %4780  ;;  %v9402_v48 = vmul.f32 %v2990_v32, %v2990_v32  ;;  %v2993_v10 = vadd.f32 0.1, %v9397_v51 }
 0x2c4   : > { %v3092_v37 = vsub.f32 1.5, %v3091_v61  ;;  %v3118_v17 = vmul.f32 %v4779_v2, %v3117_v3  ;;  %v9405_v27 = vpop.eup %4782  ;;  %v3083_v21 = vmul.f32 %v9352_v19, %v3082_v60  ;;  %vm3095_vm15 = vweird.f32 %v9365_v22  ;;  %vm9421_vm5 = vmor %vm3084_vm8, %vm3085_vm12  ;;  %v3213_v3 = vld [vmem:[#allocation2 + $0xa] sm:$0xff] }
 0x2c5   : > { %v3109_v12 = vmul.f32 0.5, %v3108_v43  ;;  %v3174_v55 = vmul.f32 %v9386_v6, %v9386_v6  ;;  %v2994_v40 = vadd.f32 0.1, %v9402_v48  ;;  %v3175_v14 = vmul.f32 %v9392_v62, %v9392_v62  ;;  %vm9435_vm13 = vmor %vm3094_vm4, %vm3095_vm15 }
 0x2c6   : > { %v3093_v23 = vmul.f32 %v9365_v22, %v3092_v37  ;;  %v3119_v8 = vmul.f32 0.5, %v3118_v17  ;;  %vm3113_vm10 = vweird.f32 %v4777_v57  ;;  %vm3122_vm11 = vweird.f32 %v9339_v25 }
 0x2c7   : > { %v9415_v39 = vpop.eup %4784  ;;  %v3110_v47 = vsub.f32 1.5, %v3109_v12  ;;  %v3151_v16 = vmul.f32 %v9405_v27, %v9363_v11  ;;  %4786 = vrcp.f32 %v2993_v10  ;;  %v3087_v34 = vsel %vm9421_vm5, %v9352_v19, %v3083_v21  ;;  %vm3114_vm14 = vmor %vm3112_vm9, %vm3113_vm10 }
 0x2c8   : > { %v3120_v9 = vsub.f32 1.5, %v3119_v8  ;;  %vm3123_vm1 = vweird.f32 %v4779_v2  ;;  %4788 = vrcp.f32 %v2994_v40  ;;  %v3161_v42 = vmul.f32 %v9415_v39, %v9371_v52 }
 0x2c9   : > { %v3111_v31 = vmul.f32 %v4777_v57, %v3110_v47  ;;  %v3152_v0 = vmul.f32 %v9405_v27, %v3151_v16  ;;  %v3097_v19 = vsel %vm9435_vm13, %v9365_v22, %v3093_v23  ;;  %v9447_v36 = vadd.f32 0.81, %v3174_v55  ;;  %vm3124_vm0 = vmor %vm3122_vm11, %vm3123_vm1 }
 0x2ca   : > { %v3121_v4 = vmul.f32 %v4779_v2, %v3120_v9  ;;  %v9449_v28 = vadd.f32 0.81, %v3175_v14  ;;  %v3098_v24 = vmul.f32 %v3087_v34, %v9242_v49  ;;  %v3162_v61 = vmul.f32 %v9415_v39, %v3161_v42 }
 0x2cb   : > { %v3115_v18 = vsel %vm3114_vm14, %v4777_v57, %v3111_v31  ;;  %v3153_v32 = vmul.f32 0.5, %v3152_v0  ;;  %4790 = vrsqrt.f32 %v9447_v36  ;;  %v9458_v63 = vsub.f32 %v3212_v54, %v11010_v45 }
 0x2cc   : > { %v3125_v60 = vsel %vm3124_vm0, %v4779_v2, %v3121_v4  ;;  %v3126_v22 = vmul.f32 %v3115_v18, %v9284_v26  ;;  %v2926_v43 = vmul.f32 %v4781_v29, %v9278_v41  ;;  %v3099_v49 = vmul.f32 %v3097_v19, %v9250_v20  ;;  %v3214_v20 = vld [vmem:[#allocation3 + $0x2] sm:$0xff]  ;;  %v3285_v4 = vld [vmem:[#allocation2 + $0xb] sm:$0xff] }
 0x2cd   : > { %v3127_v57 = vmul.f32 %v3125_v60, %v9303_v46  ;;  %v3154_v25 = vsub.f32 1.5, %v3153_v32  ;;  %v4787_v10 = vpop.eup %4786  ;;  %v3163_v17 = vmul.f32 0.5, %v3162_v61  ;;  %4792 = vrsqrt.f32 %v9449_v28 }
 0x2ce   : > { %v3128_v37 = vsub.f32 %v3098_v24, %v3126_v22  ;;  %v9465_v2 = vsub.f32 %v3213_v3, %v11060_v44  ;;  %v4789_v26 = vpop.eup %4788  ;;  %v2927_v21 = vadd.f32 %v2925_v38, %v9354_v7  ;;  %v2928_v12 = vadd.f32 %v2926_v43, %v9356_v13  ;;  %v3215_v13 = vld [vmem:[#allocation3 + $0xa] sm:$0xff] }
 0x2cf   : > { %v3129_v55 = vsub.f32 %v3099_v49, %v3127_v57  ;;  %vm3156_vm2 = vweird.f32 %v9363_v11  ;;  %vm3157_vm7 = vweird.f32 %v9405_v27  ;;  %v3218_v46 = vmul.f32 %v9458_v63, %v9458_v63  ;;  %v3284_v11 = vld [vmem:[#allocation2 + $0x3] sm:$0xff] }
 0x2d0   : > { %v3130_v41 = vmul.f32 %v3128_v37, %v3128_v37  ;;  %v3219_v29 = vmul.f32 %v9465_v2, %v9465_v2  ;;  %v2997_v40 = vmul.f32 %v4787_v10, %v9397_v51  ;;  %v3155_v7 = vmul.f32 %v9405_v27, %v3154_v25  ;;  %vm9498_vm9 = vmor %vm3156_vm2, %vm3157_vm7  ;;  %v9529_v57 = vld [vmem:[#allocation2 + $0x4] sm:$0xff] }
 0x2d1   : > { %v3131_v23 = vmul.f32 %v3129_v55, %v3129_v55  ;;  %vm3167_vm6 = vweird.f32 %v9415_v39  ;;  %v9478_v38 = vpop.eup %4790  ;;  %v3164_v14 = vsub.f32 1.5, %v3163_v17  ;;  %vm3166_vm8 = vweird.f32 %v9371_v52  ;;  %v9534_v17 = vld [vmem:[#allocation2 + $0x5] sm:$0xff] }
 0x2d2   : > { %v3132_v8 = vadd.f32 0.1, %v3130_v41  ;;  %v9481_v15 = vadd.f32 0.81, %v3218_v46  ;;  %v9484_v47 = vsub.f32 %v3214_v20, %v11015_v33  ;;  %v3179_v51 = vmul.f32 %v9478_v38, %v9447_v36  ;;  %vm9549_vm10 = vmor %vm3166_vm8, %vm3167_vm6 }
 0x2d3   : > { %v3133_v16 = vadd.f32 0.1, %v3131_v23  ;;  %vm3184_vm4 = vweird.f32 %v9447_v36  ;;  %v9489_v34 = vadd.f32 0.81, %v3219_v29  ;;  %v9491_v9 = vpop.eup %4792  ;;  %v2998_v53 = vmul.f32 %v4789_v26, %v9402_v48  ;;  %v9536_v26 = vld [vmem:[#allocation2 + $0x6] sm:$0xff] }
 0x2d4   : > { %v2999_v31 = vadd.f32 %v2997_v40, %v2927_v21  ;;  %4794 = vrcp.f32 %v3132_v8  ;;  %v9503_v42 = vsub.f32 %v3215_v13, %v10911_v58  ;;  %v3159_v54 = vsel %vm9498_vm9, %v9405_v27, %v3155_v7  ;;  %3603 = vst [vmem:[#allocation2] sm:$0xff] %v9025_v56 }
 0x2d5   : > { %4796 = vrcp.f32 %v3133_v16  ;;  %v3180_v48 = vmul.f32 %v9478_v38, %v3179_v51  ;;  %v3189_v19 = vmul.f32 %v9491_v9, %v9449_v28  ;;  %vm3194_vm12 = vweird.f32 %v9449_v28 }
 0x2d6   : > { %v3000_v24 = vadd.f32 %v2998_v53, %v2928_v12  ;;  %v3165_v18 = vmul.f32 %v9415_v39, %v3164_v14  ;;  %4798 = vrsqrt.f32 %v9481_v15  ;;  %v3246_v32 = vmul.f32 %v9484_v47, %v9484_v47  ;;  %v3286_v53 = vld [vmem:[#allocation3 + $0x3] sm:$0xff] }
 0x2d7   : > { %v3181_v61 = vmul.f32 0.5, %v3180_v48  ;;  %v3190_v27 = vmul.f32 %v9491_v9, %v3189_v19  ;;  %4800 = vrsqrt.f32 %v9489_v34  ;;  %v3247_v3 = vmul.f32 %v9503_v42, %v9503_v42 }
 0x2d8   : > { %v3170_v60 = vmul.f32 %v3159_v54, %v9326_v50  ;;  %v9521_v22 = vadd.f32 0.81, %v3246_v32  ;;  %v9524_v43 = vsub.f32 %v3284_v11, %v11010_v45  ;;  %v9527_v49 = vsub.f32 %v3285_v4, %v11060_v44 }
 0x2d9   : > { %v3182_v25 = vsub.f32 1.5, %v3181_v61  ;;  %vm3185_vm15 = vweird.f32 %v9478_v38  ;;  %v3191_v10 = vmul.f32 0.5, %v3190_v27  ;;  %v9532_v37 = vadd.f32 0.81, %v3247_v3 }
 0x2da   : > { %v4795_v50 = vpop.eup %4794  ;;  %vm3195_vm5 = vweird.f32 %v9491_v9  ;;  %4802 = vrsqrt.f32 %v9521_v22  ;;  %v3290_v21 = vmul.f32 %v9524_v43, %v9524_v43  ;;  %v3291_v12 = vmul.f32 %v9527_v49, %v9527_v49  ;;  %vm3186_vm11 = vmor %vm3184_vm4, %vm3185_vm15 }
 0x2db   : > { %v4797_v55 = vpop.eup %4796  ;;  %v3136_v20 = vmul.f32 %v4795_v50, %v3130_v41  ;;  %v3183_v29 = vmul.f32 %v9478_v38, %v3182_v25  ;;  %v3192_v40 = vsub.f32 1.5, %v3191_v10  ;;  %4804 = vrsqrt.f32 %v9532_v37  ;;  %vm3196_vm1 = vmor %vm3194_vm12, %vm3195_vm5 }
 0x2dc   : > { %v9555_v7 = vpop.eup %4798  ;;  %v3137_v13 = vmul.f32 %v4797_v55, %v3131_v23  ;;  %v3169_v41 = vsel %vm9549_vm10, %v9415_v39, %v3165_v18  ;;  %v9564_v52 = vadd.f32 0.81, %v3290_v21  ;;  %v9566_v8 = vadd.f32 0.81, %v3291_v12 }
 0x2dd   : > { %v9568_v14 = vpop.eup %4800  ;;  %v9570_v16 = vadd.f32 %v3136_v20, %v2999_v31  ;;  %v3187_v51 = vsel %vm3186_vm11, %v9478_v38, %v3183_v29  ;;  %v3193_v23 = vmul.f32 %v9491_v9, %v3192_v40  ;;  %v3223_v39 = vmul.f32 %v9555_v7, %v9481_v15  ;;  %v3287_v31 = vld [vmem:[#allocation3 + $0xb] sm:$0xff] }
 0x2de   : > { %v9576_v0 = vadd.f32 %v3137_v13, %v3000_v24  ;;  %v3198_v36 = vmul.f32 %v3187_v51, %v9386_v6  ;;  %vm3228_vm13 = vweird.f32 %v9481_v15  ;;  %v3233_v38 = vmul.f32 %v9568_v14, %v9489_v34  ;;  %v3357_v15 = vld [vmem:[#allocation2 + $0xc] sm:$0xff] }
 0x2df   : > { %v3171_v54 = vmul.f32 %v3169_v41, %v9329_v1  ;;  %v3197_v48 = vsel %vm3196_vm1, %v9491_v9, %v3193_v23  ;;  %v3224_v19 = vmul.f32 %v9555_v7, %v3223_v39  ;;  %4806 = vrsqrt.f32 %v9564_v52 }
 0x2e0   : > { %v9590_v11 = vpop.eup %4802  ;;  %v3199_v28 = vmul.f32 %v3197_v48, %v9392_v62  ;;  %v3200_v4 = vsub.f32 %v3170_v60, %v3198_v36  ;;  %v3234_v6 = vmul.f32 %v9568_v14, %v3233_v38  ;;  %vm3238_vm14 = vweird.f32 %v9489_v34 }
 0x2e1   : > { %v9596_v24 = vsub.f32 %v3286_v53, %v11015_v33  ;;  %v9598_v18 = vpop.eup %4804  ;;  %v3225_v1 = vmul.f32 0.5, %v3224_v19  ;;  %v3251_v9 = vmul.f32 %v9590_v11, %v9521_v22  ;;  %4808 = vrsqrt.f32 %v9566_v8 }
 0x2e2   : > { %v9604_v32 = vsub.f32 %v3287_v31, %v10911_v58  ;;  %v3201_v62 = vsub.f32 %v3171_v54, %v3199_v28  ;;  %v3202_v61 = vmul.f32 %v3200_v4, %v3200_v4  ;;  %v3235_v27 = vmul.f32 0.5, %v3234_v6  ;;  %v9654_v28 = vld [vmem:[#allocation2 + $0xd] sm:$0xff] }
 0x2e3   : > { %v3261_v3 = vmul.f32 %v9598_v18, %v9532_v37  ;;  %v3226_v60 = vsub.f32 1.5, %v3225_v1  ;;  %vm3229_vm0 = vweird.f32 %v9555_v7  ;;  %vm3239_vm2 = vweird.f32 %v9568_v14  ;;  %v9656_v4 = vld [vmem:[#allocation2 + $0xe] sm:$0xff]  ;;  %v9724_v54 = vld [vmem:[#allocation3 + $0xe] sm:$0xff] }
 0x2e4   : > { %v3252_v25 = vmul.f32 %v9590_v11, %v3251_v9  ;;  %v9611_v10 = vmul.f32 %v3201_v62, %v3201_v62  ;;  %v3204_v50 = vadd.f32 0.1, %v3202_v61  ;;  %v3236_v21 = vsub.f32 1.5, %v3235_v27  ;;  %vm9629_vm7 = vmor %vm3228_vm13, %vm3229_vm0  ;;  %v3358_v62 = vld [vmem:[#allocation3 + $0x4] sm:$0xff]  ;;  %3604 = vst [vmem:[#allocation2 + $0x8] sm:$0xff] %v9021_v30 }
 0x2e5   : > { %v3262_v12 = vmul.f32 %v9598_v18, %v3261_v3  ;;  %v9614_v55 = vpop.eup %4806  ;;  %v3227_v20 = vmul.f32 %v9555_v7, %v3226_v60  ;;  %v3318_v29 = vmul.f32 %v9596_v24, %v9596_v24  ;;  %v3319_v40 = vmul.f32 %v9604_v32, %v9604_v32  ;;  %vm9645_vm9 = vmor %vm3238_vm14, %vm3239_vm2  ;;  %3605 = vst [vmem:[#allocation2 + $0x10] sm:$0x3f] %v9258_v59 }
 0x2e6   : > { %v3253_v46 = vmul.f32 0.5, %v3252_v25  ;;  %v3205_v13 = vadd.f32 0.1, %v9611_v10  ;;  %4810 = vrcp.f32 %v3204_v50  ;;  %v3237_v41 = vmul.f32 %v9568_v14, %v3236_v21  ;;  %v9686_v25 = vld [vmem:[#allocation3 + $0x5] sm:$0xff]  ;;  %v3629_v21 = vpop.permute.xlu1 %3628 }
 0x2e7   : > { %v3263_v51 = vmul.f32 0.5, %v3262_v12  ;;  %v9623_v23 = vpop.eup %4808  ;;  %vm3256_vm6 = vweird.f32 %v9521_v22  ;;  %vm3257_vm8 = vweird.f32 %v9590_v11  ;;  %v3295_v36 = vmul.f32 %v9614_v55, %v9564_v52  ;;  %v9688_v50 = vld [vmem:[#allocation3 + $0x6] sm:$0xff]  ;;  %v3627_v12 = vpop.permute.xlu0 %3626 }
 0x2e8   : > { %v3254_v53 = vsub.f32 1.5, %v3253_v46  ;;  %4812 = vrcp.f32 %v3205_v13  ;;  %v3231_v38 = vsel %vm9629_vm7, %v9555_v7, %v3227_v20  ;;  %vm3267_vm4 = vweird.f32 %v9598_v18  ;;  %vm9665_vm15 = vmor %vm3256_vm6, %vm3257_vm8  ;;  %3636 = vst [vmem:[#allocation3] sm:$0xff] %v9255_v35 }
 0x2e9   : > { %v3264_v31 = vsub.f32 1.5, %v3263_v51  ;;  %vm3266_vm12 = vweird.f32 %v9532_v37  ;;  %v3296_v19 = vmul.f32 %v9614_v55, %v3295_v36  ;;  %v3305_v7 = vmul.f32 %v9623_v23, %v9566_v8 }
 0x2ea   : > { %v3255_v48 = vmul.f32 %v9590_v11, %v3254_v53  ;;  %v3241_v34 = vsel %vm9645_vm9, %v9568_v14, %v3237_v41  ;;  %v9670_v1 = vadd.f32 0.81, %v3318_v29  ;;  %v9672_v9 = vadd.f32 0.81, %v3319_v40  ;;  %vm9681_vm5 = vmor %vm3266_vm12, %vm3267_vm4 }
 0x2eb   : > { %v3265_v37 = vmul.f32 %v9598_v18, %v3264_v31  ;;  %v3242_v27 = vmul.f32 %v3231_v38, %v9458_v63  ;;  %v3297_v3 = vmul.f32 0.5, %v3296_v19  ;;  %v3306_v60 = vmul.f32 %v9623_v23, %v3305_v7 }
 0x2ec   : > { %v3259_v14 = vsel %vm9665_vm15, %v9590_v11, %v3255_v48  ;;  %v4811_v63 = vpop.eup %4810  ;;  %4814 = vrsqrt.f32 %v9670_v1  ;;  %v9698_v46 = vsub.f32 %v9529_v57, %v11010_v45  ;;  %v3243_v59 = vmul.f32 %v3241_v34, %v9465_v2 }
 0x2ed   : > { %v3269_v11 = vsel %vm9681_vm5, %v9598_v18, %v3265_v37  ;;  %v3270_v20 = vmul.f32 %v3259_v14, %v9484_v47  ;;  %v3208_v29 = vmul.f32 %v4811_v63, %v3202_v61  ;;  %v3298_v13 = vsub.f32 1.5, %v3297_v3 }
 0x2ee   : > { %v3271_v40 = vmul.f32 %v3269_v11, %v9503_v42  ;;  %v4813_v41 = vpop.eup %4812  ;;  %v3307_v39 = vmul.f32 0.5, %v3306_v60  ;;  %4816 = vrsqrt.f32 %v9672_v9  ;;  %v9705_v47 = vsub.f32 %v3357_v15, %v11060_v44 }
 0x2ef   : > { %v3272_v51 = vsub.f32 %v3242_v27, %v3270_v20  ;;  %v3632_v18 = vsel %vm3596_vm3, %v3627_v12, %v3629_v21  ;;  %v3209_v57 = vmul.f32 %v4813_v41, %v9611_v10  ;;  %v9710_v53 = vadd.f32 %v3208_v29, %v9570_v16  ;;  %v3359_v16 = vld [vmem:[#allocation3 + $0xc] sm:$0xff] }
 0x2f0   : > { %v3273_v61 = vsub.f32 %v3243_v59, %v3271_v40  ;;  %vm3300_vm10 = vweird.f32 %v9564_v52  ;;  %v3362_v42 = vmul.f32 %v9698_v46, %v9698_v46  ;;  %v3363_v36 = vmul.f32 %v9705_v47, %v9705_v47  ;;  %v9722_v10 = vld [vmem:[#allocation3 + $0xd] sm:$0xff] }
 0x2f1   : > { %v3274_v2 = vmul.f32 %v3272_v51, %v3272_v51  ;;  %v9718_v38 = vadd.f32 %v3209_v57, %v9576_v0  ;;  %v3299_v15 = vmul.f32 %v9614_v55, %v3298_v13  ;;  %vm3301_vm3 = vweird.f32 %v9614_v55  ;;  %3637 = vst [vmem:[#allocation3 + $0x8] sm:$0xff] %v9262_v5 }
 0x2f2   : > { %v3275_v31 = vmul.f32 %v3273_v61, %v3273_v61  ;;  %v4815_v48 = vpop.eup %4814  ;;  %v3308_v7 = vsub.f32 1.5, %v3307_v39  ;;  %v9726_v34 = vadd.f32 0.81, %v3362_v42  ;;  %v9729_v6 = vsub.f32 %v3358_v62, %v11015_v33  ;;  %3638 = vst [vmem:[#allocation3 + $0x10] sm:$0x3f] %v3632_v18  ;;  %vm9740_vm1 = vmor %vm3300_vm10, %vm3301_vm3 }
 0x2f3   : > { %v3276_v19 = vadd.f32 0.1, %v3274_v2  ;;  %vm3310_vm11 = vweird.f32 %v9566_v8  ;;  %v3323_v37 = vmul.f32 %v4815_v48, %v9670_v1  ;;  %v9734_v27 = vadd.f32 0.81, %v3363_v36 }
 0x2f4   : > { %v3277_v0 = vadd.f32 0.1, %v3275_v31  ;;  %v4817_v14 = vpop.eup %4816  ;;  %vm3311_vm13 = vweird.f32 %v9623_v23  ;;  %vm3328_vm14 = vweird.f32 %v9670_v1  ;;  %v9747_v62 = vsub.f32 %v3359_v16, %v10911_v58 }
 0x2f5   : > { %4818 = vrcp.f32 %v3276_v19  ;;  %v3303_v3 = vsel %vm9740_vm1, %v9614_v55, %v3299_v15  ;;  %v3324_v60 = vmul.f32 %v4815_v48, %v3323_v37  ;;  %v3333_v63 = vmul.f32 %v4817_v14, %v9672_v9  ;;  %vm9783_vm6 = vmor %vm3310_vm11, %vm3311_vm13 }
 0x2f6   : > { %4820 = vrcp.f32 %v3277_v0  ;;  %v3309_v52 = vmul.f32 %v9623_v23, %v3308_v7  ;;  %vm3338_vm0 = vweird.f32 %v9672_v9  ;;  %v3390_v21 = vmul.f32 %v9729_v6, %v9729_v6 }
 0x2f7   : > { %4822 = vrsqrt.f32 %v9726_v34  ;;  %v3325_v12 = vmul.f32 0.5, %v3324_v60  ;;  %v3334_v11 = vmul.f32 %v4817_v14, %v3333_v63  ;;  %v3391_v20 = vmul.f32 %v9747_v62, %v9747_v62 }
 0x2f8   : > { %4824 = vrsqrt.f32 %v9734_v27  ;;  %v3314_v55 = vmul.f32 %v3303_v3, %v9524_v43  ;;  %v9762_v29 = vadd.f32 0.81, %v3390_v21  ;;  %v9766_v59 = vsub.f32 %v9534_v17, %v11010_v45 }
 0x2f9   : > { %v9770_v40 = vsub.f32 %v9654_v28, %v11060_v44  ;;  %v3326_v13 = vsub.f32 1.5, %v3325_v12  ;;  %vm3329_vm2 = vweird.f32 %v4815_v48  ;;  %v3335_v41 = vmul.f32 0.5, %v3334_v11 }
 0x2fa   : > { %v9772_v51 = vadd.f32 0.81, %v3391_v20  ;;  %vm3339_vm7 = vweird.f32 %v4817_v14  ;;  %4826 = vrsqrt.f32 %v9762_v29  ;;  %v3434_v43 = vmul.f32 %v9766_v59, %v9766_v59  ;;  %vm3330_vm8 = vmor %vm3328_vm14, %vm3329_vm2 }
 0x2fb   : > { %v4819_v39 = vpop.eup %4818  ;;  %v3435_v17 = vmul.f32 %v9770_v40, %v9770_v40  ;;  %v3327_v61 = vmul.f32 %v4815_v48, %v3326_v13  ;;  %v3336_v42 = vsub.f32 1.5, %v3335_v41  ;;  %v3313_v16 = vsel %vm9783_vm6, %v9623_v23, %v3309_v52  ;;  %vm3340_vm4 = vmor %vm3338_vm0, %vm3339_vm7 }
 0x2fc   : > { %v4821_v18 = vpop.eup %4820  ;;  %v3280_v57 = vmul.f32 %v4819_v39, %v3274_v2  ;;  %4828 = vrsqrt.f32 %v9772_v51  ;;  %v9796_v8 = vadd.f32 0.81, %v3434_v43  ;;  %vm3372_vm9 = vweird.f32 %v9726_v34 }
 0x2fd   : > { %v9788_v36 = vpop.eup %4822  ;;  %v3281_v15 = vmul.f32 %v4821_v18, %v3275_v31  ;;  %v9798_v2 = vadd.f32 0.81, %v3435_v17  ;;  %v3331_v0 = vsel %vm3330_vm8, %v4815_v48, %v3327_v61  ;;  %v3337_v37 = vmul.f32 %v4817_v14, %v3336_v42 }
 0x2fe   : > { %v9800_v19 = vpop.eup %4824  ;;  %v9803_v7 = vadd.f32 %v3280_v57, %v9710_v53  ;;  %v3367_v31 = vmul.f32 %v9788_v36, %v9726_v34  ;;  %v3342_v1 = vmul.f32 %v3331_v0, %v9596_v24  ;;  %v3315_v48 = vmul.f32 %v3313_v16, %v9527_v49 }
 0x2ff   : > { %v9808_v23 = vadd.f32 %v3281_v15, %v9718_v38  ;;  %v3377_v53 = vmul.f32 %v9800_v19, %v9734_v27  ;;  %v3341_v22 = vsel %vm3340_vm4, %v4817_v14, %v3337_v37  ;;  %4830 = vrsqrt.f32 %v9796_v8 }
 0x300   : > { %v3368_v3 = vmul.f32 %v9788_v36, %v3367_v31  ;;  %v4827_v38 = vpop.eup %4826  ;;  %v3343_v60 = vmul.f32 %v3341_v22, %v9604_v32  ;;  %v3344_v63 = vsub.f32 %v3314_v55, %v3342_v1  ;;  %vm3382_vm12 = vweird.f32 %v9734_v27 }
 0x301   : > { %v3378_v9 = vmul.f32 %v9800_v19, %v3377_v53  ;;  %v9825_v24 = vsub.f32 %v9686_v25, %v11015_v33  ;;  %v3395_v49 = vmul.f32 %v4827_v38, %v9762_v29  ;;  %4832 = vrsqrt.f32 %v9798_v2 }
 0x302   : > { %v4829_v52 = vpop.eup %4828  ;;  %v3369_v21 = vmul.f32 0.5, %v3368_v3  ;;  %v9831_v14 = vsub.f32 %v9722_v10, %v10911_v58  ;;  %v3345_v32 = vsub.f32 %v3315_v48, %v3343_v60  ;;  %v3346_v12 = vmul.f32 %v3344_v63, %v3344_v63 }
 0x303   : > { %v3379_v11 = vmul.f32 0.5, %v3378_v9  ;;  %v3405_v20 = vmul.f32 %v4829_v52, %v9772_v51  ;;  %vm3373_vm15 = vweird.f32 %v9788_v36  ;;  %vm3383_vm5 = vweird.f32 %v9800_v19 }
 0x304   : > { %v3370_v55 = vsub.f32 1.5, %v3369_v21  ;;  %v3396_v25 = vmul.f32 %v4827_v38, %v3395_v49  ;;  %v3347_v13 = vmul.f32 %v3345_v32, %v3345_v32  ;;  %v3348_v41 = vadd.f32 0.1, %v3346_v12  ;;  %vm9850_vm10 = vmor %vm3372_vm9, %vm3373_vm15 }
 0x305   : > { %v3380_v39 = vsub.f32 1.5, %v3379_v11  ;;  %v3406_v43 = vmul.f32 %v4829_v52, %v3405_v20  ;;  %v9836_v17 = vpop.eup %4830  ;;  %v3462_v57 = vmul.f32 %v9825_v24, %v9825_v24  ;;  %v3463_v28 = vmul.f32 %v9831_v14, %v9831_v14  ;;  %vm9864_vm13 = vmor %vm3382_vm12, %vm3383_vm5 }
 0x306   : > { %v3371_v10 = vmul.f32 %v9788_v36, %v3370_v55  ;;  %v3397_v18 = vmul.f32 0.5, %v3396_v25  ;;  %v3349_v61 = vadd.f32 0.1, %v3347_v13  ;;  %4834 = vrcp.f32 %v3348_v41 }
 0x307   : > { %v3381_v42 = vmul.f32 %v9800_v19, %v3380_v39  ;;  %v3407_v15 = vmul.f32 0.5, %v3406_v43  ;;  %v9844_v16 = vpop.eup %4832  ;;  %vm3400_vm3 = vweird.f32 %v9762_v29  ;;  %vm3401_vm11 = vweird.f32 %v4827_v38 }
 0x308   : > { %v3398_v37 = vsub.f32 1.5, %v3397_v18  ;;  %v3439_v31 = vmul.f32 %v9836_v17, %v9796_v8  ;;  %4836 = vrcp.f32 %v3349_v61  ;;  %v3375_v1 = vsel %vm9850_vm10, %v9788_v36, %v3371_v10  ;;  %vm3402_vm0 = vmor %vm3400_vm3, %vm3401_vm11 }
 0x309   : > { %v3408_v53 = vsub.f32 1.5, %v3407_v15  ;;  %vm3411_vm1 = vweird.f32 %v4829_v52  ;;  %vm3410_vm14 = vweird.f32 %v9772_v51  ;;  %v3449_v22 = vmul.f32 %v9844_v16, %v9798_v2 }
 0x30a   : > { %v3399_v29 = vmul.f32 %v4827_v38, %v3398_v37  ;;  %v3440_v48 = vmul.f32 %v9836_v17, %v3439_v31  ;;  %v3385_v36 = vsel %vm9864_vm13, %v9800_v19, %v3381_v42  ;;  %v9875_v60 = vadd.f32 0.81, %v3462_v57  ;;  %vm3412_vm2 = vmor %vm3410_vm14, %vm3411_vm1 }
 0x30b   : > { %v3409_v3 = vmul.f32 %v4829_v52, %v3408_v53  ;;  %v9877_v27 = vadd.f32 0.81, %v3463_v28  ;;  %v3386_v63 = vmul.f32 %v3375_v1, %v9698_v46  ;;  %v3450_v21 = vmul.f32 %v9844_v16, %v3449_v22 }
 0x30c   : > { %v3403_v9 = vsel %vm3402_vm0, %v4827_v38, %v3399_v29  ;;  %v3441_v51 = vmul.f32 0.5, %v3440_v48  ;;  %v4835_v49 = vpop.eup %4834  ;;  %4838 = vrsqrt.f32 %v9875_v60  ;;  %v9885_v19 = vsub.f32 %v9536_v26, %v11010_v45 }
 0x30d   : > { %v3413_v32 = vsel %vm3412_vm2, %v4829_v52, %v3409_v3  ;;  %v3414_v11 = vmul.f32 %v3403_v9, %v9729_v6  ;;  %v3352_v20 = vmul.f32 %v4835_v49, %v3346_v12  ;;  %v3387_v55 = vmul.f32 %v3385_v36, %v9705_v47 }
 0x30e   : > { %v3415_v46 = vmul.f32 %v3413_v32, %v9747_v62  ;;  %v3451_v38 = vmul.f32 0.5, %v3450_v21  ;;  %v4837_v25 = vpop.eup %4836  ;;  %v3442_v39 = vsub.f32 1.5, %v3441_v51  ;;  %4840 = vrsqrt.f32 %v9877_v27 }
 0x30f   : > { %v3416_v41 = vsub.f32 %v3386_v63, %v3414_v11  ;;  %v9892_v6 = vsub.f32 %v9656_v4, %v11060_v44  ;;  %v3353_v52 = vmul.f32 %v4837_v25, %v3347_v13  ;;  %v9895_v43 = vadd.f32 %v3352_v20, %v9803_v7 }
 0x310   : > { %v3417_v26 = vsub.f32 %v3387_v55, %v3415_v46  ;;  %vm3444_vm7 = vweird.f32 %v9796_v8  ;;  %v3506_v47 = vmul.f32 %v9885_v19, %v9885_v19  ;;  %vm3445_vm6 = vweird.f32 %v9836_v17 }
 0x311   : > { %v3418_v12 = vmul.f32 %v3416_v41, %v3416_v41  ;;  %v3507_v62 = vmul.f32 %v9892_v6, %v9892_v6  ;;  %v3355_v10 = vadd.f32 %v3353_v52, %v9808_v23  ;;  %v3452_v4 = vsub.f32 1.5, %v3451_v38  ;;  %vm9925_vm12 = vmor %vm3444_vm7, %vm3445_vm6 }
 0x312   : > { %v3419_v18 = vmul.f32 %v3417_v26, %v3417_v26  ;;  %v4839_v13 = vpop.eup %4838  ;;  %v3443_v7 = vmul.f32 %v9836_v17, %v3442_v39  ;;  %v9905_v28 = vadd.f32 0.81, %v3506_v47  ;;  %v9909_v61 = vsub.f32 %v9688_v50, %v11015_v33 }
 0x313   : > { %v3420_v57 = vadd.f32 0.1, %v3418_v12  ;;  %vm3454_vm8 = vweird.f32 %v9798_v2  ;;  %v3467_v15 = vmul.f32 %v4839_v13, %v9875_v60  ;;  %v9913_v23 = vadd.f32 0.81, %v3507_v62 }
 0x314   : > { %v3421_v42 = vadd.f32 0.1, %v3419_v18  ;;  %v4841_v0 = vpop.eup %4840  ;;  %vm3455_vm4 = vweird.f32 %v9844_v16  ;;  %vm3472_vm9 = vweird.f32 %v9875_v60  ;;  %v9919_v37 = vsub.f32 %v9724_v54, %v10911_v58 }
 0x315   : > { %4842 = vrcp.f32 %v3420_v57  ;;  %v3453_v31 = vmul.f32 %v9844_v16, %v3452_v4  ;;  %v3468_v1 = vmul.f32 %v4839_v13, %v3467_v15  ;;  %v3477_v53 = vmul.f32 %v4841_v0, %v9877_v27  ;;  %vm9945_vm5 = vmor %vm3454_vm8, %vm3455_vm4 }
 0x316   : > { %4844 = vrcp.f32 %v3421_v42  ;;  %v3447_v34 = vsel %vm9925_vm12, %v9836_v17, %v3443_v7  ;;  %vm3482_vm15 = vweird.f32 %v9877_v27  ;;  %v3534_v54 = vmul.f32 %v9909_v61, %v9909_v61 }
 0x317   : > { %4846 = vrsqrt.f32 %v9905_v28  ;;  %v3469_v8 = vmul.f32 0.5, %v3468_v1  ;;  %v3478_v29 = vmul.f32 %v4841_v0, %v3477_v53  ;;  %v3535_v48 = vmul.f32 %v9919_v37, %v9919_v37 }
 0x318   : > { %4848 = vrsqrt.f32 %v9913_v23  ;;  %vm3473_vm10 = vweird.f32 %v4839_v13  ;;  %v9949_v22 = vadd.f32 0.81, %v3534_v54  ;;  %v9953_v36 = vsub.f32 %v9025_v56, %v11010_v45 }
 0x319   : > { %v9957_v3 = vsub.f32 %v9021_v30, %v11060_v44  ;;  %v3457_v63 = vsel %vm9945_vm5, %v9844_v16, %v3453_v31  ;;  %v3470_v2 = vsub.f32 1.5, %v3469_v8  ;;  %v3479_v9 = vmul.f32 0.5, %v3478_v29  ;;  %vm3474_vm11 = vmor %vm3472_vm9, %vm3473_vm10 }
 0x31a   : > { %v9962_v51 = vadd.f32 0.81, %v3535_v48  ;;  %vm3483_vm3 = vweird.f32 %v4841_v0  ;;  %4850 = vrsqrt.f32 %v9949_v22  ;;  %v3645_v56 = vmul.f32 %v9953_v36, %v9953_v36 }
 0x31b   : > { %v4843_v21 = vpop.eup %4842  ;;  %v3646_v49 = vmul.f32 %v9957_v3, %v9957_v3  ;;  %v3471_v11 = vmul.f32 %v4839_v13, %v3470_v2  ;;  %v3480_v20 = vsub.f32 1.5, %v3479_v9  ;;  %v3458_v46 = vmul.f32 %v3447_v34, %v9766_v59  ;;  %vm3484_vm1 = vmor %vm3482_vm15, %vm3483_vm3 }
 0x31c   : > { %v4845_v30 = vpop.eup %4844  ;;  %v3424_v32 = vmul.f32 %v4843_v21, %v3418_v12  ;;  %4852 = vrsqrt.f32 %v9962_v51  ;;  %v9976_v38 = vadd.f32 0.81, %v3645_v56  ;;  %v3459_v59 = vmul.f32 %v3457_v63, %v9770_v40 }
 0x31d   : > { %v9970_v16 = vpop.eup %4846  ;;  %v3425_v55 = vmul.f32 %v4845_v30, %v3419_v18  ;;  %v9978_v25 = vadd.f32 0.81, %v3646_v49  ;;  %v3475_v52 = vsel %vm3474_vm11, %v4839_v13, %v3471_v11  ;;  %v3481_v26 = vmul.f32 %v4841_v0, %v3480_v20 }
 0x31e   : > { %v9980_v41 = vpop.eup %4848  ;;  %v9983_v39 = vadd.f32 %v3424_v32, %v9895_v43  ;;  %v3511_v12 = vmul.f32 %v9970_v16, %v9905_v28  ;;  %v3486_v60 = vmul.f32 %v3475_v52, %v9825_v24  ;;  %vm3516_vm13 = vweird.f32 %v9905_v28 }
 0x31f   : > { %v9987_v47 = vadd.f32 %v3425_v55, %v3355_v10  ;;  %v3521_v43 = vmul.f32 %v9980_v41, %v9913_v23  ;;  %v3485_v62 = vsel %vm3484_vm1, %v4841_v0, %v3481_v26  ;;  %vm3526_vm14 = vweird.f32 %v9913_v23 }
 0x320   : > { %v3512_v18 = vmul.f32 %v9970_v16, %v3511_v12  ;;  %4854 = vrsqrt.f32 %v9976_v38  ;;  %v4851_v10 = vpop.eup %4850  ;;  %v3487_v40 = vmul.f32 %v3485_v62, %v9831_v14  ;;  %v3488_v4 = vsub.f32 %v3458_v46, %v3486_v60 }
 0x321   : > { %v3522_v27 = vmul.f32 %v9980_v41, %v3521_v43  ;;  %v10004_v24 = vsub.f32 %v9255_v35, %v11015_v33  ;;  %v3539_v7 = vmul.f32 %v4851_v10, %v9949_v22  ;;  %4856 = vrsqrt.f32 %v9978_v25 }
 0x322   : > { %v4853_v13 = vpop.eup %4852  ;;  %v3513_v57 = vmul.f32 0.5, %v3512_v18  ;;  %v10010_v42 = vsub.f32 %v9262_v5, %v10911_v58  ;;  %v3489_v15 = vsub.f32 %v3459_v59, %v3487_v40  ;;  %v3490_v0 = vmul.f32 %v3488_v4, %v3488_v4  ;;  %v3711_v40 = vld [vmem:[#allocation2 + $0x1] sm:$0xff] }
 0x323   : > { %v3523_v14 = vmul.f32 0.5, %v3522_v27  ;;  %v3549_v50 = vmul.f32 %v4853_v13, %v9962_v51  ;;  %vm3517_vm0 = vweird.f32 %v9970_v16  ;;  %vm3527_vm2 = vweird.f32 %v9980_v41 }
 0x324   : > { %v3514_v31 = vsub.f32 1.5, %v3513_v57  ;;  %v3540_v35 = vmul.f32 %v4851_v10, %v3539_v7  ;;  %v3491_v1 = vmul.f32 %v3489_v15, %v3489_v15  ;;  %v3492_v53 = vadd.f32 0.1, %v3490_v0  ;;  %vm10029_vm7 = vmor %vm3516_vm13, %vm3517_vm0 }
 0x325   : > { %v3524_v34 = vsub.f32 1.5, %v3523_v14  ;;  %v3550_v54 = vmul.f32 %v4853_v13, %v3549_v50  ;;  %v3673_v48 = vmul.f32 %v10004_v24, %v10004_v24  ;;  %v3674_v17 = vmul.f32 %v10010_v42, %v10010_v42  ;;  %vm10040_vm4 = vmor %vm3526_vm14, %vm3527_vm2  ;;  %v3712_v14 = vld [vmem:[#allocation2 + $0x9] sm:$0xff]  ;;  %v3714_v50 = vld [vmem:[#allocation3 + $0x9] sm:$0xff] }
 0x326   : > { %v10015_v8 = vpop.eup %4854  ;;  %v3515_v5 = vmul.f32 %v9970_v16, %v3514_v31  ;;  %v3541_v29 = vmul.f32 0.5, %v3540_v35  ;;  %v3493_v63 = vadd.f32 0.1, %v3491_v1  ;;  %4858 = vrcp.f32 %v3492_v53 }
 0x327   : > { %v3525_v2 = vmul.f32 %v9980_v41, %v3524_v34  ;;  %v3551_v9 = vmul.f32 0.5, %v3550_v54  ;;  %v10023_v21 = vpop.eup %4856  ;;  %vm3544_vm6 = vweird.f32 %v9949_v22  ;;  %vm3545_vm8 = vweird.f32 %v4851_v10 }
 0x328   : > { %v3542_v49 = vsub.f32 1.5, %v3541_v29  ;;  %v3650_v30 = vmul.f32 %v10015_v8, %v9976_v38  ;;  %4860 = vrcp.f32 %v3493_v63  ;;  %vm3554_vm9 = vweird.f32 %v9962_v51  ;;  %vm3546_vm15 = vmor %vm3544_vm6, %vm3545_vm8 }
 0x329   : > { %v3552_v28 = vsub.f32 1.5, %v3551_v9  ;;  %vm3555_vm12 = vweird.f32 %v4853_v13  ;;  %v3519_v22 = vsel %vm10029_vm7, %v9970_v16, %v3515_v5  ;;  %v3529_v11 = vsel %vm10040_vm4, %v9980_v41, %v3525_v2 }
 0x32a   : > { %v3543_v20 = vmul.f32 %v4851_v10, %v3542_v49  ;;  %v3660_v23 = vmul.f32 %v10023_v21, %v9978_v25  ;;  %v3651_v46 = vmul.f32 %v10015_v8, %v3650_v30  ;;  %v10054_v52 = vadd.f32 0.81, %v3673_v48  ;;  %vm3556_vm5 = vmor %vm3554_vm9, %vm3555_vm12 }
 0x32b   : > { %v3553_v55 = vmul.f32 %v4853_v13, %v3552_v28  ;;  %v10056_v51 = vadd.f32 0.81, %v3674_v17  ;;  %v3530_v16 = vmul.f32 %v3519_v22, %v9885_v19  ;;  %v3531_v43 = vmul.f32 %v3529_v11, %v9892_v6 }
 0x32c   : > { %v3547_v26 = vsel %vm3546_vm15, %v4851_v10, %v3543_v20  ;;  %v4859_v12 = vpop.eup %4858  ;;  %4862 = vrsqrt.f32 %v10054_v52  ;;  %v3661_v18 = vmul.f32 %v10023_v21, %v3660_v23  ;;  %v3652_v10 = vmul.f32 0.5, %v3651_v46 }
 0x32d   : > { %v3557_v59 = vsel %vm3556_vm5, %v4853_v13, %v3553_v55  ;;  %v3558_v41 = vmul.f32 %v3547_v26, %v9909_v61  ;;  %v3496_v60 = vmul.f32 %v4859_v12, %v3490_v0  ;;  %4864 = vrsqrt.f32 %v10056_v51  ;;  %v3713_v61 = vld [vmem:[#allocation3 + $0x1] sm:$0xff] }
 0x32e   : > { %v3559_v62 = vmul.f32 %v3557_v59, %v9919_v37  ;;  %v4861_v4 = vpop.eup %4860  ;;  %v10067_v15 = vsub.f32 %v3711_v40, %v11010_v45  ;;  %v3662_v0 = vmul.f32 0.5, %v3661_v18  ;;  %v3653_v53 = vsub.f32 1.5, %v3652_v10  ;;  %v3784_v10 = vld [vmem:[#allocation2 + $0xa] sm:$0xff] }
 0x32f   : > { %v3560_v27 = vsub.f32 %v3530_v16, %v3558_v41  ;;  %v3497_v57 = vmul.f32 %v4861_v4, %v3491_v1  ;;  %v3498_v19 = vadd.f32 %v3496_v60, %v9983_v39  ;;  %v10071_v34 = vsub.f32 %v3713_v61, %v11015_v33 }
 0x330   : > { %v3561_v13 = vsub.f32 %v3531_v43, %v3559_v62  ;;  %v10075_v5 = vsub.f32 %v3712_v14, %v11060_v44  ;;  %v10080_v29 = vsub.f32 %v3714_v50, %v10911_v58  ;;  %v3663_v48 = vsub.f32 1.5, %v3662_v0  ;;  %v3783_v43 = vld [vmem:[#allocation2 + $0x2] sm:$0xff] }
 0x331   : > { %v3562_v7 = vmul.f32 %v3560_v27, %v3560_v27  ;;  %v3499_v6 = vadd.f32 %v3497_v57, %v9987_v47  ;;  %v3717_v47 = vmul.f32 %v10067_v15, %v10067_v15  ;;  %v3654_v2 = vmul.f32 %v10015_v8, %v3653_v53 }
 0x332   : > { %v3563_v37 = vmul.f32 %v3561_v13, %v3561_v13  ;;  %v4863_v31 = vpop.eup %4862  ;;  %vm3655_vm10 = vweird.f32 %v9976_v38  ;;  %vm3656_vm3 = vweird.f32 %v10015_v8  ;;  %v3745_v9 = vmul.f32 %v10071_v34, %v10071_v34  ;;  %v3785_v13 = vld [vmem:[#allocation3 + $0x2] sm:$0xff] }
 0x333   : > { %v3564_v35 = vadd.f32 0.1, %v3562_v7  ;;  %v3678_v39 = vmul.f32 %v4863_v31, %v10054_v52  ;;  %v4865_v54 = vpop.eup %4864  ;;  %vm3665_vm11 = vweird.f32 %v9978_v25  ;;  %v3746_v30 = vmul.f32 %v10080_v29, %v10080_v29  ;;  %vm10098_vm13 = vmor %vm3655_vm10, %vm3656_vm3 }
 0x334   : > { %v3565_v1 = vadd.f32 0.1, %v3563_v37  ;;  %v3688_v63 = vmul.f32 %v4865_v54, %v10056_v51  ;;  %vm3666_vm1 = vweird.f32 %v10023_v21  ;;  %v3718_v32 = vmul.f32 %v10075_v5, %v10075_v5 }
 0x335   : > { %4866 = vrcp.f32 %v3564_v35  ;;  %v3679_v17 = vmul.f32 %v4863_v31, %v3678_v39  ;;  %v10094_v28 = vadd.f32 0.81, %v3717_v47  ;;  %v10096_v38 = vadd.f32 0.81, %v3745_v9  ;;  %vm10113_vm7 = vmor %vm3665_vm11, %vm3666_vm1 }
 0x336   : > { %4868 = vrcp.f32 %v3565_v1  ;;  %v3689_v49 = vmul.f32 %v4865_v54, %v3688_v63  ;;  %v3664_v11 = vmul.f32 %v10023_v21, %v3663_v48  ;;  %vm3684_vm14 = vweird.f32 %v4863_v31 }
 0x337   : > { %v3680_v56 = vmul.f32 0.5, %v3679_v17  ;;  %v3658_v46 = vsel %vm10098_vm13, %v10015_v8, %v3654_v2  ;;  %vm3683_vm0 = vweird.f32 %v10054_v52  ;;  %vm3694_vm2 = vweird.f32 %v4865_v54 }
 0x338   : > { %v3690_v23 = vmul.f32 0.5, %v3689_v49  ;;  %v10107_v26 = vadd.f32 0.81, %v3746_v30  ;;  %4870 = vrsqrt.f32 %v10096_v38  ;;  %vm3685_vm6 = vmor %vm3683_vm0, %vm3684_vm14  ;;  %vm3693_vm8 = vweird.f32 %v10056_v51 }
 0x339   : > { %v3681_v20 = vsub.f32 1.5, %v3680_v56  ;;  %v10119_v52 = vadd.f32 0.81, %v3718_v32  ;;  %4872 = vrsqrt.f32 %v10094_v28  ;;  %v3668_v25 = vsel %vm10113_vm7, %v10023_v21, %v3664_v11  ;;  %vm3695_vm4 = vmor %vm3693_vm8, %vm3694_vm2 }
 0x33a   : > { %v3691_v60 = vsub.f32 1.5, %v3690_v23  ;;  %v3669_v27 = vmul.f32 %v3658_v46, %v9953_v36  ;;  %4874 = vrsqrt.f32 %v10107_v26  ;;  %v10132_v61 = vsub.f32 %v3783_v43, %v11010_v45 }
 0x33b   : > { %v4867_v55 = vpop.eup %4866  ;;  %v3682_v41 = vmul.f32 %v4863_v31, %v3681_v20  ;;  %v3670_v21 = vmul.f32 %v3668_v25, %v9957_v3  ;;  %4876 = vrsqrt.f32 %v10119_v52  ;;  %v10145_v50 = vsub.f32 %v3785_v13, %v11015_v33  ;;  %v3855_v20 = vld [vmem:[#allocation2 + $0x3] sm:$0xff] }
 0x33c   : > { %v4869_v12 = vpop.eup %4868  ;;  %v3568_v16 = vmul.f32 %v4867_v55, %v3562_v7  ;;  %v3692_v40 = vmul.f32 %v4865_v54, %v3691_v60  ;;  %v3789_v3 = vmul.f32 %v10132_v61, %v10132_v61  ;;  %vm3727_vm9 = vweird.f32 %v10094_v28 }
 0x33d   : > { %v3569_v8 = vmul.f32 %v4869_v12, %v3563_v37  ;;  %v3686_v18 = vsel %vm3685_vm6, %v4863_v31, %v3682_v41  ;;  %v3817_v17 = vmul.f32 %v10145_v50, %v10145_v50  ;;  %v3856_v12 = vld [vmem:[#allocation2 + $0xb] sm:$0xff]  ;;  %vm3755_vm5 = vweird.f32 %v10096_v38 }
 0x33e   : > { %v3570_v62 = vadd.f32 %v3568_v16, %v3498_v19  ;;  %v3697_v51 = vmul.f32 %v3686_v18, %v10004_v24  ;;  %v3696_v57 = vsel %vm3695_vm4, %v4865_v54, %v3692_v40  ;;  %v3786_v19 = vld [vmem:[#allocation3 + $0xa] sm:$0xff]  ;;  %v10137_v36 = vpop.eup %4870  ;;  %v10140_v24 = vsub.f32 %v3784_v10, %v11060_v44 }
 0x33f   : > { %v10125_v4 = vadd.f32 %v3569_v8, %v3499_v6  ;;  %v3698_v7 = vmul.f32 %v3696_v57, %v10010_v42  ;;  %v10142_v37 = vpop.eup %4872  ;;  %v10148_v31 = vsub.f32 %v3786_v19, %v10911_v58  ;;  %v3750_v53 = vmul.f32 %v10137_v36, %v10096_v38  ;;  %v3857_v18 = vld [vmem:[#allocation3 + $0x3] sm:$0xff]  ;;  %v3858_v19 = vld [vmem:[#allocation3 + $0xb] sm:$0xff] }
 0x340   : > { %v3699_v6 = vsub.f32 %v3669_v27, %v3697_v51  ;;  %v10154_v1 = vpop.eup %4874  ;;  %v3722_v39 = vmul.f32 %v10142_v37, %v10094_v28  ;;  %v3790_v54 = vmul.f32 %v10140_v24, %v10140_v24  ;;  %v10166_v2 = vadd.f32 0.81, %v3789_v3  ;;  %v3927_v28 = vld [vmem:[#allocation2 + $0x4] sm:$0xff] }
 0x341   : > { %v3700_v0 = vsub.f32 %v3670_v21, %v3698_v7  ;;  %v10160_v47 = vpop.eup %4876  ;;  %v3818_v63 = vmul.f32 %v10148_v31, %v10148_v31  ;;  %v3751_v9 = vmul.f32 %v10137_v36, %v3750_v53  ;;  %v3760_v56 = vmul.f32 %v10154_v1, %v10107_v26 }
 0x342   : > { %v3701_v14 = vmul.f32 %v3699_v6, %v3699_v6  ;;  %v3732_v49 = vmul.f32 %v10160_v47, %v10119_v52  ;;  %v10173_v30 = vadd.f32 0.81, %v3790_v54  ;;  %v3723_v32 = vmul.f32 %v10142_v37, %v3722_v39 }
 0x343   : > { %v3702_v42 = vmul.f32 %v3700_v0, %v3700_v0  ;;  %v10176_v22 = vadd.f32 0.81, %v3817_v17  ;;  %v10178_v11 = vadd.f32 0.81, %v3818_v63  ;;  %v3752_v55 = vmul.f32 0.5, %v3751_v9 }
 0x344   : > { %v3703_v35 = vadd.f32 0.1, %v3701_v14  ;;  %v3761_v46 = vmul.f32 %v10154_v1, %v3760_v56  ;;  %v3733_v59 = vmul.f32 %v10160_v47, %v3732_v49  ;;  %v3724_v60 = vmul.f32 0.5, %v3723_v32 }
 0x345   : > { %v3704_v48 = vadd.f32 0.1, %v3702_v42  ;;  %v10187_v8 = vsub.f32 %v3855_v20, %v11010_v45  ;;  %v10192_v40 = vsub.f32 %v3856_v12, %v11060_v44  ;;  %v3753_v27 = vsub.f32 1.5, %v3752_v55 }
 0x346   : > { %4878 = vrcp.f32 %v3703_v35  ;;  %v3762_v51 = vmul.f32 0.5, %v3761_v46  ;;  %v3734_v13 = vmul.f32 0.5, %v3733_v59  ;;  %v3725_v7 = vsub.f32 1.5, %v3724_v60 }
 0x347   : > { %4880 = vrcp.f32 %v3704_v48  ;;  %v10204_v6 = vsub.f32 %v3857_v18, %v11015_v33  ;;  %vm3756_vm12 = vweird.f32 %v10137_v36  ;;  %v3754_v3 = vmul.f32 %v10137_v36, %v3753_v27 }
 0x348   : > { %4882 = vrsqrt.f32 %v10166_v2  ;;  %v10218_v53 = vsub.f32 %v3858_v19, %v10911_v58  ;;  %vm3728_vm15 = vweird.f32 %v10142_v37  ;;  %v3735_v39 = vsub.f32 1.5, %v3734_v13  ;;  %vm10232_vm3 = vmor %vm3755_vm5, %vm3756_vm12 }
 0x349   : > { %4884 = vrsqrt.f32 %v10176_v22  ;;  %vm3766_vm10 = vweird.f32 %v10154_v1  ;;  %v3726_v54 = vmul.f32 %v10142_v37, %v3725_v7  ;;  %v3889_v63 = vmul.f32 %v10204_v6, %v10204_v6  ;;  %vm10255_vm11 = vmor %vm3727_vm9, %vm3728_vm15 }
 0x34a   : > { %4886 = vrsqrt.f32 %v10173_v30  ;;  %v3890_v32 = vmul.f32 %v10218_v53, %v10218_v53  ;;  %v3758_v20 = vsel %vm10232_vm3, %v10137_v36, %v3754_v3  ;;  %vm3738_vm1 = vweird.f32 %v10160_v47 }
 0x34b   : > { %4888 = vrsqrt.f32 %v10178_v11  ;;  %v10249_v46 = vadd.f32 0.81, %v3889_v63  ;;  %vm3765_vm13 = vweird.f32 %v10107_v26  ;;  %v3730_v36 = vsel %vm10255_vm11, %v10142_v37, %v3726_v54  ;;  %v3928_v37 = vld [vmem:[#allocation2 + $0xc] sm:$0xff] }
 0x34c   : > { %v4879_v23 = vpop.eup %4878  ;;  %vm3737_vm14 = vweird.f32 %v10119_v52  ;;  %vm10272_vm0 = vmor %vm3765_vm13, %vm3766_vm10  ;;  %v3769_v26 = vmul.f32 %v3758_v20, %v10071_v34  ;;  %v3741_v34 = vmul.f32 %v3730_v36, %v10067_v15  ;;  %v10292_v13 = vsub.f32 %v3927_v28, %v11010_v45 }
 0x34d   : > { %v3707_v16 = vmul.f32 %v4879_v23, %v3701_v14  ;;  %v4881_v41 = vpop.eup %4880  ;;  %vm10286_vm2 = vmor %vm3737_vm14, %vm3738_vm1  ;;  %v10299_v7 = vsub.f32 %v3928_v37, %v11060_v44  ;;  %vm3799_vm7 = vweird.f32 %v10166_v2  ;;  %vm3809_vm8 = vweird.f32 %v10173_v30 }
 0x34e   : > { %v3708_v43 = vmul.f32 %v4881_v41, %v3702_v42  ;;  %v10194_v10 = vpop.eup %4882  ;;  %v3763_v42 = vsub.f32 1.5, %v3762_v51  ;;  %v10267_v41 = vadd.f32 0.81, %v3890_v32  ;;  %v3933_v63 = vmul.f32 %v10292_v13, %v10292_v13 }
 0x34f   : > { %v10189_v25 = vadd.f32 %v3707_v16, %v3570_v62  ;;  %v10199_v21 = vpop.eup %4884  ;;  %v3861_v62 = vmul.f32 %v10187_v8, %v10187_v8  ;;  %v3794_v38 = vmul.f32 %v10194_v10, %v10166_v2  ;;  %v3736_v16 = vmul.f32 %v10160_v47, %v3735_v39 }
 0x350   : > { %v10197_v57 = vadd.f32 %v3708_v43, %v10125_v4  ;;  %v10206_v0 = vpop.eup %4886  ;;  %v3862_v4 = vmul.f32 %v10192_v40, %v10192_v40  ;;  %v3822_v35 = vmul.f32 %v10199_v21, %v10176_v22  ;;  %v3764_v23 = vmul.f32 %v10154_v1, %v3763_v42  ;;  %v3929_v42 = vld [vmem:[#allocation3 + $0x4] sm:$0xff] }
 0x351   : > { %v10212_v14 = vpop.eup %4888  ;;  %v10226_v17 = vadd.f32 0.81, %v3861_v62  ;;  %v3804_v56 = vmul.f32 %v10206_v0, %v10173_v30  ;;  %v3795_v43 = vmul.f32 %v10194_v10, %v3794_v38  ;;  %vm3800_vm6 = vweird.f32 %v10194_v10 }
 0x352   : > { %v3832_v48 = vmul.f32 %v10212_v14, %v10178_v11  ;;  %v10240_v49 = vadd.f32 0.81, %v3862_v4  ;;  %v3823_v55 = vmul.f32 %v10199_v21, %v3822_v35  ;;  %v3768_v18 = vsel %vm10272_vm0, %v10154_v1, %v3764_v23  ;;  %v3930_v35 = vld [vmem:[#allocation3 + $0xc] sm:$0xff]  ;;  %vm10377_vm11 = vmor %vm3799_vm7, %vm3800_vm6 }
 0x353   : > { %4890 = vrsqrt.f32 %v10226_v17  ;;  %v3805_v27 = vmul.f32 %v10206_v0, %v3804_v56  ;;  %v3740_v1 = vsel %vm10286_vm2, %v10160_v47, %v3736_v16  ;;  %v3770_v62 = vmul.f32 %v3768_v18, %v10080_v29 }
 0x354   : > { %v3833_v59 = vmul.f32 %v10212_v14, %v3832_v48  ;;  %4892 = vrsqrt.f32 %v10240_v49  ;;  %v3824_v52 = vmul.f32 0.5, %v3823_v55  ;;  %v3771_v4 = vsub.f32 %v3741_v34, %v3769_v26 }
 0x355   : > { %4894 = vrsqrt.f32 %v10249_v46  ;;  %v3796_v3 = vmul.f32 0.5, %v3795_v43  ;;  %v3806_v39 = vmul.f32 0.5, %v3805_v27  ;;  %v3742_v47 = vmul.f32 %v3740_v1, %v10075_v5 }
 0x356   : > { %v3834_v19 = vmul.f32 0.5, %v3833_v59  ;;  %4896 = vrsqrt.f32 %v10267_v41  ;;  %v3825_v54 = vsub.f32 1.5, %v3824_v52  ;;  %v3934_v38 = vmul.f32 %v10299_v7, %v10299_v7 }
 0x357   : > { %v10317_v56 = vsub.f32 %v3929_v42, %v11015_v33  ;;  %v10320_v5 = vsub.f32 %v3930_v35, %v10911_v58  ;;  %v3772_v32 = vsub.f32 %v3742_v47, %v3770_v62  ;;  %v10322_v20 = vmul.f32 %v3771_v4, %v3771_v4  ;;  %v3999_v35 = vld [vmem:[#allocation2 + $0x5] sm:$0xff] }
 0x358   : > { %v3835_v9 = vsub.f32 1.5, %v3834_v19  ;;  %v3797_v23 = vsub.f32 1.5, %v3796_v3  ;;  %vm3827_vm4 = vweird.f32 %v10176_v22  ;;  %v3807_v12 = vsub.f32 1.5, %v3806_v39 }
 0x359   : > { %v10302_v15 = vpop.eup %4890  ;;  %v3826_v16 = vmul.f32 %v10199_v21, %v3825_v54  ;;  %vm3828_vm9 = vweird.f32 %v10199_v21  ;;  %vm3838_vm12 = vweird.f32 %v10212_v14  ;;  %v10336_v60 = vadd.f32 0.81, %v3933_v63 }
 0x35a   : > { %v10304_v48 = vpop.eup %4892  ;;  %v3866_v36 = vmul.f32 %v10302_v15, %v10226_v17  ;;  %v3836_v26 = vmul.f32 %v10212_v14, %v3835_v9  ;;  %v10339_v43 = vadd.f32 0.81, %v3934_v38  ;;  %v3961_v37 = vmul.f32 %v10317_v56, %v10317_v56  ;;  %vm10351_vm15 = vmor %vm3827_vm4, %vm3828_vm9  ;;  %v4000_v9 = vld [vmem:[#allocation2 + $0xd] sm:$0xff] }
 0x35b   : > { %v10311_v29 = vpop.eup %4894  ;;  %v3876_v59 = vmul.f32 %v10304_v48, %v10240_v49  ;;  %v3962_v18 = vmul.f32 %v10320_v5, %v10320_v5  ;;  %v10345_v27 = vmul.f32 %v3772_v32, %v3772_v32  ;;  %v3775_v52 = vadd.f32 0.1, %v10322_v20 }
 0x35c   : > { %v10325_v55 = vpop.eup %4896  ;;  %v3894_v28 = vmul.f32 %v10311_v29, %v10249_v46  ;;  %v3798_v51 = vmul.f32 %v10194_v10, %v3797_v23  ;;  %v3808_v19 = vmul.f32 %v10206_v0, %v3807_v12  ;;  %vm3810_vm5 = vweird.f32 %v10206_v0 }
 0x35d   : > { %v3904_v1 = vmul.f32 %v10325_v55, %v10267_v41  ;;  %v3830_v62 = vsel %vm10351_vm15, %v10199_v21, %v3826_v16  ;;  %vm3837_vm10 = vweird.f32 %v10178_v11  ;;  %v3867_v4 = vmul.f32 %v10302_v15, %v3866_v36  ;;  %vm10397_vm1 = vmor %vm3809_vm8, %vm3810_vm5 }
 0x35e   : > { %vm10365_vm3 = vmor %vm3837_vm10, %vm3838_vm12  ;;  %v3877_v3 = vmul.f32 %v10304_v48, %v3876_v59  ;;  %v3895_v42 = vmul.f32 %v10311_v29, %v3894_v28  ;;  %4898 = vrsqrt.f32 %v10336_v60  ;;  %v10385_v39 = vadd.f32 0.81, %v3961_v37  ;;  %v4001_v28 = vld [vmem:[#allocation3 + $0x5] sm:$0xff] }
 0x35f   : > { %v3840_v21 = vsel %vm10365_vm3, %v10212_v14, %v3836_v26  ;;  %4900 = vrsqrt.f32 %v10339_v43  ;;  %v10387_v54 = vadd.f32 0.81, %v3962_v18  ;;  %v3776_v47 = vadd.f32 0.1, %v10345_v27 }
 0x360   : > { %4902 = vrcp.f32 %v3775_v52  ;;  %v3802_v2 = vsel %vm10377_vm11, %v10194_v10, %v3798_v51  ;;  %v3905_v14 = vmul.f32 %v10325_v55, %v3904_v1  ;;  %v3812_v38 = vsel %vm10397_vm1, %v10206_v0, %v3808_v19  ;;  %v4002_v19 = vld [vmem:[#allocation3 + $0xd] sm:$0xff] }
 0x361   : > { %v3841_v32 = vmul.f32 %v3830_v62, %v10145_v50  ;;  %4904 = vrsqrt.f32 %v10385_v39  ;;  %v10408_v10 = vsub.f32 %v3999_v35, %v11010_v45  ;;  %v3842_v30 = vmul.f32 %v3840_v21, %v10148_v31 }
 0x362   : > { %v3868_v23 = vmul.f32 0.5, %v3867_v4  ;;  %v3878_v12 = vmul.f32 0.5, %v3877_v3  ;;  %v3896_v16 = vmul.f32 0.5, %v3895_v42  ;;  %v3813_v36 = vmul.f32 %v3802_v2, %v10132_v61 }
 0x363   : > { %vm3871_vm13 = vweird.f32 %v10226_v17  ;;  %4906 = vrsqrt.f32 %v10387_v54  ;;  %v10415_v0 = vsub.f32 %v4000_v9, %v11060_v44  ;;  %v3814_v59 = vmul.f32 %v3812_v38, %v10140_v24 }
 0x364   : > { %v10417_v50 = vpop.eup %4898  ;;  %4908 = vrcp.f32 %v3776_v47  ;;  %vm3899_vm14 = vweird.f32 %v10249_v46  ;;  %v3906_v31 = vmul.f32 0.5, %v3905_v14  ;;  %v3843_v37 = vsub.f32 %v3813_v36, %v3841_v32 }
 0x365   : > { %v10421_v26 = vpop.eup %4900  ;;  %vm3872_vm0 = vweird.f32 %v10302_v15  ;;  %vm3881_vm2 = vweird.f32 %v10240_v49  ;;  %v4005_v61 = vmul.f32 %v10408_v10, %v10408_v10  ;;  %v4006_v18 = vmul.f32 %v10415_v0, %v10415_v0 }
 0x366   : > { %v10429_v52 = vpop.eup %4902  ;;  %v3844_v24 = vsub.f32 %v3814_v59, %v3842_v30  ;;  %v3869_v51 = vsub.f32 1.5, %v3868_v23  ;;  %v3879_v34 = vsub.f32 1.5, %v3878_v12  ;;  %v3897_v1 = vsub.f32 1.5, %v3896_v16  ;;  %v4071_v23 = vld [vmem:[#allocation2 + $0x6] sm:$0xff]  ;;  %v4072_v12 = vld [vmem:[#allocation2 + $0xe] sm:$0xff]  ;;  %vm10474_vm9 = vmor %vm3871_vm13, %vm3872_vm0 }
 0x367   : > { %vm3909_vm7 = vweird.f32 %v10267_v41  ;;  %v10432_v62 = vpop.eup %4904  ;;  %vm3882_vm6 = vweird.f32 %v10304_v48  ;;  %v3938_v22 = vmul.f32 %v10417_v50, %v10336_v60  ;;  %v10437_v4 = vadd.f32 0.81, %v4005_v61 }
 0x368   : > { %v10440_v3 = vsub.f32 %v4001_v28, %v11015_v33  ;;  %vm3900_vm8 = vweird.f32 %v10311_v29  ;;  %v3907_v42 = vsub.f32 1.5, %v3906_v31  ;;  %v3948_v35 = vmul.f32 %v10421_v26, %v10339_v43  ;;  %vm10510_vm15 = vmor %vm3881_vm2, %vm3882_vm6 }
 0x369   : > { %v10445_v11 = vadd.f32 0.81, %v4006_v18  ;;  %v10447_v21 = vpop.eup %4906  ;;  %v10449_v47 = vmul.f32 %v3843_v37, %v3843_v37  ;;  %vm3910_vm4 = vweird.f32 %v10325_v55  ;;  %v3966_v2 = vmul.f32 %v10432_v62, %v10385_v39  ;;  %vm10487_vm12 = vmor %vm3899_vm14, %vm3900_vm8 }
 0x36a   : > { %v10455_v63 = vsub.f32 %v4002_v19, %v10911_v58  ;;  %v10457_v14 = vpop.eup %4908  ;;  %v10459_v9 = vmul.f32 %v3844_v24, %v3844_v24  ;;  %v3870_v38 = vmul.f32 %v10302_v15, %v3869_v51  ;;  %v3880_v32 = vmul.f32 %v10304_v48, %v3879_v34  ;;  %vm10523_vm5 = vmor %vm3909_vm7, %vm3910_vm4 }
 0x36b   : > { %v3898_v30 = vmul.f32 %v10311_v29, %v3897_v1  ;;  %v3939_v16 = vmul.f32 %v10417_v50, %v3938_v22  ;;  %v3976_v36 = vmul.f32 %v10447_v21, %v10387_v54  ;;  %4910 = vrsqrt.f32 %v10437_v4 }
 0x36c   : > { %v4033_v59 = vmul.f32 %v10440_v3, %v10440_v3  ;;  %v3908_v28 = vmul.f32 %v10325_v55, %v3907_v42  ;;  %v3949_v37 = vmul.f32 %v10421_v26, %v3948_v35  ;;  %4912 = vrsqrt.f32 %v10445_v11 }
 0x36d   : > { %v4034_v61 = vmul.f32 %v10455_v63, %v10455_v63  ;;  %v3967_v17 = vmul.f32 %v10432_v62, %v3966_v2  ;;  %v10495_v51 = vsub.f32 %v4071_v23, %v11010_v45  ;;  %v10498_v34 = vsub.f32 %v4072_v12, %v11060_v44 }
 0x36e   : > { %v10492_v24 = vadd.f32 0.81, %v4033_v59  ;;  %v10501_v1 = vadd.f32 0.1, %v10449_v47  ;;  %v3874_v46 = vsel %vm10474_vm9, %v10302_v15, %v3870_v38  ;;  %v3902_v45 = vsel %vm10487_vm12, %v10311_v29, %v3898_v30 }
 0x36f   : > { %v10517_v44 = vadd.f32 0.81, %v4034_v61  ;;  %v3977_v49 = vmul.f32 %v10447_v21, %v3976_v36  ;;  %v4077_v22 = vmul.f32 %v10495_v51, %v10495_v51  ;;  %v4078_v29 = vmul.f32 %v10498_v34, %v10498_v34  ;;  %v4074_v61 = vld [vmem:[#allocation3 + $0xe] sm:$0xff] }
 0x370   : > { %4914 = vrsqrt.f32 %v10492_v24  ;;  %v3884_v42 = vsel %vm10510_vm15, %v10304_v48, %v3880_v32  ;;  %v3912_v41 = vsel %vm10523_vm5, %v10325_v55, %v3908_v28  ;;  %v3940_v35 = vmul.f32 0.5, %v3939_v16 }
 0x371   : > { %4916 = vrsqrt.f32 %v10517_v44  ;;  %v10540_v2 = vpop.eup %4910  ;;  %v3913_v38 = vmul.f32 %v3902_v45, %v10204_v6  ;;  %vm3943_vm10 = vweird.f32 %v10336_v60  ;;  %v3950_v30 = vmul.f32 0.5, %v3949_v37  ;;  %v4073_v37 = vld [vmem:[#allocation3 + $0x6] sm:$0xff] }
 0x372   : > { %v3968_v23 = vmul.f32 0.5, %v3967_v17  ;;  %v10544_v12 = vadd.f32 0.81, %v4077_v22  ;;  %v10546_v36 = vpop.eup %4912  ;;  %v3885_v48 = vmul.f32 %v3874_v46, %v10187_v8  ;;  %vm3944_vm3 = vweird.f32 %v10417_v50 }
 0x373   : > { %vm3953_vm11 = vweird.f32 %v10339_v43  ;;  %v4010_v55 = vmul.f32 %v10540_v2, %v10437_v4  ;;  %v10553_v32 = vadd.f32 0.81, %v4078_v29  ;;  %v3886_v6 = vmul.f32 %v3884_v42, %v10192_v40  ;;  %vm10594_vm2 = vmor %vm3943_vm10, %vm3944_vm3 }
 0x374   : > { %vm3954_vm1 = vweird.f32 %v10421_v26  ;;  %v3978_v16 = vmul.f32 0.5, %v3977_v49  ;;  %v4020_v59 = vmul.f32 %v10546_v36, %v10445_v11  ;;  %v3914_v31 = vmul.f32 %v3912_v41, %v10218_v53 }
 0x375   : > { %v3941_v8 = vsub.f32 1.5, %v3940_v35  ;;  %v4011_v28 = vmul.f32 %v10540_v2, %v4010_v55  ;;  %4918 = vrsqrt.f32 %v10544_v12  ;;  %v3915_v17 = vsub.f32 %v3885_v48, %v3913_v38  ;;  %vm10603_vm6 = vmor %vm3953_vm11, %vm3954_vm1 }
 0x376   : > { %v10562_v18 = vpop.eup %4914  ;;  %v3951_v46 = vsub.f32 1.5, %v3950_v30  ;;  %v3969_v40 = vsub.f32 1.5, %v3968_v23  ;;  %vm3971_vm13 = vweird.f32 %v10385_v39  ;;  %vm3981_vm14 = vweird.f32 %v10387_v54 }
 0x377   : > { %v10565_v19 = vpop.eup %4916  ;;  %v4021_v53 = vmul.f32 %v10546_v36, %v4020_v59  ;;  %v4038_v45 = vmul.f32 %v10562_v18, %v10492_v24  ;;  %4920 = vrsqrt.f32 %v10553_v32  ;;  %v3979_v15 = vsub.f32 1.5, %v3978_v16 }
 0x378   : > { %v4048_v49 = vmul.f32 %v10565_v19, %v10517_v44  ;;  %v10575_v22 = vsub.f32 %v4073_v37, %v11015_v33  ;;  %v10578_v29 = vsub.f32 %v4074_v61, %v10911_v58  ;;  %v3916_v42 = vsub.f32 %v3886_v6, %v3914_v31 }
 0x379   : > { %v3942_v41 = vmul.f32 %v10417_v50, %v3941_v8  ;;  %v4012_v35 = vmul.f32 0.5, %v4011_v28  ;;  %v4039_v38 = vmul.f32 %v10562_v18, %v4038_v45  ;;  %v3952_v30 = vmul.f32 %v10421_v26, %v3951_v46 }
 0x37a   : > { %v3970_v23 = vmul.f32 %v10432_v62, %v3969_v40  ;;  %vm3972_vm0 = vweird.f32 %v10432_v62  ;;  %v4049_v48 = vmul.f32 %v10565_v19, %v4048_v49  ;;  %v10588_v33 = vmul.f32 %v3915_v17, %v3915_v17 }
 0x37b   : > { %v10586_v55 = vpop.eup %4918  ;;  %vm3982_vm7 = vweird.f32 %v10447_v21  ;;  %v4022_v6 = vmul.f32 0.5, %v4021_v53  ;;  %v4040_v16 = vmul.f32 0.5, %v4039_v38  ;;  %v3980_v31 = vmul.f32 %v10447_v21, %v3979_v15  ;;  %vm10621_vm8 = vmor %vm3971_vm13, %vm3972_vm0 }
 0x37c   : > { %v4050_v8 = vmul.f32 0.5, %v4049_v48  ;;  %v4105_v60 = vmul.f32 %v10575_v22, %v10575_v22  ;;  %v4106_v28 = vmul.f32 %v10578_v29, %v10578_v29  ;;  %v3946_v61 = vsel %vm10594_vm2, %v10417_v50, %v3942_v41  ;;  %vm10638_vm9 = vmor %vm3981_vm14, %vm3982_vm7 }
 0x37d   : > { %v10612_v37 = vpop.eup %4920  ;;  %v4013_v17 = vsub.f32 1.5, %v4012_v35  ;;  %v4041_v46 = vsub.f32 1.5, %v4040_v16  ;;  %v4082_v40 = vmul.f32 %v10586_v55, %v10544_v12  ;;  %v3956_v53 = vsel %vm10603_vm6, %v10421_v26, %v3952_v30 }
 0x37e   : > { %v3974_v50 = vsel %vm10621_vm8, %v10432_v62, %v3970_v23  ;;  %vm4043_vm4 = vweird.f32 %v10492_v24  ;;  %v4051_v39 = vsub.f32 1.5, %v4050_v8  ;;  %v4023_v15 = vsub.f32 1.5, %v4022_v6 }
 0x37f   : > { %v4042_v49 = vmul.f32 %v10562_v18, %v4041_v46  ;;  %vm4044_vm12 = vweird.f32 %v10562_v18  ;;  %v4092_v26 = vmul.f32 %v10612_v37, %v10553_v32  ;;  %v3984_v62 = vsel %vm10638_vm9, %v10447_v21, %v3980_v31 }
 0x380   : > { %vm4016_vm15 = vweird.f32 %v10540_v2  ;;  %v10650_v41 = vadd.f32 0.81, %v4105_v60  ;;  %v10652_v54 = vadd.f32 0.81, %v4106_v28  ;;  %v4014_v35 = vmul.f32 %v10540_v2, %v4013_v17  ;;  %vm10662_vm3 = vmor %vm4043_vm4, %vm4044_vm12 }
 0x381   : > { %v4052_v38 = vmul.f32 %v10565_v19, %v4051_v39  ;;  %vm4054_vm5 = vweird.f32 %v10565_v19  ;;  %v4083_v30 = vmul.f32 %v10586_v55, %v4082_v40  ;;  %v3985_v23 = vmul.f32 %v3974_v50, %v10317_v56 }
 0x382   : > { %vm4015_vm10 = vweird.f32 %v10437_v4  ;;  %vm4053_vm11 = vweird.f32 %v10517_v44  ;;  %4922 = vrsqrt.f32 %v10650_v41  ;;  %v4024_v58 = vmul.f32 %v10546_v36, %v4023_v15 }
 0x383   : > { %vm10668_vm1 = vmor %vm4015_vm10, %vm4016_vm15  ;;  %vm4026_vm13 = vweird.f32 %v10546_v36  ;;  %v4046_v56 = vsel %vm10662_vm3, %v10562_v18, %v4042_v49  ;;  %v4093_v4 = vmul.f32 %v10612_v37, %v4092_v26  ;;  %v10678_v24 = vmul.f32 %v3916_v42, %v3916_v42 }
 0x384   : > { %v3957_v44 = vmul.f32 %v3946_v61, %v10292_v13  ;;  %v3986_v6 = vmul.f32 %v3984_v62, %v10320_v5  ;;  %vm10684_vm14 = vmor %vm4053_vm11, %vm4054_vm5  ;;  %4924 = vrsqrt.f32 %v10652_v54  ;;  %v4018_v18 = vsel %vm10668_vm1, %v10540_v2, %v4014_v35 }
 0x385   : > { %vm4025_vm0 = vweird.f32 %v10445_v11  ;;  %v4056_v13 = vsel %vm10684_vm14, %v10565_v19, %v4052_v38  ;;  %v4084_v42 = vmul.f32 0.5, %v4083_v30  ;;  %v3848_v5 = vadd.f32 0.1, %v10459_v9 }
 0x386   : > { %v3958_v59 = vmul.f32 %v3956_v53, %v10299_v7  ;;  %v3987_v31 = vsub.f32 %v3957_v44, %v3985_v23  ;;  %vm10700_vm2 = vmor %vm4025_vm0, %vm4026_vm13  ;;  %v4057_v2 = vmul.f32 %v4046_v56, %v10440_v3  ;;  %v3779_v11 = vmul.f32 %v10429_v52, %v10322_v20 }
 0x387   : > { %v3919_v60 = vadd.f32 0.1, %v10588_v33  ;;  %v4028_v19 = vsel %vm10700_vm2, %v10546_v36, %v4024_v58  ;;  %v4094_v28 = vmul.f32 0.5, %v4093_v4  ;;  %v3920_v61 = vadd.f32 0.1, %v10678_v24 }
 0x388   : > { %v4923_v7 = vpop.eup %4922  ;;  %v3988_v43 = vsub.f32 %v3958_v59, %v3986_v6  ;;  %v4029_v17 = vmul.f32 %v4018_v18, %v10408_v10  ;;  %v4058_v46 = vmul.f32 %v4056_v13, %v10455_v63  ;;  %v3780_v3 = vmul.f32 %v10457_v14, %v10345_v27 }
 0x389   : > { %4926 = vrcp.f32 %v10501_v1  ;;  %v4085_v20 = vsub.f32 1.5, %v4084_v42  ;;  %v4110_v52 = vmul.f32 %v4923_v7, %v10650_v41  ;;  %v10718_v36 = vmul.f32 %v3987_v31, %v3987_v31 }
 0x38a   : > { %v4925_v40 = vpop.eup %4924  ;;  %4928 = vrcp.f32 %v3848_v5  ;;  %v4030_v53 = vmul.f32 %v4028_v19, %v10415_v0  ;;  %v4059_v50 = vsub.f32 %v4029_v17, %v4057_v2  ;;  %v4095_v39 = vsub.f32 1.5, %v4094_v28 }
 0x38b   : > { %4930 = vrcp.f32 %v3919_v60  ;;  %v4111_v10 = vmul.f32 %v4923_v7, %v4110_v52  ;;  %v4120_v63 = vmul.f32 %v4925_v40, %v10652_v54  ;;  %v3781_v45 = vadd.f32 %v3779_v11, %v10189_v25 }
 0x38c   : > { %4932 = vrcp.f32 %v3920_v61  ;;  %v10723_v27 = vmul.f32 %v3988_v43, %v3988_v43  ;;  %v4060_v14 = vsub.f32 %v4030_v53, %v4058_v46  ;;  %v4086_v1 = vmul.f32 %v10586_v55, %v4085_v20 }
 0x38d   : > { %vm4088_vm7 = vweird.f32 %v10586_v55  ;;  %v4112_v15 = vmul.f32 0.5, %v4111_v10  ;;  %v4121_v49 = vmul.f32 %v4925_v40, %v4120_v63  ;;  %v3991_v0 = vadd.f32 0.1, %v10718_v36 }
 0x38e   : > { %v10728_v26 = vmul.f32 %v4059_v50, %v4059_v50  ;;  %vm4087_vm6 = vweird.f32 %v10544_v12  ;;  %vm4098_vm8 = vweird.f32 %v10612_v37  ;;  %v4096_v25 = vmul.f32 %v10612_v37, %v4095_v39 }
 0x38f   : > { %v4927_v62 = vpop.eup %4926  ;;  %v4113_v35 = vsub.f32 1.5, %v4112_v15  ;;  %vm4116_vm4 = vweird.f32 %v4923_v7  ;;  %v4122_v38 = vmul.f32 0.5, %v4121_v49  ;;  %v3992_v23 = vadd.f32 0.1, %v10723_v27  ;;  %vm10736_vm9 = vmor %vm4087_vm6, %vm4088_vm7 }
 0x390   : > { %v4929_v30 = vpop.eup %4928  ;;  %v4062_v21 = vmul.f32 %v4060_v14, %v4060_v14  ;;  %vm4097_vm12 = vweird.f32 %v10553_v32  ;;  %vm4115_vm15 = vweird.f32 %v10650_v41  ;;  %v4090_v58 = vsel %vm10736_vm9, %v10586_v55, %v4086_v1 }
 0x391   : > { %v4931_v12 = vpop.eup %4930  ;;  %vm10745_vm5 = vmor %vm4097_vm12, %vm4098_vm8  ;;  %v4114_v4 = vmul.f32 %v4923_v7, %v4113_v35  ;;  %v4123_v44 = vsub.f32 1.5, %v4122_v38  ;;  %vm4126_vm10 = vweird.f32 %v4925_v40  ;;  %v3782_v16 = vadd.f32 %v3780_v3, %v10197_v57 }
 0x392   : > { %v4933_v6 = vpop.eup %4932  ;;  %v3851_v18 = vmul.f32 %v4927_v62, %v10449_v47  ;;  %4934 = vrcp.f32 %v3991_v0  ;;  %v4063_v32 = vadd.f32 0.1, %v10728_v26  ;;  %vm4117_vm3 = vmor %vm4115_vm15, %vm4116_vm4  ;;  %v4100_v55 = vsel %vm10745_vm5, %v10612_v37, %v4096_v25 }
 0x393   : > { %v4118_v41 = vsel %vm4117_vm3, %v4923_v7, %v4114_v4  ;;  %v4124_v13 = vmul.f32 %v4925_v40, %v4123_v44  ;;  %vm4125_vm11 = vweird.f32 %v10652_v54  ;;  %4936 = vrcp.f32 %v3992_v23 }
 0x394   : > { %v4064_v42 = vadd.f32 0.1, %v4062_v21  ;;  %v4101_v5 = vmul.f32 %v4090_v58, %v10495_v51  ;;  %vm4127_vm1 = vmor %vm4125_vm11, %vm4126_vm10  ;;  %v4129_v57 = vmul.f32 %v4118_v41, %v10575_v22  ;;  %v3852_v47 = vmul.f32 %v4929_v30, %v10459_v9 }
 0x395   : > { %v3853_v59 = vadd.f32 %v3851_v18, %v3781_v45  ;;  %v4128_v31 = vsel %vm4127_vm1, %v4925_v40, %v4124_v13  ;;  %4938 = vrcp.f32 %v4063_v32  ;;  %v4102_v8 = vmul.f32 %v4100_v55, %v10498_v34 }
 0x396   : > { %v4130_v37 = vmul.f32 %v4128_v31, %v10578_v29  ;;  %v4131_v2 = vsub.f32 %v4101_v5, %v4129_v57  ;;  %v3854_v11 = vadd.f32 %v3852_v47, %v3782_v16  ;;  %v3923_v54 = vmul.f32 %v4931_v12, %v10588_v33 }
 0x397   : > { %4940 = vrcp.f32 %v4064_v42  ;;  %v4145_v28 = vlaneseq  ;;  %v3924_v22 = vmul.f32 %v4933_v6, %v10678_v24 }
 0x398   : > { %v4935_v60 = vpop.eup %4934  ;;  %v4132_v19 = vsub.f32 %v4102_v8, %v4130_v37  ;;  %v4133_v51 = vmul.f32 %v4131_v2, %v4131_v2  ;;  %v3925_v7 = vadd.f32 %v3923_v54, %v3853_v59 }
 0x399   : > { %v4937_v9 = vpop.eup %4936  ;;  %v3926_v17 = vadd.f32 %v3924_v22, %v3854_v11  ;;  %v3995_v34 = vmul.f32 %v4935_v60, %v10718_v36  ;;  %v4146_v3 = vshrl.u32 %v4145_v28, 7  ;;  %v4152_v52 = vand.u32 127, %v4145_v28 }
 0x39a   : > { %v4134_v61 = vmul.f32 %v4132_v19, %v4132_v19  ;;  %v4135_v43 = vadd.f32 0.1, %v4133_v51  ;;  %v3996_v33 = vmul.f32 %v4937_v9, %v10723_v27 }
 0x39b   : > { %v4939_v46 = vpop.eup %4938  ;;  %v3997_v20 = vadd.f32 %v3995_v34, %v3925_v7  ;;  %v4147_v53 = vadd.s32 8, %v4146_v3  ;;  %vm4153_vm13 = vcmp.ge.s32.totalorder %v4146_v3, 1  ;;  %vm4159_vm14 = vcmp.ge.s32.totalorder %v4152_v52, 1 }
 0x39c   : > { %v4136_v29 = vadd.f32 0.1, %v4134_v61  ;;  %4942 = vrcp.f32 %v4135_v43  ;;  %v3998_v50 = vadd.f32 %v3996_v33, %v3926_v17  ;;  %v4067_v24 = vmul.f32 %v4939_v46, %v10728_v26  ;;  %vm4160_vm2 = vmand %vm4153_vm13, %vm4159_vm14 }
 0x39d   : > { %v4941_v40 = vpop.eup %4940  ;;  %vm4156_vm0 = vcmp.le.s32.totalorder %v4147_v53, 14  ;;  %vm4162_vm7 = vcmp.le.s32.totalorder %v4152_v52, 14 }
 0x39e   : > { %4944 = vrcp.f32 %v4136_v29  ;;  %v4068_v39 = vmul.f32 %v4941_v40, %v4062_v21  ;;  %v4069_v10 = vadd.f32 %v4067_v24, %v3997_v20  ;;  %vm4161_vm6 = vmand %vm4156_vm0, %vm4159_vm14 }
 0x39f   : > { %vm4163_vm8 = vmand %vm4160_vm2, %vm4162_vm7 }
 0x3a0   : > { %v4070_v36 = vadd.f32 %v4068_v39, %v3998_v50  ;;  %vm4164_vm4 = vmand %vm4161_vm6, %vm4162_vm7 }
 0x3a2   : > { %v4943_v63 = vpop.eup %4942 }
 0x3a3   : > { %v4139_v45 = vmul.f32 %v4943_v63, %v4133_v51 }
 0x3a4   : > { %v4945_v14 = vpop.eup %4944 }
 0x3a5   : > { %v4140_v27 = vmul.f32 %v4945_v14, %v4134_v61  ;;  %v4141_v1 = vadd.f32 %v4139_v45, %v4069_v10 }
 0x3a7   : > { %v4142_v15 = vadd.f32 %v4140_v27, %v4070_v36  ;;  %v4143_v49 = vmul.f32 0.020408163, %v4141_v1 }
 0x3a9   : > { %v4144_v0 = vmul.f32 0.020408163, %v4142_v15  ;;  %v4165_v26 = vsel %vm4163_vm8, %v4143_v49, 0.0 }
 0x3ab   : > { %v4166_v62 = vsel %vm4164_vm4, %v4144_v0, 0.0 }
 0x3ac   : > { %v4167_v25 = vadd.f32 %v4166_v62, %v4165_v26 }
 0x3ae   : > { %4168 = vadd.xlane.f32.xlu2 %v4167_v25 }
 0x421   : > { %v4169_v35 = vpop.xlane.xlu2 %4168 }
 0x422   : > { %v4170_v38 = vrot.slane %v4169_v35, 4 }
 0x424   : > { %v4171_v30 = vadd.f32 %v4170_v38, %v4169_v35 }
 0x426   : > { %v4172_v23 = vrot.slane %v4171_v30, 2 }
 0x428   : > { %v4173_v21 = vadd.f32 %v4172_v23, %v4171_v30 }
 0x42a   : > { %v4174_v48 = vrot.slane %v4173_v21, 1 }
 0x42c   : > { %v4175_v12 = vadd.f32 %v4174_v48, %v4173_v21 }
 0x42e   : > { %4307 = vpush %v4175_v12 }
 0x45f   : > { %s4308_s28 = spop %4307 }
 0x460   : > { %v4177_v58 = vstv %s4308_s28 }
 0x461   : > { %4178 = vst [vmem:[%s185_s25] sm:$0xff] %v4177_v58 }
 0x462   : > { %4973 = shalt.err (!%p4970_p5)
}
 0x463   : > { %4309 = dma.vmem_to_hbm [thread:$0]  (%p5087_p4), %s4194_s26, 128, %s4196_s27, %s4180_s29  }
 0x464 PF: > { %p4315_p6 = scmp.ge.s32.totalorder %s5024_s14, 2  ;;  %s4207_s8 = sand.u32 1, %s5004_s9  }
 0x465   : > { %s4208_s15 = scalar_lea.sflag [#allocation5], %s4207_s8 }
 0x466   : > { %p4312_p7 = pnand %p4315_p6, %p5094_p8 }
 0x468   : > { %p4313_p9 = pneg %p4312_p7 }
 0x46a   : > { %4999 = dma.done.wait (%p4313_p9), %s4208_s15, 128  }
 0x46b   : > { %5001 = vsyncadd (%p4313_p9), %s4208_s15, 4294967168  ;;  %s15_s14 = sadd.s32 1, %s5024_s14   ;;  %s11247_s9 = smov %s5008_s10 }
 0x46c   : > { %p12_p10 = scmp.ge.s32.totalorder %s15_s14, 4   ;;  %s11248_s10 = smov %s5012_s11 }
 0x46d   : > { %s11249_s11 = smov %s5100_s22  ;;  %s11250_s12 = smov %s5020_s13 }
 0x46e   : > { %s11251_s13 = smov %s11253_s17  ;;  %14 = sbr.rel (!%p12_p10) target bundleno = 4 (0x4), region = 66 }
 0x473   :  { %4214 = vsyncpa [#allocation5], 1 }
 0x474   :  { %4216 = vsyncpa [#allocation5 + $0x1], 1 }

</bundles_post_ra>
